<compile_context>
chip_gen: v7x
topology: tpu7x:2x2x1
jax: 0.10.0
libtpu: 0.0.40
codegen_flags: <defaults>
</compile_context>

<pallas_src>
import functools

import jax
import jax.numpy as jnp
from jax.experimental import pallas as pl
from jax.experimental.pallas import tpu as pltpu


# -----------------------------------------------------------------------------
# In-kernel helper: 3x3x3 conv (stride 1, padding 1) + bias + ReLU over a
# zero-padded, lane-flattened VMEM buffer.
# -----------------------------------------------------------------------------
def _conv3x3x3_relu(src_ref, w_ref, b_ref, mask_ref, *, S, pad, hw, W2):
    """src_ref : (Cin, pad + S + pad) VMEM ref, activations at lanes
                 [pad, pad+S), zeros elsewhere (the zero tails absorb the
                 d-direction taps).
       w_ref   : (27, Cout, Cin) VMEM ref; tap k = kd*9 + kh*3 + kw.
       b_ref   : (Cout, 1) VMEM ref.
       mask_ref: (9, S) f32 VMEM ref; row j = kh*3 + kw -> 1.0 where the
                 h/w-shifted neighbour is in-bounds, else 0.0.
       Returns ReLU(conv3x3x3(src) + b) as a (Cout, S) f32 value."""
    cout = w_ref.shape[1]
    acc = jnp.zeros((cout, S), jnp.float32)
    for oh in (-1, 0, 1):            # tap order == (kd, kh, kw) of torch weight
        for ow in (-1, 0, 1):
            # Sum the three d-taps first (d wrap-around is handled by the zero
            # halo at the ends of the flat buffer), then apply the shared h/w
            # boundary mask ONCE to the narrow (Cout, S) partial instead of
            # per-tap on the wider (Cin, S) taps.
            parts = []
            for od in (-1, 0, 1):
                off = od * hw + oh * W2 + ow
                k = (od + 1) * 9 + (oh + 1) * 3 + (ow + 1)
                # shifted neighbour: a static lane window of the padded buffer
                tap = src_ref[:, pad + off: pad + off + S]
                parts.append(jnp.dot(w_ref[k], tap,
                                     preferred_element_type=jnp.float32))
            partial = parts[0] + parts[1] + parts[2]
            if oh == 0 and ow == 0:
                acc = acc + partial          # centre column: always valid
            else:
                j = (oh + 1) * 3 + (ow + 1)
                acc = acc + partial * mask_ref[j:j + 1, :]
    return jnp.maximum(acc + b_ref[...], 0.0)


# -----------------------------------------------------------------------------
# Fused UpBlock kernel: upsample + 1x1 proj + concat + conv1+ReLU + conv2+ReLU.
# One grid step per batch element; everything stays in VMEM.
# -----------------------------------------------------------------------------
def _upblock_kernel(x1_ref, x0_ref, u_ref, mask_ref, wup_ref, bup_ref,
                    w1_ref, b1_ref, w2_ref, b2_ref, o_ref,
                    cat_ref, h_ref, *, H2, W2, PAD):
    f_out, f_in = wup_ref.shape
    S = o_ref.shape[-1]
    hw = H2 * W2

    # Zero only the halo lanes of the scratch buffers (the live lanes are
    # fully overwritten below).  Done every iteration so the result is correct
    # on every core under megacore grid partitioning.
    cat_ref[:, :PAD] = jnp.zeros((f_in, PAD), jnp.float32)
    cat_ref[:, PAD + S:] = jnp.zeros((f_in, PAD), jnp.float32)
    h_ref[:, :PAD] = jnp.zeros((f_out, PAD), jnp.float32)
    h_ref[:, PAD + S:] = jnp.zeros((f_out, PAD), jnp.float32)

    # --- up path: 1x1x1 conv at LOW resolution (commutes with nearest
    #     upsample -> 4x fewer FLOPs), then the (1,2,2) nearest upsample as a
    #     one-hot MXU matmul.
    proj = jnp.dot(wup_ref[...], x1_ref[...],
                   preferred_element_type=jnp.float32) + bup_ref[...]
    up_hi = jnp.dot(proj, u_ref[...], preferred_element_type=jnp.float32)

    # --- channel concat in VMEM (no HBM round trip, no jnp.concatenate)
    cat_ref[0:f_out, PAD:PAD + S] = up_hi
    cat_ref[f_out:f_in, PAD:PAD + S] = x0_ref[...].astype(jnp.float32)

    # --- ConvBlock: Conv3x3x3 + ReLU, Conv3x3x3 + ReLU, fully fused;
    #     the intermediate lives only in VMEM scratch.
    h1 = _conv3x3x3_relu(cat_ref, w1_ref, b1_ref, mask_ref,
                         S=S, pad=PAD, hw=hw, W2=W2)
    h_ref[:, PAD:PAD + S] = h1
    out = _conv3x3x3_relu(h_ref, w2_ref, b2_ref, mask_ref,
                          S=S, pad=PAD, hw=hw, W2=W2)
    o_ref[...] = out.astype(o_ref.dtype)
    # TODO(synk): Dropout3d / InstanceNorm3d branches of ConvBlock are disabled
    # in this configuration (dropout=0, batchnorm=False), matching the module.


# -----------------------------------------------------------------------------
# Wrapper-side constants / weight repacking (tiny; constant-folded under jit).
# -----------------------------------------------------------------------------
def _upsample_matrix(D, H, W):
    H2, W2 = 2 * H, 2 * W
    s_lo, s_hi = D * H * W, D * H2 * W2
    dd, hh, ww = jnp.meshgrid(jnp.arange(D), jnp.arange(H2), jnp.arange(W2),
                              indexing="ij")
    lo = ((dd * H + hh // 2) * W + ww // 2).reshape(s_hi)
    return (jnp.arange(s_lo)[:, None] == lo[None, :]).astype(jnp.float32)


def _boundary_masks(D, H, W):
    # (9, s_hi) f32: row (kh*3 + kw) is 1.0 where the (kh-1, kw-1)-shifted
    # neighbour stays inside the H2 x W2 plane, else 0.0.
    H2, W2 = 2 * H, 2 * W
    s_hi = D * H2 * W2
    _, hh, ww = jnp.meshgrid(jnp.arange(D), jnp.arange(H2), jnp.arange(W2),
                             indexing="ij")
    hh = hh.reshape(s_hi)
    ww = ww.reshape(s_hi)
    rows = []
    for oh in (-1, 0, 1):
        for ow in (-1, 0, 1):
            ok = ((hh + oh >= 0) & (hh + oh < H2)
                  & (ww + ow >= 0) & (ww + ow < W2))
            rows.append(ok)
    return jnp.stack(rows).astype(jnp.float32)


def _tap_weights(w):
    # torch layout (Cout, Cin, 3, 3, 3) -> (27, Cout, Cin); tap k = kd*9+kh*3+kw
    cout, cin = w.shape[0], w.shape[1]
    return jnp.transpose(w.reshape(cout, cin, 27), (2, 0, 1))


@jax.jit
def up_block_forward(x1, x0, params):
    # x1: (N, f_in, D, H, W)    x0: (N, f_in - f_out, D, 2H, 2W)   [NCDHW]
    N, f_in, D, H, W = x1.shape
    f_out = params["up_w"].shape[0]
    H2, W2 = 2 * H, 2 * W
    s_lo, s_hi = D * H * W, D * H2 * W2
    # pad must cover the largest |tap offset| (hw + W2 + 1); keep it lane aligned
    pad = ((H2 * W2 + W2 + 1 + 127) // 128) * 128

    # channels-first + flattened spatial: pure reshapes, no transposes.
    x1r = x1.reshape(N, f_in, s_lo)
    x0r = x0.reshape(N, f_in - f_out, s_hi)

    u = _upsample_matrix(D, H, W)
    masks = _boundary_masks(D, H, W)
    w1t = _tap_weights(params["c1_w"])
    w2t = _tap_weights(params["c2_w"])

    kern = functools.partial(_upblock_kernel, H2=H2, W2=W2, PAD=pad)
    out = pl.pallas_call(
        kern,
        out_shape=jax.ShapeDtypeStruct((N, f_out, s_hi), x1.dtype),
        grid=(N,),
        in_specs=[
            pl.BlockSpec((None, f_in, s_lo), lambda n: (n, 0, 0)),
            pl.BlockSpec((None, f_in - f_out, s_hi), lambda n: (n, 0, 0)),
            pl.BlockSpec((s_lo, s_hi), lambda n: (0, 0)),
            pl.BlockSpec((9, s_hi), lambda n: (0, 0)),
            pl.BlockSpec((f_out, f_in), lambda n: (0, 0)),
            pl.BlockSpec((f_out, 1), lambda n: (0, 0)),
            pl.BlockSpec((27, f_out, f_in), lambda n: (0, 0, 0)),
            pl.BlockSpec((f_out, 1), lambda n: (0, 0)),
            pl.BlockSpec((27, f_out, f_out), lambda n: (0, 0, 0)),
            pl.BlockSpec((f_out, 1), lambda n: (0, 0)),
        ],
        out_specs=pl.BlockSpec((None, f_out, s_hi), lambda n: (n, 0, 0)),
        scratch_shapes=[
            pltpu.VMEM((f_in, 2 * pad + s_hi), jnp.float32),   # concat buffer
            pltpu.VMEM((f_out, 2 * pad + s_hi), jnp.float32),  # conv1 output
        ],
        compiler_params=pltpu.CompilerParams(
            dimension_semantics=("parallel",)),
    )(x1r, x0r, u, masks,
      params["up_w"], params["up_b"].reshape(f_out, 1),
      w1t, params["c1_b"].reshape(f_out, 1),
      w2t, params["c2_b"].reshape(f_out, 1))

    return out.reshape(N, f_out, D, H2, W2)


# -----------------------------------------------------------------------------
# Pure-JAX reference (mirrors the PyTorch UpBlock for this configuration).
# -----------------------------------------------------------------------------
def up_block_reference(x1, x0, params):
    up = jnp.repeat(jnp.repeat(x1, 2, axis=3), 2, axis=4)        # nearest (1,2,2)
    up = (jnp.einsum("oc,ncdhw->nodhw", params["up_w"], up)
          + params["up_b"][None, :, None, None, None])
    cat = jnp.concatenate([up, x0], axis=1)

    def conv(x, w, b):
        y = jax.lax.conv_general_dilated(
            x, w, window_strides=(1, 1, 1),
            padding=((1, 1), (1, 1), (1, 1)),
            dimension_numbers=("NCDHW", "OIDHW", "NCDHW"))
        return jnp.maximum(y + b[None, :, None, None, None], 0.0)

    h = conv(cat, params["c1_w"], params["c1_b"])
    h = conv(h, params["c2_w"], params["c2_b"])
    return h


def init_params(key, f_in, f_out):
    ks = jax.random.split(key, 6)

    def u(k, shape, fan_in):
        bound = 1.0 / jnp.sqrt(float(fan_in))
        return jax.random.uniform(k, shape, jnp.float32, -bound, bound)

    return {
        # Conv3d(f_in, f_out, 1) weight (kernel dims squeezed) / bias
        "up_w": u(ks[0], (f_out, f_in), f_in),
        "up_b": u(ks[1], (f_out,), f_in),
        # Conv3d(f_in, f_out, 3) weight in torch OIDHW layout / bias
        "c1_w": u(ks[2], (f_out, f_in, 3, 3, 3), f_in * 27),
        "c1_b": u(ks[3], (f_out,), f_in * 27),
        # Conv3d(f_out, f_out, 3)
        "c2_w": u(ks[4], (f_out, f_out, 3, 3, 3), f_out * 27),
        "c2_b": u(ks[5], (f_out,), f_out * 27),
    }


if __name__ == "__main__":
    key = jax.random.PRNGKey(0)
    k_p, k_x1, k_x0 = jax.random.split(key, 3)

    N, f_in, f_out = 2, 8, 4
    D, H, W = 4, 8, 8
    # x1: low-res features (NCDHW); x0: skip connection at 2x spatial resolution
    x1 = jax.random.normal(k_x1, (N, f_in, D, H, W), jnp.float32)
    x0 = jax.random.normal(k_x0, (N, f_in - f_out, D, 2 * H, 2 * W), jnp.float32)
    params = init_params(k_p, f_in, f_out)

    out = jax.block_until_ready(up_block_forward(x1, x0, params))
    ref = jax.block_until_ready(up_block_reference(x1, x0, params))

    assert out.shape == (N, f_out, D, 2 * H, 2 * W), out.shape
    max_err = float(jnp.max(jnp.abs(out - ref)))
    assert jnp.allclose(out, ref, atol=1e-4, rtol=1e-4), f"mismatch vs reference: {max_err}"
    print("KERNEL_OK")
</pallas_src>

<mosaic_0001>
module attributes {stable_mosaic.version = 11 : i64} {
  func.func @_upblock_kernel(%arg0: i32, %arg1: memref<1x8x256xf32, #tpu.memory_space<vmem>>, %arg2: memref<1x4x1024xf32, #tpu.memory_space<vmem>>, %arg3: memref<256x1024xf32, #tpu.memory_space<vmem>>, %arg4: memref<9x1024xf32, #tpu.memory_space<vmem>>, %arg5: memref<4x8xf32, #tpu.memory_space<vmem>>, %arg6: memref<4x1xf32, #tpu.memory_space<vmem>>, %arg7: memref<27x4x8xf32, #tpu.memory_space<vmem>>, %arg8: memref<4x1xf32, #tpu.memory_space<vmem>>, %arg9: memref<27x4x4xf32, #tpu.memory_space<vmem>>, %arg10: memref<4x1xf32, #tpu.memory_space<vmem>>, %arg11: memref<1x4x1024xf32, #tpu.memory_space<vmem>>, %arg12: memref<8x1792xf32, #tpu.memory_space<vmem>>, %arg13: memref<4x1792xf32, #tpu.memory_space<vmem>>) attributes {dimension_semantics = [#tpu.dimension_semantics<parallel>], iteration_bounds = array<i64: 2>, scalar_prefetch = 0 : i64, scratch_operands = 2 : i64, tpu.core_type = #tpu.core_type<tc>, window_params = [{transform_indices = @transform_0, window_bounds = array<i64: 1, 8, 256>}, {transform_indices = @transform_1, window_bounds = array<i64: 1, 4, 1024>}, {pipeline_mode = #tpu.pipeline_mode<synchronous>, transform_indices = @transform_2, window_bounds = array<i64: 256, 1024>}, {pipeline_mode = #tpu.pipeline_mode<synchronous>, transform_indices = @transform_3, window_bounds = array<i64: 9, 1024>}, {pipeline_mode = #tpu.pipeline_mode<synchronous>, transform_indices = @transform_4, window_bounds = array<i64: 4, 8>}, {pipeline_mode = #tpu.pipeline_mode<synchronous>, transform_indices = @transform_5, window_bounds = array<i64: 4, 1>}, {pipeline_mode = #tpu.pipeline_mode<synchronous>, transform_indices = @transform_6, window_bounds = array<i64: 27, 4, 8>}, {pipeline_mode = #tpu.pipeline_mode<synchronous>, transform_indices = @transform_7, window_bounds = array<i64: 4, 1>}, {pipeline_mode = #tpu.pipeline_mode<synchronous>, transform_indices = @transform_8, window_bounds = array<i64: 27, 4, 4>}, {pipeline_mode = #tpu.pipeline_mode<synchronous>, transform_indices = @transform_9, window_bounds = array<i64: 4, 1>}, {transform_indices = @transform_10, window_bounds = array<i64: 1, 4, 1024>}]} {
    %cst = arith.constant 0.000000e+00 : f32
    %0 = vector.broadcast %cst : f32 to vector<8x384xf32>
    %c0 = arith.constant 0 : index
    %c0_0 = arith.constant 0 : index
    %1 = vector.load %arg12[%c0, %c0_0] : memref<8x1792xf32, #tpu.memory_space<vmem>>, vector<8x384xf32>
    tpu.vector_store %arg12[%c0, %c0_0], %0 {strides = array<i32>} : memref<8x1792xf32, #tpu.memory_space<vmem>>, vector<8x384xf32>,
    %cst_1 = arith.constant 0.000000e+00 : f32
    %2 = vector.broadcast %cst_1 : f32 to vector<8x384xf32>
    %c0_2 = arith.constant 0 : index
    %c1408 = arith.constant 1408 : index
    %3 = vector.load %arg12[%c0_2, %c1408] : memref<8x1792xf32, #tpu.memory_space<vmem>>, vector<8x384xf32>
    tpu.vector_store %arg12[%c0_2, %c1408], %2 {strides = array<i32>} : memref<8x1792xf32, #tpu.memory_space<vmem>>, vector<8x384xf32>,
    %cst_3 = arith.constant 0.000000e+00 : f32
    %4 = vector.broadcast %cst_3 : f32 to vector<4x384xf32>
    %c0_4 = arith.constant 0 : index
    %c0_5 = arith.constant 0 : index
    %5 = vector.load %arg13[%c0_4, %c0_5] : memref<4x1792xf32, #tpu.memory_space<vmem>>, vector<4x384xf32>
    tpu.vector_store %arg13[%c0_4, %c0_5], %4 {strides = array<i32>} : memref<4x1792xf32, #tpu.memory_space<vmem>>, vector<4x384xf32>,
    %cst_6 = arith.constant 0.000000e+00 : f32
    %6 = vector.broadcast %cst_6 : f32 to vector<4x384xf32>
    %c0_7 = arith.constant 0 : index
    %c1408_8 = arith.constant 1408 : index
    %7 = vector.load %arg13[%c0_7, %c1408_8] : memref<4x1792xf32, #tpu.memory_space<vmem>>, vector<4x384xf32>
    tpu.vector_store %arg13[%c0_7, %c1408_8], %6 {strides = array<i32>} : memref<4x1792xf32, #tpu.memory_space<vmem>>, vector<4x384xf32>,
    %c0_9 = arith.constant 0 : index
    %c0_10 = arith.constant 0 : index
    %8 = vector.load %arg5[%c0_9, %c0_10] : memref<4x8xf32, #tpu.memory_space<vmem>>, vector<4x8xf32>
    %c0_11 = arith.constant 0 : index
    %c0_12 = arith.constant 0 : index
    %c0_13 = arith.constant 0 : index
    %9 = vector.load %arg1[%c0_11, %c0_12, %c0_13] : memref<1x8x256xf32, #tpu.memory_space<vmem>>, vector<1x8x256xf32>
    %10 = vector.shape_cast %9 : vector<1x8x256xf32> to vector<8x256xf32>
    %cst_14 = arith.constant dense<0.000000e+00> : vector<4x256xf32>
    %11 = tpu.matmul %8, %10, %cst_14 {dimension_numbers = #tpu.dot_dimension_numbers<[1], [0], [0], [1], [0, 0, 1, 1], [], []>} : vector<4x8xf32>, vector<8x256xf32>, vector<4x256xf32> -> vector<4x256xf32>
    %c0_15 = arith.constant 0 : index
    %c0_16 = arith.constant 0 : index
    %12 = vector.load %arg6[%c0_15, %c0_16] : memref<4x1xf32, #tpu.memory_space<vmem>>, vector<4x1xf32>
    %13 = vector.broadcast %12 : vector<4x1xf32> to vector<4x256xf32>
    %14 = arith.addf %11, %13 : vector<4x256xf32>
    %c0_17 = arith.constant 0 : index
    %c0_18 = arith.constant 0 : index
    %15 = vector.load %arg3[%c0_17, %c0_18] : memref<256x1024xf32, #tpu.memory_space<vmem>>, vector<256x1024xf32>
    %cst_19 = arith.constant dense<0.000000e+00> : vector<4x1024xf32>
    %16 = tpu.matmul %14, %15, %cst_19 {dimension_numbers = #tpu.dot_dimension_numbers<[1], [0], [0], [1], [0, 0, 1, 1], [], []>} : vector<4x256xf32>, vector<256x1024xf32>, vector<4x1024xf32> -> vector<4x1024xf32>
    %c0_20 = arith.constant 0 : index
    %c384 = arith.constant 384 : index
    %17 = vector.load %arg12[%c0_20, %c384] : memref<8x1792xf32, #tpu.memory_space<vmem>>, vector<4x1024xf32>
    tpu.vector_store %arg12[%c0_20, %c384], %16 {strides = array<i32>} : memref<8x1792xf32, #tpu.memory_space<vmem>>, vector<4x1024xf32>,
    %c0_21 = arith.constant 0 : index
    %c0_22 = arith.constant 0 : index
    %c0_23 = arith.constant 0 : index
    %18 = vector.load %arg2[%c0_21, %c0_22, %c0_23] : memref<1x4x1024xf32, #tpu.memory_space<vmem>>, vector<1x4x1024xf32>
    %19 = vector.shape_cast %18 : vector<1x4x1024xf32> to vector<4x1024xf32>
    %c4 = arith.constant 4 : index
    %c384_24 = arith.constant 384 : index
    %20 = vector.load %arg12[%c4, %c384_24] : memref<8x1792xf32, #tpu.memory_space<vmem>>, vector<4x1024xf32>
    tpu.vector_store %arg12[%c4, %c384_24], %19 {strides = array<i32>} : memref<8x1792xf32, #tpu.memory_space<vmem>>, vector<4x1024xf32>,
    %cst_25 = arith.constant 0.000000e+00 : f32
    %21 = vector.broadcast %cst_25 : f32 to vector<4x1024xf32>
    %c0_26 = arith.constant 0 : index
    %c111 = arith.constant 111 : index
    %22 = vector.load %arg12[%c0_26, %c111] : memref<8x1792xf32, #tpu.memory_space<vmem>>, vector<8x1024xf32>
    %c0_27 = arith.constant 0 : index
    %c0_28 = arith.constant 0 : index
    %c0_29 = arith.constant 0 : index
    %23 = vector.load %arg7[%c0_27, %c0_28, %c0_29] : memref<27x4x8xf32, #tpu.memory_space<vmem>>, vector<1x4x8xf32>
    %24 = vector.shape_cast %23 : vector<1x4x8xf32> to vector<4x8xf32>
    %cst_30 = arith.constant dense<0.000000e+00> : vector<4x1024xf32>
    %25 = tpu.matmul %24, %22, %cst_30 {dimension_numbers = #tpu.dot_dimension_numbers<[1], [0], [0], [1], [0, 0, 1, 1], [], []>} : vector<4x8xf32>, vector<8x1024xf32>, vector<4x1024xf32> -> vector<4x1024xf32>
    %c0_31 = arith.constant 0 : index
    %c367 = arith.constant 367 : index
    %26 = vector.load %arg12[%c0_31, %c367] : memref<8x1792xf32, #tpu.memory_space<vmem>>, vector<8x1024xf32>
    %c9 = arith.constant 9 : index
    %c0_32 = arith.constant 0 : index
    %c0_33 = arith.constant 0 : index
    %27 = vector.load %arg7[%c9, %c0_32, %c0_33] : memref<27x4x8xf32, #tpu.memory_space<vmem>>, vector<1x4x8xf32>
    %28 = vector.shape_cast %27 : vector<1x4x8xf32> to vector<4x8xf32>
    %cst_34 = arith.constant dense<0.000000e+00> : vector<4x1024xf32>
    %29 = tpu.matmul %28, %26, %cst_34 {dimension_numbers = #tpu.dot_dimension_numbers<[1], [0], [0], [1], [0, 0, 1, 1], [], []>} : vector<4x8xf32>, vector<8x1024xf32>, vector<4x1024xf32> -> vector<4x1024xf32>
    %c0_35 = arith.constant 0 : index
    %c623 = arith.constant 623 : index
    %30 = vector.load %arg12[%c0_35, %c623] : memref<8x1792xf32, #tpu.memory_space<vmem>>, vector<8x1024xf32>
    %c18 = arith.constant 18 : index
    %c0_36 = arith.constant 0 : index
    %c0_37 = arith.constant 0 : index
    %31 = vector.load %arg7[%c18, %c0_36, %c0_37] : memref<27x4x8xf32, #tpu.memory_space<vmem>>, vector<1x4x8xf32>
    %32 = vector.shape_cast %31 : vector<1x4x8xf32> to vector<4x8xf32>
    %cst_38 = arith.constant dense<0.000000e+00> : vector<4x1024xf32>
    %33 = tpu.matmul %32, %30, %cst_38 {dimension_numbers = #tpu.dot_dimension_numbers<[1], [0], [0], [1], [0, 0, 1, 1], [], []>} : vector<4x8xf32>, vector<8x1024xf32>, vector<4x1024xf32> -> vector<4x1024xf32>
    %34 = arith.addf %25, %29 : vector<4x1024xf32>
    %35 = arith.addf %34, %33 : vector<4x1024xf32>
    %c0_39 = arith.constant 0 : index
    %c0_40 = arith.constant 0 : index
    %36 = vector.load %arg4[%c0_39, %c0_40] : memref<9x1024xf32, #tpu.memory_space<vmem>>, vector<1x1024xf32>
    %37 = vector.broadcast %36 : vector<1x1024xf32> to vector<4x1024xf32>
    %38 = arith.mulf %35, %37 : vector<4x1024xf32>
    %39 = arith.addf %21, %38 : vector<4x1024xf32>
    %c0_41 = arith.constant 0 : index
    %c112 = arith.constant 112 : index
    %40 = vector.load %arg12[%c0_41, %c112] : memref<8x1792xf32, #tpu.memory_space<vmem>>, vector<8x1024xf32>
    %c1 = arith.constant 1 : index
    %c0_42 = arith.constant 0 : index
    %c0_43 = arith.constant 0 : index
    %41 = vector.load %arg7[%c1, %c0_42, %c0_43] : memref<27x4x8xf32, #tpu.memory_space<vmem>>, vector<1x4x8xf32>
    %42 = vector.shape_cast %41 : vector<1x4x8xf32> to vector<4x8xf32>
    %cst_44 = arith.constant dense<0.000000e+00> : vector<4x1024xf32>
    %43 = tpu.matmul %42, %40, %cst_44 {dimension_numbers = #tpu.dot_dimension_numbers<[1], [0], [0], [1], [0, 0, 1, 1], [], []>} : vector<4x8xf32>, vector<8x1024xf32>, vector<4x1024xf32> -> vector<4x1024xf32>
    %c0_45 = arith.constant 0 : index
    %c368 = arith.constant 368 : index
    %44 = vector.load %arg12[%c0_45, %c368] : memref<8x1792xf32, #tpu.memory_space<vmem>>, vector<8x1024xf32>
    %c10 = arith.constant 10 : index
    %c0_46 = arith.constant 0 : index
    %c0_47 = arith.constant 0 : index
    %45 = vector.load %arg7[%c10, %c0_46, %c0_47] : memref<27x4x8xf32, #tpu.memory_space<vmem>>, vector<1x4x8xf32>
    %46 = vector.shape_cast %45 : vector<1x4x8xf32> to vector<4x8xf32>
    %cst_48 = arith.constant dense<0.000000e+00> : vector<4x1024xf32>
    %47 = tpu.matmul %46, %44, %cst_48 {dimension_numbers = #tpu.dot_dimension_numbers<[1], [0], [0], [1], [0, 0, 1, 1], [], []>} : vector<4x8xf32>, vector<8x1024xf32>, vector<4x1024xf32> -> vector<4x1024xf32>
    %c0_49 = arith.constant 0 : index
    %c624 = arith.constant 624 : index
    %48 = vector.load %arg12[%c0_49, %c624] : memref<8x1792xf32, #tpu.memory_space<vmem>>, vector<8x1024xf32>
    %c19 = arith.constant 19 : index
    %c0_50 = arith.constant 0 : index
    %c0_51 = arith.constant 0 : index
    %49 = vector.load %arg7[%c19, %c0_50, %c0_51] : memref<27x4x8xf32, #tpu.memory_space<vmem>>, vector<1x4x8xf32>
    %50 = vector.shape_cast %49 : vector<1x4x8xf32> to vector<4x8xf32>
    %cst_52 = arith.constant dense<0.000000e+00> : vector<4x1024xf32>
    %51 = tpu.matmul %50, %48, %cst_52 {dimension_numbers = #tpu.dot_dimension_numbers<[1], [0], [0], [1], [0, 0, 1, 1], [], []>} : vector<4x8xf32>, vector<8x1024xf32>, vector<4x1024xf32> -> vector<4x1024xf32>
    %52 = arith.addf %43, %47 : vector<4x1024xf32>
    %53 = arith.addf %52, %51 : vector<4x1024xf32>
    %c1_53 = arith.constant 1 : index
    %c0_54 = arith.constant 0 : index
    %54 = vector.load %arg4[%c1_53, %c0_54] : memref<9x1024xf32, #tpu.memory_space<vmem>>, vector<1x1024xf32>
    %55 = vector.broadcast %54 : vector<1x1024xf32> to vector<4x1024xf32>
    %56 = arith.mulf %53, %55 : vector<4x1024xf32>
    %57 = arith.addf %39, %56 : vector<4x1024xf32>
    %c0_55 = arith.constant 0 : index
    %c113 = arith.constant 113 : index
    %58 = vector.load %arg12[%c0_55, %c113] : memref<8x1792xf32, #tpu.memory_space<vmem>>, vector<8x1024xf32>
    %c2 = arith.constant 2 : index
    %c0_56 = arith.constant 0 : index
    %c0_57 = arith.constant 0 : index
    %59 = vector.load %arg7[%c2, %c0_56, %c0_57] : memref<27x4x8xf32, #tpu.memory_space<vmem>>, vector<1x4x8xf32>
    %60 = vector.shape_cast %59 : vector<1x4x8xf32> to vector<4x8xf32>
    %cst_58 = arith.constant dense<0.000000e+00> : vector<4x1024xf32>
    %61 = tpu.matmul %60, %58, %cst_58 {dimension_numbers = #tpu.dot_dimension_numbers<[1], [0], [0], [1], [0, 0, 1, 1], [], []>} : vector<4x8xf32>, vector<8x1024xf32>, vector<4x1024xf32> -> vector<4x1024xf32>
    %c0_59 = arith.constant 0 : index
    %c369 = arith.constant 369 : index
    %62 = vector.load %arg12[%c0_59, %c369] : memref<8x1792xf32, #tpu.memory_space<vmem>>, vector<8x1024xf32>
    %c11 = arith.constant 11 : index
    %c0_60 = arith.constant 0 : index
    %c0_61 = arith.constant 0 : index
    %63 = vector.load %arg7[%c11, %c0_60, %c0_61] : memref<27x4x8xf32, #tpu.memory_space<vmem>>, vector<1x4x8xf32>
    %64 = vector.shape_cast %63 : vector<1x4x8xf32> to vector<4x8xf32>
    %cst_62 = arith.constant dense<0.000000e+00> : vector<4x1024xf32>
    %65 = tpu.matmul %64, %62, %cst_62 {dimension_numbers = #tpu.dot_dimension_numbers<[1], [0], [0], [1], [0, 0, 1, 1], [], []>} : vector<4x8xf32>, vector<8x1024xf32>, vector<4x1024xf32> -> vector<4x1024xf32>
    %c0_63 = arith.constant 0 : index
    %c625 = arith.constant 625 : index
    %66 = vector.load %arg12[%c0_63, %c625] : memref<8x1792xf32, #tpu.memory_space<vmem>>, vector<8x1024xf32>
    %c20 = arith.constant 20 : index
    %c0_64 = arith.constant 0 : index
    %c0_65 = arith.constant 0 : index
    %67 = vector.load %arg7[%c20, %c0_64, %c0_65] : memref<27x4x8xf32, #tpu.memory_space<vmem>>, vector<1x4x8xf32>
    %68 = vector.shape_cast %67 : vector<1x4x8xf32> to vector<4x8xf32>
    %cst_66 = arith.constant dense<0.000000e+00> : vector<4x1024xf32>
    %69 = tpu.matmul %68, %66, %cst_66 {dimension_numbers = #tpu.dot_dimension_numbers<[1], [0], [0], [1], [0, 0, 1, 1], [], []>} : vector<4x8xf32>, vector<8x1024xf32>, vector<4x1024xf32> -> vector<4x1024xf32>
    %70 = arith.addf %61, %65 : vector<4x1024xf32>
    %71 = arith.addf %70, %69 : vector<4x1024xf32>
    %c2_67 = arith.constant 2 : index
    %c0_68 = arith.constant 0 : index
    %72 = vector.load %arg4[%c2_67, %c0_68] : memref<9x1024xf32, #tpu.memory_space<vmem>>, vector<1x1024xf32>
    %73 = vector.broadcast %72 : vector<1x1024xf32> to vector<4x1024xf32>
    %74 = arith.mulf %71, %73 : vector<4x1024xf32>
    %75 = arith.addf %57, %74 : vector<4x1024xf32>
    %c0_69 = arith.constant 0 : index
    %c127 = arith.constant 127 : index
    %76 = vector.load %arg12[%c0_69, %c127] : memref<8x1792xf32, #tpu.memory_space<vmem>>, vector<8x1024xf32>
    %c3 = arith.constant 3 : index
    %c0_70 = arith.constant 0 : index
    %c0_71 = arith.constant 0 : index
    %77 = vector.load %arg7[%c3, %c0_70, %c0_71] : memref<27x4x8xf32, #tpu.memory_space<vmem>>, vector<1x4x8xf32>
    %78 = vector.shape_cast %77 : vector<1x4x8xf32> to vector<4x8xf32>
    %cst_72 = arith.constant dense<0.000000e+00> : vector<4x1024xf32>
    %79 = tpu.matmul %78, %76, %cst_72 {dimension_numbers = #tpu.dot_dimension_numbers<[1], [0], [0], [1], [0, 0, 1, 1], [], []>} : vector<4x8xf32>, vector<8x1024xf32>, vector<4x1024xf32> -> vector<4x1024xf32>
    %c0_73 = arith.constant 0 : index
    %c383 = arith.constant 383 : index
    %80 = vector.load %arg12[%c0_73, %c383] : memref<8x1792xf32, #tpu.memory_space<vmem>>, vector<8x1024xf32>
    %c12 = arith.constant 12 : index
    %c0_74 = arith.constant 0 : index
    %c0_75 = arith.constant 0 : index
    %81 = vector.load %arg7[%c12, %c0_74, %c0_75] : memref<27x4x8xf32, #tpu.memory_space<vmem>>, vector<1x4x8xf32>
    %82 = vector.shape_cast %81 : vector<1x4x8xf32> to vector<4x8xf32>
    %cst_76 = arith.constant dense<0.000000e+00> : vector<4x1024xf32>
    %83 = tpu.matmul %82, %80, %cst_76 {dimension_numbers = #tpu.dot_dimension_numbers<[1], [0], [0], [1], [0, 0, 1, 1], [], []>} : vector<4x8xf32>, vector<8x1024xf32>, vector<4x1024xf32> -> vector<4x1024xf32>
    %c0_77 = arith.constant 0 : index
    %c639 = arith.constant 639 : index
    %84 = vector.load %arg12[%c0_77, %c639] : memref<8x1792xf32, #tpu.memory_space<vmem>>, vector<8x1024xf32>
    %c21 = arith.constant 21 : index
    %c0_78 = arith.constant 0 : index
    %c0_79 = arith.constant 0 : index
    %85 = vector.load %arg7[%c21, %c0_78, %c0_79] : memref<27x4x8xf32, #tpu.memory_space<vmem>>, vector<1x4x8xf32>
    %86 = vector.shape_cast %85 : vector<1x4x8xf32> to vector<4x8xf32>
    %cst_80 = arith.constant dense<0.000000e+00> : vector<4x1024xf32>
    %87 = tpu.matmul %86, %84, %cst_80 {dimension_numbers = #tpu.dot_dimension_numbers<[1], [0], [0], [1], [0, 0, 1, 1], [], []>} : vector<4x8xf32>, vector<8x1024xf32>, vector<4x1024xf32> -> vector<4x1024xf32>
    %88 = arith.addf %79, %83 : vector<4x1024xf32>
    %89 = arith.addf %88, %87 : vector<4x1024xf32>
    %c3_81 = arith.constant 3 : index
    %c0_82 = arith.constant 0 : index
    %90 = vector.load %arg4[%c3_81, %c0_82] : memref<9x1024xf32, #tpu.memory_space<vmem>>, vector<1x1024xf32>
    %91 = vector.broadcast %90 : vector<1x1024xf32> to vector<4x1024xf32>
    %92 = arith.mulf %89, %91 : vector<4x1024xf32>
    %93 = arith.addf %75, %92 : vector<4x1024xf32>
    %c0_83 = arith.constant 0 : index
    %c128 = arith.constant 128 : index
    %94 = vector.load %arg12[%c0_83, %c128] : memref<8x1792xf32, #tpu.memory_space<vmem>>, vector<8x1024xf32>
    %c4_84 = arith.constant 4 : index
    %c0_85 = arith.constant 0 : index
    %c0_86 = arith.constant 0 : index
    %95 = vector.load %arg7[%c4_84, %c0_85, %c0_86] : memref<27x4x8xf32, #tpu.memory_space<vmem>>, vector<1x4x8xf32>
    %96 = vector.shape_cast %95 : vector<1x4x8xf32> to vector<4x8xf32>
    %cst_87 = arith.constant dense<0.000000e+00> : vector<4x1024xf32>
    %97 = tpu.matmul %96, %94, %cst_87 {dimension_numbers = #tpu.dot_dimension_numbers<[1], [0], [0], [1], [0, 0, 1, 1], [], []>} : vector<4x8xf32>, vector<8x1024xf32>, vector<4x1024xf32> -> vector<4x1024xf32>
    %c0_88 = arith.constant 0 : index
    %c384_89 = arith.constant 384 : index
    %98 = vector.load %arg12[%c0_88, %c384_89] : memref<8x1792xf32, #tpu.memory_space<vmem>>, vector<8x1024xf32>
    %c13 = arith.constant 13 : index
    %c0_90 = arith.constant 0 : index
    %c0_91 = arith.constant 0 : index
    %99 = vector.load %arg7[%c13, %c0_90, %c0_91] : memref<27x4x8xf32, #tpu.memory_space<vmem>>, vector<1x4x8xf32>
    %100 = vector.shape_cast %99 : vector<1x4x8xf32> to vector<4x8xf32>
    %cst_92 = arith.constant dense<0.000000e+00> : vector<4x1024xf32>
    %101 = tpu.matmul %100, %98, %cst_92 {dimension_numbers = #tpu.dot_dimension_numbers<[1], [0], [0], [1], [0, 0, 1, 1], [], []>} : vector<4x8xf32>, vector<8x1024xf32>, vector<4x1024xf32> -> vector<4x1024xf32>
    %c0_93 = arith.constant 0 : index
    %c640 = arith.constant 640 : index
    %102 = vector.load %arg12[%c0_93, %c640] : memref<8x1792xf32, #tpu.memory_space<vmem>>, vector<8x1024xf32>
    %c22 = arith.constant 22 : index
    %c0_94 = arith.constant 0 : index
    %c0_95 = arith.constant 0 : index
    %103 = vector.load %arg7[%c22, %c0_94, %c0_95] : memref<27x4x8xf32, #tpu.memory_space<vmem>>, vector<1x4x8xf32>
    %104 = vector.shape_cast %103 : vector<1x4x8xf32> to vector<4x8xf32>
    %cst_96 = arith.constant dense<0.000000e+00> : vector<4x1024xf32>
    %105 = tpu.matmul %104, %102, %cst_96 {dimension_numbers = #tpu.dot_dimension_numbers<[1], [0], [0], [1], [0, 0, 1, 1], [], []>} : vector<4x8xf32>, vector<8x1024xf32>, vector<4x1024xf32> -> vector<4x1024xf32>
    %106 = arith.addf %97, %101 : vector<4x1024xf32>
    %107 = arith.addf %106, %105 : vector<4x1024xf32>
    %108 = arith.addf %93, %107 : vector<4x1024xf32>
    %c0_97 = arith.constant 0 : index
    %c129 = arith.constant 129 : index
    %109 = vector.load %arg12[%c0_97, %c129] : memref<8x1792xf32, #tpu.memory_space<vmem>>, vector<8x1024xf32>
    %c5 = arith.constant 5 : index
    %c0_98 = arith.constant 0 : index
    %c0_99 = arith.constant 0 : index
    %110 = vector.load %arg7[%c5, %c0_98, %c0_99] : memref<27x4x8xf32, #tpu.memory_space<vmem>>, vector<1x4x8xf32>
    %111 = vector.shape_cast %110 : vector<1x4x8xf32> to vector<4x8xf32>
    %cst_100 = arith.constant dense<0.000000e+00> : vector<4x1024xf32>
    %112 = tpu.matmul %111, %109, %cst_100 {dimension_numbers = #tpu.dot_dimension_numbers<[1], [0], [0], [1], [0, 0, 1, 1], [], []>} : vector<4x8xf32>, vector<8x1024xf32>, vector<4x1024xf32> -> vector<4x1024xf32>
    %c0_101 = arith.constant 0 : index
    %c385 = arith.constant 385 : index
    %113 = vector.load %arg12[%c0_101, %c385] : memref<8x1792xf32, #tpu.memory_space<vmem>>, vector<8x1024xf32>
    %c14 = arith.constant 14 : index
    %c0_102 = arith.constant 0 : index
    %c0_103 = arith.constant 0 : index
    %114 = vector.load %arg7[%c14, %c0_102, %c0_103] : memref<27x4x8xf32, #tpu.memory_space<vmem>>, vector<1x4x8xf32>
    %115 = vector.shape_cast %114 : vector<1x4x8xf32> to vector<4x8xf32>
    %cst_104 = arith.constant dense<0.000000e+00> : vector<4x1024xf32>
    %116 = tpu.matmul %115, %113, %cst_104 {dimension_numbers = #tpu.dot_dimension_numbers<[1], [0], [0], [1], [0, 0, 1, 1], [], []>} : vector<4x8xf32>, vector<8x1024xf32>, vector<4x1024xf32> -> vector<4x1024xf32>
    %c0_105 = arith.constant 0 : index
    %c641 = arith.constant 641 : index
    %117 = vector.load %arg12[%c0_105, %c641] : memref<8x1792xf32, #tpu.memory_space<vmem>>, vector<8x1024xf32>
    %c23 = arith.constant 23 : index
    %c0_106 = arith.constant 0 : index
    %c0_107 = arith.constant 0 : index
    %118 = vector.load %arg7[%c23, %c0_106, %c0_107] : memref<27x4x8xf32, #tpu.memory_space<vmem>>, vector<1x4x8xf32>
    %119 = vector.shape_cast %118 : vector<1x4x8xf32> to vector<4x8xf32>
    %cst_108 = arith.constant dense<0.000000e+00> : vector<4x1024xf32>
    %120 = tpu.matmul %119, %117, %cst_108 {dimension_numbers = #tpu.dot_dimension_numbers<[1], [0], [0], [1], [0, 0, 1, 1], [], []>} : vector<4x8xf32>, vector<8x1024xf32>, vector<4x1024xf32> -> vector<4x1024xf32>
    %121 = arith.addf %112, %116 : vector<4x1024xf32>
    %122 = arith.addf %121, %120 : vector<4x1024xf32>
    %c5_109 = arith.constant 5 : index
    %c0_110 = arith.constant 0 : index
    %123 = vector.load %arg4[%c5_109, %c0_110] : memref<9x1024xf32, #tpu.memory_space<vmem>>, vector<1x1024xf32>
    %124 = vector.broadcast %123 : vector<1x1024xf32> to vector<4x1024xf32>
    %125 = arith.mulf %122, %124 : vector<4x1024xf32>
    %126 = arith.addf %108, %125 : vector<4x1024xf32>
    %c0_111 = arith.constant 0 : index
    %c143 = arith.constant 143 : index
    %127 = vector.load %arg12[%c0_111, %c143] : memref<8x1792xf32, #tpu.memory_space<vmem>>, vector<8x1024xf32>
    %c6 = arith.constant 6 : index
    %c0_112 = arith.constant 0 : index
    %c0_113 = arith.constant 0 : index
    %128 = vector.load %arg7[%c6, %c0_112, %c0_113] : memref<27x4x8xf32, #tpu.memory_space<vmem>>, vector<1x4x8xf32>
    %129 = vector.shape_cast %128 : vector<1x4x8xf32> to vector<4x8xf32>
    %cst_114 = arith.constant dense<0.000000e+00> : vector<4x1024xf32>
    %130 = tpu.matmul %129, %127, %cst_114 {dimension_numbers = #tpu.dot_dimension_numbers<[1], [0], [0], [1], [0, 0, 1, 1], [], []>} : vector<4x8xf32>, vector<8x1024xf32>, vector<4x1024xf32> -> vector<4x1024xf32>
    %c0_115 = arith.constant 0 : index
    %c399 = arith.constant 399 : index
    %131 = vector.load %arg12[%c0_115, %c399] : memref<8x1792xf32, #tpu.memory_space<vmem>>, vector<8x1024xf32>
    %c15 = arith.constant 15 : index
    %c0_116 = arith.constant 0 : index
    %c0_117 = arith.constant 0 : index
    %132 = vector.load %arg7[%c15, %c0_116, %c0_117] : memref<27x4x8xf32, #tpu.memory_space<vmem>>, vector<1x4x8xf32>
    %133 = vector.shape_cast %132 : vector<1x4x8xf32> to vector<4x8xf32>
    %cst_118 = arith.constant dense<0.000000e+00> : vector<4x1024xf32>
    %134 = tpu.matmul %133, %131, %cst_118 {dimension_numbers = #tpu.dot_dimension_numbers<[1], [0], [0], [1], [0, 0, 1, 1], [], []>} : vector<4x8xf32>, vector<8x1024xf32>, vector<4x1024xf32> -> vector<4x1024xf32>
    %c0_119 = arith.constant 0 : index
    %c655 = arith.constant 655 : index
    %135 = vector.load %arg12[%c0_119, %c655] : memref<8x1792xf32, #tpu.memory_space<vmem>>, vector<8x1024xf32>
    %c24 = arith.constant 24 : index
    %c0_120 = arith.constant 0 : index
    %c0_121 = arith.constant 0 : index
    %136 = vector.load %arg7[%c24, %c0_120, %c0_121] : memref<27x4x8xf32, #tpu.memory_space<vmem>>, vector<1x4x8xf32>
    %137 = vector.shape_cast %136 : vector<1x4x8xf32> to vector<4x8xf32>
    %cst_122 = arith.constant dense<0.000000e+00> : vector<4x1024xf32>
    %138 = tpu.matmul %137, %135, %cst_122 {dimension_numbers = #tpu.dot_dimension_numbers<[1], [0], [0], [1], [0, 0, 1, 1], [], []>} : vector<4x8xf32>, vector<8x1024xf32>, vector<4x1024xf32> -> vector<4x1024xf32>
    %139 = arith.addf %130, %134 : vector<4x1024xf32>
    %140 = arith.addf %139, %138 : vector<4x1024xf32>
    %c6_123 = arith.constant 6 : index
    %c0_124 = arith.constant 0 : index
    %141 = vector.load %arg4[%c6_123, %c0_124] : memref<9x1024xf32, #tpu.memory_space<vmem>>, vector<1x1024xf32>
    %142 = vector.broadcast %141 : vector<1x1024xf32> to vector<4x1024xf32>
    %143 = arith.mulf %140, %142 : vector<4x1024xf32>
    %144 = arith.addf %126, %143 : vector<4x1024xf32>
    %c0_125 = arith.constant 0 : index
    %c144 = arith.constant 144 : index
    %145 = vector.load %arg12[%c0_125, %c144] : memref<8x1792xf32, #tpu.memory_space<vmem>>, vector<8x1024xf32>
    %c7 = arith.constant 7 : index
    %c0_126 = arith.constant 0 : index
    %c0_127 = arith.constant 0 : index
    %146 = vector.load %arg7[%c7, %c0_126, %c0_127] : memref<27x4x8xf32, #tpu.memory_space<vmem>>, vector<1x4x8xf32>
    %147 = vector.shape_cast %146 : vector<1x4x8xf32> to vector<4x8xf32>
    %cst_128 = arith.constant dense<0.000000e+00> : vector<4x1024xf32>
    %148 = tpu.matmul %147, %145, %cst_128 {dimension_numbers = #tpu.dot_dimension_numbers<[1], [0], [0], [1], [0, 0, 1, 1], [], []>} : vector<4x8xf32>, vector<8x1024xf32>, vector<4x1024xf32> -> vector<4x1024xf32>
    %c0_129 = arith.constant 0 : index
    %c400 = arith.constant 400 : index
    %149 = vector.load %arg12[%c0_129, %c400] : memref<8x1792xf32, #tpu.memory_space<vmem>>, vector<8x1024xf32>
    %c16 = arith.constant 16 : index
    %c0_130 = arith.constant 0 : index
    %c0_131 = arith.constant 0 : index
    %150 = vector.load %arg7[%c16, %c0_130, %c0_131] : memref<27x4x8xf32, #tpu.memory_space<vmem>>, vector<1x4x8xf32>
    %151 = vector.shape_cast %150 : vector<1x4x8xf32> to vector<4x8xf32>
    %cst_132 = arith.constant dense<0.000000e+00> : vector<4x1024xf32>
    %152 = tpu.matmul %151, %149, %cst_132 {dimension_numbers = #tpu.dot_dimension_numbers<[1], [0], [0], [1], [0, 0, 1, 1], [], []>} : vector<4x8xf32>, vector<8x1024xf32>, vector<4x1024xf32> -> vector<4x1024xf32>
    %c0_133 = arith.constant 0 : index
    %c656 = arith.constant 656 : index
    %153 = vector.load %arg12[%c0_133, %c656] : memref<8x1792xf32, #tpu.memory_space<vmem>>, vector<8x1024xf32>
    %c25 = arith.constant 25 : index
    %c0_134 = arith.constant 0 : index
    %c0_135 = arith.constant 0 : index
    %154 = vector.load %arg7[%c25, %c0_134, %c0_135] : memref<27x4x8xf32, #tpu.memory_space<vmem>>, vector<1x4x8xf32>
    %155 = vector.shape_cast %154 : vector<1x4x8xf32> to vector<4x8xf32>
    %cst_136 = arith.constant dense<0.000000e+00> : vector<4x1024xf32>
    %156 = tpu.matmul %155, %153, %cst_136 {dimension_numbers = #tpu.dot_dimension_numbers<[1], [0], [0], [1], [0, 0, 1, 1], [], []>} : vector<4x8xf32>, vector<8x1024xf32>, vector<4x1024xf32> -> vector<4x1024xf32>
    %157 = arith.addf %148, %152 : vector<4x1024xf32>
    %158 = arith.addf %157, %156 : vector<4x1024xf32>
    %c7_137 = arith.constant 7 : index
    %c0_138 = arith.constant 0 : index
    %159 = vector.load %arg4[%c7_137, %c0_138] : memref<9x1024xf32, #tpu.memory_space<vmem>>, vector<1x1024xf32>
    %160 = vector.broadcast %159 : vector<1x1024xf32> to vector<4x1024xf32>
    %161 = arith.mulf %158, %160 : vector<4x1024xf32>
    %162 = arith.addf %144, %161 : vector<4x1024xf32>
    %c0_139 = arith.constant 0 : index
    %c145 = arith.constant 145 : index
    %163 = vector.load %arg12[%c0_139, %c145] : memref<8x1792xf32, #tpu.memory_space<vmem>>, vector<8x1024xf32>
    %c8 = arith.constant 8 : index
    %c0_140 = arith.constant 0 : index
    %c0_141 = arith.constant 0 : index
    %164 = vector.load %arg7[%c8, %c0_140, %c0_141] : memref<27x4x8xf32, #tpu.memory_space<vmem>>, vector<1x4x8xf32>
    %165 = vector.shape_cast %164 : vector<1x4x8xf32> to vector<4x8xf32>
    %cst_142 = arith.constant dense<0.000000e+00> : vector<4x1024xf32>
    %166 = tpu.matmul %165, %163, %cst_142 {dimension_numbers = #tpu.dot_dimension_numbers<[1], [0], [0], [1], [0, 0, 1, 1], [], []>} : vector<4x8xf32>, vector<8x1024xf32>, vector<4x1024xf32> -> vector<4x1024xf32>
    %c0_143 = arith.constant 0 : index
    %c401 = arith.constant 401 : index
    %167 = vector.load %arg12[%c0_143, %c401] : memref<8x1792xf32, #tpu.memory_space<vmem>>, vector<8x1024xf32>
    %c17 = arith.constant 17 : index
    %c0_144 = arith.constant 0 : index
    %c0_145 = arith.constant 0 : index
    %168 = vector.load %arg7[%c17, %c0_144, %c0_145] : memref<27x4x8xf32, #tpu.memory_space<vmem>>, vector<1x4x8xf32>
    %169 = vector.shape_cast %168 : vector<1x4x8xf32> to vector<4x8xf32>
    %cst_146 = arith.constant dense<0.000000e+00> : vector<4x1024xf32>
    %170 = tpu.matmul %169, %167, %cst_146 {dimension_numbers = #tpu.dot_dimension_numbers<[1], [0], [0], [1], [0, 0, 1, 1], [], []>} : vector<4x8xf32>, vector<8x1024xf32>, vector<4x1024xf32> -> vector<4x1024xf32>
    %c0_147 = arith.constant 0 : index
    %c657 = arith.constant 657 : index
    %171 = vector.load %arg12[%c0_147, %c657] : memref<8x1792xf32, #tpu.memory_space<vmem>>, vector<8x1024xf32>
    %c26 = arith.constant 26 : index
    %c0_148 = arith.constant 0 : index
    %c0_149 = arith.constant 0 : index
    %172 = vector.load %arg7[%c26, %c0_148, %c0_149] : memref<27x4x8xf32, #tpu.memory_space<vmem>>, vector<1x4x8xf32>
    %173 = vector.shape_cast %172 : vector<1x4x8xf32> to vector<4x8xf32>
    %cst_150 = arith.constant dense<0.000000e+00> : vector<4x1024xf32>
    %174 = tpu.matmul %173, %171, %cst_150 {dimension_numbers = #tpu.dot_dimension_numbers<[1], [0], [0], [1], [0, 0, 1, 1], [], []>} : vector<4x8xf32>, vector<8x1024xf32>, vector<4x1024xf32> -> vector<4x1024xf32>
    %175 = arith.addf %166, %170 : vector<4x1024xf32>
    %176 = arith.addf %175, %174 : vector<4x1024xf32>
    %c8_151 = arith.constant 8 : index
    %c0_152 = arith.constant 0 : index
    %177 = vector.load %arg4[%c8_151, %c0_152] : memref<9x1024xf32, #tpu.memory_space<vmem>>, vector<1x1024xf32>
    %178 = vector.broadcast %177 : vector<1x1024xf32> to vector<4x1024xf32>
    %179 = arith.mulf %176, %178 : vector<4x1024xf32>
    %180 = arith.addf %162, %179 : vector<4x1024xf32>
    %c0_153 = arith.constant 0 : index
    %c0_154 = arith.constant 0 : index
    %181 = vector.load %arg8[%c0_153, %c0_154] : memref<4x1xf32, #tpu.memory_space<vmem>>, vector<4x1xf32>
    %182 = vector.broadcast %181 : vector<4x1xf32> to vector<4x1024xf32>
    %183 = arith.addf %180, %182 : vector<4x1024xf32>
    %cst_155 = arith.constant 0.000000e+00 : f32
    %184 = vector.broadcast %cst_155 : f32 to vector<4x1024xf32>
    %185 = arith.maximumf %183, %184 : vector<4x1024xf32>
    %c0_156 = arith.constant 0 : index
    %c384_157 = arith.constant 384 : index
    %186 = vector.load %arg13[%c0_156, %c384_157] : memref<4x1792xf32, #tpu.memory_space<vmem>>, vector<4x1024xf32>
    tpu.vector_store %arg13[%c0_156, %c384_157], %185 {strides = array<i32>} : memref<4x1792xf32, #tpu.memory_space<vmem>>, vector<4x1024xf32>,
    %cst_158 = arith.constant 0.000000e+00 : f32
    %187 = vector.broadcast %cst_158 : f32 to vector<4x1024xf32>
    %c0_159 = arith.constant 0 : index
    %c111_160 = arith.constant 111 : index
    %188 = vector.load %arg13[%c0_159, %c111_160] : memref<4x1792xf32, #tpu.memory_space<vmem>>, vector<4x1024xf32>
    %c0_161 = arith.constant 0 : index
    %c0_162 = arith.constant 0 : index
    %c0_163 = arith.constant 0 : index
    %189 = vector.load %arg9[%c0_161, %c0_162, %c0_163] : memref<27x4x4xf32, #tpu.memory_space<vmem>>, vector<1x4x4xf32>
    %190 = vector.shape_cast %189 : vector<1x4x4xf32> to vector<4x4xf32>
    %cst_164 = arith.constant dense<0.000000e+00> : vector<4x1024xf32>
    %191 = tpu.matmul %190, %188, %cst_164 {dimension_numbers = #tpu.dot_dimension_numbers<[1], [0], [0], [1], [0, 0, 1, 1], [], []>} : vector<4x4xf32>, vector<4x1024xf32>, vector<4x1024xf32> -> vector<4x1024xf32>
    %c0_165 = arith.constant 0 : index
    %c367_166 = arith.constant 367 : index
    %192 = vector.load %arg13[%c0_165, %c367_166] : memref<4x1792xf32, #tpu.memory_space<vmem>>, vector<4x1024xf32>
    %c9_167 = arith.constant 9 : index
    %c0_168 = arith.constant 0 : index
    %c0_169 = arith.constant 0 : index
    %193 = vector.load %arg9[%c9_167, %c0_168, %c0_169] : memref<27x4x4xf32, #tpu.memory_space<vmem>>, vector<1x4x4xf32>
    %194 = vector.shape_cast %193 : vector<1x4x4xf32> to vector<4x4xf32>
    %cst_170 = arith.constant dense<0.000000e+00> : vector<4x1024xf32>
    %195 = tpu.matmul %194, %192, %cst_170 {dimension_numbers = #tpu.dot_dimension_numbers<[1], [0], [0], [1], [0, 0, 1, 1], [], []>} : vector<4x4xf32>, vector<4x1024xf32>, vector<4x1024xf32> -> vector<4x1024xf32>
    %c0_171 = arith.constant 0 : index
    %c623_172 = arith.constant 623 : index
    %196 = vector.load %arg13[%c0_171, %c623_172] : memref<4x1792xf32, #tpu.memory_space<vmem>>, vector<4x1024xf32>
    %c18_173 = arith.constant 18 : index
    %c0_174 = arith.constant 0 : index
    %c0_175 = arith.constant 0 : index
    %197 = vector.load %arg9[%c18_173, %c0_174, %c0_175] : memref<27x4x4xf32, #tpu.memory_space<vmem>>, vector<1x4x4xf32>
    %198 = vector.shape_cast %197 : vector<1x4x4xf32> to vector<4x4xf32>
    %cst_176 = arith.constant dense<0.000000e+00> : vector<4x1024xf32>
    %199 = tpu.matmul %198, %196, %cst_176 {dimension_numbers = #tpu.dot_dimension_numbers<[1], [0], [0], [1], [0, 0, 1, 1], [], []>} : vector<4x4xf32>, vector<4x1024xf32>, vector<4x1024xf32> -> vector<4x1024xf32>
    %200 = arith.addf %191, %195 : vector<4x1024xf32>
    %201 = arith.addf %200, %199 : vector<4x1024xf32>
    %c0_177 = arith.constant 0 : index
    %c0_178 = arith.constant 0 : index
    %202 = vector.load %arg4[%c0_177, %c0_178] : memref<9x1024xf32, #tpu.memory_space<vmem>>, vector<1x1024xf32>
    %203 = vector.broadcast %202 : vector<1x1024xf32> to vector<4x1024xf32>
    %204 = arith.mulf %201, %203 : vector<4x1024xf32>
    %205 = arith.addf %187, %204 : vector<4x1024xf32>
    %c0_179 = arith.constant 0 : index
    %c112_180 = arith.constant 112 : index
    %206 = vector.load %arg13[%c0_179, %c112_180] : memref<4x1792xf32, #tpu.memory_space<vmem>>, vector<4x1024xf32>
    %c1_181 = arith.constant 1 : index
    %c0_182 = arith.constant 0 : index
    %c0_183 = arith.constant 0 : index
    %207 = vector.load %arg9[%c1_181, %c0_182, %c0_183] : memref<27x4x4xf32, #tpu.memory_space<vmem>>, vector<1x4x4xf32>
    %208 = vector.shape_cast %207 : vector<1x4x4xf32> to vector<4x4xf32>
    %cst_184 = arith.constant dense<0.000000e+00> : vector<4x1024xf32>
    %209 = tpu.matmul %208, %206, %cst_184 {dimension_numbers = #tpu.dot_dimension_numbers<[1], [0], [0], [1], [0, 0, 1, 1], [], []>} : vector<4x4xf32>, vector<4x1024xf32>, vector<4x1024xf32> -> vector<4x1024xf32>
    %c0_185 = arith.constant 0 : index
    %c368_186 = arith.constant 368 : index
    %210 = vector.load %arg13[%c0_185, %c368_186] : memref<4x1792xf32, #tpu.memory_space<vmem>>, vector<4x1024xf32>
    %c10_187 = arith.constant 10 : index
    %c0_188 = arith.constant 0 : index
    %c0_189 = arith.constant 0 : index
    %211 = vector.load %arg9[%c10_187, %c0_188, %c0_189] : memref<27x4x4xf32, #tpu.memory_space<vmem>>, vector<1x4x4xf32>
    %212 = vector.shape_cast %211 : vector<1x4x4xf32> to vector<4x4xf32>
    %cst_190 = arith.constant dense<0.000000e+00> : vector<4x1024xf32>
    %213 = tpu.matmul %212, %210, %cst_190 {dimension_numbers = #tpu.dot_dimension_numbers<[1], [0], [0], [1], [0, 0, 1, 1], [], []>} : vector<4x4xf32>, vector<4x1024xf32>, vector<4x1024xf32> -> vector<4x1024xf32>
    %c0_191 = arith.constant 0 : index
    %c624_192 = arith.constant 624 : index
    %214 = vector.load %arg13[%c0_191, %c624_192] : memref<4x1792xf32, #tpu.memory_space<vmem>>, vector<4x1024xf32>
    %c19_193 = arith.constant 19 : index
    %c0_194 = arith.constant 0 : index
    %c0_195 = arith.constant 0 : index
    %215 = vector.load %arg9[%c19_193, %c0_194, %c0_195] : memref<27x4x4xf32, #tpu.memory_space<vmem>>, vector<1x4x4xf32>
    %216 = vector.shape_cast %215 : vector<1x4x4xf32> to vector<4x4xf32>
    %cst_196 = arith.constant dense<0.000000e+00> : vector<4x1024xf32>
    %217 = tpu.matmul %216, %214, %cst_196 {dimension_numbers = #tpu.dot_dimension_numbers<[1], [0], [0], [1], [0, 0, 1, 1], [], []>} : vector<4x4xf32>, vector<4x1024xf32>, vector<4x1024xf32> -> vector<4x1024xf32>
    %218 = arith.addf %209, %213 : vector<4x1024xf32>
    %219 = arith.addf %218, %217 : vector<4x1024xf32>
    %c1_197 = arith.constant 1 : index
    %c0_198 = arith.constant 0 : index
    %220 = vector.load %arg4[%c1_197, %c0_198] : memref<9x1024xf32, #tpu.memory_space<vmem>>, vector<1x1024xf32>
    %221 = vector.broadcast %220 : vector<1x1024xf32> to vector<4x1024xf32>
    %222 = arith.mulf %219, %221 : vector<4x1024xf32>
    %223 = arith.addf %205, %222 : vector<4x1024xf32>
    %c0_199 = arith.constant 0 : index
    %c113_200 = arith.constant 113 : index
    %224 = vector.load %arg13[%c0_199, %c113_200] : memref<4x1792xf32, #tpu.memory_space<vmem>>, vector<4x1024xf32>
    %c2_201 = arith.constant 2 : index
    %c0_202 = arith.constant 0 : index
    %c0_203 = arith.constant 0 : index
    %225 = vector.load %arg9[%c2_201, %c0_202, %c0_203] : memref<27x4x4xf32, #tpu.memory_space<vmem>>, vector<1x4x4xf32>
    %226 = vector.shape_cast %225 : vector<1x4x4xf32> to vector<4x4xf32>
    %cst_204 = arith.constant dense<0.000000e+00> : vector<4x1024xf32>
    %227 = tpu.matmul %226, %224, %cst_204 {dimension_numbers = #tpu.dot_dimension_numbers<[1], [0], [0], [1], [0, 0, 1, 1], [], []>} : vector<4x4xf32>, vector<4x1024xf32>, vector<4x1024xf32> -> vector<4x1024xf32>
    %c0_205 = arith.constant 0 : index
    %c369_206 = arith.constant 369 : index
    %228 = vector.load %arg13[%c0_205, %c369_206] : memref<4x1792xf32, #tpu.memory_space<vmem>>, vector<4x1024xf32>
    %c11_207 = arith.constant 11 : index
    %c0_208 = arith.constant 0 : index
    %c0_209 = arith.constant 0 : index
    %229 = vector.load %arg9[%c11_207, %c0_208, %c0_209] : memref<27x4x4xf32, #tpu.memory_space<vmem>>, vector<1x4x4xf32>
    %230 = vector.shape_cast %229 : vector<1x4x4xf32> to vector<4x4xf32>
    %cst_210 = arith.constant dense<0.000000e+00> : vector<4x1024xf32>
    %231 = tpu.matmul %230, %228, %cst_210 {dimension_numbers = #tpu.dot_dimension_numbers<[1], [0], [0], [1], [0, 0, 1, 1], [], []>} : vector<4x4xf32>, vector<4x1024xf32>, vector<4x1024xf32> -> vector<4x1024xf32>
    %c0_211 = arith.constant 0 : index
    %c625_212 = arith.constant 625 : index
    %232 = vector.load %arg13[%c0_211, %c625_212] : memref<4x1792xf32, #tpu.memory_space<vmem>>, vector<4x1024xf32>
    %c20_213 = arith.constant 20 : index
    %c0_214 = arith.constant 0 : index
    %c0_215 = arith.constant 0 : index
    %233 = vector.load %arg9[%c20_213, %c0_214, %c0_215] : memref<27x4x4xf32, #tpu.memory_space<vmem>>, vector<1x4x4xf32>
    %234 = vector.shape_cast %233 : vector<1x4x4xf32> to vector<4x4xf32>
    %cst_216 = arith.constant dense<0.000000e+00> : vector<4x1024xf32>
    %235 = tpu.matmul %234, %232, %cst_216 {dimension_numbers = #tpu.dot_dimension_numbers<[1], [0], [0], [1], [0, 0, 1, 1], [], []>} : vector<4x4xf32>, vector<4x1024xf32>, vector<4x1024xf32> -> vector<4x1024xf32>
    %236 = arith.addf %227, %231 : vector<4x1024xf32>
    %237 = arith.addf %236, %235 : vector<4x1024xf32>
    %c2_217 = arith.constant 2 : index
    %c0_218 = arith.constant 0 : index
    %238 = vector.load %arg4[%c2_217, %c0_218] : memref<9x1024xf32, #tpu.memory_space<vmem>>, vector<1x1024xf32>
    %239 = vector.broadcast %238 : vector<1x1024xf32> to vector<4x1024xf32>
    %240 = arith.mulf %237, %239 : vector<4x1024xf32>
    %241 = arith.addf %223, %240 : vector<4x1024xf32>
    %c0_219 = arith.constant 0 : index
    %c127_220 = arith.constant 127 : index
    %242 = vector.load %arg13[%c0_219, %c127_220] : memref<4x1792xf32, #tpu.memory_space<vmem>>, vector<4x1024xf32>
    %c3_221 = arith.constant 3 : index
    %c0_222 = arith.constant 0 : index
    %c0_223 = arith.constant 0 : index
    %243 = vector.load %arg9[%c3_221, %c0_222, %c0_223] : memref<27x4x4xf32, #tpu.memory_space<vmem>>, vector<1x4x4xf32>
    %244 = vector.shape_cast %243 : vector<1x4x4xf32> to vector<4x4xf32>
    %cst_224 = arith.constant dense<0.000000e+00> : vector<4x1024xf32>
    %245 = tpu.matmul %244, %242, %cst_224 {dimension_numbers = #tpu.dot_dimension_numbers<[1], [0], [0], [1], [0, 0, 1, 1], [], []>} : vector<4x4xf32>, vector<4x1024xf32>, vector<4x1024xf32> -> vector<4x1024xf32>
    %c0_225 = arith.constant 0 : index
    %c383_226 = arith.constant 383 : index
    %246 = vector.load %arg13[%c0_225, %c383_226] : memref<4x1792xf32, #tpu.memory_space<vmem>>, vector<4x1024xf32>
    %c12_227 = arith.constant 12 : index
    %c0_228 = arith.constant 0 : index
    %c0_229 = arith.constant 0 : index
    %247 = vector.load %arg9[%c12_227, %c0_228, %c0_229] : memref<27x4x4xf32, #tpu.memory_space<vmem>>, vector<1x4x4xf32>
    %248 = vector.shape_cast %247 : vector<1x4x4xf32> to vector<4x4xf32>
    %cst_230 = arith.constant dense<0.000000e+00> : vector<4x1024xf32>
    %249 = tpu.matmul %248, %246, %cst_230 {dimension_numbers = #tpu.dot_dimension_numbers<[1], [0], [0], [1], [0, 0, 1, 1], [], []>} : vector<4x4xf32>, vector<4x1024xf32>, vector<4x1024xf32> -> vector<4x1024xf32>
    %c0_231 = arith.constant 0 : index
    %c639_232 = arith.constant 639 : index
    %250 = vector.load %arg13[%c0_231, %c639_232] : memref<4x1792xf32, #tpu.memory_space<vmem>>, vector<4x1024xf32>
    %c21_233 = arith.constant 21 : index
    %c0_234 = arith.constant 0 : index
    %c0_235 = arith.constant 0 : index
    %251 = vector.load %arg9[%c21_233, %c0_234, %c0_235] : memref<27x4x4xf32, #tpu.memory_space<vmem>>, vector<1x4x4xf32>
    %252 = vector.shape_cast %251 : vector<1x4x4xf32> to vector<4x4xf32>
    %cst_236 = arith.constant dense<0.000000e+00> : vector<4x1024xf32>
    %253 = tpu.matmul %252, %250, %cst_236 {dimension_numbers = #tpu.dot_dimension_numbers<[1], [0], [0], [1], [0, 0, 1, 1], [], []>} : vector<4x4xf32>, vector<4x1024xf32>, vector<4x1024xf32> -> vector<4x1024xf32>
    %254 = arith.addf %245, %249 : vector<4x1024xf32>
    %255 = arith.addf %254, %253 : vector<4x1024xf32>
    %c3_237 = arith.constant 3 : index
    %c0_238 = arith.constant 0 : index
    %256 = vector.load %arg4[%c3_237, %c0_238] : memref<9x1024xf32, #tpu.memory_space<vmem>>, vector<1x1024xf32>
    %257 = vector.broadcast %256 : vector<1x1024xf32> to vector<4x1024xf32>
    %258 = arith.mulf %255, %257 : vector<4x1024xf32>
    %259 = arith.addf %241, %258 : vector<4x1024xf32>
    %c0_239 = arith.constant 0 : index
    %c128_240 = arith.constant 128 : index
    %260 = vector.load %arg13[%c0_239, %c128_240] : memref<4x1792xf32, #tpu.memory_space<vmem>>, vector<4x1024xf32>
    %c4_241 = arith.constant 4 : index
    %c0_242 = arith.constant 0 : index
    %c0_243 = arith.constant 0 : index
    %261 = vector.load %arg9[%c4_241, %c0_242, %c0_243] : memref<27x4x4xf32, #tpu.memory_space<vmem>>, vector<1x4x4xf32>
    %262 = vector.shape_cast %261 : vector<1x4x4xf32> to vector<4x4xf32>
    %cst_244 = arith.constant dense<0.000000e+00> : vector<4x1024xf32>
    %263 = tpu.matmul %262, %260, %cst_244 {dimension_numbers = #tpu.dot_dimension_numbers<[1], [0], [0], [1], [0, 0, 1, 1], [], []>} : vector<4x4xf32>, vector<4x1024xf32>, vector<4x1024xf32> -> vector<4x1024xf32>
    %c0_245 = arith.constant 0 : index
    %c384_246 = arith.constant 384 : index
    %264 = vector.load %arg13[%c0_245, %c384_246] : memref<4x1792xf32, #tpu.memory_space<vmem>>, vector<4x1024xf32>
    %c13_247 = arith.constant 13 : index
    %c0_248 = arith.constant 0 : index
    %c0_249 = arith.constant 0 : index
    %265 = vector.load %arg9[%c13_247, %c0_248, %c0_249] : memref<27x4x4xf32, #tpu.memory_space<vmem>>, vector<1x4x4xf32>
    %266 = vector.shape_cast %265 : vector<1x4x4xf32> to vector<4x4xf32>
    %cst_250 = arith.constant dense<0.000000e+00> : vector<4x1024xf32>
    %267 = tpu.matmul %266, %264, %cst_250 {dimension_numbers = #tpu.dot_dimension_numbers<[1], [0], [0], [1], [0, 0, 1, 1], [], []>} : vector<4x4xf32>, vector<4x1024xf32>, vector<4x1024xf32> -> vector<4x1024xf32>
    %c0_251 = arith.constant 0 : index
    %c640_252 = arith.constant 640 : index
    %268 = vector.load %arg13[%c0_251, %c640_252] : memref<4x1792xf32, #tpu.memory_space<vmem>>, vector<4x1024xf32>
    %c22_253 = arith.constant 22 : index
    %c0_254 = arith.constant 0 : index
    %c0_255 = arith.constant 0 : index
    %269 = vector.load %arg9[%c22_253, %c0_254, %c0_255] : memref<27x4x4xf32, #tpu.memory_space<vmem>>, vector<1x4x4xf32>
    %270 = vector.shape_cast %269 : vector<1x4x4xf32> to vector<4x4xf32>
    %cst_256 = arith.constant dense<0.000000e+00> : vector<4x1024xf32>
    %271 = tpu.matmul %270, %268, %cst_256 {dimension_numbers = #tpu.dot_dimension_numbers<[1], [0], [0], [1], [0, 0, 1, 1], [], []>} : vector<4x4xf32>, vector<4x1024xf32>, vector<4x1024xf32> -> vector<4x1024xf32>
    %272 = arith.addf %263, %267 : vector<4x1024xf32>
    %273 = arith.addf %272, %271 : vector<4x1024xf32>
    %274 = arith.addf %259, %273 : vector<4x1024xf32>
    %c0_257 = arith.constant 0 : index
    %c129_258 = arith.constant 129 : index
    %275 = vector.load %arg13[%c0_257, %c129_258] : memref<4x1792xf32, #tpu.memory_space<vmem>>, vector<4x1024xf32>
    %c5_259 = arith.constant 5 : index
    %c0_260 = arith.constant 0 : index
    %c0_261 = arith.constant 0 : index
    %276 = vector.load %arg9[%c5_259, %c0_260, %c0_261] : memref<27x4x4xf32, #tpu.memory_space<vmem>>, vector<1x4x4xf32>
    %277 = vector.shape_cast %276 : vector<1x4x4xf32> to vector<4x4xf32>
    %cst_262 = arith.constant dense<0.000000e+00> : vector<4x1024xf32>
    %278 = tpu.matmul %277, %275, %cst_262 {dimension_numbers = #tpu.dot_dimension_numbers<[1], [0], [0], [1], [0, 0, 1, 1], [], []>} : vector<4x4xf32>, vector<4x1024xf32>, vector<4x1024xf32> -> vector<4x1024xf32>
    %c0_263 = arith.constant 0 : index
    %c385_264 = arith.constant 385 : index
    %279 = vector.load %arg13[%c0_263, %c385_264] : memref<4x1792xf32, #tpu.memory_space<vmem>>, vector<4x1024xf32>
    %c14_265 = arith.constant 14 : index
    %c0_266 = arith.constant 0 : index
    %c0_267 = arith.constant 0 : index
    %280 = vector.load %arg9[%c14_265, %c0_266, %c0_267] : memref<27x4x4xf32, #tpu.memory_space<vmem>>, vector<1x4x4xf32>
    %281 = vector.shape_cast %280 : vector<1x4x4xf32> to vector<4x4xf32>
    %cst_268 = arith.constant dense<0.000000e+00> : vector<4x1024xf32>
    %282 = tpu.matmul %281, %279, %cst_268 {dimension_numbers = #tpu.dot_dimension_numbers<[1], [0], [0], [1], [0, 0, 1, 1], [], []>} : vector<4x4xf32>, vector<4x1024xf32>, vector<4x1024xf32> -> vector<4x1024xf32>
    %c0_269 = arith.constant 0 : index
    %c641_270 = arith.constant 641 : index
    %283 = vector.load %arg13[%c0_269, %c641_270] : memref<4x1792xf32, #tpu.memory_space<vmem>>, vector<4x1024xf32>
    %c23_271 = arith.constant 23 : index
    %c0_272 = arith.constant 0 : index
    %c0_273 = arith.constant 0 : index
    %284 = vector.load %arg9[%c23_271, %c0_272, %c0_273] : memref<27x4x4xf32, #tpu.memory_space<vmem>>, vector<1x4x4xf32>
    %285 = vector.shape_cast %284 : vector<1x4x4xf32> to vector<4x4xf32>
    %cst_274 = arith.constant dense<0.000000e+00> : vector<4x1024xf32>
    %286 = tpu.matmul %285, %283, %cst_274 {dimension_numbers = #tpu.dot_dimension_numbers<[1], [0], [0], [1], [0, 0, 1, 1], [], []>} : vector<4x4xf32>, vector<4x1024xf32>, vector<4x1024xf32> -> vector<4x1024xf32>
    %287 = arith.addf %278, %282 : vector<4x1024xf32>
    %288 = arith.addf %287, %286 : vector<4x1024xf32>
    %c5_275 = arith.constant 5 : index
    %c0_276 = arith.constant 0 : index
    %289 = vector.load %arg4[%c5_275, %c0_276] : memref<9x1024xf32, #tpu.memory_space<vmem>>, vector<1x1024xf32>
    %290 = vector.broadcast %289 : vector<1x1024xf32> to vector<4x1024xf32>
    %291 = arith.mulf %288, %290 : vector<4x1024xf32>
    %292 = arith.addf %274, %291 : vector<4x1024xf32>
    %c0_277 = arith.constant 0 : index
    %c143_278 = arith.constant 143 : index
    %293 = vector.load %arg13[%c0_277, %c143_278] : memref<4x1792xf32, #tpu.memory_space<vmem>>, vector<4x1024xf32>
    %c6_279 = arith.constant 6 : index
    %c0_280 = arith.constant 0 : index
    %c0_281 = arith.constant 0 : index
    %294 = vector.load %arg9[%c6_279, %c0_280, %c0_281] : memref<27x4x4xf32, #tpu.memory_space<vmem>>, vector<1x4x4xf32>
    %295 = vector.shape_cast %294 : vector<1x4x4xf32> to vector<4x4xf32>
    %cst_282 = arith.constant dense<0.000000e+00> : vector<4x1024xf32>
    %296 = tpu.matmul %295, %293, %cst_282 {dimension_numbers = #tpu.dot_dimension_numbers<[1], [0], [0], [1], [0, 0, 1, 1], [], []>} : vector<4x4xf32>, vector<4x1024xf32>, vector<4x1024xf32> -> vector<4x1024xf32>
    %c0_283 = arith.constant 0 : index
    %c399_284 = arith.constant 399 : index
    %297 = vector.load %arg13[%c0_283, %c399_284] : memref<4x1792xf32, #tpu.memory_space<vmem>>, vector<4x1024xf32>
    %c15_285 = arith.constant 15 : index
    %c0_286 = arith.constant 0 : index
    %c0_287 = arith.constant 0 : index
    %298 = vector.load %arg9[%c15_285, %c0_286, %c0_287] : memref<27x4x4xf32, #tpu.memory_space<vmem>>, vector<1x4x4xf32>
    %299 = vector.shape_cast %298 : vector<1x4x4xf32> to vector<4x4xf32>
    %cst_288 = arith.constant dense<0.000000e+00> : vector<4x1024xf32>
    %300 = tpu.matmul %299, %297, %cst_288 {dimension_numbers = #tpu.dot_dimension_numbers<[1], [0], [0], [1], [0, 0, 1, 1], [], []>} : vector<4x4xf32>, vector<4x1024xf32>, vector<4x1024xf32> -> vector<4x1024xf32>
    %c0_289 = arith.constant 0 : index
    %c655_290 = arith.constant 655 : index
    %301 = vector.load %arg13[%c0_289, %c655_290] : memref<4x1792xf32, #tpu.memory_space<vmem>>, vector<4x1024xf32>
    %c24_291 = arith.constant 24 : index
    %c0_292 = arith.constant 0 : index
    %c0_293 = arith.constant 0 : index
    %302 = vector.load %arg9[%c24_291, %c0_292, %c0_293] : memref<27x4x4xf32, #tpu.memory_space<vmem>>, vector<1x4x4xf32>
    %303 = vector.shape_cast %302 : vector<1x4x4xf32> to vector<4x4xf32>
    %cst_294 = arith.constant dense<0.000000e+00> : vector<4x1024xf32>
    %304 = tpu.matmul %303, %301, %cst_294 {dimension_numbers = #tpu.dot_dimension_numbers<[1], [0], [0], [1], [0, 0, 1, 1], [], []>} : vector<4x4xf32>, vector<4x1024xf32>, vector<4x1024xf32> -> vector<4x1024xf32>
    %305 = arith.addf %296, %300 : vector<4x1024xf32>
    %306 = arith.addf %305, %304 : vector<4x1024xf32>
    %c6_295 = arith.constant 6 : index
    %c0_296 = arith.constant 0 : index
    %307 = vector.load %arg4[%c6_295, %c0_296] : memref<9x1024xf32, #tpu.memory_space<vmem>>, vector<1x1024xf32>
    %308 = vector.broadcast %307 : vector<1x1024xf32> to vector<4x1024xf32>
    %309 = arith.mulf %306, %308 : vector<4x1024xf32>
    %310 = arith.addf %292, %309 : vector<4x1024xf32>
    %c0_297 = arith.constant 0 : index
    %c144_298 = arith.constant 144 : index
    %311 = vector.load %arg13[%c0_297, %c144_298] : memref<4x1792xf32, #tpu.memory_space<vmem>>, vector<4x1024xf32>
    %c7_299 = arith.constant 7 : index
    %c0_300 = arith.constant 0 : index
    %c0_301 = arith.constant 0 : index
    %312 = vector.load %arg9[%c7_299, %c0_300, %c0_301] : memref<27x4x4xf32, #tpu.memory_space<vmem>>, vector<1x4x4xf32>
    %313 = vector.shape_cast %312 : vector<1x4x4xf32> to vector<4x4xf32>
    %cst_302 = arith.constant dense<0.000000e+00> : vector<4x1024xf32>
    %314 = tpu.matmul %313, %311, %cst_302 {dimension_numbers = #tpu.dot_dimension_numbers<[1], [0], [0], [1], [0, 0, 1, 1], [], []>} : vector<4x4xf32>, vector<4x1024xf32>, vector<4x1024xf32> -> vector<4x1024xf32>
    %c0_303 = arith.constant 0 : index
    %c400_304 = arith.constant 400 : index
    %315 = vector.load %arg13[%c0_303, %c400_304] : memref<4x1792xf32, #tpu.memory_space<vmem>>, vector<4x1024xf32>
    %c16_305 = arith.constant 16 : index
    %c0_306 = arith.constant 0 : index
    %c0_307 = arith.constant 0 : index
    %316 = vector.load %arg9[%c16_305, %c0_306, %c0_307] : memref<27x4x4xf32, #tpu.memory_space<vmem>>, vector<1x4x4xf32>
    %317 = vector.shape_cast %316 : vector<1x4x4xf32> to vector<4x4xf32>
    %cst_308 = arith.constant dense<0.000000e+00> : vector<4x1024xf32>
    %318 = tpu.matmul %317, %315, %cst_308 {dimension_numbers = #tpu.dot_dimension_numbers<[1], [0], [0], [1], [0, 0, 1, 1], [], []>} : vector<4x4xf32>, vector<4x1024xf32>, vector<4x1024xf32> -> vector<4x1024xf32>
    %c0_309 = arith.constant 0 : index
    %c656_310 = arith.constant 656 : index
    %319 = vector.load %arg13[%c0_309, %c656_310] : memref<4x1792xf32, #tpu.memory_space<vmem>>, vector<4x1024xf32>
    %c25_311 = arith.constant 25 : index
    %c0_312 = arith.constant 0 : index
    %c0_313 = arith.constant 0 : index
    %320 = vector.load %arg9[%c25_311, %c0_312, %c0_313] : memref<27x4x4xf32, #tpu.memory_space<vmem>>, vector<1x4x4xf32>
    %321 = vector.shape_cast %320 : vector<1x4x4xf32> to vector<4x4xf32>
    %cst_314 = arith.constant dense<0.000000e+00> : vector<4x1024xf32>
    %322 = tpu.matmul %321, %319, %cst_314 {dimension_numbers = #tpu.dot_dimension_numbers<[1], [0], [0], [1], [0, 0, 1, 1], [], []>} : vector<4x4xf32>, vector<4x1024xf32>, vector<4x1024xf32> -> vector<4x1024xf32>
    %323 = arith.addf %314, %318 : vector<4x1024xf32>
    %324 = arith.addf %323, %322 : vector<4x1024xf32>
    %c7_315 = arith.constant 7 : index
    %c0_316 = arith.constant 0 : index
    %325 = vector.load %arg4[%c7_315, %c0_316] : memref<9x1024xf32, #tpu.memory_space<vmem>>, vector<1x1024xf32>
    %326 = vector.broadcast %325 : vector<1x1024xf32> to vector<4x1024xf32>
    %327 = arith.mulf %324, %326 : vector<4x1024xf32>
    %328 = arith.addf %310, %327 : vector<4x1024xf32>
    %c0_317 = arith.constant 0 : index
    %c145_318 = arith.constant 145 : index
    %329 = vector.load %arg13[%c0_317, %c145_318] : memref<4x1792xf32, #tpu.memory_space<vmem>>, vector<4x1024xf32>
    %c8_319 = arith.constant 8 : index
    %c0_320 = arith.constant 0 : index
    %c0_321 = arith.constant 0 : index
    %330 = vector.load %arg9[%c8_319, %c0_320, %c0_321] : memref<27x4x4xf32, #tpu.memory_space<vmem>>, vector<1x4x4xf32>
    %331 = vector.shape_cast %330 : vector<1x4x4xf32> to vector<4x4xf32>
    %cst_322 = arith.constant dense<0.000000e+00> : vector<4x1024xf32>
    %332 = tpu.matmul %331, %329, %cst_322 {dimension_numbers = #tpu.dot_dimension_numbers<[1], [0], [0], [1], [0, 0, 1, 1], [], []>} : vector<4x4xf32>, vector<4x1024xf32>, vector<4x1024xf32> -> vector<4x1024xf32>
    %c0_323 = arith.constant 0 : index
    %c401_324 = arith.constant 401 : index
    %333 = vector.load %arg13[%c0_323, %c401_324] : memref<4x1792xf32, #tpu.memory_space<vmem>>, vector<4x1024xf32>
    %c17_325 = arith.constant 17 : index
    %c0_326 = arith.constant 0 : index
    %c0_327 = arith.constant 0 : index
    %334 = vector.load %arg9[%c17_325, %c0_326, %c0_327] : memref<27x4x4xf32, #tpu.memory_space<vmem>>, vector<1x4x4xf32>
    %335 = vector.shape_cast %334 : vector<1x4x4xf32> to vector<4x4xf32>
    %cst_328 = arith.constant dense<0.000000e+00> : vector<4x1024xf32>
    %336 = tpu.matmul %335, %333, %cst_328 {dimension_numbers = #tpu.dot_dimension_numbers<[1], [0], [0], [1], [0, 0, 1, 1], [], []>} : vector<4x4xf32>, vector<4x1024xf32>, vector<4x1024xf32> -> vector<4x1024xf32>
    %c0_329 = arith.constant 0 : index
    %c657_330 = arith.constant 657 : index
    %337 = vector.load %arg13[%c0_329, %c657_330] : memref<4x1792xf32, #tpu.memory_space<vmem>>, vector<4x1024xf32>
    %c26_331 = arith.constant 26 : index
    %c0_332 = arith.constant 0 : index
    %c0_333 = arith.constant 0 : index
    %338 = vector.load %arg9[%c26_331, %c0_332, %c0_333] : memref<27x4x4xf32, #tpu.memory_space<vmem>>, vector<1x4x4xf32>
    %339 = vector.shape_cast %338 : vector<1x4x4xf32> to vector<4x4xf32>
    %cst_334 = arith.constant dense<0.000000e+00> : vector<4x1024xf32>
    %340 = tpu.matmul %339, %337, %cst_334 {dimension_numbers = #tpu.dot_dimension_numbers<[1], [0], [0], [1], [0, 0, 1, 1], [], []>} : vector<4x4xf32>, vector<4x1024xf32>, vector<4x1024xf32> -> vector<4x1024xf32>
    %341 = arith.addf %332, %336 : vector<4x1024xf32>
    %342 = arith.addf %341, %340 : vector<4x1024xf32>
    %c8_335 = arith.constant 8 : index
    %c0_336 = arith.constant 0 : index
    %343 = vector.load %arg4[%c8_335, %c0_336] : memref<9x1024xf32, #tpu.memory_space<vmem>>, vector<1x1024xf32>
    %344 = vector.broadcast %343 : vector<1x1024xf32> to vector<4x1024xf32>
    %345 = arith.mulf %342, %344 : vector<4x1024xf32>
    %346 = arith.addf %328, %345 : vector<4x1024xf32>
    %c0_337 = arith.constant 0 : index
    %c0_338 = arith.constant 0 : index
    %347 = vector.load %arg10[%c0_337, %c0_338] : memref<4x1xf32, #tpu.memory_space<vmem>>, vector<4x1xf32>
    %348 = vector.broadcast %347 : vector<4x1xf32> to vector<4x1024xf32>
    %349 = arith.addf %346, %348 : vector<4x1024xf32>
    %cst_339 = arith.constant 0.000000e+00 : f32
    %350 = vector.broadcast %cst_339 : f32 to vector<4x1024xf32>
    %351 = arith.maximumf %349, %350 : vector<4x1024xf32>
    %c0_340 = arith.constant 0 : index
    %c0_341 = arith.constant 0 : index
    %c0_342 = arith.constant 0 : index
    %352 = vector.load %arg11[%c0_340, %c0_341, %c0_342] : memref<1x4x1024xf32, #tpu.memory_space<vmem>>, vector<1x4x1024xf32>
    %353 = vector.shape_cast %352 : vector<1x4x1024xf32> to vector<4x1024xf32>
    %354 = vector.shape_cast %351 : vector<4x1024xf32> to vector<1x4x1024xf32>
    tpu.vector_store %arg11[%c0_340, %c0_341, %c0_342], %354 {strides = array<i32>} : memref<1x4x1024xf32, #tpu.memory_space<vmem>>, vector<1x4x1024xf32>,
    return
  }
  func.func @transform_0(%arg0: i32) -> (i32, i32, i32) {
    %c0_i32 = arith.constant 0 : i32
    %c0_i32_0 = arith.constant 0 : i32
    %c0_i32_1 = arith.constant 0 : i32
    return %arg0, %c0_i32, %c0_i32_0 : i32, i32, i32
  }
  func.func @transform_1(%arg0: i32) -> (i32, i32, i32) {
    %c0_i32 = arith.constant 0 : i32
    %c0_i32_0 = arith.constant 0 : i32
    %c0_i32_1 = arith.constant 0 : i32
    return %arg0, %c0_i32, %c0_i32_0 : i32, i32, i32
  }
  func.func @transform_2(%arg0: i32) -> (i32, i32) {
    %c0_i32 = arith.constant 0 : i32
    %c0_i32_0 = arith.constant 0 : i32
    %c0_i32_1 = arith.constant 0 : i32
    return %c0_i32, %c0_i32_0 : i32, i32
  }
  func.func @transform_3(%arg0: i32) -> (i32, i32) {
    %c0_i32 = arith.constant 0 : i32
    %c0_i32_0 = arith.constant 0 : i32
    %c0_i32_1 = arith.constant 0 : i32
    return %c0_i32, %c0_i32_0 : i32, i32
  }
  func.func @transform_4(%arg0: i32) -> (i32, i32) {
    %c0_i32 = arith.constant 0 : i32
    %c0_i32_0 = arith.constant 0 : i32
    %c0_i32_1 = arith.constant 0 : i32
    return %c0_i32, %c0_i32_0 : i32, i32
  }
  func.func @transform_5(%arg0: i32) -> (i32, i32) {
    %c0_i32 = arith.constant 0 : i32
    %c0_i32_0 = arith.constant 0 : i32
    %c0_i32_1 = arith.constant 0 : i32
    return %c0_i32, %c0_i32_0 : i32, i32
  }
  func.func @transform_6(%arg0: i32) -> (i32, i32, i32) {
    %c0_i32 = arith.constant 0 : i32
    %c0_i32_0 = arith.constant 0 : i32
    %c0_i32_1 = arith.constant 0 : i32
    %c0_i32_2 = arith.constant 0 : i32
    return %c0_i32, %c0_i32_0, %c0_i32_1 : i32, i32, i32
  }
  func.func @transform_7(%arg0: i32) -> (i32, i32) {
    %c0_i32 = arith.constant 0 : i32
    %c0_i32_0 = arith.constant 0 : i32
    %c0_i32_1 = arith.constant 0 : i32
    return %c0_i32, %c0_i32_0 : i32, i32
  }
  func.func @transform_8(%arg0: i32) -> (i32, i32, i32) {
    %c0_i32 = arith.constant 0 : i32
    %c0_i32_0 = arith.constant 0 : i32
    %c0_i32_1 = arith.constant 0 : i32
    %c0_i32_2 = arith.constant 0 : i32
    return %c0_i32, %c0_i32_0, %c0_i32_1 : i32, i32, i32
  }
  func.func @transform_9(%arg0: i32) -> (i32, i32) {
    %c0_i32 = arith.constant 0 : i32
    %c0_i32_0 = arith.constant 0 : i32
    %c0_i32_1 = arith.constant 0 : i32
    return %c0_i32, %c0_i32_0 : i32, i32
  }
  func.func @transform_10(%arg0: i32) -> (i32, i32, i32) {
    %c0_i32 = arith.constant 0 : i32
    %c0_i32_0 = arith.constant 0 : i32
    %c0_i32_1 = arith.constant 0 : i32
    return %arg0, %c0_i32, %c0_i32_0 : i32, i32, i32
  }
}

</mosaic_0001>

<bundles_post_ra>
// kernel: up_block_forward.1
= control target key start
LH: loop header
LB: loop body
LE: loop exit
PB: predicated region body
PF: predicated region fallthrough
CT: control target
= control target key end

     0   :  { %s21092_s13 = smov 0   ;;  %s25164_s0 = inlined_call_operand.vmem [shape: f32[2,8,256], index: 0, kind: input, shape index: {}]   ;;  %s25165_s1 = inlined_call_operand.vmem [shape: f32[2,4,1024], index: 1, kind: input, shape index: {}]   ;;  %s25166_s2 = inlined_call_operand.vmem [shape: f32[256,1024], index: 2, kind: input, shape index: {}]   ;;  %s25167_s3 = inlined_call_operand.vmem [shape: f32[9,1024], index: 3, kind: input, shape index: {}]   ;;  %s25168_s4 = inlined_call_operand.vmem [shape: f32[4,8], index: 4, kind: input, shape index: {}]   ;;  %s25169_s5 = inlined_call_operand.vmem [shape: f32[4,1], index: 5, kind: input, shape index: {}]   ;;  %s25170_s6 = inlined_call_operand.vmem [shape: f32[27,4,8], index: 6, kind: input, shape index: {}]   ;;  %s25171_s7 = inlined_call_operand.vmem [shape: f32[4,1], index: 7, kind: input, shape index: {}]   ;;  %s25172_s8 = inlined_call_operand.vmem [shape: f32[27,4,4], index: 8, kind: input, shape index: {}]   ;;  %s25173_s9 = inlined_call_operand.vmem [shape: f32[4,1], index: 9, kind: input, shape index: {}]   ;;  %s25174_s10 = inlined_call_operand.vmem [shape: f32[2,4,1024], index: 10, kind: output, shape index: {}]  }
   0x1 LB: > { %s19745_s14 = sadd.s32 4294967295, %s21025_s13   ;;  %p19749_p0 = scmp.ge.s32.totalorder %s21025_s13, 1  ;;  %s21025_s13 = sphi %s21092_s13, %s20_s13  }
   0x2   : > { %p322_p1 = scmp.lt.s32.totalorder %s21025_s13, 3 }
   0x4   : > { %p323_p2 = pnand %p19749_p0, %p322_p1 }
   0x6   : > { %326 = sbr.rel (%p323_p2) target bundleno = 1788 (0x6fc), region = 60 }
   0xd   : > { %p365_p3 = scmp.lt.s32.totalorder %s19745_s14, 1  ;;  %v21027_v0 = vmov 0.0   ;;  %v21028_v1 = vmov 0   ;;  %v393_v2 = vld [vmem:[%s25169_s5] sm:$0xf]  ;;  %v475_v3 = vld [vmem:[%s25166_s2 + $0x8] sm:$0xff] }
   0xe   : > { %467 = vmatprep.mubr.f32.mxu0 %v21027_v0  ;;  %380 = vst [vmem:[#allocation2] sm:$0xff] %v21027_v0  ;;  %386 = vst [vmem:[#allocation3] sm:$0xff] %v21027_v0  ;;  %20836 = vset.pattern.permute.xlu0 %v21028_v1  ;;  %v483_v4 = vld [vmem:[%s25166_s2 + $0x48] sm:$0xff]  ;;  %v477_v6 = vld [vmem:[%s25166_s2 + $0x18] sm:$0xff]  ;;  %vm399_vm0 = vcmask 64512   ;;  %s21029_s19 = smov 17  }
   0xf   : > { %387 = vst [vmem:[#allocation3 + $0x8] sm:$0xf] %v21027_v0  ;;  %388 = vst [vmem:[#allocation3 + $0x2c] sm:$0xff] %v21027_v0  ;;  %s25228_s14 = smov (!%p365_p3, %s19745_s14), 1  ;;  %396 = vperm.xlu0 %20836, %v393_v2   ;;  %v20274_v5 = vpack.c.bf16 %v483_v4, %v475_v3  ;;  %v485_v7 = vld [vmem:[%s25166_s2 + $0x58] sm:$0xff]  ;;  %v474_v8 = vld [vmem:[%s25166_s2] sm:$0xff]  ;;  %20838 = vrot.lane.b32.xlu1 %v21027_v0, %s21029_s19 }
  0x10   : > { %389 = vst [vmem:[#allocation3 + $0x34] sm:$0xf] %v21027_v0  ;;  %v482_v9 = vld [vmem:[%s25166_s2 + $0x40] sm:$0xff]  ;;  %v476_v10 = vld [vmem:[%s25166_s2 + $0x10] sm:$0xff]  ;;  %s20271_s15 = sshll.u32 %s25228_s14, 4  ;;  %s20272_s16 = sshll.u32 %s25228_s14, 5  ;;  %v20338_v17 = vpack.c.bf16 %v485_v7, %v477_v6 }
  0x11   : > { %v484_v11 = vld [vmem:[%s25166_s2 + $0x50] sm:$0xff]  ;;  %v390_v12 = vld [vmem:[%s25168_s4] sm:$0xf]  ;;  %20275 = vmatprep.subr.bf16.mxu1 %v20274_v5  ;;  %v20276_v13 = vpack.c.bf16 %v482_v9, %v474_v8  ;;  %v491_v14 = vld [vmem:[%s25166_s2 + $0x88] sm:$0xff]  ;;  %s369_s27 = scalar_lea.vmem %s25164_s0, %s20271_s15  ;;  %s374_s30 = scalar_lea.vmem %s25165_s1, %s20272_s16  ;;  %vm1087_vm1 = vcmask 138240   ;;  %vm2119_vm2 = vcmask 130048  }
  0x12   : > { %v499_v15 = vld [vmem:[%s25166_s2 + $0xc8] sm:$0xff]  ;;  %v493_v16 = vld [vmem:[%s25166_s2 + $0x98] sm:$0xff]  ;;  %v490_v20 = vld [vmem:[%s25166_s2 + $0x80] sm:$0xff]  ;;  %v20340_v25 = vpack.c.bf16 %v484_v11, %v476_v10  ;;  %s21030_s20 = smov 16   ;;  %s21031_s28 = smov 15   ;;  %vm3132_vm3 = vcmask 121856  }
  0x13   : > { %v20278_v18 = vpack.c.bf16 %v499_v15, %v491_v14  ;;  %v501_v19 = vld [vmem:[%s25166_s2 + $0xd8] sm:$0xff]  ;;  %v498_v21 = vld [vmem:[%s25166_s2 + $0xc0] sm:$0xff]  ;;  %v392_v22 = vld [vmem:[%s369_s27 + $0x8] sm:$0xff]  ;;  %20277 = vmatpush1.bf16.msra.mxu1 %v20276_v13  ;;  %1734 = vrot.lane.b32.xlu0 %v21027_v0, %s21029_s19  ;;  %s21032_s29 = smov 1   ;;  %s21033_s12 = smov 127   ;;  %vm4145_vm4 = vcmask 7168  }
  0x14   : > { %v1022_v23 = vld [vmem:[%s374_s30] sm:$0xff]  ;;  %v1023_v24 = vld [vmem:[%s374_s30 + $0x8] sm:$0xff]  ;;  %v20280_v26 = vpack.c.bf16 %v498_v21, %v490_v20  ;;  %403 = vmatprep.subr.mxu0 %v392_v22  ;;  %v1024_v27 = vld [vmem:[%s374_s30 + $0x10] sm:$0xff]  ;;  %v20342_v32 = vpack.c.bf16 %v501_v19, %v493_v16  ;;  %20843 = vrot.lane.b32.xlu1 %v21027_v0, %s21029_s19  ;;  %s21034_s17 = smov 113   ;;  %s21035_s21 = smov 112   ;;  %vm6061_vm5 = vcmask 1039360  }
  0x15   : > { %v1025_v28 = vld [vmem:[%s374_s30 + $0x18] sm:$0xff]  ;;  %v1030_v29 = vcombine.low %v1022_v23, %v1022_v23  ;;  %v1031_v30 = vcombine.low %v1023_v24, %v1023_v24  ;;  %1039 = vst [vmem:[#allocation2 + $0x20] sm:$0xf0] %v1022_v23  ;;  %1041 = vst [vmem:[#allocation2 + $0x30] sm:$0xf0] %v1023_v24  ;;  %v391_v31 = vld [vmem:[%s369_s27] sm:$0xff]  ;;  %20279 = vmatprep.subr.bf16.mxu1 %v20278_v18  ;;  %v1032_v33 = vcombine.low %v1024_v27, %v1024_v27 }
  0x16   : > { %v1033_v34 = vcombine.low %v1025_v28, %v1025_v28  ;;  %1043 = vst [vmem:[#allocation2 + $0x40] sm:$0xf0] %v1024_v27  ;;  %1045 = vst [vmem:[#allocation2 + $0x50] sm:$0xf0] %v1025_v28  ;;  %404 = vmatpush1.msra.mxu0 %v391_v31  ;;  %v492_v35 = vld [vmem:[%s25166_s2 + $0x90] sm:$0xff]  ;;  %v507_v37 = vld [vmem:[%s25166_s2 + $0x108] sm:$0xff] }
  0x17   : > { %v500_v36 = vld [vmem:[%s25166_s2 + $0xd0] sm:$0xff]  ;;  %1038 = vst [vmem:[#allocation2 + $0x18] sm:$0xf0] %v1030_v29  ;;  %1040 = vst [vmem:[#allocation2 + $0x28] sm:$0xf0] %v1031_v30  ;;  %19756 = vmatmul.mubr.msk.f32.vlgmr.msra.gmra.mrb[0].mxu0 %vm399_vm0, %v390_v12  ;;  %20339 = vmatprep.subr.bf16.mxu0 %v20338_v17  ;;  %v515_v38 = vld [vmem:[%s25166_s2 + $0x148] sm:$0xff] }
  0x18   : > { %v509_v39 = vld [vmem:[%s25166_s2 + $0x118] sm:$0xff]  ;;  %1042 = vst [vmem:[#allocation2 + $0x38] sm:$0xf0] %v1032_v33  ;;  %1044 = vst [vmem:[#allocation2 + $0x48] sm:$0xf0] %v1033_v34  ;;  %20341 = vmatpush1.bf16.msra.mxu0 %v20340_v25  ;;  %20281 = vmatpush1.bf16.msra.mxu1 %v20280_v26  ;;  %v20344_v41 = vpack.c.bf16 %v500_v36, %v492_v35  ;;  %v20282_v42 = vpack.c.bf16 %v515_v38, %v507_v37  ;;  %v506_v43 = vld [vmem:[%s25166_s2 + $0x100] sm:$0xff] }
  0x19   : > { %v517_v40 = vld [vmem:[%s25166_s2 + $0x158] sm:$0xff]  ;;  %v514_v44 = vld [vmem:[%s25166_s2 + $0x140] sm:$0xff]  ;;  %v508_v45 = vld [vmem:[%s25166_s2 + $0x110] sm:$0xff]  ;;  %20343 = vmatprep.subr.bf16.mxu0 %v20342_v32  ;;  %2746 = vrot.lane.b32.xlu0 %v21027_v0, %s21030_s20  ;;  %s21036_s22 = smov 111   ;;  %vm7094_vm6 = vcmask 924672   ;;  %vm8107_vm7 = vcmask 916480  }
  0x1a   : > { %v20346_v46 = vpack.c.bf16 %v517_v40, %v509_v39  ;;  %v20284_v47 = vpack.c.bf16 %v514_v44, %v506_v43  ;;  %v516_v48 = vld [vmem:[%s25166_s2 + $0x150] sm:$0xff]  ;;  %v523_v49 = vld [vmem:[%s25166_s2 + $0x188] sm:$0xff]  ;;  %20283 = vmatprep.subr.bf16.mxu1 %v20282_v42  ;;  %v525_v52 = vld [vmem:[%s25166_s2 + $0x198] sm:$0xff]  ;;  %20848 = vrot.lane.b32.xlu1 %v21027_v0, %s21030_s20  ;;  %vm9120_vm8 = vcmask 908288   ;;  %vm10202_vm9 = vcmask 1043456  }
  0x1b   : > { %v531_v50 = vld [vmem:[%s25166_s2 + $0x1c8] sm:$0xff]  ;;  %v533_v53 = vld [vmem:[%s25166_s2 + $0x1d8] sm:$0xff]  ;;  %v522_v54 = vld [vmem:[%s25166_s2 + $0x180] sm:$0xff]  ;;  %v20348_v56 = vpack.c.bf16 %v516_v48, %v508_v45  ;;  %vm10198_vm10 = vcmask 31744  }
  0x1c   : > { %v20286_v51 = vpack.c.bf16 %v531_v50, %v523_v49  ;;  %v530_v55 = vld [vmem:[%s25166_s2 + $0x1c0] sm:$0xff]  ;;  %20345 = vmatpush1.bf16.msra.mxu0 %v20344_v41  ;;  %20285 = vmatpush1.bf16.msra.mxu1 %v20284_v47  ;;  %v524_v58 = vld [vmem:[%s25166_s2 + $0x190] sm:$0xff]  ;;  %v539_v59 = vld [vmem:[%s25166_s2 + $0x208] sm:$0xff]  ;;  %v20350_v61 = vpack.c.bf16 %v533_v53, %v525_v52 }
  0x1d   : > { %v20288_v57 = vpack.c.bf16 %v530_v55, %v522_v54  ;;  %v547_v60 = vld [vmem:[%s25166_s2 + $0x248] sm:$0xff]  ;;  %20347 = vmatprep.subr.bf16.mxu0 %v20346_v46  ;;  %v532_v62 = vld [vmem:[%s25166_s2 + $0x1d0] sm:$0xff]  ;;  %v538_v1 = vld [vmem:[%s25166_s2 + $0x200] sm:$0xff] }
  0x1e   : > { %20287 = vmatprep.subr.bf16.mxu1 %v20286_v51  ;;  %v20290_v63 = vpack.c.bf16 %v547_v60, %v539_v59  ;;  %v546_v2 = vld [vmem:[%s25166_s2 + $0x240] sm:$0xff]  ;;  %v541_v3 = vld [vmem:[%s25166_s2 + $0x218] sm:$0xff]  ;;  %v555_v5 = vld [vmem:[%s25166_s2 + $0x288] sm:$0xff]  ;;  %v20352_v7 = vpack.c.bf16 %v532_v62, %v524_v58  ;;  %20853 = vrot.lane.b32.xlu1 %v21027_v0, %s21030_s20 }
  0x1f   : > { %v549_v4 = vld [vmem:[%s25166_s2 + $0x258] sm:$0xff]  ;;  %v563_v6 = vld [vmem:[%s25166_s2 + $0x2c8] sm:$0xff]  ;;  %v20292_v8 = vpack.c.bf16 %v546_v2, %v538_v1  ;;  %v540_v9 = vld [vmem:[%s25166_s2 + $0x210] sm:$0xff] }
  0x20   : > { %20349 = vmatpush1.bf16.msra.mxu0 %v20348_v56  ;;  %20289 = vmatpush1.bf16.msra.mxu1 %v20288_v57  ;;  %v548_v10 = vld [vmem:[%s25166_s2 + $0x250] sm:$0xff]  ;;  %v20354_v11 = vpack.c.bf16 %v549_v4, %v541_v3  ;;  %v20294_v12 = vpack.c.bf16 %v563_v6, %v555_v5  ;;  %v557_v13 = vld [vmem:[%s25166_s2 + $0x298] sm:$0xff]  ;;  %v554_v14 = vld [vmem:[%s25166_s2 + $0x280] sm:$0xff] }
  0x21   : > { %20351 = vmatprep.subr.bf16.mxu0 %v20350_v61  ;;  %20291 = vmatprep.subr.bf16.mxu1 %v20290_v63  ;;  %v562_v15 = vld [vmem:[%s25166_s2 + $0x2c0] sm:$0xff]  ;;  %v565_v16 = vld [vmem:[%s25166_s2 + $0x2d8] sm:$0xff]  ;;  %v571_v17 = vld [vmem:[%s25166_s2 + $0x308] sm:$0xff]  ;;  %v20356_v19 = vpack.c.bf16 %v548_v10, %v540_v9 }
  0x22   : > { %v579_v18 = vld [vmem:[%s25166_s2 + $0x348] sm:$0xff]  ;;  %v20296_v20 = vpack.c.bf16 %v562_v15, %v554_v14  ;;  %v556_v21 = vld [vmem:[%s25166_s2 + $0x290] sm:$0xff]  ;;  %v20358_v23 = vpack.c.bf16 %v565_v16, %v557_v13  ;;  %v573_v25 = vld [vmem:[%s25166_s2 + $0x318] sm:$0xff]  ;;  %20858 = vrot.lane.b32.xlu1 %v21027_v0, %s21031_s28 }
  0x23   : > { %v564_v22 = vld [vmem:[%s25166_s2 + $0x2d0] sm:$0xff]  ;;  %v20298_v24 = vpack.c.bf16 %v579_v18, %v571_v17  ;;  %v570_v26 = vld [vmem:[%s25166_s2 + $0x300] sm:$0xff]  ;;  %v581_v28 = vld [vmem:[%s25166_s2 + $0x358] sm:$0xff] }
  0x24   : > { %20353 = vmatpush1.bf16.msra.mxu0 %v20352_v7  ;;  %20293 = vmatpush1.bf16.msra.mxu1 %v20292_v8  ;;  %v578_v27 = vld [vmem:[%s25166_s2 + $0x340] sm:$0xff]  ;;  %v587_v29 = vld [vmem:[%s25166_s2 + $0x388] sm:$0xff]  ;;  %v20360_v31 = vpack.c.bf16 %v564_v22, %v556_v21  ;;  %v572_v33 = vld [vmem:[%s25166_s2 + $0x310] sm:$0xff]  ;;  %v20362_v35 = vpack.c.bf16 %v581_v28, %v573_v25 }
  0x25   : > { %20355 = vmatprep.subr.bf16.mxu0 %v20354_v11  ;;  %20295 = vmatprep.subr.bf16.mxu1 %v20294_v12  ;;  %v595_v30 = vld [vmem:[%s25166_s2 + $0x3c8] sm:$0xff]  ;;  %v20300_v32 = vpack.c.bf16 %v578_v27, %v570_v26  ;;  %v580_v34 = vld [vmem:[%s25166_s2 + $0x350] sm:$0xff]  ;;  %v589_v37 = vld [vmem:[%s25166_s2 + $0x398] sm:$0xff] }
  0x26   : > { %v20302_v36 = vpack.c.bf16 %v595_v30, %v587_v29  ;;  %v586_v38 = vld [vmem:[%s25166_s2 + $0x380] sm:$0xff]  ;;  %v597_v40 = vld [vmem:[%s25166_s2 + $0x3d8] sm:$0xff]  ;;  %v603_v41 = vld [vmem:[%s25166_s2 + $0x408] sm:$0xff]  ;;  %v20364_v43 = vpack.c.bf16 %v580_v34, %v572_v33 }
  0x27   : > { %v594_v39 = vld [vmem:[%s25166_s2 + $0x3c0] sm:$0xff]  ;;  %v611_v42 = vld [vmem:[%s25166_s2 + $0x448] sm:$0xff]  ;;  %v588_v45 = vld [vmem:[%s25166_s2 + $0x390] sm:$0xff]  ;;  %v20366_v47 = vpack.c.bf16 %v597_v40, %v589_v37 }
  0x28   : > { %20357 = vmatpush1.bf16.msra.mxu0 %v20356_v19  ;;  %20297 = vmatpush1.bf16.msra.mxu1 %v20296_v20  ;;  %v20304_v44 = vpack.c.bf16 %v594_v39, %v586_v38  ;;  %v596_v46 = vld [vmem:[%s25166_s2 + $0x3d0] sm:$0xff]  ;;  %v20306_v48 = vpack.c.bf16 %v611_v42, %v603_v41  ;;  %v605_v49 = vld [vmem:[%s25166_s2 + $0x418] sm:$0xff]  ;;  %v602_v50 = vld [vmem:[%s25166_s2 + $0x400] sm:$0xff] }
  0x29   : > { %20359 = vmatprep.subr.bf16.mxu0 %v20358_v23  ;;  %20299 = vmatprep.subr.bf16.mxu1 %v20298_v24  ;;  %v610_v51 = vld [vmem:[%s25166_s2 + $0x440] sm:$0xff]  ;;  %v613_v52 = vld [vmem:[%s25166_s2 + $0x458] sm:$0xff]  ;;  %v619_v53 = vld [vmem:[%s25166_s2 + $0x488] sm:$0xff]  ;;  %v20368_v55 = vpack.c.bf16 %v596_v46, %v588_v45 }
  0x2a   : > { %v627_v54 = vld [vmem:[%s25166_s2 + $0x4c8] sm:$0xff]  ;;  %v20308_v56 = vpack.c.bf16 %v610_v51, %v602_v50  ;;  %v604_v57 = vld [vmem:[%s25166_s2 + $0x410] sm:$0xff]  ;;  %v20370_v59 = vpack.c.bf16 %v613_v52, %v605_v49  ;;  %v621_v61 = vld [vmem:[%s25166_s2 + $0x498] sm:$0xff] }
  0x2b   : > { %v612_v58 = vld [vmem:[%s25166_s2 + $0x450] sm:$0xff]  ;;  %v20310_v60 = vpack.c.bf16 %v627_v54, %v619_v53  ;;  %v618_v62 = vld [vmem:[%s25166_s2 + $0x480] sm:$0xff]  ;;  %v629_v1 = vld [vmem:[%s25166_s2 + $0x4d8] sm:$0xff] }
  0x2c   : > { %20361 = vmatpush1.bf16.msra.mxu0 %v20360_v31  ;;  %20301 = vmatpush1.bf16.msra.mxu1 %v20300_v32  ;;  %v626_v63 = vld [vmem:[%s25166_s2 + $0x4c0] sm:$0xff]  ;;  %v635_v2 = vld [vmem:[%s25166_s2 + $0x508] sm:$0xff]  ;;  %v20372_v4 = vpack.c.bf16 %v612_v58, %v604_v57  ;;  %v620_v6 = vld [vmem:[%s25166_s2 + $0x490] sm:$0xff]  ;;  %v20374_v8 = vpack.c.bf16 %v629_v1, %v621_v61 }
  0x2d   : > { %20363 = vmatprep.subr.bf16.mxu0 %v20362_v35  ;;  %20303 = vmatprep.subr.bf16.mxu1 %v20302_v36  ;;  %v643_v3 = vld [vmem:[%s25166_s2 + $0x548] sm:$0xff]  ;;  %v20312_v5 = vpack.c.bf16 %v626_v63, %v618_v62  ;;  %v628_v7 = vld [vmem:[%s25166_s2 + $0x4d0] sm:$0xff]  ;;  %v637_v10 = vld [vmem:[%s25166_s2 + $0x518] sm:$0xff] }
  0x2e   : > { %v20314_v9 = vpack.c.bf16 %v643_v3, %v635_v2  ;;  %v634_v11 = vld [vmem:[%s25166_s2 + $0x500] sm:$0xff]  ;;  %v645_v13 = vld [vmem:[%s25166_s2 + $0x558] sm:$0xff]  ;;  %v651_v14 = vld [vmem:[%s25166_s2 + $0x588] sm:$0xff]  ;;  %v20376_v16 = vpack.c.bf16 %v628_v7, %v620_v6 }
  0x2f   : > { %v642_v12 = vld [vmem:[%s25166_s2 + $0x540] sm:$0xff]  ;;  %v659_v15 = vld [vmem:[%s25166_s2 + $0x5c8] sm:$0xff]  ;;  %v636_v18 = vld [vmem:[%s25166_s2 + $0x510] sm:$0xff]  ;;  %v20378_v20 = vpack.c.bf16 %v645_v13, %v637_v10 }
  0x30   : > { %20365 = vmatpush1.bf16.msra.mxu0 %v20364_v43  ;;  %20305 = vmatpush1.bf16.msra.mxu1 %v20304_v44  ;;  %v20316_v17 = vpack.c.bf16 %v642_v12, %v634_v11  ;;  %v644_v19 = vld [vmem:[%s25166_s2 + $0x550] sm:$0xff]  ;;  %v20318_v21 = vpack.c.bf16 %v659_v15, %v651_v14  ;;  %v653_v22 = vld [vmem:[%s25166_s2 + $0x598] sm:$0xff]  ;;  %v650_v23 = vld [vmem:[%s25166_s2 + $0x580] sm:$0xff] }
  0x31   : > { %20367 = vmatprep.subr.bf16.mxu0 %v20366_v47  ;;  %20307 = vmatprep.subr.bf16.mxu1 %v20306_v48  ;;  %v658_v24 = vld [vmem:[%s25166_s2 + $0x5c0] sm:$0xff]  ;;  %v661_v25 = vld [vmem:[%s25166_s2 + $0x5d8] sm:$0xff]  ;;  %v667_v26 = vld [vmem:[%s25166_s2 + $0x608] sm:$0xff]  ;;  %v20380_v28 = vpack.c.bf16 %v644_v19, %v636_v18 }
  0x32   : > { %v675_v27 = vld [vmem:[%s25166_s2 + $0x648] sm:$0xff]  ;;  %v20320_v29 = vpack.c.bf16 %v658_v24, %v650_v23  ;;  %v652_v30 = vld [vmem:[%s25166_s2 + $0x590] sm:$0xff]  ;;  %v20382_v32 = vpack.c.bf16 %v661_v25, %v653_v22  ;;  %v669_v34 = vld [vmem:[%s25166_s2 + $0x618] sm:$0xff] }
  0x33   : > { %v660_v31 = vld [vmem:[%s25166_s2 + $0x5d0] sm:$0xff]  ;;  %v20322_v33 = vpack.c.bf16 %v675_v27, %v667_v26  ;;  %v666_v35 = vld [vmem:[%s25166_s2 + $0x600] sm:$0xff]  ;;  %v677_v37 = vld [vmem:[%s25166_s2 + $0x658] sm:$0xff] }
  0x34   : > { %20369 = vmatpush1.bf16.msra.mxu0 %v20368_v55  ;;  %20309 = vmatpush1.bf16.msra.mxu1 %v20308_v56  ;;  %v674_v36 = vld [vmem:[%s25166_s2 + $0x640] sm:$0xff]  ;;  %v683_v38 = vld [vmem:[%s25166_s2 + $0x688] sm:$0xff]  ;;  %v20384_v40 = vpack.c.bf16 %v660_v31, %v652_v30  ;;  %v668_v42 = vld [vmem:[%s25166_s2 + $0x610] sm:$0xff]  ;;  %v20386_v44 = vpack.c.bf16 %v677_v37, %v669_v34 }
  0x35   : > { %20371 = vmatprep.subr.bf16.mxu0 %v20370_v59  ;;  %20311 = vmatprep.subr.bf16.mxu1 %v20310_v60  ;;  %v691_v39 = vld [vmem:[%s25166_s2 + $0x6c8] sm:$0xff]  ;;  %v20324_v41 = vpack.c.bf16 %v674_v36, %v666_v35  ;;  %v676_v43 = vld [vmem:[%s25166_s2 + $0x650] sm:$0xff]  ;;  %v685_v46 = vld [vmem:[%s25166_s2 + $0x698] sm:$0xff] }
  0x36   : > { %v20326_v45 = vpack.c.bf16 %v691_v39, %v683_v38  ;;  %v682_v47 = vld [vmem:[%s25166_s2 + $0x680] sm:$0xff]  ;;  %v693_v49 = vld [vmem:[%s25166_s2 + $0x6d8] sm:$0xff]  ;;  %v699_v50 = vld [vmem:[%s25166_s2 + $0x708] sm:$0xff]  ;;  %v20388_v52 = vpack.c.bf16 %v676_v43, %v668_v42 }
  0x37   : > { %v690_v48 = vld [vmem:[%s25166_s2 + $0x6c0] sm:$0xff]  ;;  %v707_v51 = vld [vmem:[%s25166_s2 + $0x748] sm:$0xff]  ;;  %v684_v54 = vld [vmem:[%s25166_s2 + $0x690] sm:$0xff]  ;;  %v20390_v56 = vpack.c.bf16 %v693_v49, %v685_v46 }
  0x38   : > { %20373 = vmatpush1.bf16.msra.mxu0 %v20372_v4  ;;  %20313 = vmatpush1.bf16.msra.mxu1 %v20312_v5  ;;  %v20328_v53 = vpack.c.bf16 %v690_v48, %v682_v47  ;;  %v692_v55 = vld [vmem:[%s25166_s2 + $0x6d0] sm:$0xff]  ;;  %v20330_v57 = vpack.c.bf16 %v707_v51, %v699_v50  ;;  %v701_v58 = vld [vmem:[%s25166_s2 + $0x718] sm:$0xff]  ;;  %v698_v59 = vld [vmem:[%s25166_s2 + $0x700] sm:$0xff] }
  0x39   : > { %20375 = vmatprep.subr.bf16.mxu0 %v20374_v8  ;;  %20315 = vmatprep.subr.bf16.mxu1 %v20314_v9  ;;  %v706_v60 = vld [vmem:[%s25166_s2 + $0x740] sm:$0xff]  ;;  %v709_v61 = vld [vmem:[%s25166_s2 + $0x758] sm:$0xff]  ;;  %v715_v62 = vld [vmem:[%s25166_s2 + $0x788] sm:$0xff]  ;;  %v20392_v1 = vpack.c.bf16 %v692_v55, %v684_v54 }
  0x3a   : > { %v723_v63 = vld [vmem:[%s25166_s2 + $0x7c8] sm:$0xff]  ;;  %v20332_v2 = vpack.c.bf16 %v706_v60, %v698_v59  ;;  %v20394_v3 = vpack.c.bf16 %v709_v61, %v701_v58  ;;  %v700_v4 = vld [vmem:[%s25166_s2 + $0x710] sm:$0xff]  ;;  %v717_v8 = vld [vmem:[%s25166_s2 + $0x798] sm:$0xff] }
  0x3b   : > { %v708_v5 = vld [vmem:[%s25166_s2 + $0x750] sm:$0xff]  ;;  %v20334_v6 = vpack.c.bf16 %v723_v63, %v715_v62  ;;  %v725_v9 = vld [vmem:[%s25166_s2 + $0x7d8] sm:$0xff]  ;;  %v714_v11 = vld [vmem:[%s25166_s2 + $0x780] sm:$0xff] }
  0x3c   : > { %20377 = vmatpush1.bf16.msra.mxu0 %v20376_v16  ;;  %20317 = vmatpush1.bf16.msra.mxu1 %v20316_v17  ;;  %v20396_v7 = vpack.c.bf16 %v708_v5, %v700_v4  ;;  %v20398_v10 = vpack.c.bf16 %v725_v9, %v717_v8  ;;  %v722_v12 = vld [vmem:[%s25166_s2 + $0x7c0] sm:$0xff]  ;;  %v716_v13 = vld [vmem:[%s25166_s2 + $0x790] sm:$0xff]  ;;  %v479_v17 = vld [vmem:[%s25166_s2 + $0x28] sm:$0xff] }
  0x3d   : > { %20379 = vmatprep.subr.bf16.mxu0 %v20378_v20  ;;  %20319 = vmatprep.subr.bf16.mxu1 %v20318_v21  ;;  %v20336_v14 = vpack.c.bf16 %v722_v12, %v714_v11  ;;  %v724_v15 = vld [vmem:[%s25166_s2 + $0x7d0] sm:$0xff]  ;;  %v487_v18 = vld [vmem:[%s25166_s2 + $0x68] sm:$0xff]  ;;  %v481_v19 = vld [vmem:[%s25166_s2 + $0x38] sm:$0xff] }
  0x3e   : > { %v20400_v16 = vpack.c.bf16 %v724_v15, %v716_v13  ;;  %v20402_v20 = vpack.c.bf16 %v487_v18, %v479_v17  ;;  %v489_v21 = vld [vmem:[%s25166_s2 + $0x78] sm:$0xff]  ;;  %v478_v23 = vld [vmem:[%s25166_s2 + $0x20] sm:$0xff]  ;;  %v480_v26 = vld [vmem:[%s25166_s2 + $0x30] sm:$0xff] }
  0x3f   : > { %v20466_v22 = vpack.c.bf16 %v489_v21, %v481_v19  ;;  %v486_v25 = vld [vmem:[%s25166_s2 + $0x60] sm:$0xff]  ;;  %v488_v27 = vld [vmem:[%s25166_s2 + $0x70] sm:$0xff]  ;;  %v503_v31 = vld [vmem:[%s25166_s2 + $0xe8] sm:$0xff] }
  0x40   : > { %20381 = vmatpush1.bf16.msra.mxu0 %v20380_v28  ;;  %20321 = vmatpush1.bf16.msra.mxu1 %v20320_v29  ;;  %v495_v29 = vld [vmem:[%s25166_s2 + $0xa8] sm:$0xff]  ;;  %v20404_v35 = vpack.c.bf16 %v486_v25, %v478_v23  ;;  %v20468_v36 = vpack.c.bf16 %v488_v27, %v480_v26  ;;  %v494_v37 = vld [vmem:[%s25166_s2 + $0xa0] sm:$0xff]  ;;  %v513_v46 = vld [vmem:[%s25166_s2 + $0x138] sm:$0xff] }
  0x41   : > { %20383 = vmatprep.subr.bf16.mxu0 %v20382_v32  ;;  %20323 = vmatprep.subr.bf16.mxu1 %v20322_v33  ;;  %v497_v32 = vld [vmem:[%s25166_s2 + $0xb8] sm:$0xff]  ;;  %v502_v38 = vld [vmem:[%s25166_s2 + $0xe0] sm:$0xff]  ;;  %v511_v42 = vld [vmem:[%s25166_s2 + $0x128] sm:$0xff]  ;;  %v20406_v43 = vpack.c.bf16 %v503_v31, %v495_v29 }
  0x42   : > { %v505_v33 = vld [vmem:[%s25166_s2 + $0xf8] sm:$0xff]  ;;  %v20408_v48 = vpack.c.bf16 %v502_v38, %v494_v37  ;;  %v510_v50 = vld [vmem:[%s25166_s2 + $0x120] sm:$0xff]  ;;  %v512_v54 = vld [vmem:[%s25166_s2 + $0x130] sm:$0xff] }
  0x43   : > { %v521_v47 = vld [vmem:[%s25166_s2 + $0x178] sm:$0xff]  ;;  %v518_v51 = vld [vmem:[%s25166_s2 + $0x160] sm:$0xff]  ;;  %v520_v55 = vld [vmem:[%s25166_s2 + $0x170] sm:$0xff] }
  0x44   : > { %20385 = vmatpush1.bf16.msra.mxu0 %v20384_v40  ;;  %20325 = vmatpush1.bf16.msra.mxu1 %v20324_v41  ;;  %v496_v40 = vld [vmem:[%s25166_s2 + $0xb0] sm:$0xff]  ;;  %v529_v58 = vld [vmem:[%s25166_s2 + $0x1b8] sm:$0xff]  ;;  %v20412_v60 = vpack.c.bf16 %v518_v51, %v510_v50  ;;  %v20476_v61 = vpack.c.bf16 %v520_v55, %v512_v54  ;;  %v526_v62 = vld [vmem:[%s25166_s2 + $0x1a0] sm:$0xff] }
  0x45   : > { %20387 = vmatprep.subr.bf16.mxu0 %v20386_v44  ;;  %20327 = vmatprep.subr.bf16.mxu1 %v20326_v45  ;;  %v504_v41 = vld [vmem:[%s25166_s2 + $0xf0] sm:$0xff]  ;;  %v20470_v44 = vpack.c.bf16 %v505_v33, %v497_v32  ;;  %v519_v45 = vld [vmem:[%s25166_s2 + $0x168] sm:$0xff]  ;;  %v537_v59 = vld [vmem:[%s25166_s2 + $0x1f8] sm:$0xff] }
  0x46   : > { %v20472_v49 = vpack.c.bf16 %v504_v41, %v496_v40  ;;  %v534_v63 = vld [vmem:[%s25166_s2 + $0x1e0] sm:$0xff]  ;;  %v536_v4 = vld [vmem:[%s25166_s2 + $0x1f0] sm:$0xff]  ;;  %v543_v5 = vld [vmem:[%s25166_s2 + $0x228] sm:$0xff] }
  0x47   : > { %v553_v8 = vld [vmem:[%s25166_s2 + $0x278] sm:$0xff]  ;;  %v20416_v9 = vpack.c.bf16 %v534_v63, %v526_v62  ;;  %v542_v11 = vld [vmem:[%s25166_s2 + $0x220] sm:$0xff]  ;;  %v544_v15 = vld [vmem:[%s25166_s2 + $0x230] sm:$0xff] }
  0x48   : > { %20389 = vmatpush1.bf16.msra.mxu0 %v20388_v52  ;;  %20329 = vmatpush1.bf16.msra.mxu1 %v20328_v53  ;;  %v20410_v52 = vpack.c.bf16 %v519_v45, %v511_v42  ;;  %v20474_v53 = vpack.c.bf16 %v521_v47, %v513_v46  ;;  %v550_v12 = vld [vmem:[%s25166_s2 + $0x260] sm:$0xff]  ;;  %v559_v17 = vld [vmem:[%s25166_s2 + $0x2a8] sm:$0xff]  ;;  %v561_v19 = vld [vmem:[%s25166_s2 + $0x2b8] sm:$0xff] }
  0x49   : > { %20391 = vmatprep.subr.bf16.mxu0 %v20390_v56  ;;  %20331 = vmatprep.subr.bf16.mxu1 %v20330_v57  ;;  %v527_v56 = vld [vmem:[%s25166_s2 + $0x1a8] sm:$0xff]  ;;  %v20420_v21 = vpack.c.bf16 %v550_v12, %v542_v11  ;;  %v558_v23 = vld [vmem:[%s25166_s2 + $0x2a0] sm:$0xff]  ;;  %v560_v27 = vld [vmem:[%s25166_s2 + $0x2b0] sm:$0xff] }
  0x4a   : > { %v535_v57 = vld [vmem:[%s25166_s2 + $0x1e8] sm:$0xff]  ;;  %v577_v31 = vld [vmem:[%s25166_s2 + $0x338] sm:$0xff]  ;;  %v576_v40 = vld [vmem:[%s25166_s2 + $0x330] sm:$0xff] }
  0x4b   : > { %v567_v18 = vld [vmem:[%s25166_s2 + $0x2e8] sm:$0xff]  ;;  %v585_v32 = vld [vmem:[%s25166_s2 + $0x378] sm:$0xff]  ;;  %v584_v41 = vld [vmem:[%s25166_s2 + $0x370] sm:$0xff] }
  0x4c   : > { %20393 = vmatpush1.bf16.msra.mxu0 %v20392_v1  ;;  %20333 = vmatpush1.bf16.msra.mxu1 %v20332_v2  ;;  %v20414_v1 = vpack.c.bf16 %v535_v57, %v527_v56  ;;  %v20478_v2 = vpack.c.bf16 %v537_v59, %v529_v58  ;;  %v20422_v25 = vpack.c.bf16 %v567_v18, %v559_v17  ;;  %v575_v29 = vld [vmem:[%s25166_s2 + $0x328] sm:$0xff]  ;;  %v601_v45 = vld [vmem:[%s25166_s2 + $0x3f8] sm:$0xff] }
  0x4d   : > { %20395 = vmatprep.subr.bf16.mxu0 %v20394_v3  ;;  %20335 = vmatprep.subr.bf16.mxu1 %v20334_v6  ;;  %v528_v3 = vld [vmem:[%s25166_s2 + $0x1b0] sm:$0xff]  ;;  %v551_v6 = vld [vmem:[%s25166_s2 + $0x268] sm:$0xff]  ;;  %v20490_v38 = vpack.c.bf16 %v585_v32, %v577_v31  ;;  %v20492_v47 = vpack.c.bf16 %v584_v41, %v576_v40  ;;  %v609_v56 = vld [vmem:[%s25166_s2 + $0x438] sm:$0xff] }
  0x4e   : > { %v20418_v13 = vpack.c.bf16 %v551_v6, %v543_v5  ;;  %v591_v42 = vld [vmem:[%s25166_s2 + $0x3a8] sm:$0xff]  ;;  %v617_v57 = vld [vmem:[%s25166_s2 + $0x478] sm:$0xff] }
  0x4f   : > { %v607_v54 = vld [vmem:[%s25166_s2 + $0x428] sm:$0xff]  ;;  %v20498_v63 = vpack.c.bf16 %v617_v57, %v609_v56  ;;  %v625_v5 = vld [vmem:[%s25166_s2 + $0x4b8] sm:$0xff] }
  0x50   : > { %20397 = vmatpush1.bf16.msra.mxu0 %v20396_v7  ;;  %20337 = vmatpush1.bf16.msra.mxu1 %v20336_v14  ;;  %v545_v7 = vld [vmem:[%s25166_s2 + $0x238] sm:$0xff]  ;;  %v615_v55 = vld [vmem:[%s25166_s2 + $0x468] sm:$0xff] }
  0x51   : > { %20399 = vmatprep.subr.bf16.mxu0 %v20398_v10  ;;  %20403 = vmatprep.subr.bf16.mxu1 %v20402_v20  ;;  %v20480_v10 = vpack.c.bf16 %v536_v4, %v528_v3  ;;  %v20482_v14 = vpack.c.bf16 %v553_v8, %v545_v7  ;;  %v569_v20 = vld [vmem:[%s25166_s2 + $0x2f8] sm:$0xff]  ;;  %v20434_v62 = vpack.c.bf16 %v615_v55, %v607_v54  ;;  %v623_v3 = vld [vmem:[%s25166_s2 + $0x4a8] sm:$0xff] }
  0x52   : > { %v20486_v26 = vpack.c.bf16 %v569_v20, %v561_v19  ;;  %v631_v4 = vld [vmem:[%s25166_s2 + $0x4e8] sm:$0xff]  ;;  %v633_v6 = vld [vmem:[%s25166_s2 + $0x4f8] sm:$0xff] }
  0x53   : > { %v20438_v11 = vpack.c.bf16 %v631_v4, %v623_v3  ;;  %v20502_v12 = vpack.c.bf16 %v633_v6, %v625_v5  ;;  %v641_v17 = vld [vmem:[%s25166_s2 + $0x538] sm:$0xff]  ;;  %v671_v40 = vld [vmem:[%s25166_s2 + $0x628] sm:$0xff] }
  0x54   : > { %20401 = vmatpush1.bf16.msra.mxu0 %v20400_v16  ;;  %v552_v16 = vld [vmem:[%s25166_s2 + $0x270] sm:$0xff]  ;;  %v649_v18 = vld [vmem:[%s25166_s2 + $0x578] sm:$0xff]  ;;  %v679_v41 = vld [vmem:[%s25166_s2 + $0x668] sm:$0xff] }
  0x55   : > { %20467 = vmatprep.subr.bf16.mxu0 %v20466_v22  ;;  %v20484_v22 = vpack.c.bf16 %v552_v16, %v544_v15  ;;  %v639_v15 = vld [vmem:[%s25166_s2 + $0x528] sm:$0xff]  ;;  %v689_v54 = vld [vmem:[%s25166_s2 + $0x6b8] sm:$0xff] }
  0x56   : > { %v647_v16 = vld [vmem:[%s25166_s2 + $0x568] sm:$0xff]  ;;  %v697_v55 = vld [vmem:[%s25166_s2 + $0x6f8] sm:$0xff] }
  0x57   : > { %v705_v3 = vld [vmem:[%s25166_s2 + $0x738] sm:$0xff] }
  0x58   : > { %v713_v4 = vld [vmem:[%s25166_s2 + $0x778] sm:$0xff] }
  0x8e   : > { %v397_v24 = vpop.permute.xlu0 %396 }
  0xea   : > { %v469_v28 = vpop.f32.mrb[0].mxu0 }
  0xeb   : > { %v471_v30 = vpop.f32.mrb[1].mxu0  ;;  %v21563_v39 = vadd.f32 %v469_v28, %v397_v24  ;;  %v568_v28 = vld [vmem:[%s25166_s2 + $0x2f0] sm:$0xff] }
  0xec   : > { %v472_v34 = vadd.f32 %v471_v30, %v397_v24  ;;  %v566_v24 = vld [vmem:[%s25166_s2 + $0x2e0] sm:$0xff]  ;;  %v583_v30 = vld [vmem:[%s25166_s2 + $0x368] sm:$0xff] }
  0xed   : > { %v20424_v33 = vpack.c.bf16 %v566_v24, %v558_v23  ;;  %v20426_v37 = vpack.c.bf16 %v583_v30, %v575_v29  ;;  %v20442_v23 = vpack.c.bf16 %v647_v16, %v639_v15  ;;  %v20506_v24 = vpack.c.bf16 %v649_v18, %v641_v17  ;;  %v657_v29 = vld [vmem:[%s25166_s2 + $0x5b8] sm:$0xff] }
  0xee   : > { %794 = vmatprep.mubr.f32.mxu1 %v472_v34  ;;  %865 = vmatprep.mubr.f32.mxu0 %v472_v34  ;;  %v665_v30 = vld [vmem:[%s25166_s2 + $0x5f8] sm:$0xff] }
  0xef   : > { %795 = vmatmul.mubr.f32.vlgmr.msra.gmra.mrb[0].mxu1 %v21563_v39  ;;  %866 = vmatmul.mubr.f32.vlgmr.msra.gmra.mrb[2].mxu0 %v21563_v39  ;;  %v721_v15 = vld [vmem:[%s25166_s2 + $0x7b8] sm:$0xff] }
  0xf0   : > { %20405 = vmatpush1.bf16.msra.mxu1 %v20404_v35  ;;  %20469 = vmatpush1.bf16.msra.mxu0 %v20468_v36  ;;  %v574_v35 = vld [vmem:[%s25166_s2 + $0x320] sm:$0xff]  ;;  %v729_v16 = vld [vmem:[%s25166_s2 + $0x7f8] sm:$0xff] }
  0xf1   : > { %936 = vmatprep.mubr.f32.mxu1 %v472_v34  ;;  %1007 = vmatprep.mubr.f32.mxu0 %v472_v34  ;;  %v20488_v34 = vpack.c.bf16 %v568_v28, %v560_v27  ;;  %v582_v36 = vld [vmem:[%s25166_s2 + $0x360] sm:$0xff]  ;;  %v655_v27 = vld [vmem:[%s25166_s2 + $0x5a8] sm:$0xff] }
  0xf2   : > { %20407 = vmatprep.subr.bf16.mxu1 %v20406_v43  ;;  %20471 = vmatprep.subr.bf16.mxu0 %v20470_v44  ;;  %v599_v43 = vld [vmem:[%s25166_s2 + $0x3e8] sm:$0xff]  ;;  %v593_v44 = vld [vmem:[%s25166_s2 + $0x3b8] sm:$0xff]  ;;  %v20428_v46 = vpack.c.bf16 %v582_v36, %v574_v35  ;;  %v20510_v36 = vpack.c.bf16 %v665_v30, %v657_v29 }
  0xf3   : > { %v20430_v50 = vpack.c.bf16 %v599_v43, %v591_v42  ;;  %v20494_v51 = vpack.c.bf16 %v601_v45, %v593_v44  ;;  %v663_v28 = vld [vmem:[%s25166_s2 + $0x5e8] sm:$0xff]  ;;  %v673_v42 = vld [vmem:[%s25166_s2 + $0x638] sm:$0xff] }
  0xf4   : > { %20409 = vmatpush1.bf16.msra.mxu1 %v20408_v48  ;;  %20473 = vmatpush1.bf16.msra.mxu0 %v20472_v49  ;;  %v590_v48 = vld [vmem:[%s25166_s2 + $0x3a0] sm:$0xff]  ;;  %v20446_v35 = vpack.c.bf16 %v663_v28, %v655_v27  ;;  %v681_v43 = vld [vmem:[%s25166_s2 + $0x678] sm:$0xff] }
  0xf5   : > { %20411 = vmatprep.subr.bf16.mxu1 %v20410_v52  ;;  %20475 = vmatprep.subr.bf16.mxu0 %v20474_v53  ;;  %v598_v49 = vld [vmem:[%s25166_s2 + $0x3e0] sm:$0xff]  ;;  %v592_v52 = vld [vmem:[%s25166_s2 + $0x3b0] sm:$0xff] }
  0xf6   : > { %v600_v53 = vld [vmem:[%s25166_s2 + $0x3f0] sm:$0xff]  ;;  %v20432_v58 = vpack.c.bf16 %v598_v49, %v590_v48  ;;  %v20450_v48 = vpack.c.bf16 %v679_v41, %v671_v40  ;;  %v20514_v49 = vpack.c.bf16 %v681_v43, %v673_v42  ;;  %v21911_v27 = vld [vmem:[#allocation2] sm:$0xff] }
  0xf7   : > { %v20496_v59 = vpack.c.bf16 %v600_v53, %v592_v52  ;;  %v687_v52 = vld [vmem:[%s25166_s2 + $0x6a8] sm:$0xff] }
  0xf8   : > { %20413 = vmatpush1.bf16.msra.mxu1 %v20412_v60  ;;  %20477 = vmatpush1.bf16.msra.mxu0 %v20476_v61  ;;  %v606_v60 = vld [vmem:[%s25166_s2 + $0x420] sm:$0xff]  ;;  %v695_v53 = vld [vmem:[%s25166_s2 + $0x6e8] sm:$0xff] }
  0xf9   : > { %20415 = vmatprep.subr.bf16.mxu1 %v20414_v1  ;;  %20479 = vmatprep.subr.bf16.mxu0 %v20478_v2  ;;  %v614_v61 = vld [vmem:[%s25166_s2 + $0x460] sm:$0xff]  ;;  %v608_v1 = vld [vmem:[%s25166_s2 + $0x430] sm:$0xff] }
  0xfa   : > { %v616_v2 = vld [vmem:[%s25166_s2 + $0x470] sm:$0xff]  ;;  %v20436_v7 = vpack.c.bf16 %v614_v61, %v606_v60  ;;  %v20454_v60 = vpack.c.bf16 %v695_v53, %v687_v52  ;;  %v20518_v61 = vpack.c.bf16 %v697_v55, %v689_v54 }
  0xfb   : > { %v20500_v8 = vpack.c.bf16 %v616_v2, %v608_v1  ;;  %v703_v1 = vld [vmem:[%s25166_s2 + $0x728] sm:$0xff] }
  0xfc   : > { %20417 = vmatpush1.bf16.msra.mxu1 %v20416_v9  ;;  %20481 = vmatpush1.bf16.msra.mxu0 %v20480_v10  ;;  %v622_v9 = vld [vmem:[%s25166_s2 + $0x4a0] sm:$0xff]  ;;  %v711_v2 = vld [vmem:[%s25166_s2 + $0x768] sm:$0xff] }
  0xfd   : > { %20419 = vmatprep.subr.bf16.mxu1 %v20418_v13  ;;  %20483 = vmatprep.subr.bf16.mxu0 %v20482_v14  ;;  %v630_v10 = vld [vmem:[%s25166_s2 + $0x4e0] sm:$0xff]  ;;  %v624_v13 = vld [vmem:[%s25166_s2 + $0x4b0] sm:$0xff] }
  0xfe   : > { %v632_v14 = vld [vmem:[%s25166_s2 + $0x4f0] sm:$0xff]  ;;  %v20440_v19 = vpack.c.bf16 %v630_v10, %v622_v9  ;;  %v20458_v9 = vpack.c.bf16 %v711_v2, %v703_v1  ;;  %v20522_v10 = vpack.c.bf16 %v713_v4, %v705_v3 }
  0xff   : > { %v20504_v20 = vpack.c.bf16 %v632_v14, %v624_v13  ;;  %v719_v13 = vld [vmem:[%s25166_s2 + $0x7a8] sm:$0xff] }
 0x100   : > { %20421 = vmatpush1.bf16.msra.mxu1 %v20420_v21  ;;  %20485 = vmatpush1.bf16.msra.mxu0 %v20484_v22  ;;  %v638_v21 = vld [vmem:[%s25166_s2 + $0x520] sm:$0xff]  ;;  %v727_v14 = vld [vmem:[%s25166_s2 + $0x7e8] sm:$0xff] }
 0x101   : > { %20423 = vmatprep.subr.bf16.mxu1 %v20422_v25  ;;  %20487 = vmatprep.subr.bf16.mxu0 %v20486_v26  ;;  %v646_v22 = vld [vmem:[%s25166_s2 + $0x560] sm:$0xff]  ;;  %v640_v25 = vld [vmem:[%s25166_s2 + $0x530] sm:$0xff] }
 0x102   : > { %v648_v26 = vld [vmem:[%s25166_s2 + $0x570] sm:$0xff]  ;;  %v20444_v31 = vpack.c.bf16 %v646_v22, %v638_v21  ;;  %v20526_v21 = vpack.c.bf16 %v729_v16, %v721_v15  ;;  %v726_v22 = vld [vmem:[%s25166_s2 + $0x7e0] sm:$0xff] }
 0x103   : > { %v20508_v32 = vpack.c.bf16 %v648_v26, %v640_v25 }
 0x104   : > { %20425 = vmatpush1.bf16.msra.mxu1 %v20424_v33  ;;  %20489 = vmatpush1.bf16.msra.mxu0 %v20488_v34  ;;  %v654_v33 = vld [vmem:[%s25166_s2 + $0x5a0] sm:$0xff] }
 0x105   : > { %20427 = vmatprep.subr.bf16.mxu1 %v20426_v37  ;;  %20491 = vmatprep.subr.bf16.mxu0 %v20490_v38  ;;  %v662_v34 = vld [vmem:[%s25166_s2 + $0x5e0] sm:$0xff]  ;;  %v656_v37 = vld [vmem:[%s25166_s2 + $0x5b0] sm:$0xff] }
 0x106   : > { %v664_v38 = vld [vmem:[%s25166_s2 + $0x5f0] sm:$0xff]  ;;  %v20448_v44 = vpack.c.bf16 %v662_v34, %v654_v33 }
 0x107   : > { %v20512_v45 = vpack.c.bf16 %v664_v38, %v656_v37 }
 0x108   : > { %20429 = vmatpush1.bf16.msra.mxu1 %v20428_v46  ;;  %20493 = vmatpush1.bf16.msra.mxu0 %v20492_v47  ;;  %v670_v46 = vld [vmem:[%s25166_s2 + $0x620] sm:$0xff] }
 0x109   : > { %20431 = vmatprep.subr.bf16.mxu1 %v20430_v50  ;;  %20495 = vmatprep.subr.bf16.mxu0 %v20494_v51  ;;  %v678_v47 = vld [vmem:[%s25166_s2 + $0x660] sm:$0xff]  ;;  %v672_v50 = vld [vmem:[%s25166_s2 + $0x630] sm:$0xff] }
 0x10a   : > { %v680_v51 = vld [vmem:[%s25166_s2 + $0x670] sm:$0xff]  ;;  %v20452_v56 = vpack.c.bf16 %v678_v47, %v670_v46 }
 0x10b   : > { %v20516_v57 = vpack.c.bf16 %v680_v51, %v672_v50 }
 0x10c   : > { %20433 = vmatpush1.bf16.msra.mxu1 %v20432_v58  ;;  %20497 = vmatpush1.bf16.msra.mxu0 %v20496_v59  ;;  %v686_v58 = vld [vmem:[%s25166_s2 + $0x6a0] sm:$0xff] }
 0x10d   : > { %20435 = vmatprep.subr.bf16.mxu1 %v20434_v62  ;;  %20499 = vmatprep.subr.bf16.mxu0 %v20498_v63  ;;  %v694_v59 = vld [vmem:[%s25166_s2 + $0x6e0] sm:$0xff]  ;;  %v688_v62 = vld [vmem:[%s25166_s2 + $0x6b0] sm:$0xff] }
 0x10e   : > { %v696_v63 = vld [vmem:[%s25166_s2 + $0x6f0] sm:$0xff]  ;;  %v20456_v5 = vpack.c.bf16 %v694_v59, %v686_v58  ;;  %v22062_v58 = vld [vmem:[%s25170_s6 + $0x24] sm:$0xf] }
 0x10f   : > { %v20520_v6 = vpack.c.bf16 %v696_v63, %v688_v62 }
 0x110   : > { %20437 = vmatpush1.bf16.msra.mxu1 %v20436_v7  ;;  %20501 = vmatpush1.bf16.msra.mxu0 %v20500_v8  ;;  %v702_v7 = vld [vmem:[%s25166_s2 + $0x720] sm:$0xff] }
 0x111   : > { %20439 = vmatprep.subr.bf16.mxu1 %v20438_v11  ;;  %20503 = vmatprep.subr.bf16.mxu0 %v20502_v12  ;;  %v710_v8 = vld [vmem:[%s25166_s2 + $0x760] sm:$0xff]  ;;  %v704_v11 = vld [vmem:[%s25166_s2 + $0x730] sm:$0xff] }
 0x112   : > { %v712_v12 = vld [vmem:[%s25166_s2 + $0x770] sm:$0xff]  ;;  %v20460_v17 = vpack.c.bf16 %v710_v8, %v702_v7 }
 0x113   : > { %v20524_v18 = vpack.c.bf16 %v712_v12, %v704_v11 }
 0x114   : > { %20441 = vmatpush1.bf16.msra.mxu1 %v20440_v19  ;;  %20505 = vmatpush1.bf16.msra.mxu0 %v20504_v20  ;;  %v718_v19 = vld [vmem:[%s25166_s2 + $0x7a0] sm:$0xff]  ;;  %v20462_v20 = vpack.c.bf16 %v727_v14, %v719_v13 }
 0x115   : > { %20443 = vmatprep.subr.bf16.mxu1 %v20442_v23  ;;  %20507 = vmatprep.subr.bf16.mxu0 %v20506_v24  ;;  %v720_v23 = vld [vmem:[%s25166_s2 + $0x7b0] sm:$0xff]  ;;  %v20464_v25 = vpack.c.bf16 %v726_v22, %v718_v19 }
 0x116   : > { %v728_v24 = vld [vmem:[%s25166_s2 + $0x7f0] sm:$0xff] }
 0x117   : > { %v20528_v26 = vpack.c.bf16 %v728_v24, %v720_v23 }
 0x118   : > { %20445 = vmatpush1.bf16.msra.mxu1 %v20444_v31  ;;  %20509 = vmatpush1.bf16.msra.mxu0 %v20508_v32 }
 0x119   : > { %20447 = vmatprep.subr.bf16.mxu1 %v20446_v35  ;;  %20511 = vmatprep.subr.bf16.mxu0 %v20510_v36 }
 0x11c   : > { %20449 = vmatpush1.bf16.msra.mxu1 %v20448_v44  ;;  %20513 = vmatpush1.bf16.msra.mxu0 %v20512_v45  ;;  %v21997_v44 = vpop.permute.xlu1 %20838 }
 0x11d   : > { %20451 = vmatprep.subr.bf16.mxu1 %v20450_v48  ;;  %20515 = vmatprep.subr.bf16.mxu0 %v20514_v49  ;;  %v22021_v48 = vpop.permute.xlu0 %1734  ;;  %v20840_v55 = vunpack.i.l.bf16 %v21997_v44 }
 0x120   : > { %20453 = vmatpush1.bf16.msra.mxu1 %v20452_v56  ;;  %20517 = vmatpush1.bf16.msra.mxu0 %v20516_v57  ;;  %v22003_v45 = vpop.permute.xlu1 %20843 }
 0x121   : > { %20455 = vmatprep.subr.bf16.mxu1 %v20454_v60  ;;  %20519 = vmatprep.subr.bf16.mxu0 %v20518_v61  ;;  %v22033_v50 = vpop.permute.xlu0 %2746 }
 0x124   : > { %20457 = vmatpush1.bf16.msra.mxu1 %v20456_v5  ;;  %20521 = vmatpush1.bf16.msra.mxu0 %v20520_v6  ;;  %v22013_v46 = vpop.permute.xlu1 %20848 }
 0x125   : > { %20459 = vmatprep.subr.bf16.mxu1 %v20458_v9  ;;  %20523 = vmatprep.subr.bf16.mxu0 %v20522_v10 }
 0x128   : > { %20461 = vmatpush1.bf16.msra.mxu1 %v20460_v17  ;;  %20525 = vmatpush1.bf16.msra.mxu0 %v20524_v18  ;;  %v22019_v47 = vpop.permute.xlu1 %20853 }
 0x129   : > { %20463 = vmatprep.subr.bf16.mxu1 %v20462_v20  ;;  %20527 = vmatprep.subr.bf16.mxu0 %v20526_v21 }
 0x12c   : > { %20465 = vmatpush1.bf16.msra.mxu1 %v20464_v25  ;;  %20529 = vmatpush1.bf16.msra.mxu0 %v20528_v26  ;;  %v22031_v49 = vpop.permute.xlu1 %20858 }
 0x12f   : > { %937 = vmatmul.mubr.f32.vlgmr.msra.gmra.mrb[2].mxu1 %v21563_v39  ;;  %1008 = vmatmul.mubr.f32.vlgmr.msra.gmra.mrb[4].mxu0 %v21563_v39 }
 0x130   : > { %1171 = vmatprep.mubr.f32.mxu1 %v21911_v27  ;;  %1242 = vmatprep.mubr.f32.mxu0 %v21911_v27 }
 0x1c2   : > { %v796_v28 = vpop.f32.mrb[0].mxu1  ;;  %v867_v29 = vpop.f32.mrb[2].mxu0 }
 0x1c3   : > { %1014 = vst [vmem:[#allocation2 + $0x18] sm:$0xf] %v796_v28  ;;  %1016 = vst [vmem:[#allocation2 + $0x28] sm:$0xf] %v867_v29  ;;  %v798_v30 = vpop.f32.mrb[1].mxu1  ;;  %v869_v31 = vpop.f32.mrb[3].mxu0 }
 0x1c4   : > { %1015 = vst [vmem:[#allocation2 + $0x20] sm:$0xf] %v798_v30  ;;  %1017 = vst [vmem:[#allocation2 + $0x30] sm:$0xf] %v869_v31 }
 0x1ca   : > { %v21917_v32 = vld [vmem:[#allocation2 + $0x18] sm:$0xff]  ;;  %v21923_v39 = vld [vmem:[#allocation2 + $0x28] sm:$0xff] }
 0x1cb   : > { %2103 = vrot.lane.b32.xlu1 %v21917_v32, %s21030_s20  ;;  %1071 = vrot.lane.b32.xlu0 %v21917_v32, %s21029_s19  ;;  %v21929_v33 = vld [vmem:[#allocation2 + $0x20] sm:$0xff]  ;;  %v21935_v34 = vld [vmem:[#allocation2 + $0x30] sm:$0xff] }
 0x1cf   : > { %3116 = vrot.lane.b32.xlu1 %v21917_v32, %s21031_s28  ;;  %1075 = vrot.lane.b32.xlu0 %v21923_v39, %s21029_s19 }
 0x1d3   : > { %1413 = vrot.lane.b32.xlu0 %v21923_v39, %s21029_s19  ;;  %1073 = vrot.lane.b32.xlu1 %v21929_v33, %s21029_s19 }
 0x1d7   : > { %2107 = vrot.lane.b32.xlu0 %v21923_v39, %s21030_s20  ;;  %1077 = vrot.lane.b32.xlu1 %v21935_v34, %s21029_s19 }
 0x1db   : > { %2427 = vrot.lane.b32.xlu0 %v21923_v39, %s21030_s20  ;;  %1415 = vrot.lane.b32.xlu1 %v21935_v34, %s21029_s19 }
 0x1df   : > { %3120 = vrot.lane.b32.xlu0 %v21923_v39, %s21031_s28  ;;  %2109 = vrot.lane.b32.xlu1 %v21935_v34, %s21030_s20 }
 0x1e3   : > { %3440 = vrot.lane.b32.xlu0 %v21923_v39, %s21031_s28  ;;  %2429 = vrot.lane.b32.xlu1 %v21935_v34, %s21030_s20 }
 0x1e7   : > { %1411 = vrot.lane.b32.xlu0 %v21929_v33, %s21029_s19  ;;  %3122 = vrot.lane.b32.xlu1 %v21935_v34, %s21031_s28 }
 0x1eb   : > { %2105 = vrot.lane.b32.xlu0 %v21929_v33, %s21030_s20  ;;  %3442 = vrot.lane.b32.xlu1 %v21935_v34, %s21031_s28 }
 0x1ef   : > { %2425 = vrot.lane.b32.xlu0 %v21929_v33, %s21030_s20 }
 0x1f3   : > { %3118 = vrot.lane.b32.xlu0 %v21929_v33, %s21031_s28 }
 0x202   : > { %v938_v35 = vpop.f32.mrb[2].mxu1  ;;  %v1009_v36 = vpop.f32.mrb[4].mxu0 }
 0x203   : > { %1018 = vst [vmem:[#allocation2 + $0x38] sm:$0xf] %v938_v35  ;;  %1020 = vst [vmem:[#allocation2 + $0x48] sm:$0xf] %v1009_v36  ;;  %v940_v37 = vpop.f32.mrb[3].mxu1  ;;  %v1011_v38 = vpop.f32.mrb[5].mxu0  ;;  %v20841_v36 = vunpack.i.h.bf16 %v21997_v44 }
 0x204   : > { %1019 = vst [vmem:[#allocation2 + $0x40] sm:$0xf] %v940_v37  ;;  %1021 = vst [vmem:[#allocation2 + $0x50] sm:$0xf] %v1011_v38  ;;  %v19762_v35 = vld [vmem:[%s25170_s6 + $0x48] sm:$0xf]  ;;  %v20845_v37 = vunpack.i.l.bf16 %v22003_v45 }
 0x205   : > { %v1055_v44 = vld [vmem:[%s25170_s6] sm:$0xf] }
 0x20a   : > { %v21965_v40 = vld [vmem:[#allocation2 + $0x38] sm:$0xff]  ;;  %v21971_v41 = vld [vmem:[#allocation2 + $0x48] sm:$0xff] }
 0x20b   : > { %1417 = vrot.lane.b32.xlu1 %v21965_v40, %s21029_s19  ;;  %1079 = vrot.lane.b32.xlu0 %v21965_v40, %s21029_s19  ;;  %v21985_v42 = vld [vmem:[#allocation2 + $0x40] sm:$0xff]  ;;  %v21991_v43 = vld [vmem:[#allocation2 + $0x50] sm:$0xff] }
 0x20f   : > { %1421 = vrot.lane.b32.xlu1 %v21971_v41, %s21029_s19  ;;  %1083 = vrot.lane.b32.xlu0 %v21971_v41, %s21029_s19 }
 0x213   : > { %2431 = vrot.lane.b32.xlu1 %v21965_v40, %s21030_s20  ;;  %2111 = vrot.lane.b32.xlu0 %v21965_v40, %s21030_s20 }
 0x217   : > { %2435 = vrot.lane.b32.xlu1 %v21971_v41, %s21030_s20  ;;  %2115 = vrot.lane.b32.xlu0 %v21971_v41, %s21030_s20 }
 0x21b   : > { %3124 = vrot.lane.b32.xlu0 %v21965_v40, %s21031_s28  ;;  %1081 = vrot.lane.b32.xlu1 %v21985_v42, %s21029_s19 }
 0x21f   : > { %3128 = vrot.lane.b32.xlu0 %v21971_v41, %s21031_s28  ;;  %1085 = vrot.lane.b32.xlu1 %v21991_v43, %s21029_s19 }
 0x223   : > { %1419 = vrot.lane.b32.xlu0 %v21985_v42, %s21029_s19  ;;  %3444 = vrot.lane.b32.xlu1 %v21965_v40, %s21031_s28 }
 0x227   : > { %1423 = vrot.lane.b32.xlu0 %v21991_v43, %s21029_s19  ;;  %3448 = vrot.lane.b32.xlu1 %v21971_v41, %s21031_s28 }
 0x22b   : > { %3438 = vrot.lane.b32.xlu0 %v21929_v33, %s21031_s28  ;;  %20863 = vrot.lane.b32.xlu1 %v21027_v0, %s21031_s28 }
 0x22f   : > { %3759 = vrot.lane.b32.xlu0 %v21911_v27, %s21031_s28  ;;  %4129 = vrot.lane.b32.xlu1 %v21917_v32, %s21032_s29 }
 0x233   : > { %4131 = vrot.lane.b32.xlu0 %v21929_v33, %s21032_s29  ;;  %2113 = vrot.lane.b32.xlu1 %v21985_v42, %s21030_s20 }
 0x237   : > { %4133 = vrot.lane.b32.xlu0 %v21923_v39, %s21032_s29  ;;  %2117 = vrot.lane.b32.xlu1 %v21991_v43, %s21030_s20 }
 0x23b   : > { %2433 = vrot.lane.b32.xlu0 %v21985_v42, %s21030_s20  ;;  %20868 = vrot.lane.b32.xlu1 %v21027_v0, %s21032_s29 }
 0x23d   : > { %v22039_v51 = vpop.permute.xlu1 %2103  ;;  %v1072_v52 = vpop.permute.xlu0 %1071 }
 0x23e   : > { %v22068_v59 = vsel %vm1087_vm1, %v20840_v55, %v1072_v52 }
 0x23f   : > { %2437 = vrot.lane.b32.xlu0 %v21991_v43, %s21030_s20  ;;  %4135 = vrot.lane.b32.xlu1 %v21935_v34, %s21032_s29 }
 0x241   : > { %v22045_v53 = vpop.permute.xlu1 %3116  ;;  %v1076_v54 = vpop.permute.xlu0 %1075 }
 0x243   : > { %4137 = vrot.lane.b32.xlu0 %v21965_v40, %s21032_s29  ;;  %4455 = vrot.lane.b32.xlu1 %v21935_v34, %s21032_s29 }
 0x245   : > { %v1074_v56 = vpop.permute.xlu1 %1073  ;;  %v22070_v60 = vpop.permute.xlu0 %1413 }
 0x246   : > { %v22053_v57 = vsel %vm1087_vm1, %v1072_v52, %v1074_v56  ;;  %v22087_v63 = vsel %vm1087_vm1, %v1074_v56, %v1076_v54 }
 0x247   : > { %4141 = vrot.lane.b32.xlu0 %v21971_v41, %s21032_s29  ;;  %4457 = vrot.lane.b32.xlu1 %v21965_v40, %s21032_s29 }
 0x248   : > { %1107 = vmatprep.subr.mxu1 %v22053_v57 }
 0x249   : > { %1108 = vmatpush1.msra.mxu1 %v22068_v59  ;;  %v22073_v61 = vpop.permute.xlu1 %1077  ;;  %v22093_v1 = vpop.permute.xlu0 %2107 }
 0x24a   : > { %v22077_v62 = vsel %vm1087_vm1, %v1076_v54, %v22073_v61  ;;  %19758 = vmatmul.mubr.msk.f32.vlgmr.msra.gmra.mrb[4].mxu1 %vm399_vm0, %v22062_v58 }
 0x24b   : > { %4453 = vrot.lane.b32.xlu0 %v21923_v39, %s21032_s29  ;;  %3126 = vrot.lane.b32.xlu1 %v21985_v42, %s21031_s28 }
 0x24c   : > { %1178 = vmatprep.subr.mxu0 %v22077_v62  ;;  %1313 = vmatprep.mubr.f32.mxu1 %v21911_v27 }
 0x24d   : > { %1179 = vmatpush1.msra.mxu0 %v22087_v63  ;;  %v22104_v2 = vpop.permute.xlu0 %2427  ;;  %v22120_v4 = vpop.permute.xlu1 %1415 }
 0x24e   : > { %19759 = vmatmul.mubr.msk.f32.vlgmr.msra.gmra.mrb[6].mxu0 %vm399_vm0, %v22062_v58  ;;  %v1430_v28 = vsel %vm1087_vm1, %v22070_v60, %v22120_v4 }
 0x24f   : > { %4451 = vrot.lane.b32.xlu0 %v21929_v33, %s21032_s29  ;;  %3130 = vrot.lane.b32.xlu1 %v21991_v43, %s21031_s28 }
 0x250   : > { %1384 = vmatprep.mubr.f32.mxu0 %v21911_v27 }
 0x251   : > { %v22110_v3 = vpop.permute.xlu0 %3120  ;;  %v22128_v6 = vpop.permute.xlu1 %2109 }
 0x253   : > { %3446 = vrot.lane.b32.xlu0 %v21985_v42, %s21031_s28  ;;  %4461 = vrot.lane.b32.xlu1 %v21971_v41, %s21032_s29 }
 0x255   : > { %v22122_v5 = vpop.permute.xlu0 %3440  ;;  %v22138_v8 = vpop.permute.xlu1 %2429 }
 0x257   : > { %3450 = vrot.lane.b32.xlu0 %v21991_v43, %s21031_s28  ;;  %20873 = vrot.lane.b32.xlu1 %v21027_v0, %s21032_s29 }
 0x259   : > { %v1412_v7 = vpop.permute.xlu0 %1411  ;;  %v22146_v10 = vpop.permute.xlu1 %3122 }
 0x25a   : > { %v1429_v30 = vsel %vm1087_vm1, %v1412_v7, %v22070_v60 }
 0x25b   : > { %4772 = vrot.lane.b32.xlu0 %v21911_v27, %s21032_s29  ;;  %6045 = vrot.lane.b32.xlu1 %v21929_v33, %s21033_s12 }
 0x25d   : > { %v22140_v9 = vpop.permute.xlu0 %2105  ;;  %v22158_v12 = vpop.permute.xlu1 %3442 }
 0x25f   : > { %6047 = vrot.lane.b32.xlu0 %v21923_v39, %s21033_s12  ;;  %6043 = vrot.lane.b32.xlu1 %v21917_v32, %s21033_s12 }
 0x261   : > { %v22148_v11 = vpop.permute.xlu0 %2425 }
 0x263   : > { %6049 = vrot.lane.b32.xlu0 %v21935_v34, %s21033_s12  ;;  %4139 = vrot.lane.b32.xlu1 %v21985_v42, %s21032_s29 }
 0x265   : > { %v22160_v13 = vpop.permute.xlu0 %3118 }
 0x267   : > { %6387 = vrot.lane.b32.xlu0 %v21935_v34, %s21033_s12  ;;  %4143 = vrot.lane.b32.xlu1 %v21991_v43, %s21032_s29 }
 0x26b   : > { %4459 = vrot.lane.b32.xlu0 %v21985_v42, %s21032_s29  ;;  %6051 = vrot.lane.b32.xlu1 %v21965_v40, %s21033_s12 }
 0x26f   : > { %4463 = vrot.lane.b32.xlu0 %v21991_v43, %s21032_s29  ;;  %6055 = vrot.lane.b32.xlu1 %v21971_v41, %s21033_s12 }
 0x273   : > { %6385 = vrot.lane.b32.xlu0 %v21923_v39, %s21033_s12  ;;  %20878 = vrot.lane.b32.xlu1 %v21027_v0, %s21033_s12 }
 0x277   : > { %6393 = vrot.lane.b32.xlu0 %v21971_v41, %s21033_s12  ;;  %6389 = vrot.lane.b32.xlu1 %v21965_v40, %s21033_s12 }
 0x27b   : > { %20883 = vrot.lane.b32.xlu0 %v21027_v0, %s21033_s12  ;;  %20888 = vrot.lane.b32.xlu1 %v21027_v0, %s21033_s12 }
 0x27d   : > { %v1418_v14 = vpop.permute.xlu1 %1417  ;;  %v1080_v15 = vpop.permute.xlu0 %1079 }
 0x27e   : > { %v22201_v25 = vsel %vm1087_vm1, %v22073_v61, %v1080_v15  ;;  %v1431_v60 = vsel %vm1087_vm1, %v22120_v4, %v1418_v14  ;;  %v1436_v61 = vsel %vm1087_vm1, %v20841_v36, %v20845_v37 }
 0x27f   : > { %7078 = vrot.lane.b32.xlu0 %v21929_v33, %s21034_s17  ;;  %7080 = vrot.lane.b32.xlu1 %v21923_v39, %s21034_s17 }
 0x281   : > { %v22170_v16 = vpop.permute.xlu1 %1421  ;;  %v1084_v17 = vpop.permute.xlu0 %1083 }
 0x283   : > { %7076 = vrot.lane.b32.xlu0 %v21917_v32, %s21034_s17  ;;  %7082 = vrot.lane.b32.xlu1 %v21935_v34, %s21034_s17 }
 0x285   : > { %v22176_v18 = vpop.permute.xlu1 %2431  ;;  %v22178_v19 = vpop.permute.xlu0 %2111 }
 0x287   : > { %7084 = vrot.lane.b32.xlu0 %v21965_v40, %s21034_s17  ;;  %7402 = vrot.lane.b32.xlu1 %v21935_v34, %s21034_s17 }
 0x289   : > { %v22184_v20 = vpop.permute.xlu1 %2435  ;;  %v22186_v21 = vpop.permute.xlu0 %2115 }
 0x28b   : > { %7088 = vrot.lane.b32.xlu0 %v21971_v41, %s21034_s17  ;;  %7400 = vrot.lane.b32.xlu1 %v21923_v39, %s21034_s17 }
 0x28d   : > { %v22192_v22 = vpop.permute.xlu0 %3124  ;;  %v1082_v23 = vpop.permute.xlu1 %1081 }
 0x28e   : > { %v1093_v24 = vsel %vm1087_vm1, %v1080_v15, %v1082_v23  ;;  %v1094_v38 = vsel %vm1087_vm1, %v1082_v23, %v1084_v17  ;;  %v20846_v15 = vunpack.i.h.bf16 %v22003_v45 }
 0x28f   : > { %20893 = vrot.lane.b32.xlu0 %v21027_v0, %s21034_s17  ;;  %7408 = vrot.lane.b32.xlu1 %v21971_v41, %s21034_s17 }
 0x290   : > { %1249 = vmatprep.subr.mxu1 %v1093_v24 }
 0x291   : > { %1250 = vmatpush1.msra.mxu1 %v22201_v25  ;;  %v22204_v26 = vpop.permute.xlu0 %3128  ;;  %v1086_v29 = vpop.permute.xlu1 %1085 }
 0x292   : > { %1448 = vmatprep.subr.mxu1 %v1430_v28  ;;  %19760 = vmatmul.mubr.msk.f32.vlgmr.msra.gmra.mrb[6].mxu1 %vm399_vm0, %v22062_v58  ;;  %v1095_v31 = vsel %vm1087_vm1, %v1084_v17, %v1086_v29  ;;  %v1739_v28 = vsel %vm1087_vm1, %v20846_v15, %v20840_v55  ;;  %v1738_v29 = vsel %vm1087_vm1, %v22021_v48, %v20846_v15  ;;  %v20850_v48 = vunpack.i.l.bf16 %v22013_v46 }
 0x293   : > { %1449 = vmatpush1.msra.mxu1 %v1429_v30  ;;  %7404 = vrot.lane.b32.xlu0 %v21965_v40, %s21034_s17 }
 0x294   : > { %20898 = vrot.lane.b32.xlu1 %v21027_v0, %s21034_s17  ;;  %1320 = vmatprep.subr.mxu0 %v1095_v31 }
 0x295   : > { %1321 = vmatpush1.msra.mxu0 %v1094_v38  ;;  %v1420_v52 = vpop.permute.xlu0 %1419  ;;  %v22224_v54 = vpop.permute.xlu1 %3444  ;;  %1512 = vmatprep.mubr.f32.mxu1 %v21911_v27  ;;  %v2444_v38 = vsel %vm2119_vm2, %v22104_v2, %v22138_v8 }
 0x296   : > { %19761 = vmatmul.mubr.msk.f32.vlgmr.msra.gmra.mrb[8].mxu0 %vm399_vm0, %v22062_v58  ;;  %v1432_v56 = vsel %vm1087_vm1, %v1418_v14, %v1420_v52  ;;  %19763 = vmatmul.mubr.msk.f32.vlgmr.msra.gmra.mrb[4].mxu1 %vm399_vm0, %v19762_v35  ;;  %v1433_v45 = vsel %vm1087_vm1, %v1420_v52, %v22170_v16 }
 0x297   : > { %6053 = vrot.lane.b32.xlu0 %v21985_v42, %s21033_s12  ;;  %1519 = vmatprep.subr.mxu0 %v1432_v56  ;;  %v2443_v56 = vsel %vm2119_vm2, %v22148_v11, %v22104_v2  ;;  %v19777_v2 = vld [vmem:[%s25170_s6 + $0x4c] sm:$0xf]  ;;  %v2445_v11 = vsel %vm2119_vm2, %v22138_v8, %v22176_v18  ;;  %v20856_v8 = vunpack.i.h.bf16 %v22019_v47 }
 0x298   : > { %8091 = vrot.lane.b32.xlu1 %v21929_v33, %s21035_s21  ;;  %1520 = vmatpush1.msra.mxu0 %v1431_v60 }
 0x299   : > { %1583 = vmatprep.mubr.f32.mxu0 %v21911_v27  ;;  %v1424_v58 = vpop.permute.xlu0 %1423  ;;  %1661 = vmatprep.subr.mxu0 %v1436_v61  ;;  %v22239_v7 = vpop.permute.xlu1 %3448  ;;  %v20851_v61 = vunpack.i.h.bf16 %v22013_v46  ;;  %v19771_v46 = vld [vmem:[%s25170_s6 + $0x4] sm:$0xf] }
 0x29a   : > { %19764 = vmatmul.mubr.msk.f32.vlgmr.msra.gmra.mrb[6].mxu0 %vm399_vm0, %v19762_v35  ;;  %v1434_v4 = vsel %vm1087_vm1, %v22170_v16, %v1424_v58  ;;  %v1435_v14 = vsel %vm1087_vm1, %v1424_v58, %v20841_v36  ;;  %1654 = vmatprep.mubr.f32.mxu1 %v21911_v27 }
 0x29b   : > { %6057 = vrot.lane.b32.xlu0 %v21991_v43, %s21033_s12  ;;  %1590 = vmatprep.subr.mxu1 %v1434_v4 }
 0x29c   : > { %6391 = vrot.lane.b32.xlu1 %v21985_v42, %s21033_s12  ;;  %1662 = vmatpush1.msra.mxu0 %v1435_v14 }
 0x29d   : > { %1591 = vmatpush1.msra.mxu1 %v1433_v45  ;;  %1725 = vmatprep.mubr.f32.mxu0 %v21911_v27  ;;  %v22254_v17 = vpop.permute.xlu0 %3438  ;;  %v22256_v23 = vpop.permute.xlu1 %20863 }
 0x29e   : > { %1816 = vmatprep.subr.mxu0 %v22053_v57  ;;  %19765 = vmatmul.mubr.msk.f32.vlgmr.msra.gmra.mrb[6].mxu1 %vm399_vm0, %v19762_v35 }
 0x29f   : > { %19766 = vmatmul.mubr.msk.f32.vlgmr.msra.gmra.mrb[8].mxu0 %vm399_vm0, %v19762_v35  ;;  %1745 = vmatprep.subr.mxu1 %v1739_v28 }
 0x2a0   : > { %1817 = vmatpush1.msra.mxu0 %v22068_v59  ;;  %1746 = vmatpush1.msra.mxu1 %v1738_v29  ;;  %v22289_v59 = vsel %vm2119_vm2, %v22039_v51, %v22140_v9 }
 0x2a1   : > { %1958 = vmatprep.subr.mxu0 %v1093_v24  ;;  %20903 = vrot.lane.b32.xlu0 %v21027_v0, %s21034_s17  ;;  %v22269_v57 = vpop.permute.xlu0 %3759  ;;  %v22274_v55 = vpop.permute.xlu1 %4129 }
 0x2a2   : > { %6395 = vrot.lane.b32.xlu1 %v21991_v43, %s21033_s12  ;;  %1887 = vmatprep.subr.mxu1 %v22077_v62  ;;  %v22294_v62 = vsel %vm2119_vm2, %v22093_v1, %v22128_v6 }
 0x2a3   : > { %1809 = vmatprep.mubr.f32.mxu1 %v21911_v27  ;;  %1880 = vmatprep.mubr.f32.mxu0 %v21911_v27 }
 0x2a4   : > { %19767 = vmatmul.mubr.msk.f32.vlgmr.msra.gmra.mrb[4].mxu1 %vm399_vm0, %v1055_v44  ;;  %19768 = vmatmul.mubr.msk.f32.vlgmr.msra.gmra.mrb[6].mxu0 %vm399_vm0, %v1055_v44 }
 0x2a5   : > { %1888 = vmatpush1.msra.mxu1 %v22087_v63  ;;  %1959 = vmatpush1.msra.mxu0 %v22201_v25  ;;  %v22296_v16 = vpop.permute.xlu0 %4131  ;;  %v2114_v24 = vpop.permute.xlu1 %2113  ;;  %v22312_v63 = vsel %vm2119_vm2, %v20850_v48, %v22039_v51  ;;  %v22317_v25 = vsel %vm2119_vm2, %v22140_v9, %v22093_v1  ;;  %v19772_v51 = vld [vmem:[%s25170_s6 + $0x28] sm:$0xf]  ;;  %v22341_v1 = vsel %vm2119_vm2, %v22128_v6, %v22178_v19 }
 0x2a6   : > { %2139 = vmatprep.subr.mxu1 %v22289_v59  ;;  %2210 = vmatprep.subr.mxu0 %v22294_v62  ;;  %v22321_v30 = vsel %vm2119_vm2, %v22178_v19, %v2114_v24  ;;  %v2126_v6 = vsel %vm2119_vm2, %v2114_v24, %v22186_v21 }
 0x2a7   : > { %8093 = vrot.lane.b32.xlu0 %v21923_v39, %s21035_s21  ;;  %8089 = vrot.lane.b32.xlu1 %v21917_v32, %s21035_s21 }
 0x2a8   : > { %1951 = vmatprep.mubr.f32.mxu1 %v21911_v27  ;;  %2022 = vmatprep.mubr.f32.mxu0 %v21911_v27 }
 0x2a9   : > { %19769 = vmatmul.mubr.msk.f32.vlgmr.msra.gmra.mrb[6].mxu1 %vm399_vm0, %v1055_v44  ;;  %19770 = vmatmul.mubr.msk.f32.vlgmr.msra.gmra.mrb[8].mxu0 %vm399_vm0, %v1055_v44  ;;  %v22323_v31 = vpop.permute.xlu0 %4133  ;;  %v2118_v35 = vpop.permute.xlu1 %2117 }
 0x2aa   : > { %2140 = vmatpush1.msra.mxu1 %v22312_v63  ;;  %2211 = vmatpush1.msra.mxu0 %v22317_v25  ;;  %v2127_v9 = vsel %vm2119_vm2, %v22186_v21, %v2118_v35  ;;  %v20855_v21 = vunpack.i.l.bf16 %v22019_v47  ;;  %v2751_v47 = vsel %vm2119_vm2, %v20856_v8, %v20850_v48 }
 0x2ab   : > { %8095 = vrot.lane.b32.xlu0 %v21935_v34, %s21035_s21  ;;  %8097 = vrot.lane.b32.xlu1 %v21965_v40, %s21035_s21 }
 0x2ac   : > { %2281 = vmatprep.subr.mxu1 %v22321_v30  ;;  %2203 = vmatprep.mubr.f32.mxu1 %v21911_v27  ;;  %v2450_v14 = vsel %vm2119_vm2, %v20851_v61, %v20855_v21 }
 0x2ad   : > { %2274 = vmatprep.mubr.f32.mxu0 %v21911_v27  ;;  %19773 = vmatmul.mubr.msk.f32.vlgmr.msra.gmra.mrb[8].mxu1 %vm399_vm0, %v19772_v51  ;;  %v2434_v36 = vpop.permute.xlu0 %2433  ;;  %v22345_v37 = vpop.permute.xlu1 %20868 }
 0x2ae   : > { %19774 = vmatmul.mubr.msk.f32.vlgmr.msra.gmra.mrb[10].mxu0 %vm399_vm0, %v19772_v51  ;;  %2282 = vmatpush1.msra.mxu1 %v22341_v1  ;;  %v2446_v60 = vsel %vm2119_vm2, %v22176_v18, %v2434_v36  ;;  %v2447_v18 = vsel %vm2119_vm2, %v2434_v36, %v22184_v20 }
 0x2af   : > { %2462 = vmatprep.subr.mxu1 %v2444_v38  ;;  %8415 = vrot.lane.b32.xlu0 %v21935_v34, %s21035_s21 }
 0x2b0   : > { %7086 = vrot.lane.b32.xlu1 %v21985_v42, %s21034_s17  ;;  %2352 = vmatprep.subr.mxu0 %v2127_v9  ;;  %v19789_v9 = vld [vmem:[%s25170_s6 + $0x2c] sm:$0xf] }
 0x2b1   : > { %2345 = vmatprep.mubr.f32.mxu1 %v21911_v27  ;;  %2353 = vmatpush1.msra.mxu0 %v2126_v6  ;;  %v2438_v19 = vpop.permute.xlu0 %2437  ;;  %v22359_v52 = vpop.permute.xlu1 %4135  ;;  %v3456_v6 = vsel %vm3132_vm3, %v22254_v17, %v22122_v5  ;;  %v20861_v17 = vunpack.i.h.bf16 %v22031_v49 }
 0x2b2   : > { %2416 = vmatprep.mubr.f32.mxu0 %v21911_v27  ;;  %19775 = vmatmul.mubr.msk.f32.vlgmr.msra.gmra.mrb[10].mxu1 %vm399_vm0, %v19772_v51  ;;  %v2448_v4 = vsel %vm2119_vm2, %v22184_v20, %v2438_v19  ;;  %v2449_v45 = vsel %vm2119_vm2, %v2438_v19, %v20851_v61  ;;  %v2750_v20 = vsel %vm2119_vm2, %v22033_v50, %v20856_v8  ;;  %v20865_v19 = vunpack.i.l.bf16 %v22256_v23 }
 0x2b3   : > { %19776 = vmatmul.mubr.msk.f32.vlgmr.msra.gmra.mrb[12].mxu0 %vm399_vm0, %v19772_v51  ;;  %2463 = vmatpush1.msra.mxu1 %v2443_v56  ;;  %v22468_v51 = vsel %vm3132_vm3, %v22160_v13, %v22110_v3 }
 0x2b4   : > { %8413 = vrot.lane.b32.xlu0 %v21923_v39, %s21035_s21  ;;  %7090 = vrot.lane.b32.xlu1 %v21991_v43, %s21034_s17  ;;  %v3463_v21 = vsel %vm3132_vm3, %v20861_v17, %v20865_v19 }
 0x2b5   : > { %2533 = vmatprep.subr.mxu0 %v2446_v60  ;;  %2526 = vmatprep.mubr.f32.mxu1 %v21911_v27  ;;  %v22382_v58 = vpop.permute.xlu0 %4137  ;;  %v22384_v15 = vpop.permute.xlu1 %4455  ;;  %v3458_v60 = vsel %vm3132_vm3, %v22158_v12, %v22224_v54 }
 0x2b6   : > { %2534 = vmatpush1.msra.mxu0 %v2445_v11  ;;  %2597 = vmatprep.mubr.f32.mxu0 %v21911_v27 }
 0x2b7   : > { %19778 = vmatmul.mubr.msk.f32.vlgmr.msra.gmra.mrb[8].mxu1 %vm399_vm0, %v19777_v2  ;;  %19779 = vmatmul.mubr.msk.f32.vlgmr.msra.gmra.mrb[10].mxu0 %vm399_vm0, %v19777_v2 }
 0x2b8   : > { %2675 = vmatprep.subr.mxu0 %v2450_v14  ;;  %7406 = vrot.lane.b32.xlu0 %v21985_v42, %s21034_s17 }
 0x2b9   : > { %8101 = vrot.lane.b32.xlu1 %v21971_v41, %s21035_s21  ;;  %2604 = vmatprep.subr.mxu1 %v2448_v4  ;;  %v22400_v28 = vpop.permute.xlu0 %4141  ;;  %v22402_v29 = vpop.permute.xlu1 %4457 }
 0x2ba   : > { %2676 = vmatpush1.msra.mxu0 %v2449_v45  ;;  %2605 = vmatpush1.msra.mxu1 %v2447_v18 }
 0x2bb   : > { %2668 = vmatprep.mubr.f32.mxu1 %v21911_v27  ;;  %2739 = vmatprep.mubr.f32.mxu0 %v21911_v27 }
 0x2bc   : > { %2828 = vmatprep.subr.mxu0 %v22289_v59  ;;  %19780 = vmatmul.mubr.msk.f32.vlgmr.msra.gmra.mrb[10].mxu1 %vm399_vm0, %v19777_v2  ;;  %v20860_v59 = vunpack.i.l.bf16 %v22031_v49  ;;  %v19788_v49 = vld [vmem:[%s25170_s6 + $0x8] sm:$0xf] }
 0x2bd   : > { %19781 = vmatmul.mubr.msk.f32.vlgmr.msra.gmra.mrb[12].mxu0 %vm399_vm0, %v19777_v2  ;;  %2757 = vmatprep.subr.mxu1 %v2751_v47  ;;  %v22414_v44 = vpop.permute.xlu0 %4453  ;;  %v3127_v24 = vpop.permute.xlu1 %3126  ;;  %v22598_v47 = vsel %vm4145_vm4, %v22323_v31, %v22359_v52 }
 0x2be   : > { %2829 = vmatpush1.msra.mxu0 %v22312_v63  ;;  %2758 = vmatpush1.msra.mxu1 %v2750_v20  ;;  %v22443_v63 = vsel %vm3132_vm3, %v22110_v3, %v22146_v10  ;;  %v22463_v35 = vsel %vm3132_vm3, %v20860_v59, %v22045_v53 }
 0x2bf   : > { %2970 = vmatprep.subr.mxu0 %v22321_v30  ;;  %7410 = vrot.lane.b32.xlu0 %v21991_v43, %s21034_s17 }
 0x2c0   : > { %20908 = vrot.lane.b32.xlu1 %v21027_v0, %s21035_s21  ;;  %2899 = vmatprep.subr.mxu1 %v22294_v62  ;;  %v22438_v62 = vsel %vm3132_vm3, %v22045_v53, %v22160_v13  ;;  %v22492_v13 = vsel %vm3132_vm3, %v22146_v10, %v22192_v22 }
 0x2c1   : > { %2821 = vmatprep.mubr.f32.mxu1 %v21911_v27  ;;  %2892 = vmatprep.mubr.f32.mxu0 %v21911_v27  ;;  %v22428_v50 = vpop.permute.xlu0 %4451  ;;  %v3131_v48 = vpop.permute.xlu1 %3130 }
 0x2c2   : > { %19782 = vmatmul.mubr.msk.f32.vlgmr.msra.gmra.mrb[8].mxu1 %vm399_vm0, %v19771_v46  ;;  %19783 = vmatmul.mubr.msk.f32.vlgmr.msra.gmra.mrb[10].mxu0 %vm399_vm0, %v19771_v46  ;;  %v3140_v36 = vsel %vm3132_vm3, %v22204_v26, %v3131_v48  ;;  %v22623_v48 = vsel %vm4145_vm4, %v22296_v16, %v22323_v31 }
 0x2c3   : > { %2900 = vmatpush1.msra.mxu1 %v22317_v25  ;;  %2971 = vmatpush1.msra.mxu0 %v22341_v1  ;;  %v22472_v1 = vsel %vm3132_vm3, %v22192_v22, %v3127_v24  ;;  %v3139_v22 = vsel %vm3132_vm3, %v3127_v24, %v22204_v26 }
 0x2c4   : > { %3152 = vmatprep.subr.mxu1 %v22438_v62  ;;  %3223 = vmatprep.subr.mxu0 %v22443_v63 }
 0x2c5   : > { %8421 = vrot.lane.b32.xlu0 %v21971_v41, %s21035_s21  ;;  %8417 = vrot.lane.b32.xlu1 %v21965_v40, %s21035_s21  ;;  %v22451_v25 = vpop.permute.xlu0 %3446  ;;  %v22453_v30 = vpop.permute.xlu1 %4461 }
 0x2c6   : > { %2963 = vmatprep.mubr.f32.mxu1 %v21911_v27  ;;  %3034 = vmatprep.mubr.f32.mxu0 %v21911_v27 }
 0x2c7   : > { %19784 = vmatmul.mubr.msk.f32.vlgmr.msra.gmra.mrb[10].mxu1 %vm399_vm0, %v19771_v46  ;;  %19785 = vmatmul.mubr.msk.f32.vlgmr.msra.gmra.mrb[12].mxu0 %vm399_vm0, %v19771_v46 }
 0x2c8   : > { %3153 = vmatpush1.msra.mxu1 %v22463_v35  ;;  %3224 = vmatpush1.msra.mxu0 %v22468_v51 }
 0x2c9   : > { %20913 = vrot.lane.b32.xlu0 %v21027_v0, %s21035_s21  ;;  %20918 = vrot.lane.b32.xlu1 %v21027_v0, %s21035_s21  ;;  %v3451_v53 = vpop.permute.xlu0 %3450  ;;  %v22483_v3 = vpop.permute.xlu1 %20873  ;;  %v3457_v0 = vsel %vm3132_vm3, %v22122_v5, %v22158_v12  ;;  %v19794_v5 = vld [vmem:[%s25170_s6 + $0x50] sm:$0xf]  ;;  %v20866_v12 = vunpack.i.h.bf16 %v22256_v23 }
 0x2ca   : > { %3294 = vmatprep.subr.mxu1 %v22472_v1  ;;  %3216 = vmatprep.mubr.f32.mxu1 %v21911_v27  ;;  %v3461_v61 = vsel %vm3132_vm3, %v22239_v7, %v3451_v53  ;;  %v3462_v2 = vsel %vm3132_vm3, %v3451_v53, %v20861_v17  ;;  %v21004_v17 = vld [vmem:[#allocation2 + $0x20] sm:$0xff] }
 0x2cb   : > { %3287 = vmatprep.mubr.f32.mxu0 %v21911_v27  ;;  %19790 = vmatmul.mubr.msk.f32.vlgmr.msra.gmra.mrb[12].mxu1 %vm399_vm0, %v19789_v9  ;;  %v3764_v45 = vsel %vm3132_vm3, %v20866_v12, %v20860_v59 }
 0x2cc   : > { %19791 = vmatmul.mubr.msk.f32.vlgmr.msra.gmra.mrb[14].mxu0 %vm399_vm0, %v19789_v9  ;;  %3295 = vmatpush1.msra.mxu1 %v22492_v13 }
 0x2cd   : > { %3475 = vmatprep.subr.mxu1 %v3457_v0  ;;  %9104 = vrot.lane.b32.xlu0 %v21929_v33, %s21036_s22  ;;  %v22503_v38 = vpop.permute.xlu0 %4772  ;;  %v22505_v10 = vpop.permute.xlu1 %6045  ;;  %v3459_v33 = vsel %vm3132_vm3, %v22224_v54, %v22451_v25  ;;  %v3460_v54 = vsel %vm3132_vm3, %v22451_v25, %v22239_v7  ;;  %v3763_v7 = vsel %vm3132_vm3, %v22269_v57, %v20866_v12  ;;  %v21007_v12 = vld [vmem:[#allocation2 + $0x28] sm:$0xff] }
 0x2ce   : > { %9106 = vrot.lane.b32.xlu1 %v21923_v39, %s21036_s22  ;;  %3365 = vmatprep.subr.mxu0 %v3140_v36  ;;  %v22593_v57 = vsel %vm4145_vm4, %v22274_v55, %v22296_v16  ;;  %v22650_v16 = vsel %vm4145_vm4, %v22359_v52, %v22382_v58 }
 0x2cf   : > { %3358 = vmatprep.mubr.f32.mxu1 %v21911_v27  ;;  %3366 = vmatpush1.msra.mxu0 %v3139_v22 }
 0x2d0   : > { %3429 = vmatprep.mubr.f32.mxu0 %v21911_v27  ;;  %19792 = vmatmul.mubr.msk.f32.vlgmr.msra.gmra.mrb[14].mxu1 %vm399_vm0, %v19789_v9 }
 0x2d1   : > { %19793 = vmatmul.mubr.msk.f32.vlgmr.msra.gmra.mrb[16].mxu0 %vm399_vm0, %v19789_v9  ;;  %3476 = vmatpush1.msra.mxu1 %v3456_v6  ;;  %v22522_v26 = vpop.permute.xlu0 %6047  ;;  %v22524_v56 = vpop.permute.xlu1 %6043  ;;  %v4471_v9 = vsel %vm4145_vm4, %v22384_v15, %v22402_v29  ;;  %v22722_v6 = vld [vmem:[#allocation2] sm:$0xff] }
 0x2d2   : > { %8099 = vrot.lane.b32.xlu0 %v21985_v42, %s21035_s21  ;;  %9108 = vrot.lane.b32.xlu1 %v21935_v34, %s21036_s22 }
 0x2d3   : > { %3546 = vmatprep.subr.mxu0 %v3459_v33  ;;  %3539 = vmatprep.mubr.f32.mxu1 %v21911_v27 }
 0x2d4   : > { %3547 = vmatpush1.msra.mxu0 %v3458_v60  ;;  %3610 = vmatprep.mubr.f32.mxu0 %v21911_v27  ;;  %v22759_v60 = vld [vmem:[#allocation2 + $0x30] sm:$0xff] }
 0x2d5   : > { %19795 = vmatmul.mubr.msk.f32.vlgmr.msra.gmra.mrb[12].mxu1 %vm399_vm0, %v19794_v5  ;;  %19796 = vmatmul.mubr.msk.f32.vlgmr.msra.gmra.mrb[14].mxu0 %vm399_vm0, %v19794_v5  ;;  %v22545_v11 = vpop.permute.xlu0 %6049  ;;  %v22547_v4 = vpop.permute.xlu1 %4139 }
 0x2d6   : > { %3688 = vmatprep.subr.mxu0 %v3463_v21  ;;  %8103 = vrot.lane.b32.xlu0 %v21991_v43, %s21035_s21  ;;  %v4152_v52 = vsel %vm4145_vm4, %v22547_v4, %v22400_v28 }
 0x2d7   : > { %8419 = vrot.lane.b32.xlu1 %v21985_v42, %s21035_s21  ;;  %3617 = vmatprep.subr.mxu1 %v3461_v61 }
 0x2d8   : > { %3689 = vmatpush1.msra.mxu0 %v3462_v2  ;;  %3618 = vmatpush1.msra.mxu1 %v3460_v54  ;;  %v10111_v2 = vld [vmem:[%s25171_s7] sm:$0xf]  ;;  %v19823_v54 = vld [vmem:[%s25170_s6 + $0x34] sm:$0xf] }
 0x2d9   : > { %3681 = vmatprep.mubr.f32.mxu1 %v21911_v27  ;;  %3752 = vmatprep.mubr.f32.mxu0 %v21911_v27  ;;  %v22559_v14 = vpop.permute.xlu0 %6387  ;;  %v4144_v23 = vpop.permute.xlu1 %4143 }
 0x2da   : > { %3841 = vmatprep.subr.mxu0 %v22438_v62  ;;  %19797 = vmatmul.mubr.msk.f32.vlgmr.msra.gmra.mrb[14].mxu1 %vm399_vm0, %v19794_v5  ;;  %v4153_v31 = vsel %vm4145_vm4, %v22400_v28, %v4144_v23  ;;  %v20875_v28 = vunpack.i.l.bf16 %v22483_v3 }
 0x2db   : > { %19798 = vmatmul.mubr.msk.f32.vlgmr.msra.gmra.mrb[16].mxu0 %vm399_vm0, %v19794_v5  ;;  %3770 = vmatprep.subr.mxu1 %v3764_v45 }
 0x2dc   : > { %3842 = vmatpush1.msra.mxu0 %v22463_v35  ;;  %3771 = vmatpush1.msra.mxu1 %v3763_v7  ;;  %v21008_v7 = vld [vmem:[#allocation2 + $0x38] sm:$0xff] }
 0x2dd   : > { %3983 = vmatprep.subr.mxu0 %v22472_v1  ;;  %9102 = vrot.lane.b32.xlu0 %v21917_v32, %s21036_s22  ;;  %v22576_v8 = vpop.permute.xlu0 %4459  ;;  %v22578_v18 = vpop.permute.xlu1 %6051  ;;  %v20870_v32 = vunpack.i.l.bf16 %v22345_v37 }
 0x2de   : > { %8423 = vrot.lane.b32.xlu1 %v21991_v43, %s21035_s21  ;;  %3912 = vmatprep.subr.mxu1 %v22443_v63  ;;  %v4472_v1 = vsel %vm4145_vm4, %v22402_v29, %v22576_v8  ;;  %v20876_v29 = vunpack.i.h.bf16 %v22483_v3 }
 0x2df   : > { %3834 = vmatprep.mubr.f32.mxu1 %v21911_v27  ;;  %3905 = vmatprep.mubr.f32.mxu0 %v21911_v27  ;;  %v22618_v46 = vsel %vm4145_vm4, %v20870_v32, %v22274_v55  ;;  %v19806_v55 = vld [vmem:[%s25170_s6 + $0x30] sm:$0xf] }
 0x2e0   : > { %19799 = vmatmul.mubr.msk.f32.vlgmr.msra.gmra.mrb[12].mxu1 %vm399_vm0, %v19788_v49  ;;  %19800 = vmatmul.mubr.msk.f32.vlgmr.msra.gmra.mrb[14].mxu0 %vm399_vm0, %v19788_v49  ;;  %v4776_v3 = vsel %vm4145_vm4, %v22503_v38, %v20876_v29 }
 0x2e1   : > { %3913 = vmatpush1.msra.mxu1 %v22468_v51  ;;  %3984 = vmatpush1.msra.mxu0 %v22492_v13  ;;  %v22600_v20 = vpop.permute.xlu0 %4463  ;;  %v22602_v24 = vpop.permute.xlu1 %6055  ;;  %v4469_v51 = vsel %vm4145_vm4, %v22428_v50, %v22414_v44  ;;  %v20871_v50 = vunpack.i.h.bf16 %v22345_v37  ;;  %v19805_v37 = vld [vmem:[%s25170_s6 + $0xc] sm:$0xf] }
 0x2e2   : > { %4165 = vmatprep.subr.mxu1 %v22593_v57  ;;  %4236 = vmatprep.subr.mxu0 %v22598_v47 }
 0x2e3   : > { %9110 = vrot.lane.b32.xlu0 %v21965_v40, %s21036_s22  ;;  %9428 = vrot.lane.b32.xlu1 %v21935_v34, %s21036_s22  ;;  %v22628_v34 = vsel %vm4145_vm4, %v22382_v58, %v22547_v4  ;;  %v4476_v36 = vsel %vm4145_vm4, %v20871_v50, %v20875_v28  ;;  %v21006_v4 = vld [vmem:[#allocation2 + $0x18] sm:$0xff]  ;;  %v22859_v28 = vsel %vm6061_vm5, %v22522_v26, %v22545_v11 }
 0x2e4   : > { %3976 = vmatprep.mubr.f32.mxu1 %v21911_v27  ;;  %4047 = vmatprep.mubr.f32.mxu0 %v21911_v27 }
 0x2e5   : > { %19801 = vmatmul.mubr.msk.f32.vlgmr.msra.gmra.mrb[14].mxu1 %vm399_vm0, %v19788_v49  ;;  %19802 = vmatmul.mubr.msk.f32.vlgmr.msra.gmra.mrb[16].mxu0 %vm399_vm0, %v19788_v49  ;;  %v22630_v59 = vpop.permute.xlu0 %6385  ;;  %v22632_v62 = vpop.permute.xlu1 %20878  ;;  %v21009_v49 = vld [vmem:[#allocation2 + $0x48] sm:$0xff] }
 0x2e6   : > { %4166 = vmatpush1.msra.mxu1 %v22618_v46  ;;  %4237 = vmatpush1.msra.mxu0 %v22623_v48 }
 0x2e7   : > { %9114 = vrot.lane.b32.xlu0 %v21971_v41, %s21036_s22  ;;  %9426 = vrot.lane.b32.xlu1 %v21923_v39, %s21036_s22  ;;  %v4470_v39 = vsel %vm4145_vm4, %v22414_v44, %v22384_v15  ;;  %v19811_v44 = vld [vmem:[%s25170_s6 + $0x54] sm:$0xf]  ;;  %v4475_v15 = vsel %vm4145_vm4, %v22600_v20, %v20871_v50 }
 0x2e8   : > { %4307 = vmatprep.subr.mxu1 %v22628_v34  ;;  %4229 = vmatprep.mubr.f32.mxu1 %v21911_v27 }
 0x2e9   : > { %4300 = vmatprep.mubr.f32.mxu0 %v21911_v27  ;;  %19807 = vmatmul.mubr.msk.f32.vlgmr.msra.gmra.mrb[16].mxu1 %vm399_vm0, %v19806_v55  ;;  %v22654_v63 = vpop.permute.xlu0 %6393  ;;  %v22656_v25 = vpop.permute.xlu1 %6389 }
 0x2ea   : > { %19808 = vmatmul.mubr.msk.f32.vlgmr.msra.gmra.mrb[18].mxu0 %vm399_vm0, %v19806_v55  ;;  %4308 = vmatpush1.msra.mxu1 %v22650_v16 }
 0x2eb   : > { %4488 = vmatprep.subr.mxu1 %v4470_v39  ;;  %9118 = vrot.lane.b32.xlu0 %v21911_v27, %s21036_s22 }
 0x2ec   : > { %9112 = vrot.lane.b32.xlu1 %v21985_v42, %s21036_s22  ;;  %4378 = vmatprep.subr.mxu0 %v4153_v31 }
 0x2ed   : > { %4371 = vmatprep.mubr.f32.mxu1 %v21911_v27  ;;  %4379 = vmatpush1.msra.mxu0 %v4152_v52  ;;  %v22671_v58 = vpop.permute.xlu0 %20883  ;;  %v22673_v35 = vpop.permute.xlu1 %20888  ;;  %v20880_v52 = vunpack.i.l.bf16 %v22632_v62 }
 0x2ee   : > { %4442 = vmatprep.mubr.f32.mxu0 %v21911_v27  ;;  %19809 = vmatmul.mubr.msk.f32.vlgmr.msra.gmra.mrb[18].mxu1 %vm399_vm0, %v19806_v55 }
 0x2ef   : > { %19810 = vmatmul.mubr.msk.f32.vlgmr.msra.gmra.mrb[20].mxu0 %vm399_vm0, %v19806_v55  ;;  %4489 = vmatpush1.msra.mxu1 %v4469_v51  ;;  %v22828_v55 = vsel %vm6061_vm5, %v22505_v10, %v22522_v26  ;;  %v22848_v51 = vsel %vm6061_vm5, %v22524_v56, %v22505_v10 }
 0x2f0   : > { %9430 = vrot.lane.b32.xlu0 %v21965_v40, %s21036_s22  ;;  %9116 = vrot.lane.b32.xlu1 %v21991_v43, %s21036_s22  ;;  %v4474_v40 = vsel %vm4145_vm4, %v22453_v30, %v22600_v20 }
 0x2f1   : > { %4559 = vmatprep.subr.mxu0 %v4472_v1  ;;  %4552 = vmatprep.mubr.f32.mxu1 %v21911_v27  ;;  %v22697_v53 = vpop.permute.xlu0 %7078  ;;  %v22699_v13 = vpop.permute.xlu1 %7080 }
 0x2f2   : > { %4560 = vmatpush1.msra.mxu0 %v4471_v9  ;;  %4623 = vmatprep.mubr.f32.mxu0 %v21911_v27  ;;  %v4473_v27 = vsel %vm4145_vm4, %v22576_v8, %v22453_v30  ;;  %v20922_v30 = vpack.i.bf16 %v22722_v6, %v22722_v6 }
 0x2f3   : > { %19812 = vmatmul.mubr.msk.f32.vlgmr.msra.gmra.mrb[16].mxu1 %vm399_vm0, %v19811_v44  ;;  %19813 = vmatmul.mubr.msk.f32.vlgmr.msra.gmra.mrb[18].mxu0 %vm399_vm0, %v19811_v44 }
 0x2f4   : > { %4701 = vmatprep.subr.mxu0 %v4476_v36  ;;  %9432 = vrot.lane.b32.xlu0 %v21985_v42, %s21036_s22 }
 0x2f5   : > { %9434 = vrot.lane.b32.xlu1 %v21971_v41, %s21036_s22  ;;  %4630 = vmatprep.subr.mxu1 %v4474_v40  ;;  %v22718_v0 = vpop.permute.xlu0 %7076  ;;  %v22720_v22 = vpop.permute.xlu1 %7082  ;;  %v4777_v41 = vsel %vm4145_vm4, %v20876_v29, %v20870_v32  ;;  %v19828_v32 = vld [vmem:[%s25170_s6 + $0x58] sm:$0xf]  ;;  %v20885_v29 = vunpack.i.l.bf16 %v22671_v58 }
 0x2f6   : > { %4702 = vmatpush1.msra.mxu0 %v4475_v15  ;;  %4631 = vmatpush1.msra.mxu1 %v4473_v27  ;;  %v20886_v15 = vunpack.i.h.bf16 %v22671_v58  ;;  %v20890_v58 = vunpack.i.l.bf16 %v22673_v35 }
 0x2f7   : > { %4694 = vmatprep.mubr.f32.mxu1 %v22722_v6  ;;  %4765 = vmatprep.mubr.f32.mxu0 %v22722_v6 }
 0x2f8   : > { %4854 = vmatprep.subr.mxu0 %v22593_v57  ;;  %19814 = vmatmul.mubr.msk.f32.vlgmr.msra.gmra.mrb[18].mxu1 %vm399_vm0, %v19811_v44  ;;  %v21011_v57 = vld [vmem:[#allocation2 + $0x50] sm:$0xff] }
 0x2f9   : > { %19815 = vmatmul.mubr.msk.f32.vlgmr.msra.gmra.mrb[20].mxu0 %vm399_vm0, %v19811_v44  ;;  %4783 = vmatprep.subr.mxu1 %v4777_v41  ;;  %v22736_v33 = vpop.permute.xlu0 %7084  ;;  %v22738_v19 = vpop.permute.xlu1 %7402  ;;  %v19838_v44 = vld [vmem:[%s25170_s6 + $0x38] sm:$0xf]  ;;  %v6403_v41 = vsel %vm6061_vm5, %v22630_v59, %v22559_v14  ;;  %v6410_v59 = vsel %vm6061_vm5, %v20885_v29, %v20886_v15 }
 0x2fa   : > { %4855 = vmatpush1.msra.mxu0 %v22618_v46  ;;  %4784 = vmatpush1.msra.mxu1 %v4776_v3 }
 0x2fb   : > { %4996 = vmatprep.subr.mxu0 %v22628_v34  ;;  %9436 = vrot.lane.b32.xlu0 %v21991_v43, %s21036_s22 }
 0x2fc   : > { %20923 = vrot.lane.b32.xlu1 %v20922_v30, %s21036_s22  ;;  %4925 = vmatprep.subr.mxu1 %v22598_v47 }
 0x2fd   : > { %4847 = vmatprep.mubr.f32.mxu1 %v22722_v6  ;;  %4918 = vmatprep.mubr.f32.mxu0 %v22722_v6  ;;  %v22751_v38 = vpop.permute.xlu0 %7088  ;;  %v22753_v5 = vpop.permute.xlu1 %7400 }
 0x2fe   : > { %19816 = vmatmul.mubr.msk.f32.vlgmr.msra.gmra.mrb[16].mxu1 %vm399_vm0, %v19805_v37  ;;  %19817 = vmatmul.mubr.msk.f32.vlgmr.msra.gmra.mrb[18].mxu0 %vm399_vm0, %v19805_v37 }
 0x2ff   : > { %4926 = vmatpush1.msra.mxu1 %v22623_v48  ;;  %4997 = vmatpush1.msra.mxu0 %v22650_v16  ;;  %v19822_v48 = vld [vmem:[%s25170_s6 + $0x10] sm:$0xf]  ;;  %v22834_v16 = vsel %vm6061_vm5, %v22545_v11, %v22578_v18  ;;  %v20881_v11 = vunpack.i.h.bf16 %v22632_v62 }
 0x300   : > { %5143 = vmatprep.subr.mxu1 %v21004_v17  ;;  %5214 = vmatprep.subr.mxu0 %v22759_v60 }
 0x301   : > { %20928 = vrot.lane.b32.xlu0 %v20922_v30, %s21036_s22  ;;  %4989 = vmatprep.mubr.f32.mxu1 %v22722_v6  ;;  %v22764_v61 = vpop.permute.xlu0 %20893  ;;  %v22766_v21 = vpop.permute.xlu1 %7408  ;;  %v19843_v30 = vld [vmem:[%s25170_s6 + $0x5c] sm:$0xf] }
 0x302   : > { %5060 = vmatprep.mubr.f32.mxu0 %v22722_v6  ;;  %9747 = vrot.lane.b32.xlu1 %v22722_v6, %s21036_s22 }
 0x303   : > { %19818 = vmatmul.mubr.msk.f32.vlgmr.msra.gmra.mrb[18].mxu1 %vm399_vm0, %v19805_v37  ;;  %19819 = vmatmul.mubr.msk.f32.vlgmr.msra.gmra.mrb[20].mxu0 %vm399_vm0, %v19805_v37 }
 0x304   : > { %5144 = vmatpush1.msra.mxu1 %v21006_v4  ;;  %5215 = vmatpush1.msra.mxu0 %v21007_v12 }
 0x305   : > { %5285 = vmatprep.subr.mxu1 %v21985_v42  ;;  %5356 = vmatprep.subr.mxu0 %v21991_v43  ;;  %v22781_v23 = vpop.permute.xlu0 %7404  ;;  %v21010_v43 = vld [vmem:[#allocation2 + $0x40] sm:$0xff] }
 0x306   : > { %10114 = vperm.xlu0 %20836, %v10111_v2   ;;  %5207 = vmatprep.mubr.f32.mxu1 %v22722_v6  ;;  %v22784_v45 = vpop.permute.xlu1 %20898 }
 0x307   : > { %5278 = vmatprep.mubr.f32.mxu0 %v22722_v6  ;;  %19824 = vmatmul.mubr.msk.f32.vlgmr.msra.gmra.mrb[20].mxu1 %vm399_vm0, %v19823_v54 }
 0x308   : > { %19825 = vmatmul.mubr.msk.f32.vlgmr.msra.gmra.mrb[22].mxu0 %vm399_vm0, %v19823_v54  ;;  %5286 = vmatpush1.msra.mxu1 %v21008_v7 }
 0x309   : > { %5357 = vmatpush1.msra.mxu0 %v21009_v49  ;;  %5432 = vmatprep.subr.mxu1 %v22759_v60  ;;  %v6054_v42 = vpop.permute.xlu0 %6053 }
 0x30a   : > { %5503 = vmatprep.subr.mxu0 %v21010_v43  ;;  %5349 = vmatprep.mubr.f32.mxu1 %v22722_v6  ;;  %v22791_v8 = vpop.permute.xlu1 %8091  ;;  %v22852_v1 = vsel %vm6061_vm5, %v6054_v42, %v22602_v24  ;;  %v22869_v50 = vsel %vm6061_vm5, %v22578_v18, %v6054_v42  ;;  %v6404_v18 = vsel %vm6061_vm5, %v22559_v14, %v22656_v25 }
 0x30b   : > { %5420 = vmatprep.mubr.f32.mxu0 %v22722_v6  ;;  %19826 = vmatmul.mubr.msk.f32.vlgmr.msra.gmra.mrb[22].mxu1 %vm399_vm0, %v19823_v54 }
 0x30c   : > { %19827 = vmatmul.mubr.msk.f32.vlgmr.msra.gmra.mrb[24].mxu0 %vm399_vm0, %v19823_v54  ;;  %5433 = vmatpush1.msra.mxu1 %v21007_v12 }
 0x30d   : > { %5504 = vmatpush1.msra.mxu0 %v21008_v7  ;;  %5574 = vmatprep.subr.mxu1 %v21011_v57  ;;  %v6058_v47 = vpop.permute.xlu0 %6057  ;;  %v19855_v57 = vld [vmem:[%s25170_s6 + $0x3c] sm:$0xf] }
 0x30e   : > { %5496 = vmatprep.mubr.f32.mxu1 %v22722_v6  ;;  %5567 = vmatprep.mubr.f32.mxu0 %v22722_v6  ;;  %v22801_v20 = vpop.permute.xlu1 %6391  ;;  %v6069_v10 = vsel %vm6061_vm5, %v6058_v47, %v20880_v52  ;;  %v6068_v26 = vsel %vm6061_vm5, %v22602_v24, %v6058_v47  ;;  %v7418_v52 = vsel %vm7094_vm6, %v22753_v5, %v22738_v19 }
 0x30f   : > { %5645 = vmatprep.subr.mxu0 %v22722_v6  ;;  %19829 = vmatmul.mubr.msk.f32.vlgmr.msra.gmra.mrb[20].mxu1 %vm399_vm0, %v19828_v32  ;;  %v6406_v24 = vsel %vm6061_vm5, %v22801_v20, %v22654_v63  ;;  %v6405_v3 = vsel %vm6061_vm5, %v22656_v25, %v22801_v20  ;;  %v6409_v25 = vsel %vm6061_vm5, %v20881_v11, %v20885_v29 }
 0x310   : > { %19830 = vmatmul.mubr.msk.f32.vlgmr.msra.gmra.mrb[22].mxu0 %vm399_vm0, %v19828_v32  ;;  %5575 = vmatpush1.msra.mxu1 %v21009_v49  ;;  %v22960_v49 = vsel %vm7094_vm6, %v22720_v22, %v22736_v33 }
 0x311   : > { %5646 = vmatpush1.msra.mxu0 %v22722_v6  ;;  %5638 = vmatprep.mubr.f32.mxu1 %v22722_v6 }
 0x312   : > { %5790 = vmatprep.subr.mxu0 %v21004_v17  ;;  %5709 = vmatprep.mubr.f32.mxu0 %v22722_v6 }
 0x313   : > { %5719 = vmatprep.subr.mxu1 %v22722_v6  ;;  %19831 = vmatmul.mubr.msk.f32.vlgmr.msra.gmra.mrb[22].mxu1 %vm399_vm0, %v19828_v32  ;;  %v22811_v46 = vpop.permute.xlu0 %20903 }
 0x314   : > { %19832 = vmatmul.mubr.msk.f32.vlgmr.msra.gmra.mrb[24].mxu0 %vm399_vm0, %v19828_v32  ;;  %5720 = vmatpush1.msra.mxu1 %v22722_v6  ;;  %v22818_v34 = vpop.permute.xlu1 %6395  ;;  %v22974_v32 = vsel %vm7094_vm6, %v22718_v0, %v22697_v53 }
 0x315   : > { %5791 = vmatpush1.msra.mxu0 %v21006_v4  ;;  %5861 = vmatprep.subr.mxu1 %v22759_v60  ;;  %v6408_v62 = vsel %vm6061_vm5, %v22818_v34, %v20881_v11  ;;  %v6407_v14 = vsel %vm6061_vm5, %v22654_v63, %v22818_v34  ;;  %v20891_v60 = vunpack.i.h.bf16 %v22673_v35  ;;  %v6713_v63 = vsel %vm6061_vm5, %v20890_v58, %v22524_v56  ;;  %v19837_v56 = vld [vmem:[%s25170_s6 + $0x14] sm:$0xf] }
 0x316   : > { %5932 = vmatprep.subr.mxu0 %v21010_v43  ;;  %5783 = vmatprep.mubr.f32.mxu1 %v22722_v6 }
 0x317   : > { %5854 = vmatprep.mubr.f32.mxu0 %v22722_v6  ;;  %19833 = vmatmul.mubr.msk.f32.vlgmr.msra.gmra.mrb[20].mxu1 %vm399_vm0, %v19822_v48  ;;  %v6712_v35 = vsel %vm6061_vm5, %v20891_v60, %v20890_v58 }
 0x318   : > { %19834 = vmatmul.mubr.msk.f32.vlgmr.msra.gmra.mrb[22].mxu0 %vm399_vm0, %v19822_v48  ;;  %5862 = vmatpush1.msra.mxu1 %v21007_v12  ;;  %v22950_v12 = vsel %vm7094_vm6, %v22697_v53, %v22699_v13  ;;  %v22989_v53 = vsel %vm7094_vm6, %v22699_v13, %v22720_v22  ;;  %v7419_v13 = vsel %vm7094_vm6, %v22738_v19, %v22781_v23 }
 0x319   : > { %5933 = vmatpush1.msra.mxu0 %v21008_v7  ;;  %6081 = vmatprep.subr.mxu1 %v22828_v55  ;;  %v22836_v31 = vpop.permute.xlu0 %8093  ;;  %v22838_v39 = vpop.permute.xlu1 %8089  ;;  %v20895_v7 = vunpack.i.l.bf16 %v22764_v61 }
 0x31a   : > { %6152 = vmatprep.subr.mxu0 %v22834_v16  ;;  %5925 = vmatprep.mubr.f32.mxu1 %v22722_v6  ;;  %v23072_v15 = vsel %vm8107_vm7, %v22791_v8, %v22836_v31  ;;  %v23093_v58 = vsel %vm8107_vm7, %v22838_v39, %v22791_v8 }
 0x31b   : > { %5996 = vmatprep.mubr.f32.mxu0 %v22722_v6  ;;  %19835 = vmatmul.mubr.msk.f32.vlgmr.msra.gmra.mrb[22].mxu1 %vm399_vm0, %v19822_v48 }
 0x31c   : > { %19836 = vmatmul.mubr.msk.f32.vlgmr.msra.gmra.mrb[24].mxu0 %vm399_vm0, %v19822_v48  ;;  %6082 = vmatpush1.msra.mxu1 %v22848_v51 }
 0x31d   : > { %6153 = vmatpush1.msra.mxu0 %v22859_v28  ;;  %6145 = vmatprep.mubr.f32.mxu1 %v22722_v6  ;;  %v22871_v9 = vpop.permute.xlu0 %8095  ;;  %v22873_v40 = vpop.permute.xlu1 %8097 }
 0x31e   : > { %6223 = vmatprep.subr.mxu1 %v22852_v1  ;;  %6216 = vmatprep.mubr.f32.mxu0 %v22722_v6 }
 0x31f   : > { %19839 = vmatmul.mubr.msk.f32.vlgmr.msra.gmra.mrb[24].mxu1 %vm399_vm0, %v19838_v44  ;;  %6294 = vmatprep.subr.mxu0 %v6069_v10  ;;  %v20906_v10 = vunpack.i.h.bf16 %v22811_v46 }
 0x320   : > { %6224 = vmatpush1.msra.mxu1 %v22869_v50  ;;  %6287 = vmatprep.mubr.f32.mxu1 %v22722_v6 }
 0x321   : > { %19840 = vmatmul.mubr.msk.f32.vlgmr.msra.gmra.mrb[26].mxu0 %vm399_vm0, %v19838_v44  ;;  %6422 = vmatprep.subr.mxu1 %v6404_v18  ;;  %v22887_v36 = vpop.permute.xlu0 %8415 }
 0x322   : > { %6295 = vmatpush1.msra.mxu0 %v6068_v26  ;;  %6358 = vmatprep.mubr.f32.mxu0 %v22722_v6  ;;  %v22897_v27 = vpop.permute.xlu1 %7086 }
 0x323   : > { %19841 = vmatmul.mubr.msk.f32.vlgmr.msra.gmra.mrb[26].mxu1 %vm399_vm0, %v19838_v44  ;;  %6493 = vmatprep.subr.mxu0 %v6406_v24  ;;  %v22965_v42 = vsel %vm7094_vm6, %v22897_v27, %v22751_v38  ;;  %v22997_v20 = vsel %vm7094_vm6, %v22736_v33, %v22897_v27 }
 0x324   : > { %6423 = vmatpush1.msra.mxu1 %v6403_v41  ;;  %6486 = vmatprep.mubr.f32.mxu1 %v22722_v6 }
 0x325   : > { %19842 = vmatmul.mubr.msk.f32.vlgmr.msra.gmra.mrb[28].mxu0 %vm399_vm0, %v19838_v44  ;;  %6564 = vmatprep.subr.mxu1 %v6408_v62  ;;  %v19860_v44 = vld [vmem:[%s25170_s6 + $0x60] sm:$0xf]  ;;  %v23082_v62 = vsel %vm8107_vm7, %v22871_v9, %v22873_v40 }
 0x326   : > { %6494 = vmatpush1.msra.mxu0 %v6405_v3  ;;  %6557 = vmatprep.mubr.f32.mxu0 %v22722_v6  ;;  %v22917_v37 = vpop.permute.xlu0 %8413  ;;  %v22919_v17 = vpop.permute.xlu1 %7090 }
 0x327   : > { %19844 = vmatmul.mubr.msk.f32.vlgmr.msra.gmra.mrb[24].mxu1 %vm399_vm0, %v19843_v30  ;;  %6635 = vmatprep.subr.mxu0 %v6410_v59  ;;  %v7102_v47 = vsel %vm7094_vm6, %v22919_v17, %v20895_v7  ;;  %v7101_v33 = vsel %vm7094_vm6, %v22751_v38, %v22919_v17  ;;  %v20900_v38 = vunpack.i.l.bf16 %v22784_v45 }
 0x328   : > { %6565 = vmatpush1.msra.mxu1 %v6407_v14  ;;  %6628 = vmatprep.mubr.f32.mxu1 %v22722_v6  ;;  %v23106_v14 = vsel %vm8107_vm7, %v22836_v31, %v22871_v9 }
 0x329   : > { %19845 = vmatmul.mubr.msk.f32.vlgmr.msra.gmra.mrb[26].mxu0 %vm399_vm0, %v19843_v30  ;;  %6719 = vmatprep.subr.mxu1 %v6713_v63 }
 0x32a   : > { %6636 = vmatpush1.msra.mxu0 %v6409_v25  ;;  %6699 = vmatprep.mubr.f32.mxu0 %v22722_v6  ;;  %v22932_v2 = vpop.permute.xlu0 %7406 }
 0x32b   : > { %19846 = vmatmul.mubr.msk.f32.vlgmr.msra.gmra.mrb[26].mxu1 %vm399_vm0, %v19843_v30  ;;  %6790 = vmatprep.subr.mxu0 %v22828_v55  ;;  %v22938_v4 = vpop.permute.xlu1 %8101  ;;  %v20896_v55 = vunpack.i.h.bf16 %v22764_v61  ;;  %v7421_v22 = vsel %vm7094_vm6, %v22932_v2, %v22766_v21  ;;  %v20901_v61 = vunpack.i.h.bf16 %v22784_v45  ;;  %v7420_v19 = vsel %vm7094_vm6, %v22781_v23, %v22932_v2 }
 0x32c   : > { %6720 = vmatpush1.msra.mxu1 %v6712_v35  ;;  %6783 = vmatprep.mubr.f32.mxu1 %v22722_v6  ;;  %v8431_v2 = vsel %vm8107_vm7, %v22917_v37, %v22887_v36 }
 0x32d   : > { %6861 = vmatprep.subr.mxu1 %v22834_v16  ;;  %19847 = vmatmul.mubr.msk.f32.vlgmr.msra.gmra.mrb[28].mxu0 %vm399_vm0, %v19843_v30  ;;  %v7425_v45 = vsel %vm7094_vm6, %v20900_v38, %v20901_v61  ;;  %v19872_v30 = vld [vmem:[%s25170_s6 + $0x40] sm:$0xf]  ;;  %v19889_v61 = vld [vmem:[%s25170_s6 + $0x44] sm:$0xf] }
 0x32e   : > { %6791 = vmatpush1.msra.mxu0 %v22848_v51  ;;  %6854 = vmatprep.mubr.f32.mxu0 %v22722_v6 }
 0x32f   : > { %19848 = vmatmul.mubr.msk.f32.vlgmr.msra.gmra.mrb[24].mxu1 %vm399_vm0, %v19837_v56  ;;  %6932 = vmatprep.subr.mxu0 %v22852_v1 }
 0x330   : > { %6862 = vmatpush1.msra.mxu1 %v22859_v28  ;;  %6925 = vmatprep.mubr.f32.mxu1 %v22722_v6  ;;  %v20905_v28 = vunpack.i.l.bf16 %v22811_v46 }
 0x331   : > { %7114 = vmatprep.subr.mxu1 %v22950_v12  ;;  %19849 = vmatmul.mubr.msk.f32.vlgmr.msra.gmra.mrb[26].mxu0 %vm399_vm0, %v19837_v56  ;;  %v7411_v54 = vpop.permute.xlu0 %7410 }
 0x332   : > { %6933 = vmatpush1.msra.mxu0 %v22869_v50  ;;  %6996 = vmatprep.mubr.f32.mxu0 %v22722_v6  ;;  %v22968_v43 = vpop.permute.xlu1 %20908  ;;  %v7423_v16 = vsel %vm7094_vm6, %v7411_v54, %v20896_v55  ;;  %v7422_v5 = vsel %vm7094_vm6, %v22766_v21, %v7411_v54  ;;  %v7726_v23 = vsel %vm7094_vm6, %v20905_v28, %v22718_v0  ;;  %v19854_v0 = vld [vmem:[%s25170_s6 + $0x18] sm:$0xf] }
 0x333   : > { %19850 = vmatmul.mubr.msk.f32.vlgmr.msra.gmra.mrb[26].mxu1 %vm399_vm0, %v19837_v56  ;;  %7185 = vmatprep.subr.mxu0 %v22960_v49  ;;  %v7424_v21 = vsel %vm7094_vm6, %v20896_v55, %v20900_v38  ;;  %v7725_v46 = vsel %vm7094_vm6, %v20906_v10, %v20905_v28  ;;  %v20910_v24 = vunpack.i.l.bf16 %v22968_v43  ;;  %v20911_v31 = vunpack.i.h.bf16 %v22968_v43 }
 0x334   : > { %7115 = vmatpush1.msra.mxu1 %v22974_v32  ;;  %7178 = vmatprep.mubr.f32.mxu1 %v22722_v6 }
 0x335   : > { %7256 = vmatprep.subr.mxu1 %v22965_v42  ;;  %19851 = vmatmul.mubr.msk.f32.vlgmr.msra.gmra.mrb[28].mxu0 %vm399_vm0, %v19837_v56 }
 0x336   : > { %7186 = vmatpush1.msra.mxu0 %v22989_v53  ;;  %7249 = vmatprep.mubr.f32.mxu0 %v22722_v6 }
 0x337   : > { %19856 = vmatmul.mubr.msk.f32.vlgmr.msra.gmra.mrb[28].mxu1 %vm399_vm0, %v19855_v57  ;;  %7327 = vmatprep.subr.mxu0 %v7102_v47  ;;  %v22999_v48 = vpop.permute.xlu0 %8421  ;;  %v23001_v34 = vpop.permute.xlu1 %8417 }
 0x338   : > { %7257 = vmatpush1.msra.mxu1 %v22997_v20  ;;  %7320 = vmatprep.mubr.f32.mxu1 %v22722_v6  ;;  %v8432_v9 = vsel %vm8107_vm7, %v22887_v36, %v23001_v34 }
 0x339   : > { %7437 = vmatprep.subr.mxu1 %v7419_v13  ;;  %19857 = vmatmul.mubr.msk.f32.vlgmr.msra.gmra.mrb[30].mxu0 %vm399_vm0, %v19855_v57 }
 0x33a   : > { %7328 = vmatpush1.msra.mxu0 %v7101_v33  ;;  %7391 = vmatprep.mubr.f32.mxu0 %v22722_v6 }
 0x33b   : > { %19858 = vmatmul.mubr.msk.f32.vlgmr.msra.gmra.mrb[30].mxu1 %vm399_vm0, %v19855_v57  ;;  %7508 = vmatprep.subr.mxu0 %v7421_v22  ;;  %v23023_v51 = vpop.permute.xlu0 %20913  ;;  %v23025_v1 = vpop.permute.xlu1 %20918 }
 0x33c   : > { %7438 = vmatpush1.msra.mxu1 %v7418_v52  ;;  %7501 = vmatprep.mubr.f32.mxu1 %v22722_v6  ;;  %v20916_v60 = vunpack.i.h.bf16 %v23023_v51  ;;  %v20915_v63 = vunpack.i.l.bf16 %v23023_v51  ;;  %v20920_v56 = vunpack.i.l.bf16 %v23025_v1 }
 0x33d   : > { %19859 = vmatmul.mubr.msk.f32.vlgmr.msra.gmra.mrb[32].mxu0 %vm399_vm0, %v19855_v57  ;;  %7579 = vmatprep.subr.mxu1 %v7423_v16 }
 0x33e   : > { %7509 = vmatpush1.msra.mxu0 %v7420_v19  ;;  %7572 = vmatprep.mubr.f32.mxu0 %v22722_v6  ;;  %v8438_v7 = vsel %vm8107_vm7, %v20915_v63, %v20916_v60  ;;  %v8437_v43 = vsel %vm8107_vm7, %v20911_v31, %v20915_v63  ;;  %v2037_v60 = vld [vmem:[%s25167_s3] ss:$8 sm:$0xf] }
 0x33f   : > { %19861 = vmatmul.mubr.msk.f32.vlgmr.msra.gmra.mrb[28].mxu1 %vm399_vm0, %v19860_v44  ;;  %7650 = vmatprep.subr.mxu0 %v7425_v45  ;;  %v23043_v50 = vpop.permute.xlu0 %9104  ;;  %v19894_v45 = vld [vmem:[%s25170_s6 + $0x68] sm:$0xf] }
 0x340   : > { %7580 = vmatpush1.msra.mxu1 %v7422_v5  ;;  %7643 = vmatprep.mubr.f32.mxu1 %v22722_v6  ;;  %v23048_v26 = vpop.permute.xlu1 %9106  ;;  %v2038_v63 = vld [vmem:[%s25167_s3] ss:$8 sm:$0xf0] }
 0x341   : > { %19862 = vmatmul.mubr.msk.f32.vlgmr.msra.gmra.mrb[30].mxu0 %vm399_vm0, %v19860_v44  ;;  %7732 = vmatprep.subr.mxu1 %v7726_v23 }
 0x342   : > { %7651 = vmatpush1.msra.mxu0 %v7424_v21  ;;  %7714 = vmatprep.mubr.f32.mxu0 %v22722_v6 }
 0x343   : > { %19863 = vmatmul.mubr.msk.f32.vlgmr.msra.gmra.mrb[30].mxu1 %vm399_vm0, %v19860_v44  ;;  %7803 = vmatprep.subr.mxu0 %v22950_v12 }
 0x344   : > { %7733 = vmatpush1.msra.mxu1 %v7725_v46  ;;  %7796 = vmatprep.mubr.f32.mxu1 %v22722_v6  ;;  %v8100_v11 = vpop.permute.xlu0 %8099  ;;  %v23060_v18 = vpop.permute.xlu1 %9108 }
 0x345   : > { %7874 = vmatprep.subr.mxu1 %v22960_v49  ;;  %19864 = vmatmul.mubr.msk.f32.vlgmr.msra.gmra.mrb[32].mxu0 %vm399_vm0, %v19860_v44  ;;  %v23087_v27 = vsel %vm8107_vm7, %v8100_v11, %v22938_v4  ;;  %v23111_v8 = vsel %vm8107_vm7, %v22873_v40, %v8100_v11  ;;  %v20921_v49 = vunpack.i.h.bf16 %v23025_v1  ;;  %v9123_v52 = vsel %vm9120_vm8, %v23048_v26, %v23060_v18 }
 0x346   : > { %7804 = vmatpush1.msra.mxu0 %v22974_v32  ;;  %7867 = vmatprep.mubr.f32.mxu0 %v22722_v6 }
 0x347   : > { %19865 = vmatmul.mubr.msk.f32.vlgmr.msra.gmra.mrb[28].mxu1 %vm399_vm0, %v19854_v0  ;;  %7945 = vmatprep.subr.mxu0 %v22965_v42  ;;  %v8739_v42 = vsel %vm8107_vm7, %v20920_v56, %v22838_v39  ;;  %v8738_v47 = vsel %vm8107_vm7, %v20921_v49, %v20920_v56  ;;  %v19871_v39 = vld [vmem:[%s25170_s6 + $0x1c] sm:$0xf]  ;;  %v2039_v56 = vor.u32 %v2038_v63, %v2037_v60 }
 0x348   : > { %7875 = vmatpush1.msra.mxu1 %v22989_v53  ;;  %7938 = vmatprep.mubr.f32.mxu1 %v22722_v6  ;;  %v8104_v29 = vpop.permute.xlu0 %8103 }
 0x349   : > { %8127 = vmatprep.subr.mxu1 %v23072_v15  ;;  %19866 = vmatmul.mubr.msk.f32.vlgmr.msra.gmra.mrb[30].mxu0 %vm399_vm0, %v19854_v0  ;;  %v8420_v41 = vpop.permute.xlu1 %8419  ;;  %v8115_v3 = vsel %vm8107_vm7, %v8104_v29, %v20910_v24  ;;  %v8114_v59 = vsel %vm8107_vm7, %v22938_v4, %v8104_v29  ;;  %v19877_v4 = vld [vmem:[%s25170_s6 + $0x64] sm:$0xf] }
 0x34a   : > { %7946 = vmatpush1.msra.mxu0 %v22997_v20  ;;  %8009 = vmatprep.mubr.f32.mxu0 %v22722_v6  ;;  %v8434_v25 = vsel %vm8107_vm7, %v8420_v41, %v22999_v48  ;;  %v8433_v12 = vsel %vm8107_vm7, %v23001_v34, %v8420_v41  ;;  %v19888_v41 = vld [vmem:[%s25170_s6 + $0x20] sm:$0xf] }
 0x34b   : > { %19867 = vmatmul.mubr.msk.f32.vlgmr.msra.gmra.mrb[30].mxu1 %vm399_vm0, %v19854_v0  ;;  %8198 = vmatprep.subr.mxu0 %v23082_v62 }
 0x34c   : > { %8128 = vmatpush1.msra.mxu1 %v23093_v58  ;;  %8191 = vmatprep.mubr.f32.mxu1 %v22722_v6 }
 0x34d   : > { %19868 = vmatmul.mubr.msk.f32.vlgmr.msra.gmra.mrb[32].mxu0 %vm399_vm0, %v19854_v0  ;;  %8269 = vmatprep.subr.mxu1 %v23087_v27 }
 0x34e   : > { %8199 = vmatpush1.msra.mxu0 %v23106_v14  ;;  %8262 = vmatprep.mubr.f32.mxu0 %v22722_v6 }
 0x34f   : > { %19873 = vmatmul.mubr.msk.f32.vlgmr.msra.gmra.mrb[32].mxu1 %vm399_vm0, %v19872_v30  ;;  %8340 = vmatprep.subr.mxu0 %v8115_v3  ;;  %v23118_v17 = vpop.permute.xlu0 %9102 }
 0x350   : > { %8270 = vmatpush1.msra.mxu1 %v23111_v8  ;;  %8333 = vmatprep.mubr.f32.mxu1 %v22722_v6  ;;  %v8424_v40 = vpop.permute.xlu1 %8423  ;;  %v23194_v33 = vsel %vm9120_vm8, %v23118_v17, %v23043_v50 }
 0x351   : > { %19874 = vmatmul.mubr.msk.f32.vlgmr.msra.gmra.mrb[34].mxu0 %vm399_vm0, %v19872_v30  ;;  %8450 = vmatprep.subr.mxu1 %v8432_v9  ;;  %v8436_v35 = vsel %vm8107_vm7, %v8424_v40, %v20911_v31  ;;  %v8435_v36 = vsel %vm8107_vm7, %v22999_v48, %v8424_v40  ;;  %v23176_v48 = vsel %vm9120_vm8, %v23043_v50, %v23048_v26  ;;  %v2041_v40 = vlaneseq }
 0x352   : > { %8341 = vmatpush1.msra.mxu0 %v8114_v59  ;;  %8404 = vmatprep.mubr.f32.mxu0 %v22722_v6 }
 0x353   : > { %19875 = vmatmul.mubr.msk.f32.vlgmr.msra.gmra.mrb[34].mxu1 %vm399_vm0, %v19872_v30  ;;  %8521 = vmatprep.subr.mxu0 %v8434_v25  ;;  %v2042_v25 = vshrl.u32 %v2041_v40, 7 }
 0x354   : > { %8451 = vmatpush1.msra.mxu1 %v8431_v2  ;;  %8514 = vmatprep.mubr.f32.mxu1 %v22722_v6  ;;  %v19787_v2 = vld [vmem:[%s25167_s3 + $0x1] ss:$8 sm:$0xf0] }
 0x355   : > { %19876 = vmatmul.mubr.msk.f32.vlgmr.msra.gmra.mrb[36].mxu0 %vm399_vm0, %v19872_v30  ;;  %8592 = vmatprep.subr.mxu1 %v8436_v35  ;;  %v9111_v37 = vpop.permute.xlu0 %9110  ;;  %v23147_v54 = vpop.permute.xlu1 %9428  ;;  %v19786_v35 = vld [vmem:[%s25167_s3 + $0x1] ss:$8 sm:$0xf]  ;;  %v23290_v49 = vsub.s32 5, %v2042_v25 }
 0x356   : > { %8522 = vmatpush1.msra.mxu0 %v8433_v12  ;;  %8585 = vmatprep.mubr.f32.mxu0 %v22722_v6  ;;  %v23184_v34 = vsel %vm9120_vm8, %v23060_v18, %v9111_v37  ;;  %v3052_v12 = vor.u32 %v19787_v2, %v19786_v35  ;;  %v19803_v35 = vld [vmem:[%s25167_s3 + $0x2] ss:$8 sm:$0xf] }
 0x357   : > { %19878 = vmatmul.mubr.msk.f32.vlgmr.msra.gmra.mrb[32].mxu1 %vm399_vm0, %v19877_v4  ;;  %8663 = vmatprep.subr.mxu0 %v8438_v7  ;;  %v23288_v7 = vsub.s32 6, %v2042_v25  ;;  %25203 = vst [vmem:[#allocation10_spill] sm:$0xff] %v23290_v49 }
 0x358   : > { %8593 = vmatpush1.msra.mxu1 %v8435_v36  ;;  %8656 = vmatprep.mubr.f32.mxu1 %v22722_v6  ;;  %v23282_v36 = vsub.s32 1, %v2042_v25 }
 0x359   : > { %19879 = vmatmul.mubr.msk.f32.vlgmr.msra.gmra.mrb[34].mxu0 %vm399_vm0, %v19877_v4  ;;  %8745 = vmatprep.subr.mxu1 %v8739_v42  ;;  %v9115_v32 = vpop.permute.xlu0 %9114  ;;  %v9427_v57 = vpop.permute.xlu1 %9426  ;;  %25202 = vst [vmem:[#allocation9_spill] sm:$0xff] %v23288_v7  ;;  %v23292_v42 = vsub.s32 7, %v2042_v25 }
 0x35a   : > { %8664 = vmatpush1.msra.mxu0 %v8437_v43  ;;  %8727 = vmatprep.mubr.f32.mxu0 %v22722_v6  ;;  %v9444_v5 = vsel %vm9120_vm8, %v9427_v57, %v23147_v54  ;;  %25199 = vst [vmem:[#allocation6_spill] sm:$0xff] %v23282_v36 }
 0x35b   : > { %19880 = vmatmul.mubr.msk.f32.vlgmr.msra.gmra.mrb[34].mxu1 %vm399_vm0, %v19877_v4  ;;  %8816 = vmatprep.subr.mxu0 %v23072_v15  ;;  %25204 = vst [vmem:[#allocation11_spill] sm:$0xff] %v23292_v42 }
 0x35c   : > { %8746 = vmatpush1.msra.mxu1 %v8738_v47  ;;  %8809 = vmatprep.mubr.f32.mxu1 %v22722_v6 }
 0x35d   : > { %8887 = vmatprep.subr.mxu1 %v23082_v62  ;;  %19881 = vmatmul.mubr.msk.f32.vlgmr.msra.gmra.mrb[36].mxu0 %vm399_vm0, %v19877_v4  ;;  %v9119_v53 = vpop.permute.xlu0 %9118  ;;  %v23280_v4 = vsub.s32 2, %v2042_v25 }
 0x35e   : > { %8817 = vmatpush1.msra.mxu0 %v23093_v58  ;;  %8880 = vmatprep.mubr.f32.mxu0 %v22722_v6  ;;  %v9113_v20 = vpop.permute.xlu1 %9112 }
 0x35f   : > { %19882 = vmatmul.mubr.msk.f32.vlgmr.msra.gmra.mrb[32].mxu1 %vm399_vm0, %v19871_v39  ;;  %8958 = vmatprep.subr.mxu0 %v23087_v27  ;;  %v23187_v55 = vsel %vm9120_vm8, %v9113_v20, %v9115_v32  ;;  %v23213_v38 = vsel %vm9120_vm8, %v9111_v37, %v9113_v20  ;;  %25198 = vst [vmem:[#allocation5_spill] sm:$0xff] %v23280_v4  ;;  %v23284_v37 = vsub.s32 3, %v2042_v25 }
 0x360   : > { %8888 = vmatpush1.msra.mxu1 %v23106_v14  ;;  %8951 = vmatprep.mubr.f32.mxu1 %v22722_v6  ;;  %v3065_v47 = vrot.slane %v3052_v12, %v23280_v4  ;;  %v3061_v20 = vrot.slane %v3052_v12, %v23282_v36 }
 0x361   : > { %9140 = vmatprep.subr.mxu1 %v23176_v48  ;;  %19883 = vmatmul.mubr.msk.f32.vlgmr.msra.gmra.mrb[34].mxu0 %vm399_vm0, %v19871_v39  ;;  %25200 = vst [vmem:[#allocation7_spill] sm:$0xff] %v23284_v37 }
 0x362   : > { %8959 = vmatpush1.msra.mxu0 %v23111_v8  ;;  %9022 = vmatprep.mubr.f32.mxu0 %v22722_v6  ;;  %v9431_v13 = vpop.permute.xlu0 %9430  ;;  %v9117_v22 = vpop.permute.xlu1 %9116 }
 0x363   : > { %19884 = vmatmul.mubr.msk.f32.vlgmr.msra.gmra.mrb[34].mxu1 %vm399_vm0, %v19871_v39  ;;  %9211 = vmatprep.subr.mxu0 %v23184_v34  ;;  %v9128_v16 = vsel %vm9120_vm8, %v9117_v22, %v9119_v53  ;;  %v9445_v51 = vsel %vm9120_vm8, %v23147_v54, %v9431_v13  ;;  %v9127_v19 = vsel %vm9120_vm8, %v9115_v32, %v9117_v22  ;;  %v23286_v54 = vsub.s32 4, %v2042_v25 }
 0x364   : > { %9141 = vmatpush1.msra.mxu1 %v23194_v33  ;;  %9204 = vmatprep.mubr.f32.mxu1 %v22722_v6  ;;  %v2052_v32 = vrot.slane %v2039_v56, %v23280_v4  ;;  %v2056_v53 = vrot.slane %v2039_v56, %v23284_v37  ;;  %v2072_v22 = vrot.slane %v2039_v56, %v23292_v42 }
 0x365   : > { %9282 = vmatprep.subr.mxu1 %v23187_v55  ;;  %19885 = vmatmul.mubr.msk.f32.vlgmr.msra.gmra.mrb[36].mxu0 %vm399_vm0, %v19871_v39  ;;  %25201 = vst [vmem:[#allocation8_spill] sm:$0xff] %v23286_v54  ;;  %v2048_v39 = vrot.slane %v2039_v56, %v23282_v36 }
 0x366   : > { %9212 = vmatpush1.msra.mxu0 %v9123_v52  ;;  %9275 = vmatprep.mubr.f32.mxu0 %v22722_v6  ;;  %v9433_v1 = vpop.permute.xlu0 %9432 }
 0x367   : > { %19890 = vmatmul.mubr.msk.f32.vlgmr.msra.gmra.mrb[36].mxu1 %vm399_vm0, %v19889_v61  ;;  %9353 = vmatprep.subr.mxu0 %v9128_v16  ;;  %v9435_v28 = vpop.permute.xlu1 %9434  ;;  %v9446_v50 = vsel %vm9120_vm8, %v9431_v13, %v9433_v1  ;;  %v2064_v13 = vrot.slane %v2039_v56, %v23290_v49  ;;  %v3073_v16 = vrot.slane %v3052_v12, %v23286_v54 }
 0x368   : > { %9283 = vmatpush1.msra.mxu1 %v23213_v38  ;;  %9346 = vmatprep.mubr.f32.mxu1 %v22722_v6  ;;  %v9447_v44 = vsel %vm9120_vm8, %v9433_v1, %v9435_v28 }
 0x369   : > { %9463 = vmatprep.subr.mxu1 %v9445_v51  ;;  %19891 = vmatmul.mubr.msk.f32.vlgmr.msra.gmra.mrb[38].mxu0 %vm399_vm0, %v19889_v61 }
 0x36a   : > { %9354 = vmatpush1.msra.mxu0 %v9127_v19  ;;  %9417 = vmatprep.mubr.f32.mxu0 %v22722_v6 }
 0x36b   : > { %19892 = vmatmul.mubr.msk.f32.vlgmr.msra.gmra.mrb[38].mxu1 %vm399_vm0, %v19889_v61  ;;  %9534 = vmatprep.subr.mxu0 %v9447_v44 }
 0x36c   : > { %9464 = vmatpush1.msra.mxu1 %v9444_v5  ;;  %9527 = vmatprep.mubr.f32.mxu1 %v22722_v6 }
 0x36d   : > { %v9437_v10 = vpop.permute.xlu0 %9436  ;;  %19893 = vmatmul.mubr.msk.f32.vlgmr.msra.gmra.mrb[40].mxu0 %vm399_vm0, %v19889_v61 }
 0x36e   : > { %v20924_v23 = vpop.permute.xlu1 %20923  ;;  %9535 = vmatpush1.msra.mxu0 %v9446_v50  ;;  %9598 = vmatprep.mubr.f32.mxu0 %v22722_v6  ;;  %v9448_v46 = vsel %vm9120_vm8, %v9435_v28, %v9437_v10 }
 0x36f   : > { %v20925_v26 = vunpack.i.l.bf16 %v20924_v23  ;;  %19895 = vmatmul.mubr.msk.f32.vlgmr.msra.gmra.mrb[36].mxu1 %vm399_vm0, %v19894_v45  ;;  %v20926_v0 = vunpack.i.h.bf16 %v20924_v23 }
 0x370   : > { %9669 = vmatprep.mubr.f32.mxu1 %v22722_v6 }
 0x371   : > { %v9449_v21 = vsel %vm9120_vm8, %v9437_v10, %v20925_v26  ;;  %19896 = vmatmul.mubr.msk.f32.vlgmr.msra.gmra.mrb[38].mxu0 %vm399_vm0, %v19894_v45  ;;  %v9450_v58 = vsel %vm9120_vm8, %v20925_v26, %v20926_v0 }
 0x372   : > { %9605 = vmatprep.subr.mxu1 %v9449_v21  ;;  %9740 = vmatprep.mubr.f32.mxu0 %v22722_v6  ;;  %v3077_v21 = vrot.slane %v3052_v12, %v23290_v49 }
 0x373   : > { %v20929_v11 = vpop.permute.xlu0 %20928  ;;  %9606 = vmatpush1.msra.mxu1 %v9448_v46  ;;  %v3085_v46 = vrot.slane %v3052_v12, %v23292_v42 }
 0x374   : > { %v20931_v18 = vunpack.i.h.bf16 %v20929_v11  ;;  %v20930_v15 = vunpack.i.l.bf16 %v20929_v11  ;;  %v9748_v29 = vpop.permute.xlu1 %9747  ;;  %19897 = vmatmul.mubr.msk.f32.vlgmr.msra.gmra.mrb[38].mxu1 %vm399_vm0, %v19894_v45 }
 0x375   : > { %9822 = vmatprep.mubr.f32.mxu1 %v22722_v6 }
 0x376   : > { %v9751_v24 = vsel %vm9120_vm8, %v9748_v29, %v20931_v18  ;;  %v9451_v62 = vsel %vm9120_vm8, %v20926_v0, %v20930_v15  ;;  %v9752_v27 = vsel %vm9120_vm8, %v20931_v18, %v23118_v17 }
 0x377   : > { %9676 = vmatprep.subr.mxu0 %v9451_v62  ;;  %9758 = vmatprep.subr.mxu1 %v9752_v27  ;;  %v1811_v30 = vpop.f32.mrb[4].mxu1  ;;  %v1882_v3 = vpop.f32.mrb[6].mxu0 }
 0x378   : > { %9677 = vmatpush1.msra.mxu0 %v9450_v58  ;;  %9759 = vmatpush1.msra.mxu1 %v9751_v24  ;;  %v1813_v14 = vpop.f32.mrb[5].mxu1  ;;  %v1884_v8 = vpop.f32.mrb[7].mxu0  ;;  %v2083_v1 = vmul.f32 %v2052_v32, %v1882_v3 }
 0x379   : > { %19898 = vmatmul.mubr.msk.f32.vlgmr.msra.gmra.mrb[40].mxu0 %vm399_vm0, %v19894_v45  ;;  %19899 = vmatmul.mubr.msk.f32.vlgmr.msra.gmra.mrb[36].mxu1 %vm399_vm0, %v19888_v41  ;;  %v2082_v5 = vmul.f32 %v2048_v39, %v1813_v14  ;;  %v2084_v45 = vmul.f32 %v2056_v53, %v1884_v8 }
 0x37a   : > { %9829 = vmatprep.subr.mxu0 %v23176_v48  ;;  %9900 = vmatprep.subr.mxu1 %v23184_v34  ;;  %v3069_v48 = vrot.slane %v3052_v12, %v23284_v37  ;;  %v2060_v34 = vrot.slane %v2039_v56, %v23286_v54 }
 0x37b   : > { %9830 = vmatpush1.msra.mxu0 %v23194_v33  ;;  %9901 = vmatpush1.msra.mxu1 %v9123_v52  ;;  %v3081_v52 = vrot.slane %v3052_v12, %v23288_v7 }
 0x37c   : > { %9971 = vmatprep.subr.mxu0 %v23187_v55  ;;  %9893 = vmatprep.mubr.f32.mxu0 %v22722_v6  ;;  %v1953_v59 = vpop.f32.mrb[6].mxu1  ;;  %v2024_v17 = vpop.f32.mrb[8].mxu0  ;;  %v2068_v55 = vrot.slane %v2039_v56, %v23288_v7 }
 0x37d   : > { %9964 = vmatprep.mubr.f32.mxu1 %v22722_v6  ;;  %19900 = vmatmul.mubr.msk.f32.vlgmr.msra.gmra.mrb[38].mxu0 %vm399_vm0, %v19888_v41  ;;  %v23256_v31 = vpop.f32.mrb[7].mxu1  ;;  %v23258_v9 = vpop.f32.mrb[9].mxu0  ;;  %v2085_v29 = vmul.f32 %v2060_v34, %v1953_v59  ;;  %v19804_v59 = vld [vmem:[%s25167_s3 + $0x2] ss:$8 sm:$0xf0] }
 0x37e   : > { %19901 = vmatmul.mubr.msk.f32.vlgmr.msra.gmra.mrb[38].mxu1 %vm399_vm0, %v19888_v41  ;;  %9972 = vmatpush1.msra.mxu0 %v23213_v38  ;;  %v2087_v24 = vmul.f32 %v2068_v55, %v2024_v17  ;;  %v2088_v3 = vmul.f32 %v2072_v22, %v23258_v9  ;;  %v4065_v17 = vor.u32 %v19804_v59, %v19803_v35  ;;  %v23340_v59 = vld [vmem:[#allocation2] sm:$0xff] }
 0x37f   : > { %10035 = vmatprep.mubr.f32.mxu0 %v22722_v6  ;;  %10283 = vmatprep.mubr.f32.mxu1 %v22722_v6 }
 0x380   : > { %v4074_v9 = vrot.slane %v4065_v17, %v23282_v36  ;;  %v4094_v34 = vrot.slane %v4065_v17, %v23288_v7  ;;  %v4090_v22 = vrot.slane %v4065_v17, %v23290_v49 }
 0x381   : > { %19902 = vmatmul.mubr.msk.f32.vlgmr.msra.gmra.mrb[40].mxu0 %vm399_vm0, %v19888_v41 }
 0x382   : > { %10354 = vmatprep.mubr.f32.mxu0 %v22722_v6  ;;  %v23278_v6 = vsub.s32 0, %v2042_v25 }
 0x384   : > { %25197 = vst [vmem:[#allocation4_spill] sm:$0xff] %v23278_v6  ;;  %v2044_v43 = vrot.slane %v2039_v56, %v23278_v6  ;;  %v3057_v57 = vrot.slane %v3052_v12, %v23278_v6  ;;  %v4070_v2 = vrot.slane %v4065_v17, %v23278_v6  ;;  %v4082_v56 = vrot.slane %v4065_v17, %v23284_v37 }
 0x386   : > { %v2081_v51 = vmul.f32 %v2044_v43, %v1811_v30  ;;  %v2086_v30 = vmul.f32 %v2064_v13, %v23256_v31  ;;  %v4078_v31 = vrot.slane %v4065_v17, %v23280_v4 }
 0x395   : > { %v2823_v33 = vpop.f32.mrb[8].mxu1  ;;  %v2894_v61 = vpop.f32.mrb[10].mxu0 }
 0x396   : > { %v3094_v38 = vmul.f32 %v3057_v57, %v2823_v33  ;;  %v3096_v28 = vmul.f32 %v3065_v47, %v2894_v61  ;;  %v2825_v44 = vpop.f32.mrb[9].mxu1  ;;  %v2896_v19 = vpop.f32.mrb[11].mxu0  ;;  %v4098_v33 = vrot.slane %v4065_v17, %v23292_v42 }
 0x397   : > { %v3095_v10 = vmul.f32 %v3061_v20, %v2825_v44  ;;  %v3097_v50 = vmul.f32 %v3069_v48, %v2896_v19  ;;  %v4086_v48 = vrot.slane %v4065_v17, %v23286_v54 }
 0x398   : > { %v3102_v23 = vadd.f32 %v3094_v38, %v2081_v51  ;;  %v3104_v26 = vadd.f32 %v3096_v28, %v2083_v1 }
 0x399   : > { %v3103_v0 = vadd.f32 %v3095_v10, %v2082_v5  ;;  %v3105_v11 = vadd.f32 %v3097_v50, %v2084_v45 }
 0x39a   : > { %v2965_v18 = vpop.f32.mrb[10].mxu1  ;;  %v3036_v15 = vpop.f32.mrb[12].mxu0 }
 0x39b   : > { %v3098_v62 = vmul.f32 %v3073_v16, %v2965_v18  ;;  %v3100_v27 = vmul.f32 %v3081_v52, %v3036_v15  ;;  %v2967_v41 = vpop.f32.mrb[11].mxu1  ;;  %v3038_v58 = vpop.f32.mrb[13].mxu0 }
 0x39c   : > { %v3099_v14 = vmul.f32 %v3077_v21, %v2967_v41  ;;  %v3101_v8 = vmul.f32 %v3085_v46, %v3038_v58 }
 0x39d   : > { %v3106_v40 = vadd.f32 %v3098_v62, %v2085_v29  ;;  %v3108_v60 = vadd.f32 %v3100_v27, %v2087_v24 }
 0x39e   : > { %v3107_v63 = vadd.f32 %v3099_v14, %v2086_v30  ;;  %v3109_v25 = vadd.f32 %v3101_v8, %v2088_v3 }
 0x3b3   : > { %v3836_v12 = vpop.f32.mrb[12].mxu1  ;;  %v3907_v43 = vpop.f32.mrb[14].mxu0 }
 0x3b4   : > { %v4107_v32 = vmul.f32 %v4070_v2, %v3836_v12  ;;  %v4109_v57 = vmul.f32 %v4078_v31, %v3907_v43  ;;  %v3838_v47 = vpop.f32.mrb[13].mxu1  ;;  %v3909_v39 = vpop.f32.mrb[15].mxu0  ;;  %v23345_v2 = vcombine.high %v23340_v59, %v23340_v59 }
 0x3b5   : > { %v4108_v53 = vmul.f32 %v4074_v9, %v3838_v47  ;;  %v4110_v20 = vmul.f32 %v4082_v56, %v3909_v39  ;;  %v11574_v39 = vld [vmem:[#allocation3 + $0x30] sm:$0xf] }
 0x3b6   : > { %v4115_v55 = vadd.f32 %v4107_v32, %v3102_v23  ;;  %v4117_v13 = vadd.f32 %v4109_v57, %v3104_v26  ;;  %v19820_v23 = vld [vmem:[%s25167_s3 + $0x3] ss:$8 sm:$0xf]  ;;  %10853 = vrot.lane.b32.xlu1 %v23345_v2, %s21029_s19 }
 0x3b7   : > { %v4116_v61 = vadd.f32 %v4108_v53, %v3103_v0  ;;  %v4118_v16 = vadd.f32 %v4110_v20, %v3105_v11  ;;  %v19821_v26 = vld [vmem:[%s25167_s3 + $0x3] ss:$8 sm:$0xf0] }
 0x3b8   : > { %v3978_v52 = vpop.f32.mrb[14].mxu1  ;;  %v4049_v51 = vpop.f32.mrb[16].mxu0  ;;  %v5078_v46 = vor.u32 %v19821_v26, %v19820_v23 }
 0x3b9   : > { %v4111_v1 = vmul.f32 %v4086_v48, %v3978_v52  ;;  %v4113_v38 = vmul.f32 %v4094_v34, %v4049_v51  ;;  %v3980_v28 = vpop.f32.mrb[15].mxu1  ;;  %v4051_v44 = vpop.f32.mrb[17].mxu0  ;;  %v20937_v48 = vpack.i.bf16 %v23340_v59, %v11574_v39 }
 0x3ba   : > { %v4112_v19 = vmul.f32 %v4090_v22, %v3980_v28  ;;  %v4114_v5 = vmul.f32 %v4098_v33, %v4051_v44  ;;  %v5083_v0 = vrot.slane %v5078_v46, %v23278_v6  ;;  %v5091_v11 = vrot.slane %v5078_v46, %v23280_v4  ;;  %11920 = vrot.lane.b32.xlu1 %v23345_v2, %s21030_s20  ;;  %v12641_v33 = vld [vmem:[#allocation3 + $0x30] sm:$0xf] }
 0x3bb   : > { %v4119_v45 = vadd.f32 %v4111_v1, %v3106_v40  ;;  %v4121_v10 = vadd.f32 %v4113_v38, %v3108_v60  ;;  %v5087_v18 = vrot.slane %v5078_v46, %v23282_v36  ;;  %v5095_v15 = vrot.slane %v5078_v46, %v23284_v37 }
 0x3bc   : > { %v4120_v50 = vadd.f32 %v4112_v19, %v3107_v63  ;;  %v4122_v21 = vadd.f32 %v4114_v5, %v3109_v25  ;;  %v5099_v30 = vrot.slane %v5078_v46, %v23286_v54  ;;  %v5107_v3 = vrot.slane %v5078_v46, %v23288_v7  ;;  %v10507_v63 = vld [vmem:[#allocation3 + $0x30] sm:$0xf] }
 0x3bd   : > { %v5103_v40 = vrot.slane %v5078_v46, %v23290_v49  ;;  %v5111_v60 = vrot.slane %v5078_v46, %v23292_v42  ;;  %v20932_v17 = vpack.i.bf16 %v23340_v59, %v10507_v63 }
 0x3be   : > { %12987 = vrot.lane.b32.xlu1 %v23345_v2, %s21031_s28 }
 0x3bf   : > { %20933 = vrot.lane.b32.xlu0 %v20932_v17, %s21029_s19 }
 0x3c3   : > { %20938 = vrot.lane.b32.xlu0 %v20937_v48, %s21030_s20 }
 0x3d1   : > { %v4849_v29 = vpop.f32.mrb[16].mxu1  ;;  %v4920_v24 = vpop.f32.mrb[18].mxu0 }
 0x3d2   : > { %v5120_v62 = vmul.f32 %v5083_v0, %v4849_v29  ;;  %v5122_v27 = vmul.f32 %v5091_v11, %v4920_v24  ;;  %v4851_v41 = vpop.f32.mrb[17].mxu1  ;;  %v4922_v58 = vpop.f32.mrb[19].mxu0  ;;  %v19852_v0 = vld [vmem:[%s25167_s3 + $0x5] ss:$8 sm:$0xf] }
 0x3d3   : > { %v5121_v14 = vmul.f32 %v5087_v18, %v4851_v41  ;;  %v5123_v8 = vmul.f32 %v5095_v15, %v4922_v58  ;;  %v19853_v11 = vld [vmem:[%s25167_s3 + $0x5] ss:$8 sm:$0xf0] }
 0x3d4   : > { %v5128_v25 = vadd.f32 %v5120_v62, %v4115_v55  ;;  %v5130_v35 = vadd.f32 %v5122_v27, %v4117_v13  ;;  %v7014_v18 = vor.u32 %v19853_v11, %v19852_v0 }
 0x3d5   : > { %v5129_v31 = vadd.f32 %v5121_v14, %v4116_v61  ;;  %v5131_v9 = vadd.f32 %v5123_v8, %v4118_v16  ;;  %v20942_v61 = vpack.i.bf16 %v23340_v59, %v12641_v33  ;;  %v19870_v33 = vld [vmem:[%s25167_s3 + $0x6] ss:$8 sm:$0xf0] }
 0x3d6   : > { %v4991_v56 = vpop.f32.mrb[18].mxu1  ;;  %v5062_v12 = vpop.f32.mrb[20].mxu0  ;;  %v7019_v15 = vrot.slane %v7014_v18, %v23278_v6  ;;  %v7023_v29 = vrot.slane %v7014_v18, %v23282_v36  ;;  %v7027_v24 = vrot.slane %v7014_v18, %v23280_v4  ;;  %v7031_v27 = vrot.slane %v7014_v18, %v23284_v37 }
 0x3d7   : > { %v5124_v43 = vmul.f32 %v5099_v30, %v4991_v56  ;;  %v5126_v32 = vmul.f32 %v5107_v3, %v5062_v12  ;;  %v4993_v57 = vpop.f32.mrb[19].mxu1  ;;  %v5064_v47 = vpop.f32.mrb[21].mxu0  ;;  %20943 = vrot.lane.b32.xlu0 %v20942_v61, %s21031_s28  ;;  %v7035_v30 = vrot.slane %v7014_v18, %v23286_v54  ;;  %v7039_v8 = vrot.slane %v7014_v18, %v23290_v49 }
 0x3d8   : > { %v5125_v53 = vmul.f32 %v5103_v40, %v4993_v57  ;;  %v5127_v20 = vmul.f32 %v5111_v60, %v5064_v47 }
 0x3d9   : > { %v5132_v34 = vadd.f32 %v5124_v43, %v4119_v45  ;;  %v5134_v55 = vadd.f32 %v5126_v32, %v4121_v10 }
 0x3da   : > { %v5133_v13 = vadd.f32 %v5125_v53, %v4120_v50  ;;  %v5135_v22 = vadd.f32 %v5127_v20, %v4122_v21 }
 0x3ea   : > { %v5785_v16 = vpop.f32.mrb[20].mxu1 }
 0x3eb   : > { %v6011_v52 = vadd.f32 %v5785_v16, %v5128_v25  ;;  %v5856_v51 = vpop.f32.mrb[22].mxu0  ;;  %v5787_v1 = vpop.f32.mrb[21].mxu1  ;;  %v7043_v25 = vrot.slane %v7014_v18, %v23288_v7 }
 0x3ec   : > { %v6013_v38 = vadd.f32 %v5856_v51, %v5130_v35  ;;  %v6012_v28 = vadd.f32 %v5787_v1, %v5129_v31  ;;  %v5858_v44 = vpop.f32.mrb[23].mxu0 }
 0x3ed   : > { %v6014_v19 = vadd.f32 %v5858_v44, %v5131_v9  ;;  %v7047_v9 = vrot.slane %v7014_v18, %v23292_v42 }
 0x3ee   : > { %v5927_v5 = vpop.f32.mrb[22].mxu1 }
 0x3ef   : > { %v6015_v45 = vadd.f32 %v5927_v5, %v5132_v34  ;;  %v5998_v10 = vpop.f32.mrb[24].mxu0  ;;  %v5929_v50 = vpop.f32.mrb[23].mxu1 }
 0x3f0   : > { %v6017_v21 = vadd.f32 %v5998_v10, %v5134_v55  ;;  %v6016_v23 = vadd.f32 %v5929_v50, %v5133_v13  ;;  %v6000_v26 = vpop.f32.mrb[25].mxu0 }
 0x3f1   : > { %v6018_v46 = vadd.f32 %v6000_v26, %v5135_v22  ;;  %v19869_v22 = vld [vmem:[%s25167_s3 + $0x6] ss:$8 sm:$0xf] }
 0x3f2   : > { %v8027_v61 = vor.u32 %v19870_v33, %v19869_v22 }
 0x3f4   : > { %v8032_v16 = vrot.slane %v8027_v61, %v23278_v6  ;;  %v8040_v51 = vrot.slane %v8027_v61, %v23280_v4  ;;  %v8052_v10 = vrot.slane %v8027_v61, %v23290_v49  ;;  %v8056_v26 = vrot.slane %v8027_v61, %v23288_v7 }
 0x3f5   : > { %v8060_v18 = vrot.slane %v8027_v61, %v23292_v42 }
 0x402   : > { %v6785_v62 = vpop.f32.mrb[24].mxu1 }
 0x403   : > { %v7056_v41 = vmul.f32 %v7019_v15, %v6785_v62  ;;  %v6787_v58 = vpop.f32.mrb[25].mxu1 }
 0x404   : > { %v7057_v3 = vmul.f32 %v7023_v29, %v6787_v58  ;;  %v6856_v14 = vpop.f32.mrb[26].mxu0 }
 0x405   : > { %v7064_v40 = vadd.f32 %v7056_v41, %v6011_v52  ;;  %v7058_v60 = vmul.f32 %v7027_v24, %v6856_v14  ;;  %v6858_v63 = vpop.f32.mrb[27].mxu0  ;;  %v8036_v52 = vrot.slane %v8027_v61, %v23282_v36 }
 0x406   : > { %v7065_v35 = vadd.f32 %v7057_v3, %v6012_v28  ;;  %v6927_v17 = vpop.f32.mrb[26].mxu1  ;;  %v7059_v31 = vmul.f32 %v7031_v27, %v6858_v63  ;;  %v19886_v63 = vld [vmem:[%s25167_s3 + $0x7] ss:$8 sm:$0xf] }
 0x407   : > { %v7066_v56 = vadd.f32 %v7058_v60, %v6013_v38  ;;  %v7060_v12 = vmul.f32 %v7035_v30, %v6927_v17  ;;  %v6929_v43 = vpop.f32.mrb[27].mxu1  ;;  %v8044_v38 = vrot.slane %v8027_v61, %v23284_v37 }
 0x408   : > { %v7067_v32 = vadd.f32 %v7059_v31, %v6014_v19  ;;  %v7061_v57 = vmul.f32 %v7039_v8, %v6929_v43  ;;  %v6998_v47 = vpop.f32.mrb[28].mxu0  ;;  %v8048_v19 = vrot.slane %v8027_v61, %v23286_v54 }
 0x409   : > { %v7068_v39 = vadd.f32 %v7060_v12, %v6015_v45  ;;  %v7062_v53 = vmul.f32 %v7043_v25, %v6998_v47  ;;  %v7000_v20 = vpop.f32.mrb[29].mxu0  ;;  %v19887_v25 = vld [vmem:[%s25167_s3 + $0x7] ss:$8 sm:$0xf0] }
 0x40a   : > { %v7069_v48 = vadd.f32 %v7061_v57, %v6016_v23  ;;  %v7063_v34 = vmul.f32 %v7047_v9, %v7000_v20 }
 0x40b   : > { %v7070_v55 = vadd.f32 %v7062_v53, %v6017_v21 }
 0x40c   : > { %v7071_v13 = vadd.f32 %v7063_v34, %v6018_v46 }
 0x41a   : > { %v7798_v1 = vpop.f32.mrb[28].mxu1 }
 0x41b   : > { %v8069_v28 = vmul.f32 %v8032_v16, %v7798_v1  ;;  %v7800_v44 = vpop.f32.mrb[29].mxu1 }
 0x41c   : > { %v8070_v5 = vmul.f32 %v8036_v52, %v7800_v44  ;;  %v7869_v45 = vpop.f32.mrb[30].mxu0 }
 0x41d   : > { %v8077_v50 = vadd.f32 %v8069_v28, %v7064_v40  ;;  %v8071_v21 = vmul.f32 %v8040_v51, %v7869_v45  ;;  %v7871_v23 = vpop.f32.mrb[31].mxu0 }
 0x41e   : > { %v8078_v46 = vadd.f32 %v8070_v5, %v7065_v35  ;;  %v7940_v0 = vpop.f32.mrb[30].mxu1  ;;  %v8072_v11 = vmul.f32 %v8044_v38, %v7871_v23  ;;  %v9040_v35 = vor.u32 %v19887_v25, %v19886_v63  ;;  %v19903_v23 = vld [vmem:[%s25167_s3 + $0x40] ss:$8 sm:$0xf] }
 0x41f   : > { %v8079_v15 = vadd.f32 %v8071_v21, %v7066_v56  ;;  %v8073_v29 = vmul.f32 %v8048_v19, %v7940_v0  ;;  %v7942_v24 = vpop.f32.mrb[31].mxu1 }
 0x420   : > { %v8080_v62 = vadd.f32 %v8072_v11, %v7067_v32  ;;  %v8074_v27 = vmul.f32 %v8052_v10, %v7942_v24  ;;  %v8011_v41 = vpop.f32.mrb[32].mxu0  ;;  %v9045_v17 = vrot.slane %v9040_v35, %v23278_v6  ;;  %v9049_v31 = vrot.slane %v9040_v35, %v23282_v36 }
 0x421   : > { %v8081_v58 = vadd.f32 %v8073_v29, %v7068_v39  ;;  %v8075_v30 = vmul.f32 %v8056_v26, %v8011_v41  ;;  %v8013_v3 = vpop.f32.mrb[33].mxu0  ;;  %v9053_v9 = vrot.slane %v9040_v35, %v23280_v4  ;;  %v9057_v12 = vrot.slane %v9040_v35, %v23284_v37  ;;  %v19904_v26 = vld [vmem:[%s25167_s3 + $0x40] ss:$8 sm:$0xf0] }
 0x422   : > { %v8082_v14 = vadd.f32 %v8074_v27, %v7069_v48  ;;  %v8076_v8 = vmul.f32 %v8060_v18, %v8013_v3  ;;  %v9061_v57 = vrot.slane %v9040_v35, %v23286_v54  ;;  %v9065_v53 = vrot.slane %v9040_v35, %v23290_v49  ;;  %v10115_v3 = vpop.permute.xlu0 %10114 }
 0x423   : > { %v8083_v40 = vadd.f32 %v8075_v30, %v7070_v55  ;;  %v9069_v55 = vrot.slane %v9040_v35, %v23288_v7  ;;  %v9073_v61 = vrot.slane %v9040_v35, %v23292_v42 }
 0x424   : > { %v8084_v60 = vadd.f32 %v8076_v8, %v7071_v13 }
 0x432   : > { %v8811_v56 = vpop.f32.mrb[32].mxu1 }
 0x433   : > { %v9082_v43 = vmul.f32 %v9045_v17, %v8811_v56  ;;  %v8813_v32 = vpop.f32.mrb[33].mxu1 }
 0x434   : > { %v9083_v47 = vmul.f32 %v9049_v31, %v8813_v32  ;;  %v8882_v39 = vpop.f32.mrb[34].mxu0 }
 0x435   : > { %v9090_v20 = vadd.f32 %v9082_v43, %v8077_v50  ;;  %v9084_v48 = vmul.f32 %v9053_v9, %v8882_v39  ;;  %v8884_v34 = vpop.f32.mrb[35].mxu0 }
 0x436   : > { %v9091_v13 = vadd.f32 %v9083_v47, %v8078_v46  ;;  %v8953_v22 = vpop.f32.mrb[34].mxu1  ;;  %v9085_v33 = vmul.f32 %v9057_v12, %v8884_v34  ;;  %v10053_v46 = vor.u32 %v19904_v26, %v19903_v23 }
 0x437   : > { %v9092_v16 = vadd.f32 %v9084_v48, %v8079_v15  ;;  %v9086_v52 = vmul.f32 %v9061_v57, %v8953_v22  ;;  %v8955_v51 = vpop.f32.mrb[35].mxu1 }
 0x438   : > { %v9093_v1 = vadd.f32 %v9085_v33, %v8080_v62  ;;  %v9087_v38 = vmul.f32 %v9065_v53, %v8955_v51  ;;  %v9024_v28 = vpop.f32.mrb[36].mxu0  ;;  %v10058_v0 = vrot.slane %v10053_v46, %v23278_v6  ;;  %v10062_v11 = vrot.slane %v10053_v46, %v23282_v36 }
 0x439   : > { %v9094_v44 = vadd.f32 %v9086_v52, %v8081_v58  ;;  %v9088_v19 = vmul.f32 %v9069_v55, %v9024_v28  ;;  %v9026_v5 = vpop.f32.mrb[37].mxu0  ;;  %v10066_v24 = vrot.slane %v10053_v46, %v23280_v4  ;;  %v10074_v27 = vrot.slane %v10053_v46, %v23286_v54 }
 0x43a   : > { %v9095_v45 = vadd.f32 %v9087_v38, %v8082_v14  ;;  %v9089_v10 = vmul.f32 %v9073_v61, %v9026_v5  ;;  %v10070_v41 = vrot.slane %v10053_v46, %v23284_v37  ;;  %v10078_v30 = vrot.slane %v10053_v46, %v23290_v49  ;;  %v16443_v49 = vld [vmem:[#allocation3 + $0x2c] sm:$0xf] }
 0x43b   : > { %v9096_v50 = vadd.f32 %v9088_v19, %v8083_v40  ;;  %v10082_v35 = vrot.slane %v10053_v46, %v23288_v7  ;;  %v10086_v12 = vrot.slane %v10053_v46, %v23292_v42 }
 0x43c   : > { %v9097_v21 = vadd.f32 %v9089_v10, %v8084_v60 }
 0x44c   : > { %v9824_v18 = vpop.f32.mrb[36].mxu1 }
 0x44d   : > { %v10095_v15 = vmul.f32 %v10058_v0, %v9824_v18  ;;  %v9826_v29 = vpop.f32.mrb[37].mxu1 }
 0x44e   : > { %v10096_v62 = vmul.f32 %v10062_v11, %v9826_v29 }
 0x44f   : > { %v10103_v58 = vadd.f32 %v10095_v15, %v9090_v20 }
 0x450   : > { %v10104_v14 = vadd.f32 %v10096_v62, %v9091_v13  ;;  %v9895_v8 = vpop.f32.mrb[38].mxu0 }
 0x451   : > { %v10117_v40 = vadd.f32 %v10115_v3, %v10103_v58  ;;  %v10097_v60 = vmul.f32 %v10066_v24, %v9895_v8  ;;  %v9966_v63 = vpop.f32.mrb[38].mxu1  ;;  %v9897_v25 = vpop.f32.mrb[39].mxu0 }
 0x452   : > { %v10118_v17 = vadd.f32 %v10115_v3, %v10104_v14  ;;  %v10099_v31 = vmul.f32 %v10074_v27, %v9966_v63  ;;  %v10098_v9 = vmul.f32 %v10070_v41, %v9897_v25  ;;  %v9968_v56 = vpop.f32.mrb[39].mxu1  ;;  %v13708_v63 = vld [vmem:[#allocation3 + $0x30] sm:$0xf]  ;;  %v23514_v25 = vpop.permute.xlu0 %20933 }
 0x453   : > { %v10125_v43 = vmax.f32 %v10117_v40, 0.0  ;;  %v10105_v32 = vadd.f32 %v10097_v60, %v9092_v16  ;;  %v10100_v57 = vmul.f32 %v10078_v30, %v9968_v56  ;;  %v23506_v40 = vpop.permute.xlu1 %10853 }
 0x454   : > { %v23414_v47 = vmax.f32 %v10118_v17, 0.0  ;;  %v10107_v39 = vadd.f32 %v10099_v31, %v9094_v44  ;;  %v10106_v53 = vadd.f32 %v10098_v9, %v9093_v1  ;;  %v10037_v20 = vpop.f32.mrb[40].mxu0  ;;  %v20947_v17 = vpack.i.bf16 %v23340_v59, %v13708_v63 }
 0x455   : > { %v10119_v48 = vadd.f32 %v10115_v3, %v10105_v32  ;;  %v10108_v34 = vadd.f32 %v10100_v57, %v9095_v45  ;;  %v10101_v55 = vmul.f32 %v10082_v35, %v10037_v20  ;;  %v10039_v13 = vpop.f32.mrb[41].mxu0 }
 0x456   : > { %v23417_v22 = vcombine.low %v10125_v43, %v23414_v47  ;;  %v10121_v33 = vadd.f32 %v10115_v3, %v10107_v39  ;;  %v10120_v61 = vadd.f32 %v10115_v3, %v10106_v53  ;;  %v10102_v52 = vmul.f32 %v10086_v12, %v10039_v13  ;;  %v23521_v9 = vpop.permute.xlu0 %20938 }
 0x457   : > { %v10127_v51 = vmax.f32 %v10119_v48, 0.0  ;;  %v10122_v38 = vadd.f32 %v10115_v3, %v10108_v34  ;;  %v10109_v28 = vadd.f32 %v10101_v55, %v9096_v50  ;;  %v23516_v35 = vpop.permute.xlu1 %11920 }
 0x458   : > { %10149 = vst [vmem:[#allocation3 + $0xc] sm:$0xff] %v23417_v22  ;;  %v10129_v16 = vmax.f32 %v10121_v33, 0.0  ;;  %v23420_v19 = vmax.f32 %v10120_v61, 0.0  ;;  %v10110_v1 = vadd.f32 %v10102_v52, %v9097_v21  ;;  %v23562_v33 = vcombine.low %v23414_v47, %v23414_v47 }
 0x459   : > { %v23422_v44 = vmax.f32 %v10122_v38, 0.0  ;;  %v10123_v5 = vadd.f32 %v10115_v3, %v10109_v28 }
 0x45a   : > { %v23425_v45 = vcombine.low %v10127_v51, %v23420_v19  ;;  %v10124_v10 = vadd.f32 %v10115_v3, %v10110_v1  ;;  %v23530_v12 = vpop.permute.xlu0 %20943  ;;  %v23574_v51 = vld [vmem:[%s25172_s8 + $0x24] sm:$0xf]  ;;  %v23586_v47 = vcombine.low %v23420_v19, %v23420_v19 }
 0x45b   : > { %v23428_v23 = vcombine.low %v10129_v16, %v23422_v44  ;;  %v10131_v26 = vmax.f32 %v10123_v5, 0.0  ;;  %v23525_v56 = vpop.permute.xlu1 %12987 }
 0x45c   : > { %10150 = vst [vmem:[#allocation3 + $0x14] sm:$0xff] %v23425_v45  ;;  %v23431_v50 = vmax.f32 %v10124_v10, 0.0  ;;  %25205 = vst [vmem:[#allocation12_spill] sm:$0xff] %v23525_v56 }
 0x45d   : > { %10151 = vst [vmem:[#allocation3 + $0x1c] sm:$0xff] %v23428_v23 }
 0x45e   : > { %v23435_v46 = vcombine.low %v10131_v26, %v23431_v50 }
 0x45f   : > { %v10154_v21 = vld [vmem:[#allocation3 + $0x8] sm:$0xff] }
 0x460   : > { %10152 = vst [vmem:[#allocation3 + $0x24] sm:$0xff] %v23435_v46  ;;  %10172 = vrot.lane.b32.xlu1 %v10154_v21, %s21029_s19  ;;  %v10168_v11 = vcombine.high %v10154_v21, %v10154_v21 }
 0x463   : > { %v23439_v0 = vld [vmem:[#allocation3 + $0x10] sm:$0xff] }
 0x464   : > { %11241 = vrot.lane.b32.xlu1 %v10154_v21, %s21030_s20  ;;  %10176 = vrot.lane.b32.xlu0 %v23439_v0, %s21029_s19  ;;  %v10169_v18 = vcombine.high %v23439_v0, %v23439_v0  ;;  %v10156_v15 = vld [vmem:[#allocation3 + $0x18] sm:$0xff]  ;;  %v10157_v62 = vld [vmem:[#allocation3 + $0x20] sm:$0xf] }
 0x465   : > { %v11225_v41 = vld [vmem:[#allocation3 + $0x20] sm:$0xf]  ;;  %v23490_v3 = vcombine.high %v10156_v15, %v10156_v15 }
 0x466   : > { %v12292_v30 = vld [vmem:[#allocation3 + $0x20] sm:$0xf] }
 0x467   : > { %v10506_v29 = vld [vmem:[#allocation3 + $0x28] sm:$0xff]  ;;  %v10159_v24 = vld [vmem:[#allocation3 + $0x20] sm:$0xff] }
 0x468   : > { %12308 = vrot.lane.b32.xlu1 %v10154_v21, %s21031_s28  ;;  %10519 = vrot.lane.b32.xlu0 %v23439_v0, %s21029_s19  ;;  %v10160_v27 = vld [vmem:[#allocation3 + $0x28] sm:$0xf]  ;;  %v23495_v8 = vcombine.high %v10159_v24, %v10159_v24  ;;  %v23508_v60 = vcombine.high %v10506_v29, %v10506_v29  ;;  %v13359_v20 = vld [vmem:[#allocation3 + $0x20] sm:$0xf]  ;;  %v15372_v42 = vld [vmem:[#allocation3 + $0x24] sm:$0xf] }
 0x469   : > { %v11229_v58 = vld [vmem:[#allocation3 + $0x28] sm:$0xf] }
 0x46a   : > { %v12296_v14 = vld [vmem:[#allocation3 + $0x28] sm:$0xf] }
 0x46b   : > { %v13363_v31 = vld [vmem:[#allocation3 + $0x28] sm:$0xf] }
 0x46c   : > { %13375 = vrot.lane.b32.xlu1 %v10154_v21, %s21032_s29  ;;  %11245 = vrot.lane.b32.xlu0 %v23439_v0, %s21030_s20  ;;  %v15376_v21 = vld [vmem:[#allocation3 + $0x2c] sm:$0xf] }
 0x470   : > { %10174 = vrot.lane.b32.xlu1 %v10168_v11, %s21029_s19  ;;  %11586 = vrot.lane.b32.xlu0 %v23439_v0, %s21030_s20 }
 0x474   : > { %12312 = vrot.lane.b32.xlu0 %v23439_v0, %s21031_s28  ;;  %10178 = vrot.lane.b32.xlu1 %v10169_v18, %s21029_s19 }
 0x478   : > { %12653 = vrot.lane.b32.xlu0 %v23439_v0, %s21031_s28  ;;  %11243 = vrot.lane.b32.xlu1 %v10168_v11, %s21030_s20 }
 0x47c   : > { %13379 = vrot.lane.b32.xlu0 %v23439_v0, %s21032_s29  ;;  %11247 = vrot.lane.b32.xlu1 %v10169_v18, %s21030_s20 }
 0x480   : > { %10521 = vrot.lane.b32.xlu0 %v10169_v18, %s21029_s19  ;;  %12310 = vrot.lane.b32.xlu1 %v10168_v11, %s21031_s28 }
 0x484   : > { %11588 = vrot.lane.b32.xlu0 %v10169_v18, %s21030_s20  ;;  %12314 = vrot.lane.b32.xlu1 %v10169_v18, %s21031_s28 }
 0x488   : > { %12655 = vrot.lane.b32.xlu0 %v10169_v18, %s21031_s28  ;;  %13377 = vrot.lane.b32.xlu1 %v10168_v11, %s21032_s29 }
 0x48c   : > { %10180 = vrot.lane.b32.xlu0 %v10156_v15, %s21029_s19  ;;  %13381 = vrot.lane.b32.xlu1 %v10169_v18, %s21032_s29 }
 0x490   : > { %10531 = vrot.lane.b32.xlu0 %v10506_v29, %s21029_s19  ;;  %10184 = vrot.lane.b32.xlu1 %v10159_v24, %s21029_s19 }
 0x494   : > { %10855 = vrot.lane.b32.xlu0 %v10157_v62, %s21029_s19  ;;  %10188 = vrot.lane.b32.xlu1 %v10160_v27, %s21029_s19 }
 0x498   : > { %11249 = vrot.lane.b32.xlu0 %v10156_v15, %s21030_s20  ;;  %10523 = vrot.lane.b32.xlu1 %v10156_v15, %s21029_s19 }
 0x49c   : > { %11598 = vrot.lane.b32.xlu0 %v10506_v29, %s21030_s20  ;;  %10527 = vrot.lane.b32.xlu1 %v10159_v24, %s21029_s19 }
 0x4a0   : > { %11922 = vrot.lane.b32.xlu0 %v11225_v41, %s21030_s20  ;;  %11253 = vrot.lane.b32.xlu1 %v10159_v24, %s21030_s20 }
 0x4a4   : > { %12316 = vrot.lane.b32.xlu0 %v10156_v15, %s21031_s28  ;;  %11257 = vrot.lane.b32.xlu1 %v11229_v58, %s21030_s20 }
 0x4a8   : > { %12665 = vrot.lane.b32.xlu0 %v10506_v29, %s21031_s28  ;;  %11590 = vrot.lane.b32.xlu1 %v10156_v15, %s21030_s20 }
 0x4ac   : > { %12989 = vrot.lane.b32.xlu0 %v12292_v30, %s21031_s28  ;;  %11594 = vrot.lane.b32.xlu1 %v10159_v24, %s21030_s20 }
 0x4b0   : > { %13383 = vrot.lane.b32.xlu0 %v10156_v15, %s21032_s29  ;;  %12320 = vrot.lane.b32.xlu1 %v10159_v24, %s21031_s28 }
 0x4b4   : > { %10182 = vrot.lane.b32.xlu0 %v23490_v3, %s21029_s19  ;;  %12324 = vrot.lane.b32.xlu1 %v12296_v14, %s21031_s28 }
 0x4b8   : > { %12657 = vrot.lane.b32.xlu1 %v10156_v15, %s21031_s28  ;;  %10186 = vrot.lane.b32.xlu0 %v23495_v8, %s21029_s19 }
 0x4bc   : > { %12661 = vrot.lane.b32.xlu1 %v10159_v24, %s21031_s28  ;;  %10525 = vrot.lane.b32.xlu0 %v23490_v3, %s21029_s19 }
 0x4c0   : > { %10529 = vrot.lane.b32.xlu1 %v23495_v8, %s21029_s19  ;;  %13722 = vrot.lane.b32.xlu0 %v10169_v18, %s21032_s29  ;;  %v20952_v18 = vpack.i.bf16 %v23340_v59, %v15376_v21 }
 0x4c4   : > { %10533 = vrot.lane.b32.xlu1 %v23508_v60, %s21029_s19  ;;  %13720 = vrot.lane.b32.xlu0 %v23439_v0, %s21032_s29 }
 0x4c8   : > { %13387 = vrot.lane.b32.xlu1 %v10159_v24, %s21032_s29  ;;  %13732 = vrot.lane.b32.xlu0 %v10506_v29, %s21032_s29 }
 0x4cc   : > { %13391 = vrot.lane.b32.xlu1 %v13363_v31, %s21032_s29  ;;  %20948 = vrot.lane.b32.xlu0 %v20947_v17, %s21032_s29  ;;  %v23664_v17 = vld [vmem:[#allocation3 + $0x4] sm:$0xff] }
 0x4cd   : > { %v23672_v31 = vcombine.high %v23664_v17, %v23664_v17 }
 0x4d0   : > { %13724 = vrot.lane.b32.xlu1 %v10156_v15, %s21032_s29  ;;  %11251 = vrot.lane.b32.xlu0 %v23490_v3, %s21030_s20 }
 0x4d2   : > { %v23532_v43 = vpop.permute.xlu1 %10172 }
 0x4d4   : > { %13728 = vrot.lane.b32.xlu1 %v10159_v24, %s21032_s29  ;;  %11255 = vrot.lane.b32.xlu0 %v23495_v8, %s21030_s20 }
 0x4d6   : > { %v23537_v32 = vpop.permute.xlu1 %11241  ;;  %v10177_v57 = vpop.permute.xlu0 %10176 }
 0x4d8   : > { %11596 = vrot.lane.b32.xlu1 %v23495_v8, %s21030_s20  ;;  %11592 = vrot.lane.b32.xlu0 %v23490_v3, %s21030_s20 }
 0x4da   : > { %v23543_v39 = vpop.permute.xlu1 %12308  ;;  %v23545_v53 = vpop.permute.xlu0 %10519 }
 0x4dc   : > { %11600 = vrot.lane.b32.xlu1 %v23508_v60, %s21030_s20  ;;  %14056 = vrot.lane.b32.xlu0 %v13359_v20, %s21032_s29 }
 0x4de   : > { %v23550_v48 = vpop.permute.xlu1 %13375  ;;  %v23552_v34 = vpop.permute.xlu0 %11245 }
 0x4df   : > { %25206 = vst [vmem:[#allocation13_spill] sm:$0xff] %v23550_v48 }
 0x4e0   : > { %14054 = vrot.lane.b32.xlu1 %v23345_v2, %s21032_s29  ;;  %15392 = vrot.lane.b32.xlu0 %v23425_v45, %s21033_s12 }
 0x4e2   : > { %v10175_v55 = vpop.permute.xlu1 %10174  ;;  %v23558_v13 = vpop.permute.xlu0 %11586 }
 0x4e3   : > { %v23566_v61 = vsel %vm1087_vm1, %v23532_v43, %v10175_v55  ;;  %v23569_v52 = vsel %vm1087_vm1, %v10175_v55, %v10177_v57 }
 0x4e4   : > { %19906 = vmatprep.subr.msk.mxu1 %vm10202_vm9, %v23569_v52  ;;  %15390 = vrot.lane.b32.xlu1 %v23562_v33, %s21033_s12 }
 0x4e5   : > { %15396 = vrot.lane.b32.xlu0 %v23428_v23, %s21033_s12  ;;  %19907 = vmatpush1.msk.msra.mxu1 %vm10202_vm9, %v23566_v61 }
 0x4e6   : > { %v23588_v38 = vpop.permute.xlu0 %12312  ;;  %v10179_v28 = vpop.permute.xlu1 %10178  ;;  %19908 = vmatmul.mubr.msk.f32.vlgmr.msra.gmra.mrb[40].mxu1 %vm10198_vm10, %v23574_v51 }
 0x4e7   : > { %10425 = vmatprep.mubr.f32.mxu1 %v23340_v59  ;;  %v23643_v41 = vsel %vm1087_vm1, %v10177_v57, %v10179_v28  ;;  %v15721_v57 = vld [vmem:[#allocation3 + $0x34] sm:$0xf] }
 0x4e8   : > { %15394 = vrot.lane.b32.xlu1 %v23586_v47, %s21033_s12 }
 0x4e9   : > { %12318 = vrot.lane.b32.xlu0 %v23490_v3, %s21031_s28 }
 0x4ea   : > { %v23597_v16 = vpop.permute.xlu0 %12653  ;;  %v23599_v1 = vpop.permute.xlu1 %11243 }
 0x4ec   : > { %15388 = vrot.lane.b32.xlu1 %v23417_v22, %s21033_s12 }
 0x4ed   : > { %12322 = vrot.lane.b32.xlu0 %v23495_v8, %s21031_s28 }
 0x4ee   : > { %v23605_v19 = vpop.permute.xlu0 %13379  ;;  %v23607_v5 = vpop.permute.xlu1 %11247 }
 0x4ef   : > { %25207 = vst [vmem:[#allocation14_spill] sm:$0xff] %v23605_v19 }
 0x4f0   : > { %12663 = vrot.lane.b32.xlu1 %v23495_v8, %s21031_s28 }
 0x4f1   : > { %12659 = vrot.lane.b32.xlu0 %v23490_v3, %s21031_s28 }
 0x4f2   : > { %v23613_v10 = vpop.permute.xlu0 %10521  ;;  %v23615_v26 = vpop.permute.xlu1 %12310 }
 0x4f4   : > { %12667 = vrot.lane.b32.xlu1 %v23508_v60, %s21031_s28 }
 0x4f5   : > { %15735 = vrot.lane.b32.xlu0 %v23586_v47, %s21033_s12 }
 0x4f6   : > { %v23621_v0 = vpop.permute.xlu0 %11588  ;;  %v23623_v11 = vpop.permute.xlu1 %12314 }
 0x4f8   : > { %15400 = vrot.lane.b32.xlu1 %v23435_v46, %s21033_s12 }
 0x4f9   : > { %15733 = vrot.lane.b32.xlu0 %v23425_v45, %s21033_s12 }
 0x4fa   : > { %v23630_v15 = vpop.permute.xlu0 %12655  ;;  %v23632_v29 = vpop.permute.xlu1 %13377 }
 0x4fb   : > { %25208 = vst [vmem:[#allocation15_spill] sm:$0xff] %v23632_v29 }
 0x4fc   : > { %20953 = vrot.lane.b32.xlu1 %v20952_v18, %s21033_s12 }
 0x4fd   : > { %15747 = vrot.lane.b32.xlu0 %v23345_v2, %s21033_s12 }
 0x4fe   : > { %v10181_v24 = vpop.permute.xlu0 %10180  ;;  %v23637_v62 = vpop.permute.xlu1 %13381 }
 0x4ff   : > { %25209 = vst [vmem:[#allocation16_spill] sm:$0xff] %v23637_v62  ;;  %v23640_v27 = vsel %vm1087_vm1, %v10179_v28, %v10181_v24  ;;  %v20957_v28 = vpack.i.bf16 %v23664_v17, %v15721_v57  ;;  %v16788_v62 = vld [vmem:[#allocation3 + $0x34] sm:$0xf] }
 0x500   : > { %19909 = vmatprep.subr.msk.mxu0 %vm10202_vm9, %v23640_v27  ;;  %15737 = vrot.lane.b32.xlu1 %v23428_v23, %s21033_s12 }
 0x501   : > { %13385 = vrot.lane.b32.xlu0 %v23490_v3, %s21032_s29  ;;  %19910 = vmatpush1.msk.msra.mxu0 %vm10202_vm9, %v23643_v41 }
 0x502   : > { %v23653_v58 = vpop.permute.xlu0 %10531  ;;  %v10185_v30 = vpop.permute.xlu1 %10184  ;;  %19911 = vmatmul.mubr.msk.f32.vlgmr.msra.gmra.mrb[42].mxu0 %vm10198_vm10, %v23574_v51 }
 0x503   : > { %10496 = vmatprep.mubr.f32.mxu0 %v23340_v59 }
 0x504   : > { %15741 = vrot.lane.b32.xlu1 %v23435_v46, %s21033_s12 }
 0x505   : > { %13389 = vrot.lane.b32.xlu0 %v23495_v8, %s21032_s29 }
 0x506   : > { %v23662_v14 = vpop.permute.xlu0 %10855  ;;  %v10189_v63 = vpop.permute.xlu1 %10188 }
 0x508   : > { %13730 = vrot.lane.b32.xlu1 %v23495_v8, %s21032_s29 }
 0x509   : > { %13726 = vrot.lane.b32.xlu0 %v23490_v3, %s21032_s29 }
 0x50a   : > { %v23674_v20 = vpop.permute.xlu0 %11249  ;;  %v10524_v55 = vpop.permute.xlu1 %10523 }
 0x50c   : > { %13734 = vrot.lane.b32.xlu1 %v23508_v60, %s21032_s29 }
 0x50d   : > { %16067 = vrot.lane.b32.xlu0 %v23672_v31, %s21033_s12 }
 0x50e   : > { %v23681_v8 = vpop.permute.xlu0 %11598  ;;  %v23683_v21 = vpop.permute.xlu1 %10527 }
 0x510   : > { %20958 = vrot.lane.b32.xlu1 %v20957_v28, %s21033_s12 }
 0x511   : > { %16457 = vrot.lane.b32.xlu0 %v23562_v33, %s21034_s17 }
 0x512   : > { %v23688_v3 = vpop.permute.xlu0 %11922  ;;  %v23690_v18 = vpop.permute.xlu1 %11253 }
 0x514   : > { %16069 = vrot.lane.b32.xlu1 %v15372_v42, %s21033_s12  ;;  %v20962_v42 = vpack.i.bf16 %v23340_v59, %v16443_v49 }
 0x515   : > { %16461 = vrot.lane.b32.xlu0 %v23586_v47, %s21034_s17 }
 0x516   : > { %v23695_v60 = vpop.permute.xlu0 %12316  ;;  %v23697_v57 = vpop.permute.xlu1 %11257 }
 0x518   : > { %16459 = vrot.lane.b32.xlu1 %v23425_v45, %s21034_s17 }
 0x519   : > { %16455 = vrot.lane.b32.xlu0 %v23417_v22, %s21034_s17 }
 0x51a   : > { %v23703_v28 = vpop.permute.xlu0 %12665  ;;  %v23705_v7 = vpop.permute.xlu1 %11590 }
 0x51c   : > { %16463 = vrot.lane.b32.xlu1 %v23428_v23, %s21034_s17 }
 0x51d   : > { %16467 = vrot.lane.b32.xlu0 %v23435_v46, %s21034_s17 }
 0x51e   : > { %v23712_v37 = vpop.permute.xlu0 %12989  ;;  %v23714_v54 = vpop.permute.xlu1 %11594 }
 0x51f   : > { %25210 = vst [vmem:[#allocation17_spill] sm:$0xff] %v23712_v37  ;;  %v20967_v37 = vpack.i.bf16 %v23664_v17, %v16788_v62 }
 0x520   : > { %16802 = vrot.lane.b32.xlu1 %v23586_v47, %s21034_s17 }
 0x521   : > { %20963 = vrot.lane.b32.xlu0 %v20962_v42, %s21034_s17 }
 0x522   : > { %v23719_v4 = vpop.permute.xlu0 %13383  ;;  %v23721_v36 = vpop.permute.xlu1 %12320 }
 0x523   : > { %25211 = vst [vmem:[#allocation18_spill] sm:$0xff] %v23719_v4  ;;  %v10538_v4 = vsel %vm1087_vm1, %v23613_v10, %v10524_v55 }
 0x524   : > { %16800 = vrot.lane.b32.xlu1 %v23425_v45, %s21034_s17 }
 0x525   : > { %16804 = vrot.lane.b32.xlu0 %v23428_v23, %s21034_s17 }
 0x526   : > { %v23727_v49 = vpop.permute.xlu0 %10182  ;;  %v23729_v6 = vpop.permute.xlu1 %12324 }
 0x527   : > { %v10195_v48 = vsel %vm1087_vm1, %v23727_v49, %v10185_v30  ;;  %v23735_v42 = vsel %vm1087_vm1, %v10181_v24, %v23727_v49  ;;  %v10537_v24 = vsel %vm1087_vm1, %v23545_v53, %v23613_v10  ;;  %v19918_v53 = vld [vmem:[%s25172_s8 + $0x48] sm:$0xf] }
 0x528   : > { %16814 = vrot.lane.b32.xlu1 %v23345_v2, %s21034_s17  ;;  %19912 = vmatprep.subr.msk.mxu1 %vm10202_vm9, %v10195_v48 }
 0x529   : > { %16808 = vrot.lane.b32.xlu0 %v23435_v46, %s21034_s17  ;;  %19913 = vmatpush1.msk.msra.mxu1 %vm10202_vm9, %v23735_v42 }
 0x52a   : > { %19919 = vmatprep.subr.msk.mxu1 %vm10202_vm9, %v10538_v4  ;;  %v23751_v29 = vpop.permute.xlu1 %12657  ;;  %v10187_v48 = vpop.permute.xlu0 %10186  ;;  %19914 = vmatmul.mubr.msk.f32.vlgmr.msra.gmra.mrb[42].mxu1 %vm10198_vm10, %v23574_v51 }
 0x52b   : > { %v10196_v19 = vsel %vm1087_vm1, %v10185_v30, %v10187_v48  ;;  %19920 = vmatpush1.msk.msra.mxu1 %vm10202_vm9, %v10537_v24  ;;  %v10197_v56 = vsel %vm1087_vm1, %v10187_v48, %v10189_v63  ;;  %10628 = vmatprep.mubr.f32.mxu1 %v23340_v59  ;;  %v23788_v63 = vcombine.low %v23422_v44, %v23422_v44  ;;  %v20935_v24 = vunpack.i.l.bf16 %v23514_v25 }
 0x52c   : > { %17134 = vrot.lane.b32.xlu1 %v23672_v31, %s21034_s17  ;;  %19915 = vmatprep.subr.msk.mxu0 %vm10202_vm9, %v10197_v56  ;;  %v20936_v56 = vunpack.i.h.bf16 %v23514_v25  ;;  %v10858_v44 = vsel %vm1087_vm1, %v23506_v40, %v23532_v43  ;;  %v23813_v25 = vcombine.low %v23431_v50, %v23431_v50 }
 0x52d   : > { %20968 = vrot.lane.b32.xlu0 %v20967_v37, %s21034_s17  ;;  %19916 = vmatpush1.msk.msra.mxu0 %vm10202_vm9, %v10196_v19  ;;  %v16439_v37 = vld [vmem:[#allocation3 + $0x24] sm:$0xf] }
 0x52e   : > { %v23767_v4 = vpop.permute.xlu1 %12661  ;;  %v10526_v10 = vpop.permute.xlu0 %10525  ;;  %19917 = vmatmul.mubr.msk.f32.vlgmr.msra.gmra.mrb[44].mxu0 %vm10198_vm10, %v23574_v51  ;;  %19921 = vmatmul.mubr.msk.f32.vlgmr.msra.gmra.mrb[40].mxu1 %vm10198_vm10, %v19918_v53 }
 0x52f   : > { %v10539_v62 = vsel %vm1087_vm1, %v10524_v55, %v10526_v10  ;;  %v10540_v30 = vsel %vm1087_vm1, %v10526_v10, %v23683_v21  ;;  %10699 = vmatprep.mubr.f32.mxu0 %v23340_v59  ;;  %10770 = vmatprep.mubr.f32.mxu1 %v23340_v59 }
 0x530   : > { %17524 = vrot.lane.b32.xlu1 %v23562_v33, %s21035_s21  ;;  %19922 = vmatprep.subr.msk.mxu0 %vm10202_vm9, %v10540_v30 }
 0x531   : > { %17136 = vrot.lane.b32.xlu0 %v16439_v37, %s21034_s17  ;;  %19923 = vmatpush1.msk.msra.mxu0 %vm10202_vm9, %v10539_v62 }
 0x532   : > { %v10530_v51 = vpop.permute.xlu1 %10529  ;;  %v23783_v19 = vpop.permute.xlu0 %13722  ;;  %19924 = vmatmul.mubr.msk.f32.vlgmr.msra.gmra.mrb[42].mxu0 %vm10198_vm10, %v19918_v53 }
 0x533   : > { %v10541_v33 = vsel %vm1087_vm1, %v23683_v21, %v10530_v51  ;;  %v10542_v55 = vsel %vm1087_vm1, %v10530_v51, %v23653_v58  ;;  %10841 = vmatprep.mubr.f32.mxu0 %v23340_v59  ;;  %v10857_v21 = vsel %vm1087_vm1, %v20936_v56, %v23506_v40  ;;  %v10158_v40 = vld [vmem:[%s25172_s8] sm:$0xf] }
 0x534   : > { %17528 = vrot.lane.b32.xlu1 %v23586_v47, %s21035_s21  ;;  %19925 = vmatprep.subr.msk.mxu1 %vm10202_vm9, %v10542_v55  ;;  %v23922_v51 = vld [vmem:[#allocation2] sm:$0xff] }
 0x535   : > { %15398 = vrot.lane.b32.xlu0 %v23788_v63, %s21033_s12  ;;  %19926 = vmatpush1.msk.msra.mxu1 %vm10202_vm9, %v10541_v33 }
 0x536   : > { %19927 = vmatmul.mubr.msk.f32.vlgmr.msra.gmra.mrb[42].mxu1 %vm10198_vm10, %v19918_v53  ;;  %19931 = vmatprep.subr.msk.mxu1 %vm10202_vm9, %v10858_v44  ;;  %v10534_v48 = vpop.permute.xlu1 %10533  ;;  %v23809_v10 = vpop.permute.xlu0 %13720 }
 0x537   : > { %v10543_v62 = vsel %vm1087_vm1, %v23653_v58, %v10534_v48  ;;  %19932 = vmatpush1.msk.msra.mxu1 %vm10202_vm9, %v10857_v21  ;;  %v10544_v43 = vsel %vm1087_vm1, %v10534_v48, %v20935_v24  ;;  %10933 = vmatprep.mubr.f32.mxu1 %v23340_v59  ;;  %v20941_v48 = vunpack.i.h.bf16 %v23521_v9 }
 0x538   : > { %17522 = vrot.lane.b32.xlu1 %v23417_v22, %s21035_s21  ;;  %19937 = vmatprep.subr.msk.mxu1 %vm10202_vm9, %v23640_v27  ;;  %v23842_v22 = vsel %vm2119_vm2, %v23599_v1, %v23552_v34  ;;  %v10859_v27 = vsel %vm1087_vm1, %v23727_v49, %v23662_v14  ;;  %v23878_v14 = vsel %vm2119_vm2, %v23607_v5, %v23674_v20 }
 0x539   : > { %15402 = vrot.lane.b32.xlu0 %v23813_v25, %s21033_s12  ;;  %19928 = vmatprep.subr.msk.mxu0 %vm10202_vm9, %v10544_v43  ;;  %v11924_v43 = vsel %vm2119_vm2, %v20941_v48, %v23516_v35  ;;  %v12671_v48 = vsel %vm3132_vm3, %v23597_v16, %v23630_v15 }
 0x53a   : > { %19929 = vmatpush1.msk.msra.mxu0 %vm10202_vm9, %v10543_v62  ;;  %19933 = vmatmul.mubr.msk.f32.vlgmr.msra.gmra.mrb[40].mxu1 %vm10198_vm10, %v10158_v40  ;;  %v23832_v50 = vpop.permute.xlu1 %13387  ;;  %v23834_v58 = vpop.permute.xlu0 %13732 }
 0x53b   : > { %19938 = vmatpush1.msk.msra.mxu1 %vm10202_vm9, %v23643_v41  ;;  %19930 = vmatmul.mubr.msk.f32.vlgmr.msra.gmra.mrb[44].mxu0 %vm10198_vm10, %v19918_v53  ;;  %v23867_v53 = vsel %vm2119_vm2, %v23537_v32, %v23599_v1  ;;  %v19944_v1 = vld [vmem:[%s25172_s8 + $0x28] sm:$0xf] }
 0x53c   : > { %19934 = vmatprep.subr.msk.mxu0 %vm10202_vm9, %v23569_v52  ;;  %19945 = vmatprep.subr.msk.mxu1 %vm10202_vm9, %v23842_v22 }
 0x53d   : > { %19935 = vmatpush1.msk.msra.mxu0 %vm10202_vm9, %v23566_v61  ;;  %15743 = vrot.lane.b32.xlu1 %v23813_v25, %s21033_s12  ;;  %v17510_v61 = vld [vmem:[#allocation3 + $0x2c] sm:$0xf] }
 0x53e   : > { %15739 = vrot.lane.b32.xlu0 %v23788_v63, %s21033_s12  ;;  %19940 = vmatprep.subr.msk.mxu0 %vm10202_vm9, %v10859_v27  ;;  %v23858_v41 = vpop.permute.xlu1 %13391  ;;  %v23860_v52 = vpop.permute.xlu0 %20948  ;;  %s379_s12 = scalar_lea.vmem %s25174_s10, %s20272_s16 }
 0x53f   : > { %11004 = vmatprep.mubr.f32.mxu0 %v23340_v59  ;;  %11075 = vmatprep.mubr.f32.mxu1 %v23340_v59 }
 0x540   : > { %19939 = vmatmul.mubr.msk.f32.vlgmr.msra.gmra.mrb[42].mxu1 %vm10198_vm10, %v10158_v40  ;;  %19936 = vmatmul.mubr.msk.f32.vlgmr.msra.gmra.mrb[42].mxu0 %vm10198_vm10, %v10158_v40 }
 0x541   : > { %19946 = vmatpush1.msk.msra.mxu1 %vm10202_vm9, %v23867_v53  ;;  %19941 = vmatpush1.msk.msra.mxu0 %vm10202_vm9, %v23735_v42  ;;  %v20972_v42 = vpack.i.bf16 %v23340_v59, %v17510_v61  ;;  %v24019_v61 = vld [vmem:[#allocation3 + $0x1c] sm:$0xff] }
 0x542   : > { %19948 = vmatprep.subr.msk.mxu0 %vm10202_vm9, %v23878_v14  ;;  %17534 = vrot.lane.b32.xlu1 %v23435_v46, %s21035_s21  ;;  %v23887_v49 = vpop.permute.xlu1 %13724  ;;  %v23889_v30 = vpop.permute.xlu0 %11251  ;;  %v23901_v46 = vsel %vm2119_vm2, %v23552_v34, %v23607_v5 }
 0x543   : > { %17526 = vrot.lane.b32.xlu0 %v23425_v45, %s21035_s21  ;;  %11146 = vmatprep.mubr.f32.mxu0 %v23340_v59  ;;  %v11264_v37 = vsel %vm2119_vm2, %v23889_v30, %v23690_v18  ;;  %v23911_v56 = vsel %vm2119_vm2, %v23674_v20, %v23889_v30  ;;  %v11605_v20 = vsel %vm2119_vm2, %v23621_v0, %v23705_v7 }
 0x544   : > { %11350 = vmatprep.mubr.f32.mxu1 %v23340_v59  ;;  %19942 = vmatmul.mubr.msk.f32.vlgmr.msra.gmra.mrb[44].mxu0 %vm10198_vm10, %v10158_v40 }
 0x545   : > { %19947 = vmatmul.mubr.msk.f32.vlgmr.msra.gmra.mrb[44].mxu1 %vm10198_vm10, %v19944_v1  ;;  %19949 = vmatpush1.msk.msra.mxu0 %vm10202_vm9, %v23901_v46 }
 0x546   : > { %20973 = vrot.lane.b32.xlu1 %v20972_v42, %s21035_s21  ;;  %19951 = vmatprep.subr.msk.mxu1 %vm10202_vm9, %v11264_v37  ;;  %v23915_v34 = vpop.permute.xlu1 %13728  ;;  %v11256_v5 = vpop.permute.xlu0 %11255  ;;  %v17855_v42 = vld [vmem:[#allocation3 + $0x34] sm:$0xf]  ;;  %v24057_v37 = vsel %vm3132_vm3, %v23623_v11, %v23695_v60 }
 0x547   : > { %17530 = vrot.lane.b32.xlu0 %v23428_v23, %s21035_s21  ;;  %11421 = vmatprep.mubr.f32.mxu0 %v23340_v59  ;;  %v11266_v23 = vsel %vm2119_vm2, %v11256_v5, %v23697_v57  ;;  %v11604_v59 = vsel %vm2119_vm2, %v23558_v13, %v23621_v0  ;;  %v11265_v33 = vsel %vm2119_vm2, %v23690_v18, %v11256_v5  ;;  %v19957_v57 = vld [vmem:[%s25172_s8 + $0x4c] sm:$0xf] }
 0x548   : > { %19952 = vmatpush1.msk.msra.mxu1 %vm10202_vm9, %v23911_v56  ;;  %11492 = vmatprep.mubr.f32.mxu1 %v23922_v51 }
 0x549   : > { %19950 = vmatmul.mubr.msk.f32.vlgmr.msra.gmra.mrb[46].mxu0 %vm10198_vm10, %v19944_v1  ;;  %19953 = vmatmul.mubr.msk.f32.vlgmr.msra.gmra.mrb[46].mxu1 %vm10198_vm10, %v19944_v1 }
 0x54a   : > { %19958 = vmatprep.subr.msk.mxu1 %vm10202_vm9, %v11605_v20  ;;  %16465 = vrot.lane.b32.xlu1 %v23788_v63, %s21034_s17  ;;  %v11597_v55 = vpop.permute.xlu1 %11596  ;;  %v11593_v24 = vpop.permute.xlu0 %11592  ;;  %v20977_v20 = vpack.i.bf16 %v23664_v17, %v17855_v42 }
 0x54b   : > { %19959 = vmatpush1.msk.msra.mxu1 %vm10202_vm9, %v11604_v59  ;;  %17869 = vrot.lane.b32.xlu0 %v23586_v47, %s21035_s21  ;;  %v11609_v13 = vsel %vm2119_vm2, %v11597_v55, %v23681_v8  ;;  %v11607_v0 = vsel %vm2119_vm2, %v11593_v24, %v23714_v54  ;;  %v11606_v47 = vsel %vm2119_vm2, %v23705_v7, %v11593_v24  ;;  %v20940_v7 = vunpack.i.l.bf16 %v23521_v9 }
 0x54c   : > { %19954 = vmatprep.subr.msk.mxu0 %vm10202_vm9, %v11266_v23  ;;  %11563 = vmatprep.mubr.f32.mxu0 %v23922_v51  ;;  %v11608_v21 = vsel %vm2119_vm2, %v23714_v54, %v11597_v55  ;;  %v11925_v9 = vsel %vm2119_vm2, %v23516_v35, %v23537_v32  ;;  %v19943_v35 = vld [vmem:[%s25172_s8 + $0x4] sm:$0xf]  ;;  %v24073_v23 = vld [vmem:[#allocation3 + $0xc] sm:$0xff] }
 0x54d   : > { %19955 = vmatpush1.msk.msra.mxu0 %vm10202_vm9, %v11265_v33  ;;  %11695 = vmatprep.mubr.f32.mxu1 %v23922_v51  ;;  %v24084_v33 = vsel %vm3132_vm3, %v23588_v38, %v23623_v11  ;;  %v24102_v11 = vld [vmem:[#allocation3 + $0x14] sm:$0xff] }
 0x54e   : > { %19956 = vmatmul.mubr.msk.f32.vlgmr.msra.gmra.mrb[48].mxu0 %vm10198_vm10, %v19944_v1  ;;  %19960 = vmatmul.mubr.msk.f32.vlgmr.msra.gmra.mrb[44].mxu1 %vm10198_vm10, %v19957_v57  ;;  %v11601_v18 = vpop.permute.xlu1 %11600  ;;  %v23958_v44 = vpop.permute.xlu0 %14056 }
 0x54f   : > { %16469 = vrot.lane.b32.xlu1 %v23813_v25, %s21034_s17  ;;  %17867 = vrot.lane.b32.xlu0 %v23425_v45, %s21035_s21  ;;  %v11611_v45 = vsel %vm2119_vm2, %v11601_v18, %v20940_v7  ;;  %v11610_v40 = vsel %vm2119_vm2, %v23681_v8, %v11601_v18  ;;  %v24119_v18 = vcombine.high %v24102_v11, %v24102_v11 }
 0x550   : > { %19961 = vmatprep.subr.msk.mxu0 %vm10202_vm9, %v11607_v0  ;;  %19964 = vmatprep.subr.msk.mxu1 %vm10202_vm9, %v11609_v13  ;;  %v12672_v13 = vsel %vm3132_vm3, %v23630_v15, %v23751_v29 }
 0x551   : > { %19962 = vmatpush1.msk.msra.mxu0 %vm10202_vm9, %v11606_v47  ;;  %11766 = vmatprep.mubr.f32.mxu0 %v23922_v51  ;;  %v17506_v47 = vld [vmem:[#allocation3 + $0x24] sm:$0xf] }
 0x552   : > { %19965 = vmatpush1.msk.msra.mxu1 %vm10202_vm9, %v11608_v21  ;;  %11837 = vmatprep.mubr.f32.mxu1 %v23922_v51  ;;  %v23974_v54 = vpop.permute.xlu1 %14054  ;;  %v15393_v62 = vpop.permute.xlu0 %15392 }
 0x553   : > { %19963 = vmatmul.mubr.msk.f32.vlgmr.msra.gmra.mrb[46].mxu0 %vm10198_vm10, %v19957_v57  ;;  %19966 = vmatmul.mubr.msk.f32.vlgmr.msra.gmra.mrb[46].mxu1 %vm10198_vm10, %v19957_v57 }
 0x554   : > { %19970 = vmatprep.subr.msk.mxu1 %vm10202_vm9, %v11925_v9  ;;  %16806 = vrot.lane.b32.xlu1 %v23788_v63, %s21034_s17 }
 0x555   : > { %19971 = vmatpush1.msk.msra.mxu1 %vm10202_vm9, %v11924_v43  ;;  %17881 = vrot.lane.b32.xlu0 %v23345_v2, %s21035_s21  ;;  %v24017_v2 = vsel %vm3132_vm3, %v23615_v26, %v23588_v38 }
 0x556   : > { %19967 = vmatprep.subr.msk.mxu0 %vm10202_vm9, %v11611_v45  ;;  %19976 = vmatprep.subr.msk.mxu1 %vm10202_vm9, %v23878_v14  ;;  %v15391_v32 = vpop.permute.xlu1 %15390 }
 0x557   : > { %19968 = vmatpush1.msk.msra.mxu0 %vm10202_vm9, %v11610_v40  ;;  %11908 = vmatprep.mubr.f32.mxu0 %v23922_v51  ;;  %v24001_v8 = vsel %vm6061_vm5, %v15391_v32, %v15393_v62  ;;  %v24003_v27 = vpop.permute.xlu0 %15396  ;;  %v20946_v40 = vunpack.i.h.bf16 %v23530_v12 }
 0x558   : > { %12000 = vmatprep.mubr.f32.mxu1 %v23922_v51  ;;  %19969 = vmatmul.mubr.msk.f32.vlgmr.msra.gmra.mrb[48].mxu0 %vm10198_vm10, %v19957_v57  ;;  %v24098_v57 = vcombine.high %v24073_v23, %v24073_v23 }
 0x559   : > { %19972 = vmatmul.mubr.msk.f32.vlgmr.msra.gmra.mrb[44].mxu1 %vm10198_vm10, %v19943_v35  ;;  %19973 = vmatprep.subr.msk.mxu0 %vm10202_vm9, %v23842_v22  ;;  %v11926_v22 = vsel %vm2119_vm2, %v23889_v30, %v23688_v3  ;;  %v24044_v3 = vsel %vm3132_vm3, %v23543_v39, %v23615_v26 }
 0x55a   : > { %19977 = vmatpush1.msk.msra.mxu1 %vm10202_vm9, %v23901_v46  ;;  %19974 = vmatpush1.msk.msra.mxu0 %vm10202_vm9, %v23867_v53  ;;  %v24021_v14 = vpop.permute.xlu1 %15394  ;;  %v24059_v46 = vld [vmem:[#allocation3 + $0x24] sm:$0xff] }
 0x55b   : > { %19986 = vmatprep.subr.msk.mxu1 %vm10202_vm9, %v24017_v2  ;;  %17871 = vrot.lane.b32.xlu1 %v24019_v61, %s21035_s21  ;;  %v24032_v53 = vsel %vm6061_vm5, %v15393_v62, %v24021_v14  ;;  %v24034_v1 = vpop.permute.xlu0 %12318 }
 0x55c   : > { %18201 = vrot.lane.b32.xlu0 %v23672_v31, %s21035_s21  ;;  %19979 = vmatprep.subr.msk.mxu0 %vm10202_vm9, %v11926_v22  ;;  %v12331_v59 = vsel %vm3132_vm3, %v24034_v1, %v23721_v36  ;;  %v24094_v24 = vsel %vm3132_vm3, %v23695_v60, %v24034_v1 }
 0x55d   : > { %12071 = vmatprep.mubr.f32.mxu0 %v23922_v51  ;;  %12142 = vmatprep.mubr.f32.mxu1 %v23922_v51 }
 0x55e   : > { %19975 = vmatmul.mubr.msk.f32.vlgmr.msra.gmra.mrb[46].mxu0 %vm10198_vm10, %v19943_v35  ;;  %19978 = vmatmul.mubr.msk.f32.vlgmr.msra.gmra.mrb[46].mxu1 %vm10198_vm10, %v19943_v35  ;;  %v24048_v30 = vpop.permute.xlu1 %15388 }
 0x55f   : > { %19980 = vmatpush1.msk.msra.mxu0 %vm10202_vm9, %v23911_v56  ;;  %19987 = vmatpush1.msk.msra.mxu1 %vm10202_vm9, %v24044_v3  ;;  %v24063_v26 = vsel %vm6061_vm5, %v24048_v30, %v15391_v32  ;;  %v12323_v5 = vpop.permute.xlu0 %12322  ;;  %v19985_v56 = vld [vmem:[%s25172_s8 + $0x2c] sm:$0xf] }
 0x560   : > { %19989 = vmatprep.subr.msk.mxu0 %vm10202_vm9, %v24057_v37  ;;  %17875 = vrot.lane.b32.xlu1 %v24059_v46, %s21035_s21  ;;  %v12333_v0 = vsel %vm3132_vm3, %v12323_v5, %v23729_v6  ;;  %v12332_v7 = vsel %vm3132_vm3, %v23721_v36, %v12323_v5  ;;  %v19998_v6 = vld [vmem:[%s25172_s8 + $0x50] sm:$0xf]  ;;  %v25212_v32 = vld [vmem:[#allocation12_spill] sm:$0xff] }
 0x561   : > { %16810 = vrot.lane.b32.xlu0 %v23813_v25, %s21034_s17  ;;  %12213 = vmatprep.mubr.f32.mxu0 %v23922_v51  ;;  %v12991_v22 = vsel %vm3132_vm3, %v20946_v40, %v25212_v32  ;;  %v18577_v40 = vld [vmem:[#allocation3 + $0x2c] sm:$0xf] }
 0x562   : > { %12417 = vmatprep.mubr.f32.mxu1 %v23922_v51  ;;  %19981 = vmatmul.mubr.msk.f32.vlgmr.msra.gmra.mrb[48].mxu0 %vm10198_vm10, %v19943_v35  ;;  %v12664_v55 = vpop.permute.xlu1 %12663  ;;  %v20945_v35 = vunpack.i.l.bf16 %v23530_v12  ;;  %v12992_v12 = vsel %vm3132_vm3, %v25212_v32, %v23543_v39  ;;  %v19984_v39 = vld [vmem:[%s25172_s8 + $0x8] sm:$0xf]  ;;  %v13738_v32 = vsel %vm4145_vm4, %v23809_v10, %v23783_v19 }
 0x563   : > { %19988 = vmatmul.mubr.msk.f32.vlgmr.msra.gmra.mrb[48].mxu1 %vm10198_vm10, %v19985_v56  ;;  %19990 = vmatpush1.msk.msra.mxu0 %vm10202_vm9, %v24084_v33  ;;  %v12660_v38 = vpop.permute.xlu0 %12659  ;;  %v12676_v36 = vsel %vm3132_vm3, %v12664_v55, %v23703_v28  ;;  %v12675_v43 = vsel %vm3132_vm3, %v23767_v4, %v12664_v55  ;;  %v25214_v55 = vld [vmem:[#allocation15_spill] sm:$0xff] }
 0x564   : > { %20978 = vrot.lane.b32.xlu1 %v20977_v20, %s21035_s21  ;;  %19992 = vmatprep.subr.msk.mxu1 %vm10202_vm9, %v12331_v59  ;;  %v12674_v15 = vsel %vm3132_vm3, %v12660_v38, %v23767_v4  ;;  %v12673_v45 = vsel %vm3132_vm3, %v23751_v29, %v12660_v38  ;;  %v24213_v20 = vcombine.high %v24019_v61, %v24019_v61  ;;  %v25213_v59 = vld [vmem:[#allocation14_spill] sm:$0xff] }
 0x565   : > { %18591 = vrot.lane.b32.xlu0 %v24098_v57, %s21036_s22  ;;  %12488 = vmatprep.mubr.f32.mxu0 %v23922_v51  ;;  %v24222_v38 = vsel %vm4145_vm4, %v25214_v55, %v25213_v59 }
 0x566   : > { %19993 = vmatpush1.msk.msra.mxu1 %vm10202_vm9, %v24094_v24  ;;  %12559 = vmatprep.mubr.f32.mxu1 %v23922_v51  ;;  %v12668_v60 = vpop.permute.xlu1 %12667 }
 0x567   : > { %19991 = vmatmul.mubr.msk.f32.vlgmr.msra.gmra.mrb[50].mxu0 %vm10198_vm10, %v19985_v56  ;;  %19994 = vmatmul.mubr.msk.f32.vlgmr.msra.gmra.mrb[50].mxu1 %vm10198_vm10, %v19985_v56  ;;  %v24121_v21 = vpop.permute.xlu0 %15735  ;;  %v12677_v42 = vsel %vm3132_vm3, %v23703_v28, %v12668_v60 }
 0x568   : > { %19999 = vmatprep.subr.msk.mxu1 %vm10202_vm9, %v12672_v13  ;;  %18203 = vrot.lane.b32.xlu1 %v17506_v47, %s21035_s21  ;;  %v25216_v13 = vld [vmem:[#allocation13_spill] sm:$0xff]  ;;  %v25218_v47 = vld [vmem:[#allocation16_spill] sm:$0xff] }
 0x569   : > { %20000 = vmatpush1.msk.msra.mxu1 %vm10202_vm9, %v12671_v48  ;;  %18595 = vrot.lane.b32.xlu0 %v24119_v18, %s21036_s22 }
 0x56a   : > { %19995 = vmatprep.subr.msk.mxu0 %vm10202_vm9, %v12333_v0  ;;  %12630 = vmatprep.mubr.f32.mxu0 %v23922_v51  ;;  %v24138_v16 = vpop.permute.xlu1 %15400  ;;  %v24239_v0 = vsel %vm4145_vm4, %v25216_v13, %v25214_v55  ;;  %v20950_v55 = vunpack.i.l.bf16 %v23860_v52 }
 0x56b   : > { %19996 = vmatpush1.msk.msra.mxu0 %vm10202_vm9, %v12332_v7  ;;  %12762 = vmatprep.mubr.f32.mxu1 %v23922_v51  ;;  %v15734_v62 = vpop.permute.xlu0 %15733  ;;  %v20026_v7 = vld [vmem:[%s25172_s8 + $0x30] sm:$0xf] }
 0x56c   : > { %19997 = vmatmul.mubr.msk.f32.vlgmr.msra.gmra.mrb[52].mxu0 %vm10198_vm10, %v19985_v56  ;;  %20001 = vmatmul.mubr.msk.f32.vlgmr.msra.gmra.mrb[48].mxu1 %vm10198_vm10, %v19998_v6  ;;  %v24152_v9 = vsel %vm6061_vm5, %v15734_v62, %v24121_v21 }
 0x56d   : > { %18593 = vrot.lane.b32.xlu1 %v24102_v11, %s21036_s22  ;;  %17532 = vrot.lane.b32.xlu0 %v23788_v63, %s21035_s21  ;;  %v12678_v63 = vsel %vm3132_vm3, %v12668_v60, %v20945_v35  ;;  %v13739_v35 = vsel %vm4145_vm4, %v23783_v19, %v23887_v49 }
 0x56e   : > { %20002 = vmatprep.subr.msk.mxu0 %vm10202_vm9, %v12674_v15  ;;  %20005 = vmatprep.subr.msk.mxu1 %vm10202_vm9, %v12676_v36  ;;  %v24163_v29 = vpop.permute.xlu1 %20953  ;;  %v24272_v15 = vsel %vm4145_vm4, %v25213_v59, %v25218_v47 }
 0x56f   : > { %20003 = vmatpush1.msk.msra.mxu0 %vm10202_vm9, %v12673_v45  ;;  %12833 = vmatprep.mubr.f32.mxu0 %v23922_v51  ;;  %v24168_v4 = vpop.permute.xlu0 %15747 }
 0x570   : > { %20006 = vmatpush1.msk.msra.mxu1 %vm10202_vm9, %v12675_v43  ;;  %12904 = vmatprep.mubr.f32.mxu1 %v23922_v51 }
 0x571   : > { %20004 = vmatmul.mubr.msk.f32.vlgmr.msra.gmra.mrb[50].mxu0 %vm10198_vm10, %v19998_v6  ;;  %20007 = vmatmul.mubr.msk.f32.vlgmr.msra.gmra.mrb[50].mxu1 %vm10198_vm10, %v19998_v6 }
 0x572   : > { %20011 = vmatprep.subr.msk.mxu1 %vm10202_vm9, %v12992_v12  ;;  %18597 = vrot.lane.b32.xlu1 %v24019_v61, %s21036_s22  ;;  %v24185_v5 = vpop.permute.xlu1 %15737 }
 0x573   : > { %20012 = vmatpush1.msk.msra.mxu1 %vm10202_vm9, %v12991_v22  ;;  %17536 = vrot.lane.b32.xlu0 %v23813_v25, %s21035_s21  ;;  %v24190_v56 = vpop.permute.xlu0 %13385  ;;  %v24206_v25 = vcombine.high %v24059_v46, %v24059_v46 }
 0x574   : > { %20008 = vmatprep.subr.msk.mxu0 %vm10202_vm9, %v12678_v63  ;;  %20017 = vmatprep.subr.msk.mxu1 %vm10202_vm9, %v24057_v37 }
 0x575   : > { %20009 = vmatpush1.msk.msra.mxu0 %vm10202_vm9, %v12677_v42  ;;  %12975 = vmatprep.mubr.f32.mxu0 %v23922_v51 }
 0x576   : > { %13067 = vmatprep.mubr.f32.mxu1 %v23922_v51  ;;  %20010 = vmatmul.mubr.msk.f32.vlgmr.msra.gmra.mrb[52].mxu0 %vm10198_vm10, %v19998_v6  ;;  %v24202_v28 = vpop.permute.xlu1 %15741 }
 0x577   : > { %20013 = vmatmul.mubr.msk.f32.vlgmr.msra.gmra.mrb[48].mxu1 %vm10198_vm10, %v19984_v39  ;;  %20014 = vmatprep.subr.msk.mxu0 %vm10202_vm9, %v24017_v2  ;;  %v13390_v37 = vpop.permute.xlu0 %13389  ;;  %v25215_v2 = vld [vmem:[#allocation17_spill] sm:$0xff] }
 0x578   : > { %20018 = vmatpush1.msk.msra.mxu1 %vm10202_vm9, %v24084_v33  ;;  %20015 = vmatpush1.msk.msra.mxu0 %vm10202_vm9, %v24044_v3  ;;  %v12993_v60 = vsel %vm3132_vm3, %v24034_v1, %v25215_v2  ;;  %v25217_v1 = vld [vmem:[#allocation18_spill] sm:$0xff]  ;;  %v13400_v63 = vsel %vm4145_vm4, %v13390_v37, %v23858_v41  ;;  %v13399_v12 = vsel %vm4145_vm4, %v23832_v50, %v13390_v37  ;;  %v20039_v41 = vld [vmem:[%s25172_s8 + $0x54] sm:$0xf] }
 0x579   : > { %20027 = vmatprep.subr.msk.mxu1 %vm10202_vm9, %v24222_v38  ;;  %17877 = vrot.lane.b32.xlu1 %v24206_v25, %s21035_s21  ;;  %v24250_v48 = vsel %vm4145_vm4, %v25218_v47, %v25217_v1  ;;  %v24282_v62 = vsel %vm4145_vm4, %v25217_v1, %v24190_v56  ;;  %v14059_v2 = vsel %vm4145_vm4, %v23974_v54, %v25216_v13  ;;  %v18922_v13 = vld [vmem:[#allocation3 + $0x34] sm:$0xf] }
 0x57a   : > { %17873 = vrot.lane.b32.xlu0 %v24213_v20, %s21035_s21  ;;  %20020 = vmatprep.subr.msk.mxu0 %vm10202_vm9, %v12993_v60  ;;  %v13731_v3 = vpop.permute.xlu1 %13730  ;;  %v20982_v1 = vpack.i.bf16 %v18922_v13, %v23922_v51 }
 0x57b   : > { %13138 = vmatprep.mubr.f32.mxu0 %v23922_v51  ;;  %13209 = vmatprep.mubr.f32.mxu1 %v23922_v51  ;;  %v13727_v33 = vpop.permute.xlu0 %13726  ;;  %v13743_v19 = vsel %vm4145_vm4, %v13731_v3, %v23834_v58  ;;  %v13742_v37 = vsel %vm4145_vm4, %v23915_v34, %v13731_v3 }
 0x57c   : > { %20016 = vmatmul.mubr.msk.f32.vlgmr.msra.gmra.mrb[50].mxu0 %vm10198_vm10, %v19984_v39  ;;  %20019 = vmatmul.mubr.msk.f32.vlgmr.msra.gmra.mrb[50].mxu1 %vm10198_vm10, %v19984_v39  ;;  %v13741_v10 = vsel %vm4145_vm4, %v13727_v33, %v23915_v34 }
 0x57d   : > { %20021 = vmatpush1.msk.msra.mxu0 %vm10202_vm9, %v24094_v24  ;;  %20028 = vmatpush1.msk.msra.mxu1 %vm10202_vm9, %v24239_v0  ;;  %v13398_v24 = vsel %vm4145_vm4, %v24190_v56, %v23832_v50  ;;  %v13740_v50 = vsel %vm4145_vm4, %v23887_v49, %v13727_v33  ;;  %v20951_v49 = vunpack.i.h.bf16 %v23860_v52 }
 0x57e   : > { %20030 = vmatprep.subr.msk.mxu0 %vm10202_vm9, %v24250_v48  ;;  %18936 = vrot.lane.b32.xlu1 %v24119_v18, %s21036_s22  ;;  %v24259_v6 = vpop.permute.xlu1 %13734 }
 0x57f   : > { %18589 = vrot.lane.b32.xlu0 %v24073_v23, %s21036_s22  ;;  %13280 = vmatprep.mubr.f32.mxu0 %v23922_v51  ;;  %v24267_v36 = vpop.permute.xlu0 %16067  ;;  %v13745_v60 = vsel %vm4145_vm4, %v24259_v6, %v20950_v55  ;;  %v14058_v52 = vsel %vm4145_vm4, %v20951_v49, %v23974_v54  ;;  %v13744_v33 = vsel %vm4145_vm4, %v23834_v58, %v24259_v6  ;;  %v20025_v58 = vld [vmem:[%s25172_s8 + $0xc] sm:$0xf] }
 0x580   : > { %13484 = vmatprep.mubr.f32.mxu1 %v23922_v51  ;;  %20022 = vmatmul.mubr.msk.f32.vlgmr.msra.gmra.mrb[52].mxu0 %vm10198_vm10, %v19984_v39 }
 0x581   : > { %20029 = vmatmul.mubr.msk.f32.vlgmr.msra.gmra.mrb[52].mxu1 %vm10198_vm10, %v20026_v7  ;;  %20031 = vmatpush1.msk.msra.mxu0 %vm10202_vm9, %v24272_v15 }
 0x582   : > { %18934 = vrot.lane.b32.xlu1 %v24102_v11, %s21036_s22  ;;  %20033 = vmatprep.subr.msk.mxu1 %vm10202_vm9, %v13398_v24  ;;  %v24287_v45 = vpop.permute.xlu1 %20958 }
 0x583   : > { %18601 = vrot.lane.b32.xlu0 %v24059_v46, %s21036_s22  ;;  %13555 = vmatprep.mubr.f32.mxu0 %v23922_v51  ;;  %v24292_v43 = vpop.permute.xlu0 %16457 }
 0x584   : > { %20034 = vmatpush1.msk.msra.mxu1 %vm10202_vm9, %v24282_v62  ;;  %13626 = vmatprep.mubr.f32.mxu1 %v23922_v51 }
 0x585   : > { %20032 = vmatmul.mubr.msk.f32.vlgmr.msra.gmra.mrb[54].mxu0 %vm10198_vm10, %v20026_v7  ;;  %20035 = vmatmul.mubr.msk.f32.vlgmr.msra.gmra.mrb[54].mxu1 %vm10198_vm10, %v20026_v7 }
 0x586   : > { %20040 = vmatprep.subr.msk.mxu1 %vm10202_vm9, %v13739_v35  ;;  %18599 = vrot.lane.b32.xlu1 %v24213_v20, %s21036_s22  ;;  %v24312_v22 = vpop.permute.xlu1 %16069  ;;  %v19636_v35 = vld [vmem:[%s25173_s9] sm:$0xf] }
 0x587   : > { %20041 = vmatpush1.msk.msra.mxu1 %vm10202_vm9, %v13738_v32  ;;  %18605 = vrot.lane.b32.xlu0 %v18577_v40, %s21036_s22  ;;  %v24319_v42 = vpop.permute.xlu0 %16461 }
 0x588   : > { %20036 = vmatprep.subr.msk.mxu0 %vm10202_vm9, %v13400_v63  ;;  %13697 = vmatprep.mubr.f32.mxu0 %v23922_v51  ;;  %v20080_v63 = vld [vmem:[%s25172_s8 + $0x58] sm:$0xf] }
 0x589   : > { %20037 = vmatpush1.msk.msra.mxu0 %vm10202_vm9, %v13399_v12  ;;  %13829 = vmatprep.mubr.f32.mxu1 %v23922_v51 }
 0x58a   : > { %20038 = vmatmul.mubr.msk.f32.vlgmr.msra.gmra.mrb[56].mxu0 %vm10198_vm10, %v20026_v7  ;;  %20042 = vmatmul.mubr.msk.f32.vlgmr.msra.gmra.mrb[52].mxu1 %vm10198_vm10, %v20039_v41  ;;  %v24333_v39 = vpop.permute.xlu1 %16459  ;;  %v14060_v7 = vsel %vm4145_vm4, %v24190_v56, %v23958_v44  ;;  %v20067_v56 = vld [vmem:[%s25172_s8 + $0x34] sm:$0xf] }
 0x58b   : > { %18603 = vrot.lane.b32.xlu1 %v24206_v25, %s21036_s22  ;;  %18938 = vrot.lane.b32.xlu0 %v24019_v61, %s21036_s22  ;;  %v24341_v59 = vpop.permute.xlu0 %16455 }
 0x58c   : > { %20043 = vmatprep.subr.msk.mxu0 %vm10202_vm9, %v13741_v10  ;;  %20046 = vmatprep.subr.msk.mxu1 %vm10202_vm9, %v13743_v19 }
 0x58d   : > { %20044 = vmatpush1.msk.msra.mxu0 %vm10202_vm9, %v13740_v50  ;;  %13900 = vmatprep.mubr.f32.mxu0 %v23922_v51 }
 0x58e   : > { %20047 = vmatpush1.msk.msra.mxu1 %vm10202_vm9, %v13742_v37  ;;  %13971 = vmatprep.mubr.f32.mxu1 %v23922_v51  ;;  %v24351_v34 = vpop.permute.xlu1 %16463 }
 0x58f   : > { %20045 = vmatmul.mubr.msk.f32.vlgmr.msra.gmra.mrb[54].mxu0 %vm10198_vm10, %v20039_v41  ;;  %20048 = vmatmul.mubr.msk.f32.vlgmr.msra.gmra.mrb[54].mxu1 %vm10198_vm10, %v20039_v41  ;;  %v24360_v3 = vpop.permute.xlu0 %16467 }
 0x590   : > { %20052 = vmatprep.subr.msk.mxu1 %vm10202_vm9, %v14059_v2  ;;  %18940 = vrot.lane.b32.xlu1 %v24213_v20, %s21036_s22 }
 0x591   : > { %20053 = vmatpush1.msk.msra.mxu1 %vm10202_vm9, %v14058_v52  ;;  %18942 = vrot.lane.b32.xlu0 %v24059_v46, %s21036_s22 }
 0x592   : > { %20049 = vmatprep.subr.msk.mxu0 %vm10202_vm9, %v13745_v60  ;;  %20058 = vmatprep.subr.msk.mxu1 %vm10202_vm9, %v24250_v48  ;;  %v24379_v54 = vpop.permute.xlu1 %16802  ;;  %v20956_v60 = vunpack.i.h.bf16 %v24163_v29 }
 0x593   : > { %20050 = vmatpush1.msk.msra.mxu0 %vm10202_vm9, %v13744_v33  ;;  %14042 = vmatprep.mubr.f32.mxu0 %v23922_v51  ;;  %v24384_v47 = vpop.permute.xlu0 %20963  ;;  %v20960_v33 = vunpack.i.l.bf16 %v24287_v45 }
 0x594   : > { %14134 = vmatprep.mubr.f32.mxu1 %v23922_v51  ;;  %20051 = vmatmul.mubr.msk.f32.vlgmr.msra.gmra.mrb[56].mxu0 %vm10198_vm10, %v20039_v41 }
 0x595   : > { %20054 = vmatmul.mubr.msk.f32.vlgmr.msra.gmra.mrb[52].mxu1 %vm10198_vm10, %v20025_v58  ;;  %20055 = vmatprep.subr.msk.mxu0 %vm10202_vm9, %v24222_v38  ;;  %v18933_v38 = vcombine.high %v23922_v51, %v23922_v51 }
 0x596   : > { %20059 = vmatpush1.msk.msra.mxu1 %vm10202_vm9, %v24272_v15  ;;  %20056 = vmatpush1.msk.msra.mxu0 %vm10202_vm9, %v24239_v0  ;;  %v24395_v48 = vpop.permute.xlu1 %16800 }
 0x597   : > { %20068 = vmatprep.subr.msk.mxu1 %vm10202_vm9, %v24098_v57  ;;  %20983 = vrot.lane.b32.xlu1 %v20982_v1, %s21036_s22  ;;  %v24403_v6 = vpop.permute.xlu0 %16804 }
 0x598   : > { %18944 = vrot.lane.b32.xlu0 %v24206_v25, %s21036_s22  ;;  %20061 = vmatprep.subr.msk.mxu0 %vm10202_vm9, %v14060_v7 }
 0x599   : > { %14205 = vmatprep.mubr.f32.mxu0 %v23922_v51  ;;  %14276 = vmatprep.mubr.f32.mxu1 %v23922_v51 }
 0x59a   : > { %20057 = vmatmul.mubr.msk.f32.vlgmr.msra.gmra.mrb[54].mxu0 %vm10198_vm10, %v20025_v58  ;;  %20060 = vmatmul.mubr.msk.f32.vlgmr.msra.gmra.mrb[54].mxu1 %vm10198_vm10, %v20025_v58  ;;  %v24414_v0 = vpop.permute.xlu1 %16814 }
 0x59b   : > { %20062 = vmatpush1.msk.msra.mxu0 %vm10202_vm9, %v24282_v62  ;;  %20069 = vmatpush1.msk.msra.mxu1 %vm10202_vm9, %v24073_v23  ;;  %v24420_v44 = vpop.permute.xlu0 %16808 }
 0x59c   : > { %20071 = vmatprep.subr.msk.mxu0 %vm10202_vm9, %v24119_v18  ;;  %20074 = vmatprep.subr.msk.mxu1 %vm10202_vm9, %v24213_v20 }
 0x59d   : > { %19268 = vrot.lane.b32.xlu1 %v23672_v31, %s21036_s22  ;;  %18948 = vrot.lane.b32.xlu0 %v18933_v38, %s21036_s22  ;;  %v18573_v31 = vld [vmem:[#allocation3 + $0x24] sm:$0xf] }
 0x59e   : > { %14347 = vmatprep.mubr.f32.mxu0 %v23922_v51  ;;  %14522 = vmatprep.mubr.f32.mxu1 %v23922_v51  ;;  %v24434_v24 = vpop.permute.xlu1 %17134 }
 0x59f   : > { %20063 = vmatmul.mubr.msk.f32.vlgmr.msra.gmra.mrb[56].mxu0 %vm10198_vm10, %v20025_v58  ;;  %20070 = vmatmul.mubr.msk.f32.vlgmr.msra.gmra.mrb[56].mxu1 %vm10198_vm10, %v20067_v56  ;;  %v24438_v15 = vpop.permute.xlu0 %20968  ;;  %v20119_v58 = vld [vmem:[%s25172_s8 + $0x5c] sm:$0xf] }
 0x5a0   : > { %20072 = vmatpush1.msk.msra.mxu0 %vm10202_vm9, %v24102_v11  ;;  %20075 = vmatpush1.msk.msra.mxu1 %vm10202_vm9, %v24019_v61 }
 0x5a1   : > { %20077 = vmatprep.subr.msk.mxu0 %vm10202_vm9, %v24206_v25  ;;  %20081 = vmatprep.subr.msk.mxu1 %vm10202_vm9, %v24119_v18 }
 0x5a2   : > { %19270 = vrot.lane.b32.xlu1 %v18573_v31, %s21036_s22  ;;  %19266 = vrot.lane.b32.xlu0 %v23664_v17, %s21036_s22  ;;  %v24451_v62 = vpop.permute.xlu1 %17524  ;;  %v14422_v17 = vld [vmem:[#allocation3 + $0x4] sm:$0xff]  ;;  %v24641_v31 = vsel %vm7094_vm6, %v24292_v43, %v24333_v39 }
 0x5a3   : > { %14593 = vmatprep.mubr.f32.mxu0 %v23922_v51  ;;  %14664 = vmatprep.mubr.f32.mxu1 %v23922_v51  ;;  %v24455_v40 = vpop.permute.xlu0 %17136  ;;  %v15060_v41 = vcombine.high %v14422_v17, %v14422_v17 }
 0x5a4   : > { %20073 = vmatmul.mubr.msk.f32.vlgmr.msra.gmra.mrb[58].mxu0 %vm10198_vm10, %v20067_v56  ;;  %20076 = vmatmul.mubr.msk.f32.vlgmr.msra.gmra.mrb[58].mxu1 %vm10198_vm10, %v20067_v56 }
 0x5a5   : > { %20078 = vmatpush1.msk.msra.mxu0 %vm10202_vm9, %v24059_v46  ;;  %20082 = vmatpush1.msk.msra.mxu1 %vm10202_vm9, %v24102_v11 }
 0x5a6   : > { %20084 = vmatprep.subr.msk.mxu0 %vm10202_vm9, %v24213_v20  ;;  %20087 = vmatprep.subr.msk.mxu1 %vm10202_vm9, %v24206_v25  ;;  %v24473_v32 = vpop.permute.xlu1 %17528 }
 0x5a7   : > { %19639 = vperm.xlu0 %20836, %v19636_v35   ;;  %14735 = vmatprep.mubr.f32.mxu0 %v23922_v51  ;;  %v24476_v12 = vpop.permute.xlu0 %15398  ;;  %v20965_v35 = vunpack.i.l.bf16 %v24384_v47 }
 0x5a8   : > { %14839 = vmatprep.mubr.f32.mxu1 %v23922_v51  ;;  %20079 = vmatmul.mubr.msk.f32.vlgmr.msra.gmra.mrb[60].mxu0 %vm10198_vm10, %v20067_v56 }
 0x5a9   : > { %20083 = vmatmul.mubr.msk.f32.vlgmr.msra.gmra.mrb[56].mxu1 %vm10198_vm10, %v20080_v63  ;;  %20085 = vmatpush1.msk.msra.mxu0 %vm10202_vm9, %v24019_v61 }
 0x5aa   : > { %20088 = vmatpush1.msk.msra.mxu1 %vm10202_vm9, %v24059_v46  ;;  %14910 = vmatprep.mubr.f32.mxu0 %v23922_v51  ;;  %v24486_v25 = vpop.permute.xlu1 %17522  ;;  %v20066_v46 = vld [vmem:[%s25172_s8 + $0x10] sm:$0xf] }
 0x5ab   : > { %14981 = vmatprep.mubr.f32.mxu1 %v23922_v51  ;;  %20090 = vmatprep.subr.msk.mxu0 %vm10202_vm9, %v18933_v38  ;;  %v15403_v19 = vpop.permute.xlu0 %15402  ;;  %v16072_v38 = vsel %vm6061_vm5, %v24267_v36, %v24048_v30  ;;  %v20105_v30 = vld [vmem:[%s25172_s8 + $0x14] sm:$0xf] }
 0x5ac   : > { %20093 = vmatprep.subr.msk.mxu1 %vm10202_vm9, %v15060_v41  ;;  %20086 = vmatmul.mubr.msk.f32.vlgmr.msra.gmra.mrb[58].mxu0 %vm10198_vm10, %v20080_v63  ;;  %v15412_v2 = vsel %vm6061_vm5, %v24138_v16, %v15403_v19  ;;  %v24686_v41 = vsel %vm7094_vm6, %v24333_v39, %v24319_v42  ;;  %v20966_v39 = vunpack.i.h.bf16 %v24384_v47  ;;  %v16818_v47 = vsel %vm7094_vm6, %v24395_v48, %v24379_v54 }
 0x5ad   : > { %20089 = vmatmul.mubr.msk.f32.vlgmr.msra.gmra.mrb[58].mxu1 %vm10198_vm10, %v20080_v63  ;;  %20091 = vmatpush1.msk.msra.mxu0 %vm10202_vm9, %v23922_v51 }
 0x5ae   : > { %20094 = vmatpush1.msk.msra.mxu1 %vm10202_vm9, %v14422_v17  ;;  %20096 = vmatprep.subr.msk.mxu0 %vm10202_vm9, %v24098_v57 }
 0x5af   : > { %20099 = vmatprep.subr.msk.mxu1 %vm10202_vm9, %v24119_v18  ;;  %15052 = vmatprep.mubr.f32.mxu0 %v23922_v51  ;;  %v15744_v10 = vpop.permute.xlu1 %15743 }
 0x5b0   : > { %15132 = vmatprep.mubr.f32.mxu1 %v23922_v51  ;;  %20092 = vmatmul.mubr.msk.f32.vlgmr.msra.gmra.mrb[60].mxu0 %vm10198_vm10, %v20080_v63  ;;  %v15740_v50 = vpop.permute.xlu0 %15739  ;;  %v15755_v1 = vsel %vm6061_vm5, %v24202_v28, %v15744_v10 }
 0x5b1   : > { %20095 = vmatmul.mubr.msk.f32.vlgmr.msra.gmra.mrb[56].mxu1 %vm10198_vm10, %v20066_v46  ;;  %20097 = vmatpush1.msk.msra.mxu0 %vm10202_vm9, %v24073_v23  ;;  %v24523_v23 = vsel %vm6061_vm5, %v24021_v14, %v24003_v27  ;;  %v20106_v14 = vld [vmem:[%s25172_s8 + $0x38] sm:$0xf]  ;;  %v15753_v13 = vsel %vm6061_vm5, %v24185_v5, %v15740_v50 }
 0x5b2   : > { %20100 = vmatpush1.msk.msra.mxu1 %vm10202_vm9, %v24102_v11  ;;  %20102 = vmatprep.subr.msk.mxu0 %vm10202_vm9, %v24213_v20  ;;  %v15411_v11 = vsel %vm6061_vm5, %v24476_v12, %v24138_v16  ;;  %v20955_v20 = vunpack.i.l.bf16 %v24163_v29  ;;  %v15756_v16 = vsel %vm6061_vm5, %v15744_v10, %v20956_v60 }
 0x5b3   : > { %20107 = vmatprep.subr.msk.mxu1 %vm10202_vm9, %v24001_v8  ;;  %15203 = vmatprep.mubr.f32.mxu0 %v23922_v51 }
 0x5b4   : > { %15274 = vmatprep.mubr.f32.mxu1 %v23922_v51  ;;  %20098 = vmatmul.mubr.msk.f32.vlgmr.msra.gmra.mrb[58].mxu0 %vm10198_vm10, %v20066_v46  ;;  %v24518_v57 = vpop.permute.xlu1 %17534  ;;  %v15413_v55 = vsel %vm6061_vm5, %v15403_v19, %v20955_v20 }
 0x5b5   : > { %20101 = vmatmul.mubr.msk.f32.vlgmr.msra.gmra.mrb[58].mxu1 %vm10198_vm10, %v20066_v46  ;;  %20103 = vmatpush1.msk.msra.mxu0 %vm10202_vm9, %v24019_v61  ;;  %v24531_v18 = vpop.permute.xlu0 %17526  ;;  %v24546_v61 = vsel %vm6061_vm5, %v24003_v27, %v24476_v12  ;;  %v15752_v27 = vsel %vm6061_vm5, %v24121_v21, %v24185_v5  ;;  %v15754_v21 = vsel %vm6061_vm5, %v15740_v50, %v24202_v28 }
 0x5b6   : > { %20108 = vmatpush1.msk.msra.mxu1 %vm10202_vm9, %v24063_v26  ;;  %20110 = vmatprep.subr.msk.mxu0 %vm10202_vm9, %v24523_v23  ;;  %v15758_v28 = vsel %vm6061_vm5, %v24168_v4, %v20960_v33 }
 0x5b7   : > { %15345 = vmatprep.mubr.f32.mxu0 %v23922_v51  ;;  %15497 = vmatprep.mubr.f32.mxu1 %v23922_v51 }
 0x5b8   : > { %20104 = vmatmul.mubr.msk.f32.vlgmr.msra.gmra.mrb[60].mxu0 %vm10198_vm10, %v20066_v46  ;;  %20113 = vmatprep.subr.msk.mxu1 %vm10202_vm9, %v15411_v11  ;;  %v24550_v37 = vpop.permute.xlu1 %20973  ;;  %v16819_v46 = vsel %vm7094_vm6, %v24379_v54, %v24403_v6  ;;  %v20160_v54 = vld [vmem:[%s25172_s8 + $0x60] sm:$0xf] }
 0x5b9   : > { %20111 = vmatpush1.msk.msra.mxu0 %vm10202_vm9, %v24032_v53  ;;  %20109 = vmatmul.mubr.msk.f32.vlgmr.msra.gmra.mrb[60].mxu1 %vm10198_vm10, %v20106_v14  ;;  %v24556_v49 = vpop.permute.xlu0 %17530 }
 0x5ba   : > { %15568 = vmatprep.mubr.f32.mxu0 %v23922_v51  ;;  %20114 = vmatpush1.msk.msra.mxu1 %vm10202_vm9, %v24546_v61 }
 0x5bb   : > { %15639 = vmatprep.mubr.f32.mxu1 %v23922_v51  ;;  %20120 = vmatprep.subr.msk.mxu1 %vm10202_vm9, %v15752_v27 }
 0x5bc   : > { %20112 = vmatmul.mubr.msk.f32.vlgmr.msra.gmra.mrb[62].mxu0 %vm10198_vm10, %v20106_v14  ;;  %20116 = vmatprep.subr.msk.mxu0 %vm10202_vm9, %v15413_v55  ;;  %v24573_v52 = vpop.permute.xlu1 %16465  ;;  %v20971_v55 = vunpack.i.h.bf16 %v24438_v15 }
 0x5bd   : > { %20115 = vmatmul.mubr.msk.f32.vlgmr.msra.gmra.mrb[62].mxu1 %vm10198_vm10, %v20106_v14  ;;  %20117 = vmatpush1.msk.msra.mxu0 %vm10202_vm9, %v15412_v2  ;;  %v24578_v29 = vpop.permute.xlu0 %17869  ;;  %v24693_v19 = vsel %vm7094_vm6, %v24351_v34, %v24573_v52  ;;  %v16824_v2 = vsel %vm7094_vm6, %v20966_v39, %v24414_v0 }
 0x5be   : > { %20121 = vmatpush1.msk.msra.mxu1 %vm10202_vm9, %v24152_v9  ;;  %15710 = vmatprep.mubr.f32.mxu0 %v23922_v51  ;;  %v20961_v9 = vunpack.i.h.bf16 %v24287_v45  ;;  %v15757_v45 = vsel %vm6061_vm5, %v20956_v60, %v24168_v4 }
 0x5bf   : > { %15842 = vmatprep.mubr.f32.mxu1 %v23922_v51  ;;  %20123 = vmatprep.subr.msk.mxu0 %vm10202_vm9, %v15754_v21  ;;  %v24792_v21 = vsel %vm8107_vm7, %v24451_v62, %v24531_v18 }
 0x5c0   : > { %20118 = vmatmul.mubr.msk.f32.vlgmr.msra.gmra.mrb[64].mxu0 %vm10198_vm10, %v20106_v14  ;;  %20126 = vmatprep.subr.msk.mxu1 %vm10202_vm9, %v15756_v16  ;;  %v16071_v56 = vsel %vm6061_vm5, %v20961_v9, %v24267_v36  ;;  %v20188_v9 = vld [vmem:[%s25172_s8 + $0x40] sm:$0xf] }
 0x5c1   : > { %20122 = vmatmul.mubr.msk.f32.vlgmr.msra.gmra.mrb[60].mxu1 %vm10198_vm10, %v20119_v58  ;;  %20124 = vmatpush1.msk.msra.mxu0 %vm10202_vm9, %v15753_v13  ;;  %v24598_v5 = vpop.permute.xlu1 %16469  ;;  %v24604_v7 = vpop.permute.xlu0 %17867 }
 0x5c2   : > { %15913 = vmatprep.mubr.f32.mxu0 %v23922_v51  ;;  %20127 = vmatpush1.msk.msra.mxu1 %vm10202_vm9, %v15755_v1  ;;  %v16479_v50 = vsel %vm7094_vm6, %v24360_v3, %v24598_v5 }
 0x5c3   : > { %15984 = vmatprep.mubr.f32.mxu1 %v23922_v51  ;;  %20129 = vmatprep.subr.msk.mxu0 %vm10202_vm9, %v15758_v28 }
 0x5c4   : > { %20125 = vmatmul.mubr.msk.f32.vlgmr.msra.gmra.mrb[62].mxu0 %vm10198_vm10, %v20119_v58  ;;  %20132 = vmatprep.subr.msk.mxu1 %vm10202_vm9, %v16072_v38 }
 0x5c5   : > { %20128 = vmatmul.mubr.msk.f32.vlgmr.msra.gmra.mrb[62].mxu1 %vm10198_vm10, %v20119_v58  ;;  %20130 = vmatpush1.msk.msra.mxu0 %vm10202_vm9, %v15757_v45 }
 0x5c6   : > { %20133 = vmatpush1.msk.msra.mxu1 %vm10202_vm9, %v16071_v56  ;;  %20135 = vmatprep.subr.msk.mxu0 %vm10202_vm9, %v24001_v8  ;;  %v16807_v4 = vpop.permute.xlu1 %16806  ;;  %v16073_v8 = vsel %vm6061_vm5, %v24476_v12, %v24312_v22  ;;  %v24657_v22 = vsel %vm7094_vm6, %v24341_v59, %v24292_v43  ;;  %v20147_v43 = vld [vmem:[%s25172_s8 + $0x3c] sm:$0xf]  ;;  %v16480_v12 = vsel %vm7094_vm6, %v24598_v5, %v20965_v35 }
 0x5c7   : > { %20138 = vmatprep.subr.msk.mxu1 %vm10202_vm9, %v24523_v23  ;;  %16055 = vmatprep.mubr.f32.mxu0 %v23922_v51  ;;  %v24630_v36 = vpop.permute.xlu0 %17881  ;;  %v20970_v23 = vunpack.i.l.bf16 %v24438_v15  ;;  %v16820_v14 = vsel %vm7094_vm6, %v24403_v6, %v16807_v4  ;;  %v17885_v56 = vsel %vm8107_vm7, %v24604_v7, %v24578_v29 }
 0x5c8   : > { %16147 = vmatprep.mubr.f32.mxu1 %v23922_v51  ;;  %20131 = vmatmul.mubr.msk.f32.vlgmr.msra.gmra.mrb[64].mxu0 %vm10198_vm10, %v20119_v58  ;;  %v24817_v58 = vsel %vm8107_vm7, %v24486_v25, %v24451_v62  ;;  %v24832_v62 = vsel %vm8107_vm7, %v24531_v18, %v24473_v32 }
 0x5c9   : > { %20134 = vmatmul.mubr.msk.f32.vlgmr.msra.gmra.mrb[60].mxu1 %vm10198_vm10, %v20105_v30  ;;  %20136 = vmatpush1.msk.msra.mxu0 %vm10202_vm9, %v24063_v26  ;;  %v16478_v26 = vsel %vm7094_vm6, %v24573_v52, %v24360_v3 }
 0x5ca   : > { %20139 = vmatpush1.msk.msra.mxu1 %vm10202_vm9, %v24032_v53  ;;  %20141 = vmatprep.subr.msk.mxu0 %vm10202_vm9, %v16073_v8  ;;  %v24662_v53 = vsel %vm7094_vm6, %v24319_v42, %v24351_v34  ;;  %v16821_v34 = vsel %vm7094_vm6, %v16807_v4, %v24420_v44  ;;  %v20201_v4 = vld [vmem:[%s25172_s8 + $0x64] sm:$0xf] }
 0x5cb   : > { %20148 = vmatprep.subr.msk.mxu1 %vm10202_vm9, %v24641_v31  ;;  %16218 = vmatprep.mubr.f32.mxu0 %v23922_v51 }
 0x5cc   : > { %16289 = vmatprep.mubr.f32.mxu1 %v23922_v51  ;;  %20137 = vmatmul.mubr.msk.f32.vlgmr.msra.gmra.mrb[62].mxu0 %vm10198_vm10, %v20105_v30 }
 0x5cd   : > { %20140 = vmatmul.mubr.msk.f32.vlgmr.msra.gmra.mrb[62].mxu1 %vm10198_vm10, %v20105_v30  ;;  %20142 = vmatpush1.msk.msra.mxu0 %vm10202_vm9, %v24546_v61  ;;  %v24668_v17 = vpop.permute.xlu1 %17871  ;;  %v16825_v61 = vsel %vm7094_vm6, %v24414_v0, %v20970_v23  ;;  %v20146_v0 = vld [vmem:[%s25172_s8 + $0x18] sm:$0xf] }
 0x5ce   : > { %20149 = vmatpush1.msk.msra.mxu1 %vm10202_vm9, %v24657_v22  ;;  %20151 = vmatprep.subr.msk.mxu0 %vm10202_vm9, %v24662_v53  ;;  %v24677_v63 = vpop.permute.xlu0 %18201  ;;  %v17886_v18 = vsel %vm8107_vm7, %v24578_v29, %v24668_v17 }
 0x5cf   : > { %20154 = vmatprep.subr.msk.mxu1 %vm10202_vm9, %v16478_v26  ;;  %16360 = vmatprep.mubr.f32.mxu0 %v23922_v51 }
 0x5d0   : > { %16564 = vmatprep.mubr.f32.mxu1 %v23922_v51  ;;  %20143 = vmatmul.mubr.msk.f32.vlgmr.msra.gmra.mrb[64].mxu0 %vm10198_vm10, %v20105_v30 }
 0x5d1   : > { %20150 = vmatmul.mubr.msk.f32.vlgmr.msra.gmra.mrb[64].mxu1 %vm10198_vm10, %v20147_v43  ;;  %20152 = vmatpush1.msk.msra.mxu0 %vm10202_vm9, %v24686_v41 }
 0x5d2   : > { %20155 = vmatpush1.msk.msra.mxu1 %vm10202_vm9, %v24693_v19  ;;  %20157 = vmatprep.subr.msk.mxu0 %vm10202_vm9, %v16480_v12  ;;  %v24704_v42 = vpop.permute.xlu1 %17875 }
 0x5d3   : > { %20161 = vmatprep.subr.msk.mxu1 %vm10202_vm9, %v16819_v46  ;;  %16635 = vmatprep.mubr.f32.mxu0 %v23922_v51  ;;  %v16811_v10 = vpop.permute.xlu0 %16810 }
 0x5d4   : > { %16706 = vmatprep.mubr.f32.mxu1 %v23922_v51  ;;  %20153 = vmatmul.mubr.msk.f32.vlgmr.msra.gmra.mrb[66].mxu0 %vm10198_vm10, %v20147_v43  ;;  %v16823_v11 = vsel %vm7094_vm6, %v16811_v10, %v20966_v39  ;;  %v16822_v20 = vsel %vm7094_vm6, %v24420_v44, %v16811_v10  ;;  %v17139_v44 = vsel %vm7094_vm6, %v24434_v24, %v24341_v59 }
 0x5d5   : > { %20156 = vmatmul.mubr.msk.f32.vlgmr.msra.gmra.mrb[66].mxu1 %vm10198_vm10, %v20147_v43  ;;  %20158 = vmatpush1.msk.msra.mxu0 %vm10202_vm9, %v16479_v50  ;;  %v17138_v59 = vsel %vm7094_vm6, %v20971_v55, %v24434_v24  ;;  %v24784_v24 = vld [vmem:[#allocation2] sm:$0xff] }
 0x5d6   : > { %20162 = vmatpush1.msk.msra.mxu1 %vm10202_vm9, %v16818_v47  ;;  %20164 = vmatprep.subr.msk.mxu0 %vm10202_vm9, %v16821_v34  ;;  %v24725_v3 = vpop.permute.xlu1 %20978  ;;  %v20229_v50 = vld [vmem:[%s25172_s8 + $0x44] sm:$0xf] }
 0x5d7   : > { %16777 = vmatprep.mubr.f32.mxu0 %v23922_v51  ;;  %16909 = vmatprep.mubr.f32.mxu1 %v23922_v51  ;;  %v24732_v48 = vpop.permute.xlu0 %18591  ;;  %v20980_v38 = vunpack.i.l.bf16 %v24725_v3 }
 0x5d8   : > { %20159 = vmatmul.mubr.msk.f32.vlgmr.msra.gmra.mrb[68].mxu0 %vm10198_vm10, %v20147_v43  ;;  %20167 = vmatprep.subr.msk.mxu1 %vm10202_vm9, %v16823_v11 }
 0x5d9   : > { %20165 = vmatpush1.msk.msra.mxu0 %vm10202_vm9, %v16820_v14  ;;  %16980 = vmatprep.mubr.f32.mxu0 %v23922_v51  ;;  %v17892_v8 = vsel %vm8107_vm7, %v24630_v36, %v20980_v38  ;;  %v11162_v38 = vld [vmem:[%s25167_s3] ss:$8 sm:$0xf0] }
 0x5da   : > { %20170 = vmatprep.subr.msk.mxu0 %vm10202_vm9, %v16825_v61  ;;  %20163 = vmatmul.mubr.msk.f32.vlgmr.msra.gmra.mrb[64].mxu1 %vm10198_vm10, %v20160_v54  ;;  %v24747_v6 = vpop.permute.xlu1 %18203  ;;  %v20242_v61 = vld [vmem:[%s25172_s8 + $0x68] sm:$0xf] }
 0x5db   : > { %20168 = vmatpush1.msk.msra.mxu1 %vm10202_vm9, %v16822_v20  ;;  %17051 = vmatprep.mubr.f32.mxu1 %v23922_v51  ;;  %v24754_v27 = vpop.permute.xlu0 %18595 }
 0x5dc   : > { %20166 = vmatmul.mubr.msk.f32.vlgmr.msra.gmra.mrb[66].mxu0 %vm10198_vm10, %v20160_v54  ;;  %20173 = vmatprep.subr.msk.mxu1 %vm10202_vm9, %v17139_v44 }
 0x5dd   : > { %20171 = vmatpush1.msk.msra.mxu0 %vm10202_vm9, %v16824_v2  ;;  %17122 = vmatprep.mubr.f32.mxu0 %v23922_v51 }
 0x5de   : > { %20176 = vmatprep.subr.msk.mxu0 %vm10202_vm9, %v24641_v31  ;;  %20169 = vmatmul.mubr.msk.f32.vlgmr.msra.gmra.mrb[66].mxu1 %vm10198_vm10, %v20160_v54  ;;  %v20981_v31 = vunpack.i.h.bf16 %v24725_v3 }
 0x5df   : > { %20174 = vmatpush1.msk.msra.mxu1 %vm10202_vm9, %v17138_v59  ;;  %17214 = vmatprep.mubr.f32.mxu1 %v23922_v51  ;;  %v24772_v15 = vpop.permute.xlu1 %18593  ;;  %v24774_v60 = vpop.permute.xlu0 %17532  ;;  %v17140_v51 = vsel %vm7094_vm6, %v24573_v52, %v24455_v40  ;;  %v20975_v40 = vunpack.i.l.bf16 %v24550_v37  ;;  %v24804_v52 = vsel %vm8107_vm7, %v24473_v32, %v24556_v49  ;;  %v20976_v32 = vunpack.i.h.bf16 %v24550_v37 }
 0x5e0   : > { %20172 = vmatmul.mubr.msk.f32.vlgmr.msra.gmra.mrb[68].mxu0 %vm10198_vm10, %v20160_v54  ;;  %20179 = vmatprep.subr.msk.mxu1 %vm10202_vm9, %v24662_v53  ;;  %v17545_v16 = vsel %vm8107_vm7, %v24774_v60, %v24518_v57  ;;  %v24842_v5 = vsel %vm8107_vm7, %v24556_v49, %v24774_v60  ;;  %v24963_v47 = vsel %vm9120_vm8, %v24772_v15, %v24754_v27 }
 0x5e1   : > { %20177 = vmatpush1.msk.msra.mxu0 %vm10202_vm9, %v24657_v22  ;;  %17285 = vmatprep.mubr.f32.mxu0 %v24784_v24  ;;  %v18206_v22 = vsel %vm8107_vm7, %v24677_v63, %v24486_v25  ;;  %v17891_v53 = vsel %vm8107_vm7, %v20976_v32, %v24630_v36  ;;  %v18205_v25 = vsel %vm8107_vm7, %v20981_v31, %v24677_v63  ;;  %v20187_v36 = vld [vmem:[%s25172_s8 + $0x1c] sm:$0xf] }
 0x5e2   : > { %20182 = vmatprep.subr.msk.mxu0 %vm10202_vm9, %v17140_v51  ;;  %20175 = vmatmul.mubr.msk.f32.vlgmr.msra.gmra.mrb[64].mxu1 %vm10198_vm10, %v20146_v0  ;;  %v18207_v63 = vsel %vm8107_vm7, %v24774_v60, %v24747_v6 }
 0x5e3   : > { %20180 = vmatpush1.msk.msra.mxu1 %vm10202_vm9, %v24686_v41  ;;  %17356 = vmatprep.mubr.f32.mxu1 %v24784_v24  ;;  %v24927_v41 = vsel %vm9120_vm8, %v24732_v48, %v24772_v15 }
 0x5e4   : > { %20178 = vmatmul.mubr.msk.f32.vlgmr.msra.gmra.mrb[66].mxu0 %vm10198_vm10, %v20146_v0  ;;  %20189 = vmatprep.subr.msk.mxu1 %vm10202_vm9, %v24792_v21  ;;  %v24812_v33 = vpop.permute.xlu1 %18597 }
 0x5e5   : > { %20183 = vmatpush1.msk.msra.mxu0 %vm10202_vm9, %v24693_v19  ;;  %17427 = vmatprep.mubr.f32.mxu0 %v24784_v24  ;;  %v17537_v13 = vpop.permute.xlu0 %17536  ;;  %v24938_v19 = vsel %vm9120_vm8, %v24754_v27, %v24812_v33 }
 0x5e6   : > { %20192 = vmatprep.subr.msk.mxu0 %vm10202_vm9, %v24804_v52  ;;  %20181 = vmatmul.mubr.msk.f32.vlgmr.msra.gmra.mrb[66].mxu1 %vm10198_vm10, %v20146_v0  ;;  %v17547_v1 = vsel %vm8107_vm7, %v17537_v13, %v20975_v40  ;;  %v17546_v28 = vsel %vm8107_vm7, %v24518_v57, %v17537_v13 }
 0x5e7   : > { %20190 = vmatpush1.msk.msra.mxu1 %vm10202_vm9, %v24817_v58  ;;  %17631 = vmatprep.mubr.f32.mxu1 %v24784_v24 }
 0x5e8   : > { %20184 = vmatmul.mubr.msk.f32.vlgmr.msra.gmra.mrb[68].mxu0 %vm10198_vm10, %v20146_v0  ;;  %20195 = vmatprep.subr.msk.mxu1 %vm10202_vm9, %v17545_v16 }
 0x5e9   : > { %20193 = vmatpush1.msk.msra.mxu0 %vm10202_vm9, %v24832_v62  ;;  %17702 = vmatprep.mubr.f32.mxu0 %v24784_v24 }
 0x5ea   : > { %20191 = vmatmul.mubr.msk.f32.vlgmr.msra.gmra.mrb[68].mxu1 %vm10198_vm10, %v20188_v9  ;;  %20198 = vmatprep.subr.msk.mxu0 %vm10202_vm9, %v17547_v1 }
 0x5eb   : > { %20196 = vmatpush1.msk.msra.mxu1 %vm10202_vm9, %v24842_v5  ;;  %17773 = vmatprep.mubr.f32.mxu1 %v24784_v24  ;;  %v17878_v49 = vpop.permute.xlu1 %17877 }
 0x5ec   : > { %20194 = vmatmul.mubr.msk.f32.vlgmr.msra.gmra.mrb[70].mxu0 %vm10198_vm10, %v20188_v9  ;;  %20202 = vmatprep.subr.msk.mxu1 %vm10202_vm9, %v17886_v18  ;;  %v17874_v57 = vpop.permute.xlu0 %17873  ;;  %v17890_v37 = vsel %vm8107_vm7, %v17878_v49, %v20976_v32  ;;  %v17889_v26 = vsel %vm8107_vm7, %v24704_v42, %v17878_v49 }
 0x5ed   : > { %20199 = vmatpush1.msk.msra.mxu0 %vm10202_vm9, %v17546_v28  ;;  %17844 = vmatprep.mubr.f32.mxu0 %v24784_v24  ;;  %v17888_v45 = vsel %vm8107_vm7, %v17874_v57, %v24704_v42  ;;  %v17887_v30 = vsel %vm8107_vm7, %v24668_v17, %v17874_v57  ;;  %v11161_v57 = vld [vmem:[%s25167_s3] ss:$8 sm:$0xf] }
 0x5ee   : > { %20197 = vmatmul.mubr.msk.f32.vlgmr.msra.gmra.mrb[70].mxu1 %vm10198_vm10, %v20188_v9  ;;  %20205 = vmatprep.subr.msk.mxu0 %vm10202_vm9, %v17888_v45  ;;  %v11163_v45 = vor.u32 %v11162_v38, %v11161_v57 }
 0x5ef   : > { %20203 = vmatpush1.msk.msra.mxu1 %vm10202_vm9, %v17885_v56  ;;  %17976 = vmatprep.mubr.f32.mxu1 %v24784_v24 }
 0x5f0   : > { %20200 = vmatmul.mubr.msk.f32.vlgmr.msra.gmra.mrb[72].mxu0 %vm10198_vm10, %v20188_v9  ;;  %20208 = vmatprep.subr.msk.mxu1 %vm10202_vm9, %v17890_v37  ;;  %v24877_v29 = vpop.permute.xlu1 %18936  ;;  %v20228_v9 = vld [vmem:[%s25172_s8 + $0x20] sm:$0xf] }
 0x5f1   : > { %20206 = vmatpush1.msk.msra.mxu0 %vm10202_vm9, %v17887_v30  ;;  %18047 = vmatprep.mubr.f32.mxu0 %v24784_v24  ;;  %v24881_v7 = vpop.permute.xlu0 %18589  ;;  %v19982_v37 = vld [vmem:[%s25167_s3 + $0x1] ss:$8 sm:$0xf] }
 0x5f2   : > { %20204 = vmatmul.mubr.msk.f32.vlgmr.msra.gmra.mrb[68].mxu1 %vm10198_vm10, %v20201_v4  ;;  %20211 = vmatprep.subr.msk.mxu0 %vm10202_vm9, %v17892_v8  ;;  %v24946_v39 = vsel %vm9120_vm8, %v24881_v7, %v24732_v48  ;;  %v25219_v30 = vld [vmem:[#allocation4_spill] sm:$0xff] }
 0x5f3   : > { %20209 = vmatpush1.msk.msra.mxu1 %vm10202_vm9, %v17889_v26  ;;  %18118 = vmatprep.mubr.f32.mxu1 %v24784_v24  ;;  %v25221_v26 = vld [vmem:[#allocation5_spill] sm:$0xff] }
 0x5f4   : > { %20207 = vmatmul.mubr.msk.f32.vlgmr.msra.gmra.mrb[70].mxu0 %vm10198_vm10, %v20201_v4  ;;  %20214 = vmatprep.subr.msk.mxu1 %vm10202_vm9, %v18206_v22  ;;  %v18935_v35 = vpop.permute.xlu1 %18934  ;;  %v11176_v22 = vrot.slane %v11163_v45, %v25221_v26 }
 0x5f5   : > { %20212 = vmatpush1.msk.msra.mxu0 %vm10202_vm9, %v17891_v53  ;;  %18189 = vmatprep.mubr.f32.mxu0 %v24784_v24  ;;  %v18602_v17 = vpop.permute.xlu0 %18601  ;;  %v18952_v20 = vsel %vm9120_vm8, %v18935_v35, %v24877_v29 }
 0x5f6   : > { %20217 = vmatprep.subr.msk.mxu0 %vm10202_vm9, %v24792_v21  ;;  %20210 = vmatmul.mubr.msk.f32.vlgmr.msra.gmra.mrb[70].mxu1 %vm10198_vm10, %v20201_v4 }
 0x5f7   : > { %20215 = vmatpush1.msk.msra.mxu1 %vm10202_vm9, %v18205_v25  ;;  %18281 = vmatprep.mubr.f32.mxu1 %v24784_v24 }
 0x5f8   : > { %20213 = vmatmul.mubr.msk.f32.vlgmr.msra.gmra.mrb[72].mxu0 %vm10198_vm10, %v20201_v4  ;;  %20220 = vmatprep.subr.msk.mxu1 %vm10202_vm9, %v24804_v52  ;;  %v24914_v43 = vpop.permute.xlu1 %18599  ;;  %v11168_v4 = vrot.slane %v11163_v45, %v25219_v30 }
 0x5f9   : > { %20218 = vmatpush1.msk.msra.mxu0 %vm10202_vm9, %v24817_v58  ;;  %18352 = vmatprep.mubr.f32.mxu0 %v24784_v24  ;;  %v18606_v12 = vpop.permute.xlu0 %18605  ;;  %v18612_v10 = vsel %vm9120_vm8, %v24914_v43, %v18602_v17  ;;  %v24973_v23 = vsel %vm9120_vm8, %v24812_v33, %v24914_v43 }
 0x5fa   : > { %20223 = vmatprep.subr.msk.mxu0 %vm10202_vm9, %v18207_v63  ;;  %20216 = vmatmul.mubr.msk.f32.vlgmr.msra.gmra.mrb[68].mxu1 %vm10198_vm10, %v20187_v36 }
 0x5fb   : > { %20221 = vmatpush1.msk.msra.mxu1 %vm10202_vm9, %v24832_v62  ;;  %18423 = vmatprep.mubr.f32.mxu1 %v24784_v24 }
 0x5fc   : > { %20219 = vmatmul.mubr.msk.f32.vlgmr.msra.gmra.mrb[70].mxu0 %vm10198_vm10, %v20187_v36  ;;  %20230 = vmatprep.subr.msk.mxu1 %vm10202_vm9, %v24927_v41 }
 0x5fd   : > { %20224 = vmatpush1.msk.msra.mxu0 %vm10202_vm9, %v24842_v5  ;;  %18494 = vmatprep.mubr.f32.mxu0 %v24784_v24  ;;  %v18604_v46 = vpop.permute.xlu1 %18603  ;;  %v18939_v42 = vpop.permute.xlu0 %18938 }
 0x5fe   : > { %20233 = vmatprep.subr.msk.mxu0 %vm10202_vm9, %v24938_v19  ;;  %20222 = vmatmul.mubr.msk.f32.vlgmr.msra.gmra.mrb[70].mxu1 %vm10198_vm10, %v20187_v36  ;;  %v18614_v34 = vsel %vm9120_vm8, %v18604_v46, %v18606_v12  ;;  %v18953_v3 = vsel %vm9120_vm8, %v24877_v29, %v18939_v42  ;;  %v18613_v48 = vsel %vm9120_vm8, %v18602_v17, %v18604_v46  ;;  %v25222_v17 = vld [vmem:[#allocation8_spill] sm:$0xff] }
 0x5ff   : > { %20231 = vmatpush1.msk.msra.mxu1 %vm10202_vm9, %v24946_v39  ;;  %18698 = vmatprep.mubr.f32.mxu1 %v24784_v24  ;;  %v11184_v25 = vrot.slane %v11163_v45, %v25222_v17 }
 0x600   : > { %20225 = vmatmul.mubr.msk.f32.vlgmr.msra.gmra.mrb[72].mxu0 %vm10198_vm10, %v20187_v36  ;;  %20236 = vmatprep.subr.msk.mxu1 %vm10202_vm9, %v18612_v10  ;;  %v25223_v36 = vld [vmem:[#allocation7_spill] sm:$0xff] }
 0x601   : > { %20234 = vmatpush1.msk.msra.mxu0 %vm10202_vm9, %v24963_v47  ;;  %18769 = vmatprep.mubr.f32.mxu0 %v24784_v24 }
 0x602   : > { %20239 = vmatprep.subr.msk.mxu0 %vm10202_vm9, %v18614_v34  ;;  %v18941_v11 = vpop.permute.xlu1 %18940  ;;  %20232 = vmatmul.mubr.msk.f32.vlgmr.msra.gmra.mrb[72].mxu1 %vm10198_vm10, %v20229_v50 }
 0x603   : > { %v18943_v54 = vpop.permute.xlu0 %18942  ;;  %20237 = vmatpush1.msk.msra.mxu1 %vm10202_vm9, %v24973_v23  ;;  %18840 = vmatprep.mubr.f32.mxu1 %v24784_v24  ;;  %v18954_v55 = vsel %vm9120_vm8, %v18939_v42, %v18941_v11 }
 0x604   : > { %v18955_v14 = vsel %vm9120_vm8, %v18941_v11, %v18943_v54  ;;  %20235 = vmatmul.mubr.msk.f32.vlgmr.msra.gmra.mrb[74].mxu0 %vm10198_vm10, %v20229_v50  ;;  %20243 = vmatprep.subr.msk.mxu1 %vm10202_vm9, %v18953_v3  ;;  %v25225_v11 = vld [vmem:[#allocation9_spill] sm:$0xff] }
 0x605   : > { %20240 = vmatpush1.msk.msra.mxu0 %vm10202_vm9, %v18613_v48  ;;  %18911 = vmatprep.mubr.f32.mxu0 %v24784_v24  ;;  %v11192_v3 = vrot.slane %v11163_v45, %v25225_v11 }
 0x606   : > { %20246 = vmatprep.subr.msk.mxu0 %vm10202_vm9, %v18955_v14  ;;  %20238 = vmatmul.mubr.msk.f32.vlgmr.msra.gmra.mrb[74].mxu1 %vm10198_vm10, %v20229_v50 }
 0x607   : > { %20244 = vmatpush1.msk.msra.mxu1 %vm10202_vm9, %v18952_v20  ;;  %19043 = vmatprep.mubr.f32.mxu1 %v24784_v24 }
 0x608   : > { %20241 = vmatmul.mubr.msk.f32.vlgmr.msra.gmra.mrb[76].mxu0 %vm10198_vm10, %v20229_v50 }
 0x609   : > { %v20984_v6 = vpop.permute.xlu1 %20983  ;;  %20247 = vmatpush1.msk.msra.mxu0 %vm10202_vm9, %v18954_v55  ;;  %19114 = vmatprep.mubr.f32.mxu0 %v24784_v24 }
 0x60a   : > { %v20985_v44 = vunpack.i.l.bf16 %v20984_v6  ;;  %v18945_v27 = vpop.permute.xlu0 %18944  ;;  %20245 = vmatmul.mubr.msk.f32.vlgmr.msra.gmra.mrb[72].mxu1 %vm10198_vm10, %v20242_v61  ;;  %v20986_v2 = vunpack.i.h.bf16 %v20984_v6 }
 0x60b   : > { %19185 = vmatprep.mubr.f32.mxu1 %v24784_v24  ;;  %v18956_v0 = vsel %vm9120_vm8, %v18943_v54, %v18945_v27  ;;  %v25226_v54 = vld [vmem:[#allocation11_spill] sm:$0xff] }
 0x60c   : > { %v18957_v59 = vsel %vm9120_vm8, %v18945_v27, %v20985_v44  ;;  %20248 = vmatmul.mubr.msk.f32.vlgmr.msra.gmra.mrb[74].mxu0 %vm10198_vm10, %v20242_v61  ;;  %v11196_v48 = vrot.slane %v11163_v45, %v25226_v54 }
 0x60d   : > { %20249 = vmatprep.subr.msk.mxu1 %vm10202_vm9, %v18957_v59  ;;  %19256 = vmatprep.mubr.f32.mxu0 %v24784_v24  ;;  %v10935_v15 = vpop.f32.mrb[40].mxu1 }
 0x60e   : > { %20250 = vmatpush1.msk.msra.mxu1 %vm10202_vm9, %v18956_v0  ;;  %v10937_v60 = vpop.f32.mrb[41].mxu1  ;;  %v11205_v35 = vmul.f32 %v11168_v4, %v10935_v15 }
 0x60f   : > { %v19269_v51 = vpop.permute.xlu1 %19268  ;;  %v18949_v21 = vpop.permute.xlu0 %18948  ;;  %20251 = vmatmul.mubr.msk.f32.vlgmr.msra.gmra.mrb[74].mxu1 %vm10198_vm10, %v20242_v61 }
 0x610   : > { %v19273_v40 = vsel %vm9120_vm8, %v19269_v51, %v24881_v7  ;;  %v18958_v52 = vsel %vm9120_vm8, %v20985_v44, %v18949_v21  ;;  %v18959_v16 = vsel %vm9120_vm8, %v18949_v21, %v20986_v2  ;;  %19348 = vmatprep.mubr.f32.mxu1 %v24784_v24  ;;  %v25220_v7 = vld [vmem:[#allocation6_spill] sm:$0xff] }
 0x611   : > { %20252 = vmatprep.subr.msk.mxu0 %vm10202_vm9, %v18959_v16  ;;  %20255 = vmatprep.subr.msk.mxu1 %vm10202_vm9, %v19273_v40  ;;  %v11172_v8 = vrot.slane %v11163_v45, %v25220_v7 }
 0x612   : > { %20253 = vmatpush1.msk.msra.mxu0 %vm10202_vm9, %v18958_v52 }
 0x613   : > { %20254 = vmatmul.mubr.msk.f32.vlgmr.msra.gmra.mrb[76].mxu0 %vm10198_vm10, %v20242_v61  ;;  %20258 = vmatprep.subr.msk.mxu0 %vm10202_vm9, %v24927_v41  ;;  %v11006_v33 = vpop.f32.mrb[42].mxu0  ;;  %v11077_v13 = vpop.f32.mrb[42].mxu1  ;;  %v11206_v41 = vmul.f32 %v11172_v8, %v10937_v60 }
 0x614   : > { %v19271_v58 = vpop.permute.xlu1 %19270  ;;  %v19267_v1 = vpop.permute.xlu0 %19266  ;;  %20259 = vmatpush1.msk.msra.mxu0 %vm10202_vm9, %v24946_v39  ;;  %19419 = vmatprep.mubr.f32.mxu0 %v24784_v24  ;;  %v25224_v39 = vld [vmem:[#allocation10_spill] sm:$0xff]  ;;  %v11207_v6 = vmul.f32 %v11176_v22, %v11006_v33  ;;  %v11209_v44 = vmul.f32 %v11184_v25, %v11077_v13 }
 0x615   : > { %v19274_v62 = vsel %vm9120_vm8, %v24914_v43, %v19271_v58  ;;  %v19272_v5 = vsel %vm9120_vm8, %v19267_v1, %v19269_v51  ;;  %v11008_v28 = vpop.f32.mrb[43].mxu0  ;;  %v11079_v32 = vpop.f32.mrb[43].mxu1  ;;  %v11180_v43 = vrot.slane %v11163_v45, %v25223_v36  ;;  %v11188_v34 = vrot.slane %v11163_v45, %v25224_v39 }
 0x616   : > { %20256 = vmatpush1.msk.msra.mxu1 %vm10202_vm9, %v19272_v5  ;;  %20264 = vmatprep.subr.msk.mxu0 %vm10202_vm9, %v19274_v62 }
 0x617   : > { %20261 = vmatprep.subr.msk.mxu1 %vm10202_vm9, %v24938_v19  ;;  %20257 = vmatmul.mubr.msk.f32.vlgmr.msra.gmra.mrb[72].mxu1 %vm10198_vm10, %v20228_v9  ;;  %v11148_v18 = vpop.f32.mrb[44].mxu0  ;;  %v11208_v15 = vmul.f32 %v11180_v43, %v11008_v28  ;;  %v11210_v60 = vmul.f32 %v11188_v34, %v11079_v32  ;;  %v20024_v28 = vld [vmem:[%s25167_s3 + $0x2] ss:$8 sm:$0xf0] }
 0x618   : > { %20260 = vmatmul.mubr.msk.f32.vlgmr.msra.gmra.mrb[74].mxu0 %vm10198_vm10, %v20228_v9  ;;  %20262 = vmatpush1.msk.msra.mxu1 %vm10202_vm9, %v24963_v47  ;;  %v11150_v49 = vpop.f32.mrb[45].mxu0 }
 0x619   : > { %20265 = vmatpush1.msk.msra.mxu0 %vm10202_vm9, %v24973_v23  ;;  %19490 = vmatprep.mubr.f32.mxu1 %v24784_v24  ;;  %v11212_v57 = vmul.f32 %v11196_v48, %v11150_v49 }
 0x61a   : > { %19561 = vmatprep.mubr.f32.mxu0 %v24784_v24  ;;  %v19983_v24 = vld [vmem:[%s25167_s3 + $0x1] ss:$8 sm:$0xf0] }
 0x61b   : > { %20263 = vmatmul.mubr.msk.f32.vlgmr.msra.gmra.mrb[74].mxu1 %vm10198_vm10, %v20228_v9  ;;  %v12230_v56 = vor.u32 %v19983_v24, %v19982_v37  ;;  %v20023_v37 = vld [vmem:[%s25167_s3 + $0x2] ss:$8 sm:$0xf] }
 0x61c   : > { %20266 = vmatmul.mubr.msk.f32.vlgmr.msra.gmra.mrb[76].mxu0 %vm10198_vm10, %v20228_v9  ;;  %v11211_v9 = vmul.f32 %v11192_v3, %v11148_v18  ;;  %v13297_v32 = vor.u32 %v20024_v28, %v20023_v37 }
 0x61d   : > { %v12235_v29 = vrot.slane %v12230_v56, %v25219_v30  ;;  %v12239_v31 = vrot.slane %v12230_v56, %v25220_v7  ;;  %v12243_v46 = vrot.slane %v12230_v56, %v25221_v26  ;;  %v12251_v42 = vrot.slane %v12230_v56, %v25222_v17 }
 0x61e   : > { %v12247_v50 = vrot.slane %v12230_v56, %v25223_v36  ;;  %v12255_v47 = vrot.slane %v12230_v56, %v25224_v39  ;;  %v12259_v61 = vrot.slane %v12230_v56, %v25225_v11  ;;  %v12263_v55 = vrot.slane %v12230_v56, %v25226_v54 }
 0x61f   : > { %v13302_v24 = vrot.slane %v13297_v32, %v25219_v30  ;;  %v13306_v45 = vrot.slane %v13297_v32, %v25220_v7  ;;  %v13318_v8 = vrot.slane %v13297_v32, %v25222_v17  ;;  %v13314_v22 = vrot.slane %v13297_v32, %v25223_v36 }
 0x62c   : > { %v12002_v53 = vpop.f32.mrb[44].mxu1 }
 0x62d   : > { %v12272_v63 = vmul.f32 %v12235_v29, %v12002_v53  ;;  %v12004_v12 = vpop.f32.mrb[45].mxu1  ;;  %v13310_v29 = vrot.slane %v13297_v32, %v25221_v26  ;;  %v13322_v53 = vrot.slane %v13297_v32, %v25224_v39 }
 0x62e   : > { %v12273_v19 = vmul.f32 %v12239_v31, %v12004_v12 }
 0x62f   : > { %v12280_v10 = vadd.f32 %v12272_v63, %v11205_v35 }
 0x630   : > { %v12281_v23 = vadd.f32 %v12273_v19, %v11206_v41 }
 0x631   : > { %v12073_v14 = vpop.f32.mrb[46].mxu0  ;;  %v12144_v20 = vpop.f32.mrb[46].mxu1 }
 0x632   : > { %v12274_v27 = vmul.f32 %v12243_v46, %v12073_v14  ;;  %v12276_v2 = vmul.f32 %v12251_v42, %v12144_v20  ;;  %v12075_v59 = vpop.f32.mrb[47].mxu0  ;;  %v12146_v0 = vpop.f32.mrb[47].mxu1  ;;  %v13326_v46 = vrot.slane %v13297_v32, %v25225_v11 }
 0x633   : > { %v12275_v51 = vmul.f32 %v12247_v50, %v12075_v59  ;;  %v12277_v21 = vmul.f32 %v12255_v47, %v12146_v0  ;;  %v13330_v50 = vrot.slane %v13297_v32, %v25226_v54 }
 0x634   : > { %v12282_v40 = vadd.f32 %v12274_v27, %v11207_v6  ;;  %v12284_v52 = vadd.f32 %v12276_v2, %v11209_v44  ;;  %v20064_v44 = vld [vmem:[%s25167_s3 + $0x3] ss:$8 sm:$0xf] }
 0x635   : > { %v12283_v16 = vadd.f32 %v12275_v51, %v11208_v15  ;;  %v12285_v58 = vadd.f32 %v12277_v21, %v11210_v60  ;;  %v12215_v1 = vpop.f32.mrb[48].mxu0  ;;  %v20065_v27 = vld [vmem:[%s25167_s3 + $0x3] ss:$8 sm:$0xf0] }
 0x636   : > { %v12278_v62 = vmul.f32 %v12259_v61, %v12215_v1  ;;  %v12217_v5 = vpop.f32.mrb[49].mxu0  ;;  %v14364_v2 = vor.u32 %v20065_v27, %v20064_v44 }
 0x637   : > { %v12279_v38 = vmul.f32 %v12263_v55, %v12217_v5 }
 0x638   : > { %v12286_v33 = vadd.f32 %v12278_v62, %v11211_v9  ;;  %v14369_v59 = vrot.slane %v14364_v2, %v25219_v30  ;;  %v14373_v0 = vrot.slane %v14364_v2, %v25220_v7  ;;  %v14393_v32 = vrot.slane %v14364_v2, %v25225_v11 }
 0x639   : > { %v12287_v13 = vadd.f32 %v12279_v38, %v11212_v57 }
 0x64a   : > { %v13069_v18 = vpop.f32.mrb[48].mxu1 }
 0x64b   : > { %v13339_v56 = vmul.f32 %v13302_v24, %v13069_v18  ;;  %v13071_v4 = vpop.f32.mrb[49].mxu1  ;;  %v14397_v24 = vrot.slane %v14364_v2, %v25226_v54 }
 0x64c   : > { %v13340_v49 = vmul.f32 %v13306_v45, %v13071_v4 }
 0x64d   : > { %v13347_v31 = vadd.f32 %v13339_v56, %v12280_v10 }
 0x64e   : > { %v13348_v35 = vadd.f32 %v13340_v49, %v12281_v23 }
 0x64f   : > { %v13140_v25 = vpop.f32.mrb[50].mxu0  ;;  %v13211_v43 = vpop.f32.mrb[50].mxu1 }
 0x650   : > { %v13341_v63 = vmul.f32 %v13310_v29, %v13140_v25  ;;  %v13343_v12 = vmul.f32 %v13318_v8, %v13211_v43  ;;  %v13142_v41 = vpop.f32.mrb[51].mxu0  ;;  %v13213_v19 = vpop.f32.mrb[51].mxu1 }
 0x651   : > { %v13342_v42 = vmul.f32 %v13314_v22, %v13142_v41  ;;  %v13344_v34 = vmul.f32 %v13322_v53, %v13213_v19 }
 0x652   : > { %v13349_v47 = vadd.f32 %v13341_v63, %v12282_v40  ;;  %v13351_v3 = vadd.f32 %v13343_v12, %v12284_v52  ;;  %v14377_v40 = vrot.slane %v14364_v2, %v25221_v26  ;;  %v14385_v52 = vrot.slane %v14364_v2, %v25222_v17 }
 0x653   : > { %v13350_v10 = vadd.f32 %v13342_v42, %v12283_v16  ;;  %v13352_v48 = vadd.f32 %v13344_v34, %v12285_v58  ;;  %v13282_v14 = vpop.f32.mrb[52].mxu0  ;;  %v14381_v16 = vrot.slane %v14364_v2, %v25223_v36  ;;  %v14389_v58 = vrot.slane %v14364_v2, %v25224_v39 }
 0x654   : > { %v13345_v20 = vmul.f32 %v13326_v46, %v13282_v14  ;;  %v13284_v61 = vpop.f32.mrb[53].mxu0 }
 0x655   : > { %v13346_v23 = vmul.f32 %v13330_v50, %v13284_v61  ;;  %v20145_v61 = vld [vmem:[%s25167_s3 + $0x5] ss:$8 sm:$0xf0] }
 0x656   : > { %v13353_v55 = vadd.f32 %v13345_v20, %v12286_v33  ;;  %v20144_v20 = vld [vmem:[%s25167_s3 + $0x5] ss:$8 sm:$0xf] }
 0x657   : > { %v13354_v6 = vadd.f32 %v13346_v23, %v12287_v13  ;;  %v16377_v23 = vor.u32 %v20145_v61, %v20144_v20 }
 0x659   : > { %v16390_v27 = vrot.slane %v16377_v23, %v25221_v26 }
 0x668   : > { %v14136_v15 = vpop.f32.mrb[52].mxu1 }
 0x669   : > { %v14406_v60 = vmul.f32 %v14369_v59, %v14136_v15  ;;  %v14138_v51 = vpop.f32.mrb[53].mxu1  ;;  %v16394_v15 = vrot.slane %v16377_v23, %v25223_v36 }
 0x66a   : > { %v14407_v21 = vmul.f32 %v14373_v0, %v14138_v51  ;;  %v16398_v0 = vrot.slane %v16377_v23, %v25222_v17  ;;  %v16402_v51 = vrot.slane %v16377_v23, %v25224_v39 }
 0x66b   : > { %v14414_v1 = vadd.f32 %v14406_v60, %v13347_v31 }
 0x66c   : > { %v14415_v9 = vadd.f32 %v14407_v21, %v13348_v35 }
 0x66d   : > { %v14207_v62 = vpop.f32.mrb[54].mxu0  ;;  %v14278_v5 = vpop.f32.mrb[54].mxu1 }
 0x66e   : > { %v14408_v57 = vmul.f32 %v14377_v40, %v14207_v62  ;;  %v14410_v38 = vmul.f32 %v14385_v52, %v14278_v5  ;;  %v14209_v33 = vpop.f32.mrb[55].mxu0  ;;  %v14280_v13 = vpop.f32.mrb[55].mxu1 }
 0x66f   : > { %v14409_v37 = vmul.f32 %v14381_v16, %v14209_v33  ;;  %v14411_v28 = vmul.f32 %v14389_v58, %v14280_v13 }
 0x670   : > { %v14416_v45 = vadd.f32 %v14408_v57, %v13349_v47  ;;  %v14418_v18 = vadd.f32 %v14410_v38, %v13351_v3  ;;  %v16410_v38 = vrot.slane %v16377_v23, %v25226_v54 }
 0x671   : > { %v14417_v56 = vadd.f32 %v14409_v37, %v13350_v10  ;;  %v14419_v4 = vadd.f32 %v14411_v28, %v13352_v48 }
 0x672   : > { %v14349_v49 = vpop.f32.mrb[56].mxu0 }
 0x673   : > { %v14412_v29 = vmul.f32 %v14393_v32, %v14349_v49  ;;  %v14351_v8 = vpop.f32.mrb[57].mxu0 }
 0x674   : > { %v14413_v31 = vmul.f32 %v14397_v24, %v14351_v8  ;;  %v20186_v8 = vld [vmem:[%s25167_s3 + $0x6] ss:$8 sm:$0xf0] }
 0x675   : > { %v14420_v22 = vadd.f32 %v14412_v29, %v13353_v55  ;;  %v16382_v55 = vrot.slane %v16377_v23, %v25219_v30  ;;  %v20185_v29 = vld [vmem:[%s25167_s3 + $0x6] ss:$8 sm:$0xf] }
 0x676   : > { %v14421_v53 = vadd.f32 %v14413_v31, %v13354_v6  ;;  %v16386_v6 = vrot.slane %v16377_v23, %v25220_v7  ;;  %v17444_v31 = vor.u32 %v20186_v8, %v20185_v29 }
 0x678   : > { %v17477_v20 = vrot.slane %v17444_v31, %v25226_v54 }
 0x684   : > { %v15134_v35 = vpop.f32.mrb[56].mxu1 }
 0x685   : > { %v15360_v25 = vadd.f32 %v15134_v35, %v14414_v1  ;;  %v15136_v43 = vpop.f32.mrb[57].mxu1  ;;  %v17457_v35 = vrot.slane %v17444_v31, %v25221_v26 }
 0x686   : > { %v15361_v63 = vadd.f32 %v15136_v43, %v14415_v9  ;;  %v16406_v9 = vrot.slane %v16377_v23, %v25225_v11  ;;  %v17461_v43 = vrot.slane %v17444_v31, %v25223_v36 }
 0x687   : > { %v15205_v12 = vpop.f32.mrb[58].mxu0 }
 0x688   : > { %v15362_v41 = vadd.f32 %v15205_v12, %v14416_v45  ;;  %v15276_v19 = vpop.f32.mrb[58].mxu1  ;;  %v15207_v46 = vpop.f32.mrb[59].mxu0 }
 0x689   : > { %v15364_v42 = vadd.f32 %v15276_v19, %v14418_v18  ;;  %v15363_v34 = vadd.f32 %v15207_v46, %v14417_v56  ;;  %v15278_v50 = vpop.f32.mrb[59].mxu1 }
 0x68a   : > { %v15365_v47 = vadd.f32 %v15278_v50, %v14419_v4 }
 0x68b   : > { %v15347_v3 = vpop.f32.mrb[60].mxu0 }
 0x68c   : > { %v15366_v10 = vadd.f32 %v15347_v3, %v14420_v22  ;;  %v15349_v48 = vpop.f32.mrb[61].mxu0  ;;  %v17449_v22 = vrot.slane %v17444_v31, %v25219_v30  ;;  %v17473_v3 = vrot.slane %v17444_v31, %v25225_v11 }
 0x68d   : > { %v15367_v14 = vadd.f32 %v15349_v48, %v14421_v53  ;;  %v17453_v53 = vrot.slane %v17444_v31, %v25220_v7 }
 0x69c   : > { %v16149_v44 = vpop.f32.mrb[60].mxu1 }
 0x69d   : > { %v16419_v2 = vmul.f32 %v16382_v55, %v16149_v44  ;;  %v16151_v59 = vpop.f32.mrb[61].mxu1 }
 0x69e   : > { %v16420_v60 = vmul.f32 %v16386_v6, %v16151_v59 }
 0x69f   : > { %v16427_v21 = vadd.f32 %v16419_v2, %v15360_v25  ;;  %v16220_v40 = vpop.f32.mrb[62].mxu0 }
 0x6a0   : > { %v16428_v52 = vadd.f32 %v16420_v60, %v15361_v63  ;;  %v16421_v16 = vmul.f32 %v16390_v27, %v16220_v40  ;;  %v16291_v58 = vpop.f32.mrb[62].mxu1  ;;  %v16222_v1 = vpop.f32.mrb[63].mxu0  ;;  %v20226_v40 = vld [vmem:[%s25167_s3 + $0x7] ss:$8 sm:$0xf] }
 0x6a1   : > { %v16423_v62 = vmul.f32 %v16398_v0, %v16291_v58  ;;  %v16422_v5 = vmul.f32 %v16394_v15, %v16222_v1  ;;  %v16293_v57 = vpop.f32.mrb[63].mxu1 }
 0x6a2   : > { %v16429_v33 = vadd.f32 %v16421_v16, %v15362_v41  ;;  %v16424_v13 = vmul.f32 %v16402_v51, %v16293_v57  ;;  %v17465_v41 = vrot.slane %v17444_v31, %v25222_v17 }
 0x6a3   : > { %v16431_v37 = vadd.f32 %v16423_v62, %v15364_v42  ;;  %v16430_v28 = vadd.f32 %v16422_v5, %v15363_v34  ;;  %v16362_v32 = vpop.f32.mrb[64].mxu0  ;;  %v17469_v42 = vrot.slane %v17444_v31, %v25224_v39 }
 0x6a4   : > { %v16432_v24 = vadd.f32 %v16424_v13, %v15365_v47  ;;  %v16425_v45 = vmul.f32 %v16406_v9, %v16362_v32  ;;  %v16364_v18 = vpop.f32.mrb[65].mxu0 }
 0x6a5   : > { %v16426_v56 = vmul.f32 %v16410_v38, %v16364_v18 }
 0x6a6   : > { %v16433_v4 = vadd.f32 %v16425_v45, %v15366_v10 }
 0x6a7   : > { %v16434_v49 = vadd.f32 %v16426_v56, %v15367_v14 }
 0x6b5   : > { %v17216_v25 = vpop.f32.mrb[64].mxu1 }
 0x6b6   : > { %v17486_v63 = vmul.f32 %v17449_v22, %v17216_v25  ;;  %v17218_v12 = vpop.f32.mrb[65].mxu1 }
 0x6b7   : > { %v17287_v19 = vpop.f32.mrb[66].mxu0  ;;  %v17487_v46 = vmul.f32 %v17453_v53, %v17218_v12 }
 0x6b8   : > { %v17494_v34 = vadd.f32 %v17486_v63, %v16427_v21  ;;  %v17488_v50 = vmul.f32 %v17457_v35, %v17287_v19  ;;  %v17289_v47 = vpop.f32.mrb[67].mxu0 }
 0x6b9   : > { %v17495_v10 = vadd.f32 %v17487_v46, %v16428_v52  ;;  %v17489_v48 = vmul.f32 %v17461_v43, %v17289_v47  ;;  %v17358_v14 = vpop.f32.mrb[66].mxu1  ;;  %v20227_v52 = vld [vmem:[%s25167_s3 + $0x7] ss:$8 sm:$0xf0] }
 0x6ba   : > { %v17496_v61 = vadd.f32 %v17488_v50, %v16429_v33  ;;  %v17490_v23 = vmul.f32 %v17465_v41, %v17358_v14  ;;  %v17360_v55 = vpop.f32.mrb[67].mxu1  ;;  %v18511_v16 = vor.u32 %v20227_v52, %v20226_v40  ;;  %v20268_v50 = vld [vmem:[%s25167_s3 + $0x40] ss:$8 sm:$0xf0] }
 0x6bb   : > { %v17497_v6 = vadd.f32 %v17489_v48, %v16430_v28  ;;  %v17429_v44 = vpop.f32.mrb[68].mxu0  ;;  %v17491_v27 = vmul.f32 %v17469_v42, %v17360_v55 }
 0x6bc   : > { %v17498_v2 = vadd.f32 %v17490_v23, %v16431_v37  ;;  %v17492_v59 = vmul.f32 %v17473_v3, %v17429_v44  ;;  %v17431_v0 = vpop.f32.mrb[69].mxu0  ;;  %v18516_v58 = vrot.slane %v18511_v16, %v25219_v30  ;;  %v18520_v1 = vrot.slane %v18511_v16, %v25220_v7 }
 0x6bd   : > { %v17499_v15 = vadd.f32 %v17491_v27, %v16432_v24  ;;  %v17493_v60 = vmul.f32 %v17477_v20, %v17431_v0  ;;  %v18524_v9 = vrot.slane %v18511_v16, %v25221_v26  ;;  %v18528_v5 = vrot.slane %v18511_v16, %v25223_v36 }
 0x6be   : > { %v17500_v51 = vadd.f32 %v17492_v59, %v16433_v4  ;;  %v18532_v33 = vrot.slane %v18511_v16, %v25222_v17  ;;  %v18536_v28 = vrot.slane %v18511_v16, %v25224_v39  ;;  %v18540_v18 = vrot.slane %v18511_v16, %v25225_v11 }
 0x6bf   : > { %v17501_v21 = vadd.f32 %v17493_v60, %v16434_v49  ;;  %v18544_v29 = vrot.slane %v18511_v16, %v25226_v54 }
 0x6cd   : > { %v18283_v62 = vpop.f32.mrb[68].mxu1 }
 0x6ce   : > { %v18553_v57 = vmul.f32 %v18516_v58, %v18283_v62  ;;  %v18285_v38 = vpop.f32.mrb[69].mxu1 }
 0x6cf   : > { %v18354_v13 = vpop.f32.mrb[70].mxu0  ;;  %v18554_v37 = vmul.f32 %v18520_v1, %v18285_v38 }
 0x6d0   : > { %v18561_v32 = vadd.f32 %v18553_v57, %v17494_v34  ;;  %v18555_v24 = vmul.f32 %v18524_v9, %v18354_v13  ;;  %v18356_v45 = vpop.f32.mrb[71].mxu0  ;;  %v20267_v34 = vld [vmem:[%s25167_s3 + $0x40] ss:$8 sm:$0xf] }
 0x6d1   : > { %v18562_v56 = vadd.f32 %v18554_v37, %v17495_v10  ;;  %v18556_v4 = vmul.f32 %v18528_v5, %v18356_v45  ;;  %v18425_v49 = vpop.f32.mrb[70].mxu1  ;;  %v19578_v47 = vor.u32 %v20268_v50, %v20267_v34 }
 0x6d2   : > { %v18563_v8 = vadd.f32 %v18555_v24, %v17496_v61  ;;  %v18557_v31 = vmul.f32 %v18532_v33, %v18425_v49  ;;  %v18427_v22 = vpop.f32.mrb[71].mxu1 }
 0x6d3   : > { %v18564_v53 = vadd.f32 %v18556_v4, %v17497_v6  ;;  %v18496_v35 = vpop.f32.mrb[72].mxu0  ;;  %v18558_v25 = vmul.f32 %v18536_v28, %v18427_v22  ;;  %v19583_v3 = vrot.slane %v19578_v47, %v25219_v30  ;;  %v19591_v10 = vrot.slane %v19578_v47, %v25221_v26 }
 0x6d4   : > { %v18565_v43 = vadd.f32 %v18557_v31, %v17498_v2  ;;  %v18559_v63 = vmul.f32 %v18540_v18, %v18496_v35  ;;  %v18498_v12 = vpop.f32.mrb[73].mxu0  ;;  %v19587_v48 = vrot.slane %v19578_v47, %v25220_v7  ;;  %v19595_v14 = vrot.slane %v19578_v47, %v25223_v36  ;;  %v19640_v7 = vpop.permute.xlu0 %19639 }
 0x6d5   : > { %v18566_v41 = vadd.f32 %v18558_v25, %v17499_v15  ;;  %v18560_v19 = vmul.f32 %v18544_v29, %v18498_v12  ;;  %v19599_v6 = vrot.slane %v19578_v47, %v25222_v17  ;;  %v19607_v59 = vrot.slane %v19578_v47, %v25225_v11 }
 0x6d6   : > { %v18567_v46 = vadd.f32 %v18559_v63, %v17500_v51  ;;  %v19603_v0 = vrot.slane %v19578_v47, %v25224_v39  ;;  %v19611_v26 = vrot.slane %v19578_v47, %v25226_v54 }
 0x6d7   : > { %v18568_v42 = vadd.f32 %v18560_v19, %v17501_v21 }
 0x6ea   : > { %v19350_v20 = vpop.f32.mrb[72].mxu1 }
 0x6eb   : > { %v19620_v61 = vmul.f32 %v19583_v3, %v19350_v20  ;;  %v19421_v23 = vpop.f32.mrb[74].mxu0  ;;  %v19352_v55 = vpop.f32.mrb[73].mxu1 }
 0x6ec   : > { %v19622_v44 = vmul.f32 %v19591_v10, %v19421_v23  ;;  %v19621_v27 = vmul.f32 %v19587_v48, %v19352_v55  ;;  %v19423_v2 = vpop.f32.mrb[75].mxu0 }
 0x6ed   : > { %v19628_v30 = vadd.f32 %v19620_v61, %v18561_v32  ;;  %v19623_v15 = vmul.f32 %v19595_v14, %v19423_v2 }
 0x6ee   : > { %v19630_v60 = vadd.f32 %v19622_v44, %v18563_v8  ;;  %v19629_v36 = vadd.f32 %v19621_v27, %v18562_v56  ;;  %v19492_v51 = vpop.f32.mrb[74].mxu1 }
 0x6ef   : > { %v19642_v21 = vadd.f32 %v19640_v7, %v19628_v30  ;;  %v19631_v40 = vadd.f32 %v19623_v15, %v18564_v53  ;;  %v19624_v52 = vmul.f32 %v19599_v6, %v19492_v51  ;;  %v19563_v17 = vpop.f32.mrb[76].mxu0  ;;  %v19494_v16 = vpop.f32.mrb[75].mxu1 }
 0x6f0   : > { %v19644_v58 = vadd.f32 %v19640_v7, %v19630_v60  ;;  %v19643_v1 = vadd.f32 %v19640_v7, %v19629_v36  ;;  %v19626_v9 = vmul.f32 %v19607_v59, %v19563_v17  ;;  %v19625_v11 = vmul.f32 %v19603_v0, %v19494_v16  ;;  %v19565_v62 = vpop.f32.mrb[77].mxu0 }
 0x6f1   : > { %v19650_v39 = vmax.f32 %v19642_v21, 0.0  ;;  %v19645_v5 = vadd.f32 %v19640_v7, %v19631_v40  ;;  %v19632_v57 = vadd.f32 %v19624_v52, %v18565_v43  ;;  %v19627_v38 = vmul.f32 %v19611_v26, %v19565_v62 }
 0x6f2   : > { %v19652_v54 = vmax.f32 %v19644_v58, 0.0  ;;  %v19651_v33 = vmax.f32 %v19643_v1, 0.0  ;;  %v19634_v13 = vadd.f32 %v19626_v9, %v18567_v46  ;;  %v19633_v37 = vadd.f32 %v19625_v11, %v18566_v41 }
 0x6f3   : > { %v19653_v28 = vmax.f32 %v19645_v5, 0.0  ;;  %v19646_v32 = vadd.f32 %v19640_v7, %v19632_v57  ;;  %v19635_v24 = vadd.f32 %v19627_v38, %v18568_v42 }
 0x6f4   : > { %v19666_v45 = vcombine.low %v19650_v39, %v19651_v33  ;;  %v19648_v18 = vadd.f32 %v19640_v7, %v19634_v13  ;;  %v19647_v56 = vadd.f32 %v19640_v7, %v19633_v37 }
 0x6f5   : > { %v19667_v4 = vcombine.low %v19652_v54, %v19653_v28  ;;  %v19654_v49 = vmax.f32 %v19646_v32, 0.0  ;;  %v19649_v29 = vadd.f32 %v19640_v7, %v19635_v24 }
 0x6f6   : > { %19674 = vst [vmem:[%s379_s12] sm:$0xff] %v19666_v45  ;;  %v19656_v8 = vmax.f32 %v19648_v18, 0.0  ;;  %v19655_v31 = vmax.f32 %v19647_v56, 0.0 }
 0x6f7   : > { %19675 = vst [vmem:[%s379_s12 + $0x8] sm:$0xff] %v19667_v4  ;;  %v19657_v22 = vmax.f32 %v19649_v29, 0.0 }
 0x6f8   : > { %v19668_v53 = vcombine.low %v19654_v49, %v19655_v31 }
 0x6f9   : > { %v19669_v35 = vcombine.low %v19656_v8, %v19657_v22 }
 0x6fa   : > { %19676 = vst [vmem:[%s379_s12 + $0x10] sm:$0xff] %v19668_v53 }
 0x6fb   : > { %19677 = vst [vmem:[%s379_s12 + $0x18] sm:$0xff] %v19669_v35 }
 0x6fc PF: > { %s20_s13 = sadd.s32 1, %s21025_s13  }
 0x6fd   : > { %p17_p4 = scmp.ge.s32.totalorder %s20_s13, 4  }
 0x6ff   :  { %19 = sbr.rel (!%p17_p4) target bundleno = 1 (0x1), region = 152 }

</bundles_post_ra>
